<compile_context>
chip_gen: v7x
topology: tpu7x:2x2x1
jax: 0.10.0
libtpu: 0.0.40
codegen_flags: <defaults>
</compile_context>

<pallas_src>
import functools

import jax
import jax.numpy as jnp
import numpy as np
from jax import lax
from jax.experimental import pallas as pl
from jax.experimental.pallas import tpu as pltpu

NUM_CLASSES = 10   # `self.num_classes` is undefined in the reference __init__; fixed to 10.
H = W = 32         # implied by fc1 in_features = 16*16*16 (16x16 spatial after 2x2 pool)
CIN, COUT = 3, 16
KH = KW = 3
PH, PW = H // 2, W // 2
WPAD = (W + 2) * CIN          # 102  : padded row with (W, C) merged (lane-dense input)
NCOL = W * COUT               # 512  : conv output columns, ordered [even-w | odd-w]
HALF = NCOL // 2              # 256


# ----------------------------------------------------------------------------------------
# Trace-time weight preparation (all outside the kernel; folds im2col, pool compaction and
# the PyTorch NCHW flatten permutation into the weights).
# ----------------------------------------------------------------------------------------
def build_banded_conv_weight(w_conv):
    """(COUT, CIN, KH, KW) torch weight -> (KH, 102, 512) banded matmul weight.

    wb[kh, CIN*(w+kw)+ci, col(w,co)] = w_conv[co, ci, kh, kw]
    with col(w,co) = 256*(w%2) + 16*(w//2) + co   (even-w columns first, then odd-w).
    """
    wk = jnp.transpose(w_conv, (2, 3, 1, 0)).astype(jnp.float32)   # (KH, KW, CIN, COUT)
    wb = jnp.zeros((KH, WPAD, NCOL), jnp.float32)
    w_all = jnp.arange(W)
    col_base = HALF * (w_all % 2) + COUT * (w_all // 2)            # (W,)
    cols = col_base[:, None] + jnp.arange(COUT)[None, :]           # (W, COUT)
    for kh in range(KH):
        for kw in range(KW):
            for ci in range(CIN):
                rows = CIN * (w_all + kw) + ci                     # (W,)
                vals = jnp.broadcast_to(wk[kh, kw, ci], (W, COUT))
                wb = wb.at[kh, rows[:, None], cols].set(vals)
    return wb


def build_fc_weight(w_fc):
    """(NUM_CLASSES, 16*16*16) torch weight (channel-major flatten) -> (PH, 256, NUM_CLASSES).

    wfch[h', 16*w' + co, n] = w_fc[n, co*PH*PW + h'*PW + w']
    """
    wr = w_fc.reshape(NUM_CLASSES, COUT, PH, PW).astype(jnp.float32)
    wt = jnp.transpose(wr, (2, 3, 1, 0))                           # (PH, PW, COUT, N)
    return wt.reshape(PH, PW * COUT, NUM_CLASSES)                  # row index = 16*w' + co


# ----------------------------------------------------------------------------------------
# Fused kernel: conv (3 banded matmuls) + bias + ReLU + 2x2 maxpool + flatten + FC.
# ----------------------------------------------------------------------------------------
def fused_kernel(x_ref, wband_ref, brow_ref, wfch_ref, bfc_ref, o_ref):
    # x_ref:     (TB, 34, 102)  zero-padded input rows, (W, C) merged into the lane dim
    # wband_ref: (KH, 102, 512) banded conv weights (columns ordered [even-w | odd-w])
    # brow_ref:  (1, 512)       conv bias tiled per column
    # wfch_ref:  (PH, 256, 10)  per-pooled-row FC weights (flatten permutation folded in)
    # bfc_ref:   (1, 10)
    # o_ref:     (TB, 10)
    tb = x_ref.shape[0]
    x = x_ref[...]                                                  # (TB, 34, 102)

    # Convolution: one matmul per kernel row kh, accumulated in f32.
    acc = jnp.zeros((tb * H, NCOL), jnp.float32)
    for kh in range(KH):
        rows = x[:, kh:kh + H, :].reshape(tb * H, WPAD)             # (TB*32, 102)
        acc = acc + jnp.dot(rows, wband_ref[kh],
                            preferred_element_type=jnp.float32)     # (TB*32, 512)

    acc = jnp.maximum(acc + brow_ref[...], 0.0)                     # bias + ReLU (lane dense)

    # 2x2 max pool, stride 2:
    #  - W direction: columns are [even-w | odd-w], so it is an elementwise max of the halves.
    #  - H direction: adjacent row pairs.
    wp = jnp.maximum(acc[:, :HALF], acc[:, HALF:])                  # (TB*32, 256)
    pooled = jnp.max(wp.reshape(tb * PH, 2, HALF), axis=1)          # (TB*16, 256)

    # Fully connected: contraction over (h', w', co) as PH accumulated matmuls.
    feat = pooled.reshape(tb, PH, HALF)                             # (TB, 16, 256)
    out = jnp.zeros((tb, NUM_CLASSES), jnp.float32)
    for hp in range(PH):
        out = out + jnp.dot(feat[:, hp, :], wfch_ref[hp],
                            preferred_element_type=jnp.float32)     # (TB, 10)
    o_ref[...] = out + bfc_ref[...]


# ----------------------------------------------------------------------------------------
# Wrapper
# ----------------------------------------------------------------------------------------
def simplex2nn_forward(x_nchw, w_conv, b_conv, w_fc, b_fc, *, tb=8):
    B = x_nchw.shape[0]

    # Weight prep (trace-time, tiny arrays).
    wband = build_banded_conv_weight(w_conv)                        # (3, 102, 512)
    brow = jnp.tile(b_conv.astype(jnp.float32), W).reshape(1, NCOL)  # col % 16 == co
    wfch = build_fc_weight(w_fc)                                    # (16, 256, 10)
    bfc = b_fc.astype(jnp.float32).reshape(1, NUM_CLASSES)

    # Input prep: NCHW -> NHWC, zero-pad (padding=1), merge (W, C) into a 102-wide lane dim.
    # TODO(synk): the transpose/pad could be pulled into the kernel with a manual DMA into a
    # pre-zeroed VMEM scratch to save one HBM pass over the (tiny) input.
    x_nhwc = jnp.transpose(x_nchw, (0, 2, 3, 1)).astype(jnp.float32)
    x_pad = jnp.pad(x_nhwc, ((0, 0), (1, 1), (1, 1), (0, 0)))
    x_r = x_pad.reshape(B, H + 2, WPAD)                             # (B, 34, 102)

    # Pad batch to a multiple of the per-step batch tile.
    bp = ((B + tb - 1) // tb) * tb
    if bp != B:
        x_r = jnp.pad(x_r, ((0, bp - B), (0, 0), (0, 0)))

    out = pl.pallas_call(
        fused_kernel,
        out_shape=jax.ShapeDtypeStruct((bp, NUM_CLASSES), jnp.float32),
        grid=(bp // tb,),
        in_specs=[
            pl.BlockSpec((tb, H + 2, WPAD), lambda i: (i, 0, 0)),
            pl.BlockSpec((KH, WPAD, NCOL), lambda i: (0, 0, 0)),
            pl.BlockSpec((1, NCOL), lambda i: (0, 0)),
            pl.BlockSpec((PH, HALF, NUM_CLASSES), lambda i: (0, 0, 0)),
            pl.BlockSpec((1, NUM_CLASSES), lambda i: (0, 0)),
        ],
        out_specs=pl.BlockSpec((tb, NUM_CLASSES), lambda i: (i, 0)),
        compiler_params=pltpu.CompilerParams(
            dimension_semantics=("parallel",),        # batch tiles are independent
            vmem_limit_bytes=32 * 1024 * 1024,
        ),
    )(x_r, wband, brow, wfch, bfc)
    return out[:B]


# ----------------------------------------------------------------------------------------
# Pure-JAX reference
# ----------------------------------------------------------------------------------------
def reference_forward(x, w_conv, b_conv, w_fc, b_fc):
    y = lax.conv_general_dilated(
        x, w_conv, window_strides=(1, 1), padding=((1, 1), (1, 1)),
        dimension_numbers=("NCHW", "OIHW", "NCHW"),
        precision=lax.Precision.HIGHEST)
    y = jnp.maximum(y + b_conv[None, :, None, None], 0.0)
    y = lax.reduce_window(y, -jnp.inf, lax.max,
                          window_dimensions=(1, 1, 2, 2),
                          window_strides=(1, 1, 2, 2), padding="VALID")
    flat = y.reshape(y.shape[0], -1)
    return jnp.dot(flat, w_fc.T, precision=lax.Precision.HIGHEST) + b_fc


if __name__ == "__main__":
    key = jax.random.PRNGKey(0)
    k1, k2, k3, k4, k5 = jax.random.split(key, 5)

    # Deterministic synthetic parameters (PyTorch layouts: OIHW conv, (out, in) linear).
    w_conv = jax.random.normal(k1, (COUT, CIN, KH, KW), jnp.float32) * 0.1
    b_conv = jax.random.normal(k2, (COUT,), jnp.float32) * 0.1
    w_fc = jax.random.normal(k3, (NUM_CLASSES, COUT * PH * PW), jnp.float32) * 0.02
    b_fc = jax.random.normal(k4, (NUM_CLASSES,), jnp.float32) * 0.02

    B = 12                                                     # exercises the batch-pad path
    x = jax.random.normal(k5, (B, CIN, H, W), jnp.float32)     # NCHW, like PyTorch

    fwd = jax.jit(functools.partial(simplex2nn_forward))
    out = jax.block_until_ready(fwd(x, w_conv, b_conv, w_fc, b_fc))

    ref = jax.block_until_ready(reference_forward(x, w_conv, b_conv, w_fc, b_fc))
    assert out.shape == (B, NUM_CLASSES)
    np.testing.assert_allclose(np.asarray(out), np.asarray(ref), rtol=1e-2, atol=1e-2)

    print("KERNEL_OK")
</pallas_src>

<mosaic_0001>
module attributes {stable_mosaic.version = 11 : i64} {
  func.func @fused_kernel(%arg0: i32, %arg1: memref<8x34x102xf32, #tpu.memory_space<vmem>>, %arg2: memref<3x102x512xf32, #tpu.memory_space<vmem>>, %arg3: memref<1x512xf32, #tpu.memory_space<vmem>>, %arg4: memref<16x256x10xf32, #tpu.memory_space<vmem>>, %arg5: memref<1x10xf32, #tpu.memory_space<vmem>>, %arg6: memref<8x10xf32, #tpu.memory_space<vmem>>) attributes {dimension_semantics = [#tpu.dimension_semantics<parallel>], iteration_bounds = array<i64: 2>, scalar_prefetch = 0 : i64, scratch_operands = 0 : i64, tpu.core_type = #tpu.core_type<tc>, window_params = [{transform_indices = @transform_0, window_bounds = array<i64: 8, 34, 102>}, {pipeline_mode = #tpu.pipeline_mode<synchronous>, transform_indices = @transform_1, window_bounds = array<i64: 3, 102, 512>}, {pipeline_mode = #tpu.pipeline_mode<synchronous>, transform_indices = @transform_2, window_bounds = array<i64: 1, 512>}, {pipeline_mode = #tpu.pipeline_mode<synchronous>, transform_indices = @transform_3, window_bounds = array<i64: 16, 256, 10>}, {pipeline_mode = #tpu.pipeline_mode<synchronous>, transform_indices = @transform_4, window_bounds = array<i64: 1, 10>}, {transform_indices = @transform_5, window_bounds = array<i64: 8, 10>}]} {
    %c0 = arith.constant 0 : index
    %c0_0 = arith.constant 0 : index
    %c0_1 = arith.constant 0 : index
    %0 = vector.load %arg1[%c0, %c0_0, %c0_1] : memref<8x34x102xf32, #tpu.memory_space<vmem>>, vector<8x34x102xf32>
    %cst = arith.constant 0.000000e+00 : f32
    %1 = vector.broadcast %cst : f32 to vector<256x512xf32>
    %2 = vector.extract_strided_slice %0 {offsets = [0, 0, 0], sizes = [8, 32, 102], strides = [1, 1, 1]} : vector<8x34x102xf32> to vector<8x32x102xf32>
    %3 = vector.shape_cast %2 : vector<8x32x102xf32> to vector<256x102xf32>
    %c0_2 = arith.constant 0 : index
    %c0_3 = arith.constant 0 : index
    %c0_4 = arith.constant 0 : index
    %4 = vector.load %arg2[%c0_2, %c0_3, %c0_4] : memref<3x102x512xf32, #tpu.memory_space<vmem>>, vector<1x102x512xf32>
    %5 = vector.shape_cast %4 : vector<1x102x512xf32> to vector<102x512xf32>
    %cst_5 = arith.constant dense<0.000000e+00> : vector<256x512xf32>
    %6 = tpu.matmul %3, %5, %cst_5 {dimension_numbers = #tpu.dot_dimension_numbers<[1], [0], [0], [1], [0, 0, 1, 1], [], []>} : vector<256x102xf32>, vector<102x512xf32>, vector<256x512xf32> -> vector<256x512xf32>
    %7 = arith.addf %1, %6 : vector<256x512xf32>
    %8 = vector.extract_strided_slice %0 {offsets = [0, 1, 0], sizes = [8, 32, 102], strides = [1, 1, 1]} : vector<8x34x102xf32> to vector<8x32x102xf32>
    %9 = vector.shape_cast %8 : vector<8x32x102xf32> to vector<256x102xf32>
    %c1 = arith.constant 1 : index
    %c0_6 = arith.constant 0 : index
    %c0_7 = arith.constant 0 : index
    %10 = vector.load %arg2[%c1, %c0_6, %c0_7] : memref<3x102x512xf32, #tpu.memory_space<vmem>>, vector<1x102x512xf32>
    %11 = vector.shape_cast %10 : vector<1x102x512xf32> to vector<102x512xf32>
    %cst_8 = arith.constant dense<0.000000e+00> : vector<256x512xf32>
    %12 = tpu.matmul %9, %11, %cst_8 {dimension_numbers = #tpu.dot_dimension_numbers<[1], [0], [0], [1], [0, 0, 1, 1], [], []>} : vector<256x102xf32>, vector<102x512xf32>, vector<256x512xf32> -> vector<256x512xf32>
    %13 = arith.addf %7, %12 : vector<256x512xf32>
    %14 = vector.extract_strided_slice %0 {offsets = [0, 2, 0], sizes = [8, 32, 102], strides = [1, 1, 1]} : vector<8x34x102xf32> to vector<8x32x102xf32>
    %15 = vector.shape_cast %14 : vector<8x32x102xf32> to vector<256x102xf32>
    %c2 = arith.constant 2 : index
    %c0_9 = arith.constant 0 : index
    %c0_10 = arith.constant 0 : index
    %16 = vector.load %arg2[%c2, %c0_9, %c0_10] : memref<3x102x512xf32, #tpu.memory_space<vmem>>, vector<1x102x512xf32>
    %17 = vector.shape_cast %16 : vector<1x102x512xf32> to vector<102x512xf32>
    %cst_11 = arith.constant dense<0.000000e+00> : vector<256x512xf32>
    %18 = tpu.matmul %15, %17, %cst_11 {dimension_numbers = #tpu.dot_dimension_numbers<[1], [0], [0], [1], [0, 0, 1, 1], [], []>} : vector<256x102xf32>, vector<102x512xf32>, vector<256x512xf32> -> vector<256x512xf32>
    %19 = arith.addf %13, %18 : vector<256x512xf32>
    %c0_12 = arith.constant 0 : index
    %c0_13 = arith.constant 0 : index
    %20 = vector.load %arg3[%c0_12, %c0_13] : memref<1x512xf32, #tpu.memory_space<vmem>>, vector<1x512xf32>
    %21 = vector.broadcast %20 : vector<1x512xf32> to vector<256x512xf32>
    %22 = arith.addf %19, %21 : vector<256x512xf32>
    %cst_14 = arith.constant 0.000000e+00 : f32
    %23 = vector.broadcast %cst_14 : f32 to vector<256x512xf32>
    %24 = arith.maximumf %22, %23 : vector<256x512xf32>
    %25 = vector.extract_strided_slice %24 {offsets = [0, 0], sizes = [256, 256], strides = [1, 1]} : vector<256x512xf32> to vector<256x256xf32>
    %26 = vector.extract_strided_slice %24 {offsets = [0, 256], sizes = [256, 256], strides = [1, 1]} : vector<256x512xf32> to vector<256x256xf32>
    %27 = arith.maximumf %25, %26 : vector<256x256xf32>
    %28 = vector.shape_cast %27 : vector<256x256xf32> to vector<128x2x256xf32>
    %cst_15 = arith.constant dense<0xFF800000> : vector<128x256xf32>
    %29 = vector.multi_reduction <maximumf>, %28, %cst_15 [1] : vector<128x2x256xf32> to vector<128x256xf32>
    %30 = vector.shape_cast %29 : vector<128x256xf32> to vector<8x16x256xf32>
    %cst_16 = arith.constant 0.000000e+00 : f32
    %31 = vector.broadcast %cst_16 : f32 to vector<8x10xf32>
    %32 = vector.extract_strided_slice %30 {offsets = [0, 0, 0], sizes = [8, 1, 256], strides = [1, 1, 1]} : vector<8x16x256xf32> to vector<8x1x256xf32>
    %33 = vector.shape_cast %32 : vector<8x1x256xf32> to vector<8x256xf32>
    %c0_17 = arith.constant 0 : index
    %c0_18 = arith.constant 0 : index
    %c0_19 = arith.constant 0 : index
    %34 = vector.load %arg4[%c0_17, %c0_18, %c0_19] : memref<16x256x10xf32, #tpu.memory_space<vmem>>, vector<1x256x10xf32>
    %35 = vector.shape_cast %34 : vector<1x256x10xf32> to vector<256x10xf32>
    %cst_20 = arith.constant dense<0.000000e+00> : vector<8x10xf32>
    %36 = tpu.matmul %33, %35, %cst_20 {dimension_numbers = #tpu.dot_dimension_numbers<[1], [0], [0], [1], [0, 0, 1, 1], [], []>} : vector<8x256xf32>, vector<256x10xf32>, vector<8x10xf32> -> vector<8x10xf32>
    %37 = arith.addf %31, %36 : vector<8x10xf32>
    %38 = vector.extract_strided_slice %30 {offsets = [0, 1, 0], sizes = [8, 1, 256], strides = [1, 1, 1]} : vector<8x16x256xf32> to vector<8x1x256xf32>
    %39 = vector.shape_cast %38 : vector<8x1x256xf32> to vector<8x256xf32>
    %c1_21 = arith.constant 1 : index
    %c0_22 = arith.constant 0 : index
    %c0_23 = arith.constant 0 : index
    %40 = vector.load %arg4[%c1_21, %c0_22, %c0_23] : memref<16x256x10xf32, #tpu.memory_space<vmem>>, vector<1x256x10xf32>
    %41 = vector.shape_cast %40 : vector<1x256x10xf32> to vector<256x10xf32>
    %cst_24 = arith.constant dense<0.000000e+00> : vector<8x10xf32>
    %42 = tpu.matmul %39, %41, %cst_24 {dimension_numbers = #tpu.dot_dimension_numbers<[1], [0], [0], [1], [0, 0, 1, 1], [], []>} : vector<8x256xf32>, vector<256x10xf32>, vector<8x10xf32> -> vector<8x10xf32>
    %43 = arith.addf %37, %42 : vector<8x10xf32>
    %44 = vector.extract_strided_slice %30 {offsets = [0, 2, 0], sizes = [8, 1, 256], strides = [1, 1, 1]} : vector<8x16x256xf32> to vector<8x1x256xf32>
    %45 = vector.shape_cast %44 : vector<8x1x256xf32> to vector<8x256xf32>
    %c2_25 = arith.constant 2 : index
    %c0_26 = arith.constant 0 : index
    %c0_27 = arith.constant 0 : index
    %46 = vector.load %arg4[%c2_25, %c0_26, %c0_27] : memref<16x256x10xf32, #tpu.memory_space<vmem>>, vector<1x256x10xf32>
    %47 = vector.shape_cast %46 : vector<1x256x10xf32> to vector<256x10xf32>
    %cst_28 = arith.constant dense<0.000000e+00> : vector<8x10xf32>
    %48 = tpu.matmul %45, %47, %cst_28 {dimension_numbers = #tpu.dot_dimension_numbers<[1], [0], [0], [1], [0, 0, 1, 1], [], []>} : vector<8x256xf32>, vector<256x10xf32>, vector<8x10xf32> -> vector<8x10xf32>
    %49 = arith.addf %43, %48 : vector<8x10xf32>
    %50 = vector.extract_strided_slice %30 {offsets = [0, 3, 0], sizes = [8, 1, 256], strides = [1, 1, 1]} : vector<8x16x256xf32> to vector<8x1x256xf32>
    %51 = vector.shape_cast %50 : vector<8x1x256xf32> to vector<8x256xf32>
    %c3 = arith.constant 3 : index
    %c0_29 = arith.constant 0 : index
    %c0_30 = arith.constant 0 : index
    %52 = vector.load %arg4[%c3, %c0_29, %c0_30] : memref<16x256x10xf32, #tpu.memory_space<vmem>>, vector<1x256x10xf32>
    %53 = vector.shape_cast %52 : vector<1x256x10xf32> to vector<256x10xf32>
    %cst_31 = arith.constant dense<0.000000e+00> : vector<8x10xf32>
    %54 = tpu.matmul %51, %53, %cst_31 {dimension_numbers = #tpu.dot_dimension_numbers<[1], [0], [0], [1], [0, 0, 1, 1], [], []>} : vector<8x256xf32>, vector<256x10xf32>, vector<8x10xf32> -> vector<8x10xf32>
    %55 = arith.addf %49, %54 : vector<8x10xf32>
    %56 = vector.extract_strided_slice %30 {offsets = [0, 4, 0], sizes = [8, 1, 256], strides = [1, 1, 1]} : vector<8x16x256xf32> to vector<8x1x256xf32>
    %57 = vector.shape_cast %56 : vector<8x1x256xf32> to vector<8x256xf32>
    %c4 = arith.constant 4 : index
    %c0_32 = arith.constant 0 : index
    %c0_33 = arith.constant 0 : index
    %58 = vector.load %arg4[%c4, %c0_32, %c0_33] : memref<16x256x10xf32, #tpu.memory_space<vmem>>, vector<1x256x10xf32>
    %59 = vector.shape_cast %58 : vector<1x256x10xf32> to vector<256x10xf32>
    %cst_34 = arith.constant dense<0.000000e+00> : vector<8x10xf32>
    %60 = tpu.matmul %57, %59, %cst_34 {dimension_numbers = #tpu.dot_dimension_numbers<[1], [0], [0], [1], [0, 0, 1, 1], [], []>} : vector<8x256xf32>, vector<256x10xf32>, vector<8x10xf32> -> vector<8x10xf32>
    %61 = arith.addf %55, %60 : vector<8x10xf32>
    %62 = vector.extract_strided_slice %30 {offsets = [0, 5, 0], sizes = [8, 1, 256], strides = [1, 1, 1]} : vector<8x16x256xf32> to vector<8x1x256xf32>
    %63 = vector.shape_cast %62 : vector<8x1x256xf32> to vector<8x256xf32>
    %c5 = arith.constant 5 : index
    %c0_35 = arith.constant 0 : index
    %c0_36 = arith.constant 0 : index
    %64 = vector.load %arg4[%c5, %c0_35, %c0_36] : memref<16x256x10xf32, #tpu.memory_space<vmem>>, vector<1x256x10xf32>
    %65 = vector.shape_cast %64 : vector<1x256x10xf32> to vector<256x10xf32>
    %cst_37 = arith.constant dense<0.000000e+00> : vector<8x10xf32>
    %66 = tpu.matmul %63, %65, %cst_37 {dimension_numbers = #tpu.dot_dimension_numbers<[1], [0], [0], [1], [0, 0, 1, 1], [], []>} : vector<8x256xf32>, vector<256x10xf32>, vector<8x10xf32> -> vector<8x10xf32>
    %67 = arith.addf %61, %66 : vector<8x10xf32>
    %68 = vector.extract_strided_slice %30 {offsets = [0, 6, 0], sizes = [8, 1, 256], strides = [1, 1, 1]} : vector<8x16x256xf32> to vector<8x1x256xf32>
    %69 = vector.shape_cast %68 : vector<8x1x256xf32> to vector<8x256xf32>
    %c6 = arith.constant 6 : index
    %c0_38 = arith.constant 0 : index
    %c0_39 = arith.constant 0 : index
    %70 = vector.load %arg4[%c6, %c0_38, %c0_39] : memref<16x256x10xf32, #tpu.memory_space<vmem>>, vector<1x256x10xf32>
    %71 = vector.shape_cast %70 : vector<1x256x10xf32> to vector<256x10xf32>
    %cst_40 = arith.constant dense<0.000000e+00> : vector<8x10xf32>
    %72 = tpu.matmul %69, %71, %cst_40 {dimension_numbers = #tpu.dot_dimension_numbers<[1], [0], [0], [1], [0, 0, 1, 1], [], []>} : vector<8x256xf32>, vector<256x10xf32>, vector<8x10xf32> -> vector<8x10xf32>
    %73 = arith.addf %67, %72 : vector<8x10xf32>
    %74 = vector.extract_strided_slice %30 {offsets = [0, 7, 0], sizes = [8, 1, 256], strides = [1, 1, 1]} : vector<8x16x256xf32> to vector<8x1x256xf32>
    %75 = vector.shape_cast %74 : vector<8x1x256xf32> to vector<8x256xf32>
    %c7 = arith.constant 7 : index
    %c0_41 = arith.constant 0 : index
    %c0_42 = arith.constant 0 : index
    %76 = vector.load %arg4[%c7, %c0_41, %c0_42] : memref<16x256x10xf32, #tpu.memory_space<vmem>>, vector<1x256x10xf32>
    %77 = vector.shape_cast %76 : vector<1x256x10xf32> to vector<256x10xf32>
    %cst_43 = arith.constant dense<0.000000e+00> : vector<8x10xf32>
    %78 = tpu.matmul %75, %77, %cst_43 {dimension_numbers = #tpu.dot_dimension_numbers<[1], [0], [0], [1], [0, 0, 1, 1], [], []>} : vector<8x256xf32>, vector<256x10xf32>, vector<8x10xf32> -> vector<8x10xf32>
    %79 = arith.addf %73, %78 : vector<8x10xf32>
    %80 = vector.extract_strided_slice %30 {offsets = [0, 8, 0], sizes = [8, 1, 256], strides = [1, 1, 1]} : vector<8x16x256xf32> to vector<8x1x256xf32>
    %81 = vector.shape_cast %80 : vector<8x1x256xf32> to vector<8x256xf32>
    %c8 = arith.constant 8 : index
    %c0_44 = arith.constant 0 : index
    %c0_45 = arith.constant 0 : index
    %82 = vector.load %arg4[%c8, %c0_44, %c0_45] : memref<16x256x10xf32, #tpu.memory_space<vmem>>, vector<1x256x10xf32>
    %83 = vector.shape_cast %82 : vector<1x256x10xf32> to vector<256x10xf32>
    %cst_46 = arith.constant dense<0.000000e+00> : vector<8x10xf32>
    %84 = tpu.matmul %81, %83, %cst_46 {dimension_numbers = #tpu.dot_dimension_numbers<[1], [0], [0], [1], [0, 0, 1, 1], [], []>} : vector<8x256xf32>, vector<256x10xf32>, vector<8x10xf32> -> vector<8x10xf32>
    %85 = arith.addf %79, %84 : vector<8x10xf32>
    %86 = vector.extract_strided_slice %30 {offsets = [0, 9, 0], sizes = [8, 1, 256], strides = [1, 1, 1]} : vector<8x16x256xf32> to vector<8x1x256xf32>
    %87 = vector.shape_cast %86 : vector<8x1x256xf32> to vector<8x256xf32>
    %c9 = arith.constant 9 : index
    %c0_47 = arith.constant 0 : index
    %c0_48 = arith.constant 0 : index
    %88 = vector.load %arg4[%c9, %c0_47, %c0_48] : memref<16x256x10xf32, #tpu.memory_space<vmem>>, vector<1x256x10xf32>
    %89 = vector.shape_cast %88 : vector<1x256x10xf32> to vector<256x10xf32>
    %cst_49 = arith.constant dense<0.000000e+00> : vector<8x10xf32>
    %90 = tpu.matmul %87, %89, %cst_49 {dimension_numbers = #tpu.dot_dimension_numbers<[1], [0], [0], [1], [0, 0, 1, 1], [], []>} : vector<8x256xf32>, vector<256x10xf32>, vector<8x10xf32> -> vector<8x10xf32>
    %91 = arith.addf %85, %90 : vector<8x10xf32>
    %92 = vector.extract_strided_slice %30 {offsets = [0, 10, 0], sizes = [8, 1, 256], strides = [1, 1, 1]} : vector<8x16x256xf32> to vector<8x1x256xf32>
    %93 = vector.shape_cast %92 : vector<8x1x256xf32> to vector<8x256xf32>
    %c10 = arith.constant 10 : index
    %c0_50 = arith.constant 0 : index
    %c0_51 = arith.constant 0 : index
    %94 = vector.load %arg4[%c10, %c0_50, %c0_51] : memref<16x256x10xf32, #tpu.memory_space<vmem>>, vector<1x256x10xf32>
    %95 = vector.shape_cast %94 : vector<1x256x10xf32> to vector<256x10xf32>
    %cst_52 = arith.constant dense<0.000000e+00> : vector<8x10xf32>
    %96 = tpu.matmul %93, %95, %cst_52 {dimension_numbers = #tpu.dot_dimension_numbers<[1], [0], [0], [1], [0, 0, 1, 1], [], []>} : vector<8x256xf32>, vector<256x10xf32>, vector<8x10xf32> -> vector<8x10xf32>
    %97 = arith.addf %91, %96 : vector<8x10xf32>
    %98 = vector.extract_strided_slice %30 {offsets = [0, 11, 0], sizes = [8, 1, 256], strides = [1, 1, 1]} : vector<8x16x256xf32> to vector<8x1x256xf32>
    %99 = vector.shape_cast %98 : vector<8x1x256xf32> to vector<8x256xf32>
    %c11 = arith.constant 11 : index
    %c0_53 = arith.constant 0 : index
    %c0_54 = arith.constant 0 : index
    %100 = vector.load %arg4[%c11, %c0_53, %c0_54] : memref<16x256x10xf32, #tpu.memory_space<vmem>>, vector<1x256x10xf32>
    %101 = vector.shape_cast %100 : vector<1x256x10xf32> to vector<256x10xf32>
    %cst_55 = arith.constant dense<0.000000e+00> : vector<8x10xf32>
    %102 = tpu.matmul %99, %101, %cst_55 {dimension_numbers = #tpu.dot_dimension_numbers<[1], [0], [0], [1], [0, 0, 1, 1], [], []>} : vector<8x256xf32>, vector<256x10xf32>, vector<8x10xf32> -> vector<8x10xf32>
    %103 = arith.addf %97, %102 : vector<8x10xf32>
    %104 = vector.extract_strided_slice %30 {offsets = [0, 12, 0], sizes = [8, 1, 256], strides = [1, 1, 1]} : vector<8x16x256xf32> to vector<8x1x256xf32>
    %105 = vector.shape_cast %104 : vector<8x1x256xf32> to vector<8x256xf32>
    %c12 = arith.constant 12 : index
    %c0_56 = arith.constant 0 : index
    %c0_57 = arith.constant 0 : index
    %106 = vector.load %arg4[%c12, %c0_56, %c0_57] : memref<16x256x10xf32, #tpu.memory_space<vmem>>, vector<1x256x10xf32>
    %107 = vector.shape_cast %106 : vector<1x256x10xf32> to vector<256x10xf32>
    %cst_58 = arith.constant dense<0.000000e+00> : vector<8x10xf32>
    %108 = tpu.matmul %105, %107, %cst_58 {dimension_numbers = #tpu.dot_dimension_numbers<[1], [0], [0], [1], [0, 0, 1, 1], [], []>} : vector<8x256xf32>, vector<256x10xf32>, vector<8x10xf32> -> vector<8x10xf32>
    %109 = arith.addf %103, %108 : vector<8x10xf32>
    %110 = vector.extract_strided_slice %30 {offsets = [0, 13, 0], sizes = [8, 1, 256], strides = [1, 1, 1]} : vector<8x16x256xf32> to vector<8x1x256xf32>
    %111 = vector.shape_cast %110 : vector<8x1x256xf32> to vector<8x256xf32>
    %c13 = arith.constant 13 : index
    %c0_59 = arith.constant 0 : index
    %c0_60 = arith.constant 0 : index
    %112 = vector.load %arg4[%c13, %c0_59, %c0_60] : memref<16x256x10xf32, #tpu.memory_space<vmem>>, vector<1x256x10xf32>
    %113 = vector.shape_cast %112 : vector<1x256x10xf32> to vector<256x10xf32>
    %cst_61 = arith.constant dense<0.000000e+00> : vector<8x10xf32>
    %114 = tpu.matmul %111, %113, %cst_61 {dimension_numbers = #tpu.dot_dimension_numbers<[1], [0], [0], [1], [0, 0, 1, 1], [], []>} : vector<8x256xf32>, vector<256x10xf32>, vector<8x10xf32> -> vector<8x10xf32>
    %115 = arith.addf %109, %114 : vector<8x10xf32>
    %116 = vector.extract_strided_slice %30 {offsets = [0, 14, 0], sizes = [8, 1, 256], strides = [1, 1, 1]} : vector<8x16x256xf32> to vector<8x1x256xf32>
    %117 = vector.shape_cast %116 : vector<8x1x256xf32> to vector<8x256xf32>
    %c14 = arith.constant 14 : index
    %c0_62 = arith.constant 0 : index
    %c0_63 = arith.constant 0 : index
    %118 = vector.load %arg4[%c14, %c0_62, %c0_63] : memref<16x256x10xf32, #tpu.memory_space<vmem>>, vector<1x256x10xf32>
    %119 = vector.shape_cast %118 : vector<1x256x10xf32> to vector<256x10xf32>
    %cst_64 = arith.constant dense<0.000000e+00> : vector<8x10xf32>
    %120 = tpu.matmul %117, %119, %cst_64 {dimension_numbers = #tpu.dot_dimension_numbers<[1], [0], [0], [1], [0, 0, 1, 1], [], []>} : vector<8x256xf32>, vector<256x10xf32>, vector<8x10xf32> -> vector<8x10xf32>
    %121 = arith.addf %115, %120 : vector<8x10xf32>
    %122 = vector.extract_strided_slice %30 {offsets = [0, 15, 0], sizes = [8, 1, 256], strides = [1, 1, 1]} : vector<8x16x256xf32> to vector<8x1x256xf32>
    %123 = vector.shape_cast %122 : vector<8x1x256xf32> to vector<8x256xf32>
    %c15 = arith.constant 15 : index
    %c0_65 = arith.constant 0 : index
    %c0_66 = arith.constant 0 : index
    %124 = vector.load %arg4[%c15, %c0_65, %c0_66] : memref<16x256x10xf32, #tpu.memory_space<vmem>>, vector<1x256x10xf32>
    %125 = vector.shape_cast %124 : vector<1x256x10xf32> to vector<256x10xf32>
    %cst_67 = arith.constant dense<0.000000e+00> : vector<8x10xf32>
    %126 = tpu.matmul %123, %125, %cst_67 {dimension_numbers = #tpu.dot_dimension_numbers<[1], [0], [0], [1], [0, 0, 1, 1], [], []>} : vector<8x256xf32>, vector<256x10xf32>, vector<8x10xf32> -> vector<8x10xf32>
    %127 = arith.addf %121, %126 : vector<8x10xf32>
    %c0_68 = arith.constant 0 : index
    %c0_69 = arith.constant 0 : index
    %128 = vector.load %arg5[%c0_68, %c0_69] : memref<1x10xf32, #tpu.memory_space<vmem>>, vector<1x10xf32>
    %129 = vector.broadcast %128 : vector<1x10xf32> to vector<8x10xf32>
    %130 = arith.addf %127, %129 : vector<8x10xf32>
    %c0_70 = arith.constant 0 : index
    %c0_71 = arith.constant 0 : index
    %131 = vector.load %arg6[%c0_70, %c0_71] : memref<8x10xf32, #tpu.memory_space<vmem>>, vector<8x10xf32>
    tpu.vector_store %arg6[%c0_70, %c0_71], %130 {strides = array<i32>} : memref<8x10xf32, #tpu.memory_space<vmem>>, vector<8x10xf32>,
    return
  }
  func.func @transform_0(%arg0: i32) -> (i32, i32, i32) {
    %c0_i32 = arith.constant 0 : i32
    %c0_i32_0 = arith.constant 0 : i32
    %c0_i32_1 = arith.constant 0 : i32
    return %arg0, %c0_i32, %c0_i32_0 : i32, i32, i32
  }
  func.func @transform_1(%arg0: i32) -> (i32, i32, i32) {
    %c0_i32 = arith.constant 0 : i32
    %c0_i32_0 = arith.constant 0 : i32
    %c0_i32_1 = arith.constant 0 : i32
    %c0_i32_2 = arith.constant 0 : i32
    return %c0_i32, %c0_i32_0, %c0_i32_1 : i32, i32, i32
  }
  func.func @transform_2(%arg0: i32) -> (i32, i32) {
    %c0_i32 = arith.constant 0 : i32
    %c0_i32_0 = arith.constant 0 : i32
    %c0_i32_1 = arith.constant 0 : i32
    return %c0_i32, %c0_i32_0 : i32, i32
  }
  func.func @transform_3(%arg0: i32) -> (i32, i32, i32) {
    %c0_i32 = arith.constant 0 : i32
    %c0_i32_0 = arith.constant 0 : i32
    %c0_i32_1 = arith.constant 0 : i32
    %c0_i32_2 = arith.constant 0 : i32
    return %c0_i32, %c0_i32_0, %c0_i32_1 : i32, i32, i32
  }
  func.func @transform_4(%arg0: i32) -> (i32, i32) {
    %c0_i32 = arith.constant 0 : i32
    %c0_i32_0 = arith.constant 0 : i32
    %c0_i32_1 = arith.constant 0 : i32
    return %c0_i32, %c0_i32_0 : i32, i32
  }
  func.func @transform_5(%arg0: i32) -> (i32, i32) {
    %c0_i32 = arith.constant 0 : i32
    %c0_i32_0 = arith.constant 0 : i32
    return %arg0, %c0_i32 : i32, i32
  }
}

</mosaic_0001>

<bundles_post_ra>
// kernel: tile.9
= control target key start
LH: loop header
LB: loop body
LE: loop exit
PB: predicated region body
PF: predicated region fallthrough
CT: control target
= control target key end

     0   :  { %s89_s8 = smov 112   ;;  %s90_s11 = smov 80   ;;  %vm3_vm0 = vcmask 130048   ;;  %vm9_vm1 = vcmask 1048448   ;;  %vm15_vm2 = vcmask 917248   ;;  %vm21_vm3 = vcmask 786048   ;;  %s142_s0 = inlined_call_operand.vmem [shape: f32[32,16], index: 0, kind: input, shape index: {}]   ;;  %s143_s1 = inlined_call_operand.vmem [shape: f32[1,512], index: 1, kind: output, shape index: {}]  }
   0x1   :  { %v72_v0 = vld [vmem:[%s142_s0 + $0x7] ss:$8 sm:$0xf]   ;;  %v74_v1 = vld [vmem:[%s142_s0 + $0x5] ss:$8 sm:$0xf]  }
   0x2   :  { %7 = vrot.lane.b32.xlu0 %v72_v0, %s89_s8  ;;  %19 = vrot.lane.b32.xlu1 %v74_v1, %s90_s11  ;;  %v73_v2 = vld [vmem:[%s142_s0 + $0x6] ss:$8 sm:$0xf]   ;;  %v75_v3 = vld [vmem:[%s142_s0 + $0x4] ss:$8 sm:$0xf]  }
   0x3   :  { %s91_s16 = smov 96   ;;  %v2_v4 = vld [vmem:[%s142_s0] ss:$8 sm:$0xf]   ;;  %s92_s19 = smov 64   ;;  %vm27_vm4 = vcmask 654848  }
   0x4   :  { %v76_v5 = vld [vmem:[%s142_s0 + $0x3] ss:$8 sm:$0xf]   ;;  %4 = vst.msk [vmem:[#allocation0] ss:$8 sm:$0xf] %vm3_vm0, %v2_v4  }
   0x5   :  { %v77_v6 = vld [vmem:[%s142_s0 + $0x2] ss:$8 sm:$0xf]   ;;  %s93_s24 = smov 48   ;;  %s94_s25 = smov 32   ;;  %vm33_vm5 = vcmask 523648  }
   0x6   :  { %13 = vrot.lane.b32.xlu0 %v73_v2, %s91_s16  ;;  %25 = vrot.lane.b32.xlu1 %v75_v3, %s92_s19  ;;  %v78_v7 = vld [vmem:[%s142_s0 + $0x1] ss:$8 sm:$0xf]   ;;  %s95_s0 = smov 16   ;;  %vm39_vm6 = vcmask 392448   ;;  %vm45_vm7 = vcmask 261248  }
   0xa   :  { %31 = vrot.lane.b32.xlu0 %v76_v5, %s93_s24  ;;  %37 = vrot.lane.b32.xlu1 %v77_v6, %s94_s25 }
   0xe   :  { %43 = vrot.lane.b32.xlu0 %v78_v7, %s95_s0 }
  0x74   :  { %v8_v8 = vpop.permute.xlu0 %7   ;;  %v20_v9 = vpop.permute.xlu1 %19  }
  0x75   :  { %10 = vst.msk [vmem:[#allocation0] ss:$8 sm:$0xf] %vm9_vm1, %v8_v8  }
  0x78   :  { %v14_v10 = vpop.permute.xlu0 %13   ;;  %v26_v11 = vpop.permute.xlu1 %25  }
  0x79   :  { %16 = vst.msk [vmem:[#allocation0] ss:$8 sm:$0xf] %vm15_vm2, %v14_v10  }
  0x7a   :  { %22 = vst.msk [vmem:[#allocation0] ss:$8 sm:$0xf] %vm21_vm3, %v20_v9  }
  0x7b   :  { %28 = vst.msk [vmem:[#allocation0] ss:$8 sm:$0xf] %vm27_vm4, %v26_v11  }
  0x7c   :  { %v32_v12 = vpop.permute.xlu0 %31   ;;  %v38_v13 = vpop.permute.xlu1 %37  }
  0x7d   :  { %34 = vst.msk [vmem:[#allocation0] ss:$8 sm:$0xf] %vm33_vm5, %v32_v12  }
  0x7e   :  { %40 = vst.msk [vmem:[#allocation0] ss:$8 sm:$0xf] %vm39_vm6, %v38_v13  }
  0x80   :  { %v44_v14 = vpop.permute.xlu0 %43  }
  0x81   :  { %46 = vst.msk [vmem:[#allocation0] ss:$8 sm:$0xf] %vm45_vm7, %v44_v14  }
  0x88   :  { %v50_v15 = vld [vmem:[#allocation0] sm:$0x1]  ;;  %v54_v16 = vld [vmem:[#allocation0 + $0x8] sm:$0x1]  ;;  %v59_v17 = vld [vmem:[#allocation0 + $0x10] sm:$0x1] }
  0x89   :  { %52 = vst [vmem:[%s143_s1] sm:$0x1] %v50_v15  ;;  %79 = vst [vmem:[%s143_s1 + $0x1] sm:$0x1] %v54_v16  ;;  %v65_v18 = vld [vmem:[#allocation0 + $0x18] sm:$0x1] }
  0x8a   :  { %80 = vst [vmem:[%s143_s1 + $0x2] sm:$0x1] %v59_v17  ;;  %81 = vst [vmem:[%s143_s1 + $0x3] sm:$0x1] %v65_v18 }

// kernel: simplex2nn_forward.1
= control target key start
LH: loop header
LB: loop body
LE: loop exit
PB: predicated region body
PF: predicated region fallthrough
CT: control target
= control target key end

     0   :  { %10 = vsyncpa [#allocation3], 0  ;;  %s18330_s0 = inlined_call_operand.vmem [shape: f32[16,34,102], index: 0, kind: input, shape index: {}]   ;;  %s18331_s1 = inlined_call_operand.vmem [shape: f32[3,102,512], index: 1, kind: input, shape index: {}]   ;;  %s18332_s2 = inlined_call_operand.vmem [shape: f32[1,512], index: 2, kind: input, shape index: {}]   ;;  %s18333_s3 = inlined_call_operand.vmem [shape: f32[16,256,10], index: 3, kind: input, shape index: {}]   ;;  %s18334_s4 = inlined_call_operand.vmem [shape: f32[1,10], index: 4, kind: input, shape index: {}]   ;;  %s18335_s5 = inlined_call_operand.hbm [shape: f32[16,10], index: 5, kind: output, shape index: {}]  }
   0x1   :  { %12 = vsyncpa [#allocation3 + $0x1], 0  ;;  %s11248_s18 = smov 0   ;;  %s11250_s19 = smov 0  }
   0x2   :  { %s11252_s20 = smov 0   ;;  %s11254_s21 = smov 0  }
   0x3 LB: > { %s11269_s22 = sadd.s32 4294967295, %s11213_s21   ;;  %s8829_s23 = sadd.s32 4294967294, %s11213_s21   ;;  %s11213_s21 = sphi %s11254_s21, %s19248_s21   ;;  %s11209_s20 = sphi %s11252_s20, %s19247_s20   ;;  %s11205_s19 = sphi %s11250_s19, %s19246_s19   ;;  %s11201_s18 = sphi %s11248_s18, %s19245_s18  }
   0x4   : > { %s11273_s24 = sadd.s32 1, %s11213_s21   ;;  %s135_s25 = sadd.s32 1, %s11209_s20 }
   0x5   : > { %s132_s26 = ssub.s32 %s11213_s21, %s11273_s24  ;;  %p145_p0 = scmp.ne.s32.totalorder %s11209_s20, %s11205_s19 }
   0x6   : > { %p133_p1 = scmp.eq.s32.totalorder %s132_s26, 0  ;;  %p146_p2 = scmp.eq.s32.totalorder %s11269_s22, 1 }
   0x7   : > { %p151_p3 = scmp.ne.s32.totalorder %s11205_s19, %s11201_s18  ;;  %p152_p4 = scmp.eq.s32.totalorder %s8829_s23, 1 }
   0x8   : > { %s11284_s27 = scalar_select %p133_p1, %s11209_s20, %s135_s25  }
   0x9   : > { %p11286_p5 = por %p146_p2, %p145_p0  ;;  %p11290_p6 = por %p152_p4, %p151_p3 }
   0xa   : > { %p8832_p7 = scmp.ge.s32.totalorder %s11213_s21, 1  ;;  %p192_p8 = scmp.lt.s32.totalorder %s11213_s21, 3 }
   0xc   : > { %p193_p9 = pnand %p8832_p7, %p192_p8 }
   0xe   : > { %196 = sbr.rel (%p193_p9) target bundleno = 1550 (0x60e), region = 40 }
  0x15   : > { %v8837_v0 = vld [vmem:[%s18331_s1 + $0x1a8] sm:$0xff]  ;;  %v8839_v2 = vld [vmem:[%s18331_s1 + $0x1b8] sm:$0xff]  ;;  %v8836_v5 = vld [vmem:[%s18331_s1 + $0x1a0] sm:$0xff]  ;;  %v11215_v7 = vmov 0.0   ;;  %s8834_s17 = sshll.u32 %s11269_s22, 3  ;;  %vm551_vm0 = vcmask 1045504  }
  0x16   : > { %v8841_v1 = vld [vmem:[%s18331_s1 + $0x1c8] sm:$0xff]  ;;  %v8843_v4 = vld [vmem:[%s18331_s1 + $0x1d8] sm:$0xff]  ;;  %v8840_v6 = vld [vmem:[%s18331_s1 + $0x1c0] sm:$0xff]  ;;  %628 = vmatprep.mubr.f32.mxu0 %v11215_v7  ;;  %885 = vmatprep.mubr.f32.mxu1 %v11215_v7  ;;  %p11346_p10 = scmp.lt.s32.totalorder %s8834_s17, 15  ;;  %vm360_vm1 = vcmask 1046528   ;;  %vm486_vm2 = vcmask 834560  }
  0x17   : > { %v10189_v3 = vpack.c.bf16 %v8841_v1, %v8837_v0  ;;  %v10213_v8 = vpack.c.bf16 %v8843_v4, %v8839_v2  ;;  %v10191_v9 = vpack.c.bf16 %v8840_v6, %v8836_v5  ;;  %v8838_v10 = vld [vmem:[%s18331_s1 + $0x1b0] sm:$0xff]  ;;  %v8845_v12 = vld [vmem:[%s18331_s1 + $0x1e8] sm:$0xff]  ;;  %v8847_v15 = vld [vmem:[%s18331_s1 + $0x1f8] sm:$0xff]  ;;  %vm4773_vm3 = vcmask 1041408   ;;  %s218_s9 = sand.u32 1, %s11205_s19   ;;  %s9626_s12 = sshll.u32 %s11269_s22, 7 }
  0x18   : > { %v8842_v11 = vld [vmem:[%s18331_s1 + $0x1d0] sm:$0xff]  ;;  %v8849_v14 = vld [vmem:[%s18331_s1 + $0x208] sm:$0xff]  ;;  %v8851_v16 = vld [vmem:[%s18331_s1 + $0x218] sm:$0xff]  ;;  %s19250_s17 = smov (!%p11346_p10, %s8834_s17), 15  ;;  %vm6647_vm4 = vcmask 1041409   ;;  %vm6649_vm5 = vcmask 1042434   ;;  %s18288_s16 = scalar_lea.hbm %s18335_s5, %s9626_s12 }
  0x19   : > { %10190 = vmatprep.subr.bf16.mxu0 %v10189_v3  ;;  %v10215_v13 = vpack.c.bf16 %v8842_v11, %v8838_v10  ;;  %10214 = vmatprep.subr.bf16.mxu1 %v10213_v8  ;;  %v10193_v17 = vpack.c.bf16 %v8849_v14, %v8845_v12  ;;  %v10217_v18 = vpack.c.bf16 %v8851_v16, %v8847_v15  ;;  %v8844_v19 = vld [vmem:[%s18331_s1 + $0x1e0] sm:$0xff]  ;;  %v8846_v21 = vld [vmem:[%s18331_s1 + $0x1f0] sm:$0xff]  ;;  %v8853_v24 = vld [vmem:[%s18331_s1 + $0x228] sm:$0xff]  ;;  %s11101_s26 = smul.u32 40, %s19250_s17  ;;  %vm6651_vm6 = vcmask 1043459   ;;  %s8833_s10 = sshll.u32 %s218_s9, 3 }
  0x1a   : > { %10192 = vmatpush1.bf16.msra.mxu0 %v10191_v9  ;;  %v8848_v20 = vld [vmem:[%s18331_s1 + $0x200] sm:$0xff]  ;;  %v8850_v23 = vld [vmem:[%s18331_s1 + $0x210] sm:$0xff]  ;;  %v8857_v25 = vld [vmem:[%s18331_s1 + $0x248] sm:$0xff]  ;;  %vm6653_vm7 = vcmask 1044484   ;;  %vm6655_vm8 = vcmask 1045509   ;;  %vm6657_vm9 = vcmask 1046534  }
  0x1b   : > { %10216 = vmatpush1.bf16.msra.mxu1 %v10215_v13  ;;  %v10195_v22 = vpack.c.bf16 %v8848_v20, %v8844_v19  ;;  %10194 = vmatprep.subr.bf16.mxu0 %v10193_v17  ;;  %v10219_v26 = vpack.c.bf16 %v8850_v23, %v8846_v21  ;;  %v10197_v27 = vpack.c.bf16 %v8857_v25, %v8853_v24  ;;  %v8855_v28 = vld [vmem:[%s18331_s1 + $0x238] sm:$0xff]  ;;  %v8852_v30 = vld [vmem:[%s18331_s1 + $0x220] sm:$0xff]  ;;  %v8854_v33 = vld [vmem:[%s18331_s1 + $0x230] sm:$0xff]  ;;  %s11447_s8 = scalar_lea.vmem %s18330_s0, %s11101_s26  ;;  %vm6659_vm10 = vcmask 1047559   ;;  %s220_s13 = scalar_lea.vmem [#allocation2], %s8833_s10 }
  0x1c   : > { %10218 = vmatprep.subr.bf16.mxu1 %v10217_v18  ;;  %v8859_v29 = vld [vmem:[%s18331_s1 + $0x258] sm:$0xff]  ;;  %v8856_v32 = vld [vmem:[%s18331_s1 + $0x240] sm:$0xff]  ;;  %v8858_v34 = vld [vmem:[%s18331_s1 + $0x250] sm:$0xff]  ;;  %s8770_s26 = sshll.u32 %s220_s13, 4  ;;  %vm8754_vm11 = vcmask 80896   ;;  %s8757_s23 = scalar_lea.sflag [#allocation3], %s218_s9  ;;  %s18290_s26 = int_to_ptr.vmem [resolvable:$true] %s8770_s26 }
  0x1d   : > { %v10221_v31 = vpack.c.bf16 %v8859_v29, %v8855_v28  ;;  %v10199_v35 = vpack.c.bf16 %v8856_v32, %v8852_v30  ;;  %v8861_v36 = vld [vmem:[%s18331_s1 + $0x268] sm:$0xff]  ;;  %v8863_v38 = vld [vmem:[%s18331_s1 + $0x278] sm:$0xff]  ;;  %v10223_v39 = vpack.c.bf16 %v8858_v34, %v8854_v33  ;;  %v8860_v42 = vld [vmem:[%s18331_s1 + $0x260] sm:$0xff]  ;;  %s11151_s25 = scalar_lea.vmem %s18290_s26, 128  ;;  %s11217_s22 = smov [#allocation2]  }
  0x1e   : > { %10196 = vmatpush1.bf16.msra.mxu0 %v10195_v22  ;;  %v8865_v37 = vld [vmem:[%s18331_s1 + $0x288] sm:$0xff]  ;;  %v8867_v41 = vld [vmem:[%s18331_s1 + $0x298] sm:$0xff]  ;;  %v8864_v43 = vld [vmem:[%s18331_s1 + $0x280] sm:$0xff]  ;;  %p11152_p11 = scmp.ne.s32.totalorder %s18290_s26, %s11151_s25  ;;  %s11155_s6 = sshll.u32 %s11217_s22, 4  ;;  %s11156_s6 = int_to_ptr.vmem [resolvable:$false] %s11155_s6 }
  0x1f   : > { %10220 = vmatpush1.bf16.msra.mxu1 %v10219_v26  ;;  %10198 = vmatprep.subr.bf16.mxu0 %v10197_v27  ;;  %v10201_v40 = vpack.c.bf16 %v8865_v37, %v8861_v36  ;;  %v10225_v44 = vpack.c.bf16 %v8867_v41, %v8863_v38  ;;  %v8862_v45 = vld [vmem:[%s18331_s1 + $0x270] sm:$0xff]  ;;  %v8869_v47 = vld [vmem:[%s18331_s1 + $0x2a8] sm:$0xff]  ;;  %v8871_v49 = vld [vmem:[%s18331_s1 + $0x2b8] sm:$0xff]  ;;  %v10203_v51 = vpack.c.bf16 %v8864_v43, %v8860_v42  ;;  %s11157_s7 = scalar_lea.vmem %s11156_s6, 256  ;;  %p11158_p0 = scmp.lt.s32.totalorder %s18290_s26, %s11156_s6 }
  0x20   : > { %10222 = vmatprep.subr.bf16.mxu1 %v10221_v31  ;;  %v8866_v46 = vld [vmem:[%s18331_s1 + $0x290] sm:$0xff]  ;;  %v8873_v48 = vld [vmem:[%s18331_s1 + $0x2c8] sm:$0xff]  ;;  %v8875_v50 = vld [vmem:[%s18331_s1 + $0x2d8] sm:$0xff]  ;;  %p11153_p12 = pnand %p11152_p11, %p11286_p5  ;;  %p11159_p1 = scmp.lt.s32.totalorder %s11157_s7, %s11151_s25 }
  0x21   : > { %v10227_v52 = vpack.c.bf16 %v8866_v46, %v8862_v45  ;;  %v10205_v53 = vpack.c.bf16 %v8873_v48, %v8869_v47  ;;  %v8868_v54 = vld [vmem:[%s18331_s1 + $0x2a0] sm:$0xff]  ;;  %v8870_v56 = vld [vmem:[%s18331_s1 + $0x2b0] sm:$0xff]  ;;  %v10229_v57 = vpack.c.bf16 %v8875_v50, %v8871_v49  ;;  %v8877_v59 = vld [vmem:[%s18331_s1 + $0x2e8] sm:$0xff] }
  0x22   : > { %10200 = vmatpush1.bf16.msra.mxu0 %v10199_v35  ;;  %v8872_v55 = vld [vmem:[%s18331_s1 + $0x2c0] sm:$0xff]  ;;  %v8874_v58 = vld [vmem:[%s18331_s1 + $0x2d0] sm:$0xff]  ;;  %v8881_v60 = vld [vmem:[%s18331_s1 + $0x308] sm:$0xff]  ;;  %p11154_p13 = pneg %p11153_p12  ;;  %p11160_p2 = por %p11159_p1, %p11158_p0 }
  0x23   : > { %10224 = vmatpush1.bf16.msra.mxu1 %v10223_v39  ;;  %10202 = vmatprep.subr.bf16.mxu0 %v10201_v40  ;;  %v8879_v61 = vld [vmem:[%s18331_s1 + $0x2f8] sm:$0xff]  ;;  %v10207_v63 = vpack.c.bf16 %v8872_v55, %v8868_v54  ;;  %v10231_v0 = vpack.c.bf16 %v8874_v58, %v8870_v56  ;;  %v10209_v1 = vpack.c.bf16 %v8881_v60, %v8877_v59  ;;  %v8876_v2 = vld [vmem:[%s18331_s1 + $0x2e0] sm:$0xff]  ;;  %v8878_v5 = vld [vmem:[%s18331_s1 + $0x2f0] sm:$0xff] }
  0x24   : > { %10226 = vmatprep.subr.bf16.mxu1 %v10225_v44  ;;  %v8883_v62 = vld [vmem:[%s18331_s1 + $0x318] sm:$0xff]  ;;  %v8880_v3 = vld [vmem:[%s18331_s1 + $0x300] sm:$0xff]  ;;  %v8882_v6 = vld [vmem:[%s18331_s1 + $0x310] sm:$0xff]  ;;  %p11161_p3 = pnand %p11160_p2, %p11154_p13 }
  0x25   : > { %v10233_v4 = vpack.c.bf16 %v8883_v62, %v8879_v61  ;;  %v11462_v8 = vld [vmem:[%s11447_s8] sm:$0xff]  ;;  %v11465_v9 = vld [vmem:[%s11447_s8 + $0x8] sm:$0xff]  ;;  %v10211_v10 = vpack.c.bf16 %v8880_v3, %v8876_v2  ;;  %v10235_v11 = vpack.c.bf16 %v8882_v6, %v8878_v5  ;;  %v8887_v13 = vld [vmem:[%s18331_s1 + $0x338] sm:$0x3f] }
  0x26   : > { %10204 = vmatpush1.bf16.msra.mxu0 %v10203_v51  ;;  %v8885_v12 = vld [vmem:[%s18331_s1 + $0x328] sm:$0x3f]  ;;  %v361_v14 = vrot.slane %v11462_v8, 1  ;;  %v362_v15 = vrot.slane %v11465_v9, 1  ;;  %v271_v18 = vld [vmem:[%s18331_s1 + $0x18] sm:$0xff]  ;;  %v11485_v19 = vld [vmem:[%s11447_s8 + $0x10] sm:$0xff] }
  0x27   : > { %10228 = vmatpush1.bf16.msra.mxu1 %v10227_v52  ;;  %10206 = vmatprep.subr.bf16.mxu0 %v10205_v53  ;;  %v269_v16 = vld [vmem:[%s18331_s1 + $0x8] sm:$0xff]  ;;  %v275_v20 = vld [vmem:[%s18331_s1 + $0x38] sm:$0xff]  ;;  %v268_v21 = vld [vmem:[%s18331_s1] sm:$0xff]  ;;  %v364_v29 = vrot.slane %v11485_v19, 1 }
  0x28   : > { %10230 = vmatprep.subr.bf16.mxu1 %v10229_v57  ;;  %v273_v17 = vld [vmem:[%s18331_s1 + $0x28] sm:$0xff]  ;;  %v272_v22 = vld [vmem:[%s18331_s1 + $0x20] sm:$0xff]  ;;  %v270_v24 = vld [vmem:[%s18331_s1 + $0x10] sm:$0xff]  ;;  %v363_v27 = vsel %vm360_vm1, %v361_v14, %v362_v15  ;;  %v10261_v30 = vpack.c.bf16 %v275_v20, %v271_v18 }
  0x29   : > { %v8884_v23 = vld [vmem:[%s18331_s1 + $0x320] sm:$0x3f]  ;;  %v274_v25 = vld [vmem:[%s18331_s1 + $0x30] sm:$0xff]  ;;  %v10237_v28 = vpack.c.bf16 %v273_v17, %v269_v16  ;;  %v10239_v31 = vpack.c.bf16 %v272_v22, %v268_v21  ;;  %v11513_v32 = vld [vmem:[%s11447_s8 + $0x18] sm:$0xff]  ;;  %v365_v40 = vsel %vm360_vm1, %v362_v15, %v364_v29 }
  0x2a   : > { %10208 = vmatpush1.bf16.msra.mxu0 %v10207_v63  ;;  %v8886_v26 = vld [vmem:[%s18331_s1 + $0x330] sm:$0x3f]  ;;  %v10263_v33 = vpack.c.bf16 %v274_v25, %v270_v24  ;;  %v277_v34 = vld [vmem:[%s18331_s1 + $0x48] sm:$0xff]  ;;  %v279_v36 = vld [vmem:[%s18331_s1 + $0x58] sm:$0xff]  ;;  %v366_v41 = vrot.slane %v11513_v32, 1 }
  0x2b   : > { %10232 = vmatpush1.bf16.msra.mxu1 %v10231_v0  ;;  %10210 = vmatprep.subr.bf16.mxu0 %v10209_v1  ;;  %v281_v35 = vld [vmem:[%s18331_s1 + $0x68] sm:$0xff]  ;;  %v283_v37 = vld [vmem:[%s18331_s1 + $0x78] sm:$0xff]  ;;  %v276_v38 = vld [vmem:[%s18331_s1 + $0x40] sm:$0xff] }
  0x2c   : > { %10234 = vmatprep.subr.bf16.mxu1 %v10233_v4  ;;  %v280_v39 = vld [vmem:[%s18331_s1 + $0x60] sm:$0xff]  ;;  %v278_v42 = vld [vmem:[%s18331_s1 + $0x50] sm:$0xff]  ;;  %v10241_v45 = vpack.c.bf16 %v281_v35, %v277_v34  ;;  %v10265_v46 = vpack.c.bf16 %v283_v37, %v279_v36  ;;  %v285_v48 = vld [vmem:[%s18331_s1 + $0x88] sm:$0xff]  ;;  %v367_v55 = vsel %vm360_vm1, %v364_v29, %v366_v41 }
  0x2d   : > { %v282_v43 = vld [vmem:[%s18331_s1 + $0x70] sm:$0xff]  ;;  %v232_v44 = vld [vmem:[%s11447_s8 + $0x20] sm:$0x3]  ;;  %v10243_v47 = vpack.c.bf16 %v280_v39, %v276_v38  ;;  %v289_v49 = vld [vmem:[%s18331_s1 + $0xa8] sm:$0xff] }
  0x2e   : > { %10212 = vmatpush1.bf16.msra.mxu0 %v10211_v10  ;;  %v287_v50 = vld [vmem:[%s18331_s1 + $0x98] sm:$0xff]  ;;  %v10267_v51 = vpack.c.bf16 %v282_v43, %v278_v42  ;;  %v284_v53 = vld [vmem:[%s18331_s1 + $0x80] sm:$0xff]  ;;  %v368_v56 = vrot.slane %v232_v44, 1  ;;  %v286_v57 = vld [vmem:[%s18331_s1 + $0x90] sm:$0xff]  ;;  %v10245_v61 = vpack.c.bf16 %v289_v49, %v285_v48 }
  0x2f   : > { %10236 = vmatpush1.bf16.msra.mxu1 %v10235_v11  ;;  %8888 = vmatprep.subr.msk.mxu0 %vm551_vm0, %v8885_v12  ;;  %v291_v52 = vld [vmem:[%s18331_s1 + $0xb8] sm:$0xff]  ;;  %v288_v54 = vld [vmem:[%s18331_s1 + $0xa0] sm:$0xff]  ;;  %v290_v58 = vld [vmem:[%s18331_s1 + $0xb0] sm:$0xff] }
  0x30   : > { %8922 = vmatprep.subr.msk.mxu1 %vm551_vm0, %v8887_v13  ;;  %v11578_v59 = vld [vmem:[%s11447_s8 + $0x28] sm:$0xff]  ;;  %v11581_v60 = vld [vmem:[%s11447_s8 + $0x30] sm:$0xff]  ;;  %v10269_v62 = vpack.c.bf16 %v291_v52, %v287_v50  ;;  %v10247_v63 = vpack.c.bf16 %v288_v54, %v284_v53  ;;  %v295_v2 = vld [vmem:[%s18331_s1 + $0xd8] sm:$0xff]  ;;  %v10271_v3 = vpack.c.bf16 %v290_v58, %v286_v57  ;;  %v369_v10 = vsel %vm360_vm1, %v366_v41, %v368_v56 }
  0x31   : > { %v293_v0 = vld [vmem:[%s18331_s1 + $0xc8] sm:$0xff]  ;;  %v299_v4 = vld [vmem:[%s18331_s1 + $0xf8] sm:$0xff]  ;;  %v292_v5 = vld [vmem:[%s18331_s1 + $0xc0] sm:$0xff]  ;;  %v370_v11 = vrot.slane %v11578_v59, 1  ;;  %v371_v12 = vrot.slane %v11581_v60, 1 }
  0x32   : > { %8889 = vmatpush1.msk.msra.mxu0 %vm551_vm0, %v8884_v23  ;;  %v297_v1 = vld [vmem:[%s18331_s1 + $0xe8] sm:$0xff]  ;;  %v296_v6 = vld [vmem:[%s18331_s1 + $0xe0] sm:$0xff]  ;;  %v294_v13 = vld [vmem:[%s18331_s1 + $0xd0] sm:$0xff]  ;;  %v10273_v17 = vpack.c.bf16 %v299_v4, %v295_v2 }
  0x33   : > { %8923 = vmatpush1.msk.msra.mxu1 %vm551_vm0, %v8886_v26  ;;  %8890 = vmatmul.mubr.msk.f32.vlgmr.msra.gmra.mrb[0].mxu0 %vm486_vm2, %v363_v27  ;;  %v298_v14 = vld [vmem:[%s18331_s1 + $0xf0] sm:$0xff]  ;;  %v11615_v15 = vld [vmem:[%s11447_s8 + $0x38] sm:$0xff]  ;;  %v10249_v16 = vpack.c.bf16 %v297_v1, %v293_v0  ;;  %v10251_v18 = vpack.c.bf16 %v296_v6, %v292_v5  ;;  %v301_v20 = vld [vmem:[%s18331_s1 + $0x108] sm:$0xff] }
  0x34   : > { %8924 = vmatmul.mubr.msk.f32.vlgmr.msra.gmra.mrb[0].mxu1 %vm486_vm2, %v363_v27  ;;  %10238 = vmatprep.subr.bf16.mxu0 %v10237_v28  ;;  %v305_v21 = vld [vmem:[%s18331_s1 + $0x128] sm:$0xff]  ;;  %v303_v22 = vld [vmem:[%s18331_s1 + $0x118] sm:$0xff]  ;;  %v10275_v23 = vpack.c.bf16 %v298_v14, %v294_v13  ;;  %v300_v25 = vld [vmem:[%s18331_s1 + $0x100] sm:$0xff]  ;;  %v372_v27 = vsel %vm360_vm1, %v370_v11, %v371_v12  ;;  %v373_v28 = vrot.slane %v11615_v15, 1 }
  0x35   : > { %10262 = vmatprep.subr.bf16.mxu1 %v10261_v30  ;;  %10240 = vmatpush1.bf16.msra.mxu0 %v10239_v31  ;;  %v307_v24 = vld [vmem:[%s18331_s1 + $0x138] sm:$0xff]  ;;  %v304_v26 = vld [vmem:[%s18331_s1 + $0x120] sm:$0xff]  ;;  %v302_v29 = vld [vmem:[%s18331_s1 + $0x110] sm:$0xff] }
  0x36   : > { %10264 = vmatpush1.bf16.msra.mxu1 %v10263_v33  ;;  %634 = vmatprep.mubr.f32.mxu0 %v11215_v7  ;;  %v306_v30 = vld [vmem:[%s18331_s1 + $0x130] sm:$0xff]  ;;  %v11648_v31 = vld [vmem:[%s11447_s8 + $0x40] sm:$0xff]  ;;  %v10253_v33 = vpack.c.bf16 %v305_v21, %v301_v20  ;;  %v10277_v34 = vpack.c.bf16 %v307_v24, %v303_v22  ;;  %v10255_v35 = vpack.c.bf16 %v304_v26, %v300_v25  ;;  %v309_v36 = vld [vmem:[%s18331_s1 + $0x148] sm:$0xff] }
  0x37   : > { %891 = vmatprep.mubr.f32.mxu1 %v11215_v7  ;;  %8891 = vmatmul.mubr.msk.f32.gmra.mrb[2].mxu0 %vm486_vm2, %v365_v40  ;;  %v313_v37 = vld [vmem:[%s18331_s1 + $0x168] sm:$0xff]  ;;  %v311_v38 = vld [vmem:[%s18331_s1 + $0x158] sm:$0xff]  ;;  %v10279_v39 = vpack.c.bf16 %v306_v30, %v302_v29  ;;  %v308_v41 = vld [vmem:[%s18331_s1 + $0x140] sm:$0xff]  ;;  %v374_v43 = vsel %vm360_vm1, %v371_v12, %v373_v28  ;;  %v375_v44 = vrot.slane %v11648_v31, 1 }
  0x38   : > { %8925 = vmatmul.mubr.msk.f32.gmra.mrb[2].mxu1 %vm486_vm2, %v365_v40  ;;  %640 = vmatprep.mubr.f32.mxu0 %v11215_v7  ;;  %v315_v40 = vld [vmem:[%s18331_s1 + $0x178] sm:$0xff]  ;;  %v312_v42 = vld [vmem:[%s18331_s1 + $0x160] sm:$0xff]  ;;  %v10257_v48 = vpack.c.bf16 %v313_v37, %v309_v36  ;;  %v11690_v54 = vld [vmem:[%s11447_s8 + $0x50] sm:$0xff] }
  0x39   : > { %897 = vmatprep.mubr.f32.mxu1 %v11215_v7  ;;  %10242 = vmatprep.subr.bf16.mxu0 %v10241_v45  ;;  %v310_v45 = vld [vmem:[%s18331_s1 + $0x150] sm:$0xff]  ;;  %v10281_v49 = vpack.c.bf16 %v315_v40, %v311_v38  ;;  %v10259_v50 = vpack.c.bf16 %v312_v42, %v308_v41  ;;  %v376_v52 = vsel %vm360_vm1, %v373_v28, %v375_v44  ;;  %v317_v56 = vld [vmem:[%s18331_s1 + $0x188] sm:$0x3f]  ;;  %v319_v57 = vld [vmem:[%s18331_s1 + $0x198] sm:$0x3f]  ;;  %v379_v2 = vrot.slane %v11690_v54, 1 }
  0x3a   : > { %10266 = vmatprep.subr.bf16.mxu1 %v10265_v46  ;;  %10244 = vmatpush1.bf16.msra.mxu0 %v10243_v47  ;;  %v314_v46 = vld [vmem:[%s18331_s1 + $0x170] sm:$0xff]  ;;  %v11681_v47 = vld [vmem:[%s11447_s8 + $0x48] sm:$0x3]  ;;  %v9031_v0 = vld [vmem:[%s18331_s1 + $0x378] sm:$0xff] }
  0x3b   : > { %8892 = vmatmul.mubr.msk.f32.gmra.mrb[4].mxu0 %vm486_vm2, %v367_v55  ;;  %10268 = vmatpush1.bf16.msra.mxu1 %v10267_v51  ;;  %v10283_v51 = vpack.c.bf16 %v314_v46, %v310_v45  ;;  %v377_v53 = vrot.slane %v11681_v47, 1  ;;  %v9025_v58 = vld [vmem:[%s18331_s1 + $0x348] sm:$0xff]  ;;  %v318_v4 = vld [vmem:[%s18331_s1 + $0x190] sm:$0x3f]  ;;  %v11727_v5 = vld [vmem:[%s11447_s8 + $0x60] sm:$0xff] }
  0x3c   : > { %8926 = vmatmul.mubr.msk.f32.gmra.mrb[4].mxu1 %vm486_vm2, %v367_v55  ;;  %646 = vmatprep.mubr.f32.mxu0 %v11215_v7  ;;  %v11693_v55 = vld [vmem:[%s11447_s8 + $0x58] sm:$0xff]  ;;  %v382_v12 = vrot.slane %v11727_v5, 1  ;;  %v11740_v13 = vld [vmem:[%s11447_s8 + $0x68] sm:$0xff]  ;;  %v11761_v22 = vld [vmem:[%s11447_s8 + $0x80] sm:$0xff] }
  0x3d   : > { %903 = vmatprep.mubr.f32.mxu1 %v11215_v7  ;;  %10246 = vmatprep.subr.bf16.mxu0 %v10245_v61  ;;  %v9029_v61 = vld [vmem:[%s18331_s1 + $0x368] sm:$0xff]  ;;  %v378_v1 = vsel %vm360_vm1, %v375_v44, %v377_v53  ;;  %v11758_v21 = vld [vmem:[%s11447_s8 + $0x78] sm:$0xff]  ;;  %v389_v25 = vrot.slane %v11761_v22, 1  ;;  %v11780_v29 = vld [vmem:[%s11447_s8 + $0x90] sm:$0xff] }
  0x3e   : > { %10270 = vmatprep.subr.bf16.mxu1 %v10269_v62  ;;  %10248 = vmatpush1.bf16.msra.mxu0 %v10247_v63  ;;  %v316_v62 = vld [vmem:[%s18331_s1 + $0x180] sm:$0x3f]  ;;  %v9027_v63 = vld [vmem:[%s18331_s1 + $0x358] sm:$0xff]  ;;  %v10285_v6 = vpack.c.bf16 %v9029_v61, %v9025_v58  ;;  %v388_v24 = vrot.slane %v11758_v21, 1  ;;  %v11771_v26 = vld [vmem:[%s11447_s8 + $0x88] sm:$0xff] }
  0x3f   : > { %8893 = vmatmul.mubr.msk.f32.gmra.mrb[6].mxu0 %vm486_vm2, %v369_v10  ;;  %10272 = vmatpush1.bf16.msra.mxu1 %v10271_v3  ;;  %v380_v3 = vrot.slane %v11693_v55, 1  ;;  %v391_v28 = vrot.slane %v11771_v26, 1  ;;  %v11798_v37 = vld [vmem:[%s11447_s8 + $0xa0] sm:$0xff]  ;;  %v11801_v38 = vld [vmem:[%s11447_s8 + $0xa8] sm:$0xff]  ;;  %v11811_v42 = vld [vmem:[%s11447_s8 + $0xb0] sm:$0xff] }
  0x40   : > { %8927 = vmatmul.mubr.msk.f32.gmra.mrb[6].mxu1 %vm486_vm2, %v369_v10  ;;  %652 = vmatprep.mubr.f32.mxu0 %v11215_v7  ;;  %v10309_v10 = vpack.c.bf16 %v9031_v0, %v9027_v63  ;;  %v397_v40 = vrot.slane %v11798_v37, 1  ;;  %v398_v41 = vrot.slane %v11801_v38, 1  ;;  %v400_v44 = vrot.slane %v11811_v42, 1  ;;  %v11820_v45 = vld [vmem:[%s11447_s8 + $0xb8] sm:$0xff]  ;;  %v11841_v53 = vld [vmem:[%s11447_s8 + $0xd0] sm:$0xff]  ;;  %v11860_v0 = vld [vmem:[%s11447_s8 + $0xe0] sm:$0xff] }
  0x41   : > { %909 = vmatprep.mubr.f32.mxu1 %v11215_v7  ;;  %10250 = vmatprep.subr.bf16.mxu0 %v10249_v16  ;;  %v381_v11 = vsel %vm360_vm1, %v379_v2, %v380_v3  ;;  %v383_v14 = vsel %vm360_vm1, %v380_v3, %v382_v12  ;;  %v384_v16 = vrot.slane %v11740_v13, 1  ;;  %v392_v30 = vsel %vm360_vm1, %v389_v25, %v391_v28  ;;  %v11851_v61 = vld [vmem:[%s11447_s8 + $0xd8] sm:$0xff]  ;;  %v11869_v3 = vld [vmem:[%s11447_s8 + $0xe8] sm:$0x3] }
  0x42   : > { %10274 = vmatprep.subr.bf16.mxu1 %v10273_v17  ;;  %10252 = vmatpush1.bf16.msra.mxu0 %v10251_v18  ;;  %v11749_v17 = vld [vmem:[%s11447_s8 + $0x70] sm:$0x3]  ;;  %v401_v46 = vsel %vm360_vm1, %v398_v41, %v400_v44  ;;  %v407_v58 = vrot.slane %v11841_v53, 1  ;;  %v409_v63 = vrot.slane %v11851_v61, 1  ;;  %v411_v2 = vrot.slane %v11860_v0, 1 }
  0x43   : > { %8894 = vmatmul.mubr.msk.f32.gmra.mrb[8].mxu0 %vm486_vm2, %v372_v27  ;;  %10276 = vmatpush1.bf16.msra.mxu1 %v10275_v23  ;;  %v385_v18 = vsel %vm360_vm1, %v382_v12, %v384_v16  ;;  %v386_v20 = vrot.slane %v11749_v17, 1 }
  0x44   : > { %8928 = vmatmul.mubr.msk.f32.gmra.mrb[8].mxu1 %vm486_vm2, %v372_v27  ;;  %658 = vmatprep.mubr.f32.mxu0 %v11215_v7  ;;  %v390_v27 = vsel %vm360_vm1, %v388_v24, %v389_v25  ;;  %v11900_v24 = vld [vmem:[%s11447_s8 + $0x108] sm:$0xff] }
  0x45   : > { %915 = vmatprep.mubr.f32.mxu1 %v11215_v7  ;;  %10254 = vmatprep.subr.bf16.mxu0 %v10253_v33  ;;  %v387_v23 = vsel %vm360_vm1, %v384_v16, %v386_v20  ;;  %v393_v33 = vrot.slane %v11780_v29, 1 }
  0x46   : > { %10278 = vmatprep.subr.bf16.mxu1 %v10277_v34  ;;  %10256 = vmatpush1.bf16.msra.mxu0 %v10255_v35  ;;  %v11789_v34 = vld [vmem:[%s11447_s8 + $0x98] sm:$0x3] }
  0x47   : > { %8895 = vmatmul.mubr.msk.f32.gmra.mrb[10].mxu0 %vm486_vm2, %v374_v43  ;;  %10280 = vmatpush1.bf16.msra.mxu1 %v10279_v39  ;;  %v394_v35 = vsel %vm360_vm1, %v391_v28, %v393_v33  ;;  %v395_v36 = vrot.slane %v11789_v34, 1  ;;  %v11909_v28 = vld [vmem:[%s11447_s8 + $0x110] sm:$0x3] }
  0x48   : > { %8929 = vmatmul.mubr.msk.f32.gmra.mrb[10].mxu1 %vm486_vm2, %v374_v43  ;;  %664 = vmatprep.mubr.f32.mxu0 %v11215_v7  ;;  %v399_v43 = vsel %vm360_vm1, %v397_v40, %v398_v41 }
  0x49   : > { %921 = vmatprep.mubr.f32.mxu1 %v11215_v7  ;;  %10258 = vmatprep.subr.bf16.mxu0 %v10257_v48  ;;  %v396_v39 = vsel %vm360_vm1, %v393_v33, %v395_v36  ;;  %v402_v48 = vrot.slane %v11820_v45, 1  ;;  %v422_v33 = vrot.slane %v11909_v28, 1  ;;  %v11921_v36 = vld [vmem:[%s11447_s8 + $0x120] sm:$0xff] }
  0x4a   : > { %10282 = vmatprep.subr.bf16.mxu1 %v10281_v49  ;;  %10260 = vmatpush1.bf16.msra.mxu0 %v10259_v50  ;;  %v11829_v49 = vld [vmem:[%s11447_s8 + $0xc0] sm:$0x3]  ;;  %v425_v41 = vrot.slane %v11921_v36, 1 }
  0x4b   : > { %8896 = vmatmul.mubr.msk.f32.gmra.mrb[12].mxu0 %vm486_vm2, %v376_v52  ;;  %10284 = vmatpush1.bf16.msra.mxu1 %v10283_v51  ;;  %v403_v50 = vsel %vm360_vm1, %v400_v44, %v402_v48  ;;  %v404_v51 = vrot.slane %v11829_v49, 1 }
  0x4c   : > { %8930 = vmatmul.mubr.msk.f32.gmra.mrb[12].mxu1 %vm486_vm2, %v376_v52  ;;  %670 = vmatprep.mubr.f32.mxu0 %v11215_v7  ;;  %v11838_v52 = vld [vmem:[%s11447_s8 + $0xc8] sm:$0xff] }
  0x4d   : > { %927 = vmatprep.mubr.f32.mxu1 %v11215_v7  ;;  %8956 = vmatprep.subr.msk.mxu0 %vm551_vm0, %v317_v56  ;;  %v405_v56 = vsel %vm360_vm1, %v402_v48, %v404_v51  ;;  %v11940_v48 = vld [vmem:[%s11447_s8 + $0x130] sm:$0xff] }
  0x4e   : > { %8990 = vmatprep.subr.msk.mxu1 %vm551_vm0, %v319_v57  ;;  %8957 = vmatpush1.msk.msra.mxu0 %vm551_vm0, %v316_v62  ;;  %v406_v57 = vrot.slane %v11838_v52, 1  ;;  %v429_v51 = vrot.slane %v11940_v48, 1 }
  0x4f   : > { %8897 = vmatmul.mubr.msk.f32.gmra.mrb[14].mxu0 %vm486_vm2, %v378_v1  ;;  %8991 = vmatpush1.msk.msra.mxu1 %vm551_vm0, %v318_v4  ;;  %v412_v4 = vsel %vm360_vm1, %v409_v63, %v411_v2 }
  0x50   : > { %8931 = vmatmul.mubr.msk.f32.gmra.mrb[14].mxu1 %vm486_vm2, %v378_v1  ;;  %676 = vmatprep.mubr.f32.mxu0 %v11215_v7  ;;  %v408_v62 = vsel %vm360_vm1, %v406_v57, %v407_v58  ;;  %v410_v1 = vsel %vm360_vm1, %v407_v58, %v409_v63  ;;  %v9024_v63 = vld [vmem:[%s18331_s1 + $0x340] sm:$0xff] }
  0x51   : > { %933 = vmatprep.mubr.f32.mxu1 %v11215_v7  ;;  %10286 = vmatprep.subr.bf16.mxu0 %v10285_v6  ;;  %v413_v6 = vrot.slane %v11869_v3, 1 }
  0x52   : > { %10310 = vmatprep.subr.bf16.mxu1 %v10309_v10  ;;  %v11878_v10 = vld [vmem:[%s11447_s8 + $0xf0] sm:$0xff] }
  0x53   : > { %8898 = vmatmul.mubr.msk.f32.gmra.mrb[16].mxu0 %vm486_vm2, %v381_v11  ;;  %v414_v12 = vsel %vm360_vm1, %v411_v2, %v413_v6  ;;  %v9026_v2 = vld [vmem:[%s18331_s1 + $0x350] sm:$0xff]  ;;  %v9033_v6 = vld [vmem:[%s18331_s1 + $0x388] sm:$0xff] }
  0x54   : > { %8932 = vmatmul.mubr.msk.f32.gmra.mrb[16].mxu1 %vm486_vm2, %v381_v11  ;;  %682 = vmatprep.mubr.f32.mxu0 %v11215_v7  ;;  %v11881_v11 = vld [vmem:[%s11447_s8 + $0xf8] sm:$0xff] }
  0x55   : > { %939 = vmatprep.mubr.f32.mxu1 %v11215_v7  ;;  %v416_v16 = vrot.slane %v11881_v11, 1 }
  0x57   : > { %8899 = vmatmul.mubr.msk.f32.gmra.mrb[18].mxu0 %vm486_vm2, %v383_v14 }
  0x58   : > { %8933 = vmatmul.mubr.msk.f32.gmra.mrb[18].mxu1 %vm486_vm2, %v383_v14  ;;  %688 = vmatprep.mubr.f32.mxu0 %v11215_v7  ;;  %v415_v14 = vrot.slane %v11878_v10, 1 }
  0x59   : > { %945 = vmatprep.mubr.f32.mxu1 %v11215_v7 }
  0x5a   : > { %v417_v20 = vsel %vm360_vm1, %v415_v14, %v416_v16 }
  0x5b   : > { %8900 = vmatmul.mubr.msk.f32.gmra.mrb[20].mxu0 %vm486_vm2, %v385_v18 }
  0x5c   : > { %8934 = vmatmul.mubr.msk.f32.gmra.mrb[20].mxu1 %vm486_vm2, %v385_v18  ;;  %694 = vmatprep.mubr.f32.mxu0 %v11215_v7  ;;  %v11891_v18 = vld [vmem:[%s11447_s8 + $0x100] sm:$0xff] }
  0x5d   : > { %951 = vmatprep.mubr.f32.mxu1 %v11215_v7 }
  0x5f   : > { %8901 = vmatmul.mubr.msk.f32.gmra.mrb[22].mxu0 %vm486_vm2, %v387_v23 }
  0x60   : > { %8935 = vmatmul.mubr.msk.f32.gmra.mrb[22].mxu1 %vm486_vm2, %v387_v23  ;;  %700 = vmatprep.mubr.f32.mxu0 %v11215_v7  ;;  %v418_v23 = vrot.slane %v11891_v18, 1 }
  0x61   : > { %957 = vmatprep.mubr.f32.mxu1 %v11215_v7 }
  0x62   : > { %v419_v25 = vsel %vm360_vm1, %v416_v16, %v418_v23  ;;  %v9035_v16 = vld [vmem:[%s18331_s1 + $0x398] sm:$0xff] }
  0x63   : > { %8902 = vmatmul.mubr.msk.f32.gmra.mrb[24].mxu0 %vm486_vm2, %v390_v27 }
  0x64   : > { %8936 = vmatmul.mubr.msk.f32.gmra.mrb[24].mxu1 %vm486_vm2, %v390_v27  ;;  %706 = vmatprep.mubr.f32.mxu0 %v11215_v7  ;;  %v420_v27 = vrot.slane %v11900_v24, 1 }
  0x65   : > { %963 = vmatprep.mubr.f32.mxu1 %v11215_v7 }
  0x67   : > { %8903 = vmatmul.mubr.msk.f32.gmra.mrb[26].mxu0 %vm486_vm2, %v392_v30 }
  0x68   : > { %8937 = vmatmul.mubr.msk.f32.gmra.mrb[26].mxu1 %vm486_vm2, %v392_v30  ;;  %712 = vmatprep.mubr.f32.mxu0 %v11215_v7  ;;  %v421_v30 = vsel %vm360_vm1, %v418_v23, %v420_v27 }
  0x69   : > { %969 = vmatprep.mubr.f32.mxu1 %v11215_v7 }
  0x6b   : > { %8904 = vmatmul.mubr.msk.f32.gmra.mrb[28].mxu0 %vm486_vm2, %v394_v35 }
  0x6c   : > { %8938 = vmatmul.mubr.msk.f32.gmra.mrb[28].mxu1 %vm486_vm2, %v394_v35  ;;  %718 = vmatprep.mubr.f32.mxu0 %v11215_v7  ;;  %v11918_v35 = vld [vmem:[%s11447_s8 + $0x118] sm:$0xff] }
  0x6d   : > { %975 = vmatprep.mubr.f32.mxu1 %v11215_v7  ;;  %v424_v40 = vrot.slane %v11918_v35, 1 }
  0x6f   : > { %8905 = vmatmul.mubr.msk.f32.gmra.mrb[30].mxu0 %vm486_vm2, %v396_v39  ;;  %v426_v44 = vsel %vm360_vm1, %v424_v40, %v425_v41  ;;  %v9038_v40 = vld [vmem:[%s18331_s1 + $0x3b0] sm:$0xff] }
  0x70   : > { %8939 = vmatmul.mubr.msk.f32.gmra.mrb[30].mxu1 %vm486_vm2, %v396_v39  ;;  %724 = vmatprep.mubr.f32.mxu0 %v11215_v7  ;;  %v423_v39 = vsel %vm360_vm1, %v420_v27, %v422_v33  ;;  %v9032_v27 = vld [vmem:[%s18331_s1 + $0x380] sm:$0xff]  ;;  %v9034_v33 = vld [vmem:[%s18331_s1 + $0x390] sm:$0xff] }
  0x71   : > { %981 = vmatprep.mubr.f32.mxu1 %v11215_v7 }
  0x73   : > { %8906 = vmatmul.mubr.msk.f32.gmra.mrb[32].mxu0 %vm486_vm2, %v399_v43 }
  0x74   : > { %8940 = vmatmul.mubr.msk.f32.gmra.mrb[32].mxu1 %vm486_vm2, %v399_v43  ;;  %730 = vmatprep.mubr.f32.mxu0 %v11215_v7  ;;  %v11931_v43 = vld [vmem:[%s11447_s8 + $0x128] sm:$0xff] }
  0x75   : > { %987 = vmatprep.mubr.f32.mxu1 %v11215_v7 }
  0x77   : > { %8907 = vmatmul.mubr.msk.f32.gmra.mrb[34].mxu0 %vm486_vm2, %v401_v46 }
  0x78   : > { %8941 = vmatmul.mubr.msk.f32.gmra.mrb[34].mxu1 %vm486_vm2, %v401_v46  ;;  %736 = vmatprep.mubr.f32.mxu0 %v11215_v7  ;;  %v427_v46 = vrot.slane %v11931_v43, 1 }
  0x79   : > { %993 = vmatprep.mubr.f32.mxu1 %v11215_v7 }
  0x7a   : > { %v430_v57 = vsel %vm360_vm1, %v427_v46, %v429_v51 }
  0x7b   : > { %8908 = vmatmul.mubr.msk.f32.gmra.mrb[36].mxu0 %vm486_vm2, %v403_v50 }
  0x7c   : > { %8942 = vmatmul.mubr.msk.f32.gmra.mrb[36].mxu1 %vm486_vm2, %v403_v50  ;;  %742 = vmatprep.mubr.f32.mxu0 %v11215_v7  ;;  %v428_v50 = vsel %vm360_vm1, %v425_v41, %v427_v46  ;;  %v9041_v41 = vld [vmem:[%s18331_s1 + $0x3c8] sm:$0xff]  ;;  %v9043_v46 = vld [vmem:[%s18331_s1 + $0x3d8] sm:$0xff] }
  0x7d   : > { %999 = vmatprep.mubr.f32.mxu1 %v11215_v7 }
  0x7f   : > { %8909 = vmatmul.mubr.msk.f32.gmra.mrb[38].mxu0 %vm486_vm2, %v405_v56 }
  0x80   : > { %8943 = vmatmul.mubr.msk.f32.gmra.mrb[38].mxu1 %vm486_vm2, %v405_v56  ;;  %748 = vmatprep.mubr.f32.mxu0 %v11215_v7  ;;  %v11949_v56 = vld [vmem:[%s11447_s8 + $0x138] sm:$0x3] }
  0x81   : > { %1005 = vmatprep.mubr.f32.mxu1 %v11215_v7  ;;  %v431_v58 = vrot.slane %v11949_v56, 1 }
  0x83   : > { %8910 = vmatmul.mubr.msk.f32.gmra.mrb[40].mxu0 %vm486_vm2, %v408_v62 }
  0x84   : > { %8944 = vmatmul.mubr.msk.f32.gmra.mrb[40].mxu1 %vm486_vm2, %v408_v62  ;;  %754 = vmatprep.mubr.f32.mxu0 %v11215_v7  ;;  %v432_v62 = vsel %vm360_vm1, %v429_v51, %v431_v58 }
  0x85   : > { %1011 = vmatprep.mubr.f32.mxu1 %v11215_v7 }
  0x87   : > { %8911 = vmatmul.mubr.msk.f32.gmra.mrb[42].mxu0 %vm486_vm2, %v410_v1 }
  0x88   : > { %8945 = vmatmul.mubr.msk.f32.gmra.mrb[42].mxu1 %vm486_vm2, %v410_v1  ;;  %760 = vmatprep.mubr.f32.mxu0 %v11215_v7  ;;  %v9028_v1 = vld [vmem:[%s18331_s1 + $0x360] sm:$0xff] }
  0x89   : > { %1017 = vmatprep.mubr.f32.mxu1 %v11215_v7  ;;  %v10287_v14 = vpack.c.bf16 %v9028_v1, %v9024_v63  ;;  %v9042_v63 = vld [vmem:[%s18331_s1 + $0x3d0] sm:$0xff] }
  0x8b   : > { %8912 = vmatmul.mubr.msk.f32.gmra.mrb[44].mxu0 %vm486_vm2, %v412_v4 }
  0x8c   : > { %8946 = vmatmul.mubr.msk.f32.gmra.mrb[44].mxu1 %vm486_vm2, %v412_v4  ;;  %766 = vmatprep.mubr.f32.mxu0 %v11215_v7  ;;  %v9030_v4 = vld [vmem:[%s18331_s1 + $0x370] sm:$0xff] }
  0x8d   : > { %1023 = vmatprep.mubr.f32.mxu1 %v11215_v7  ;;  %v10311_v23 = vpack.c.bf16 %v9030_v4, %v9026_v2  ;;  %v9046_v2 = vld [vmem:[%s18331_s1 + $0x3f0] sm:$0xff]  ;;  %v9049_v4 = vld [vmem:[%s18331_s1 + $0x408] sm:$0xff] }
  0x8f   : > { %8913 = vmatmul.mubr.msk.f32.gmra.mrb[46].mxu0 %vm486_vm2, %v414_v12 }
  0x90   : > { %8947 = vmatmul.mubr.msk.f32.gmra.mrb[46].mxu1 %vm486_vm2, %v414_v12  ;;  %772 = vmatprep.mubr.f32.mxu0 %v11215_v7  ;;  %v9037_v12 = vld [vmem:[%s18331_s1 + $0x3a8] sm:$0xff] }
  0x91   : > { %1029 = vmatprep.mubr.f32.mxu1 %v11215_v7 }
  0x93   : > { %8914 = vmatmul.mubr.msk.f32.gmra.mrb[48].mxu0 %vm486_vm2, %v417_v20 }
  0x94   : > { %8948 = vmatmul.mubr.msk.f32.gmra.mrb[48].mxu1 %vm486_vm2, %v417_v20  ;;  %778 = vmatprep.mubr.f32.mxu0 %v11215_v7  ;;  %v9039_v20 = vld [vmem:[%s18331_s1 + $0x3b8] sm:$0xff] }
  0x95   : > { %1035 = vmatprep.mubr.f32.mxu1 %v11215_v7 }
  0x97   : > { %8915 = vmatmul.mubr.msk.f32.gmra.mrb[50].mxu0 %vm486_vm2, %v419_v25 }
  0x98   : > { %8949 = vmatmul.mubr.msk.f32.gmra.mrb[50].mxu1 %vm486_vm2, %v419_v25  ;;  %784 = vmatprep.mubr.f32.mxu0 %v11215_v7  ;;  %v10289_v25 = vpack.c.bf16 %v9037_v12, %v9033_v6  ;;  %v9053_v6 = vld [vmem:[%s18331_s1 + $0x428] sm:$0xff]  ;;  %v9051_v12 = vld [vmem:[%s18331_s1 + $0x418] sm:$0xff] }
  0x99   : > { %1041 = vmatprep.mubr.f32.mxu1 %v11215_v7 }
  0x9b   : > { %8916 = vmatmul.mubr.msk.f32.gmra.mrb[52].mxu0 %vm486_vm2, %v421_v30 }
  0x9c   : > { %8950 = vmatmul.mubr.msk.f32.gmra.mrb[52].mxu1 %vm486_vm2, %v421_v30  ;;  %790 = vmatprep.mubr.f32.mxu0 %v11215_v7  ;;  %v9036_v30 = vld [vmem:[%s18331_s1 + $0x3a0] sm:$0xff] }
  0x9d   : > { %1047 = vmatprep.mubr.f32.mxu1 %v11215_v7  ;;  %v10291_v51 = vpack.c.bf16 %v9036_v30, %v9032_v27  ;;  %v9050_v27 = vld [vmem:[%s18331_s1 + $0x410] sm:$0xff] }
  0x9f   : > { %8917 = vmatmul.mubr.msk.f32.gmra.mrb[54].mxu0 %vm486_vm2, %v423_v39 }
  0xa0   : > { %8951 = vmatmul.mubr.msk.f32.gmra.mrb[54].mxu1 %vm486_vm2, %v423_v39  ;;  %796 = vmatprep.mubr.f32.mxu0 %v11215_v7  ;;  %v10313_v39 = vpack.c.bf16 %v9039_v20, %v9035_v16  ;;  %v10319_v20 = vpack.c.bf16 %v9046_v2, %v9042_v63  ;;  %v9065_v63 = vld [vmem:[%s18331_s1 + $0x488] sm:$0xff]  ;;  %v9067_v2 = vld [vmem:[%s18331_s1 + $0x498] sm:$0xff] }
  0xa1   : > { %1053 = vmatprep.mubr.f32.mxu1 %v11215_v7 }
  0xa3   : > { %8918 = vmatmul.mubr.msk.f32.gmra.mrb[56].mxu0 %vm486_vm2, %v426_v44 }
  0xa4   : > { %8952 = vmatmul.mubr.msk.f32.gmra.mrb[56].mxu1 %vm486_vm2, %v426_v44  ;;  %802 = vmatprep.mubr.f32.mxu0 %v11215_v7  ;;  %v9045_v44 = vld [vmem:[%s18331_s1 + $0x3e8] sm:$0xff] }
  0xa5   : > { %1059 = vmatprep.mubr.f32.mxu1 %v11215_v7  ;;  %v10293_v58 = vpack.c.bf16 %v9045_v44, %v9041_v41  ;;  %v9059_v41 = vld [vmem:[%s18331_s1 + $0x458] sm:$0xff] }
  0xa6   : > { %v9063_v44 = vld [vmem:[%s18331_s1 + $0x478] sm:$0xff] }
  0xa7   : > { %8919 = vmatmul.mubr.msk.f32.gmra.mrb[58].mxu0 %vm486_vm2, %v428_v50 }
  0xa8   : > { %8953 = vmatmul.mubr.msk.f32.gmra.mrb[58].mxu1 %vm486_vm2, %v428_v50  ;;  %808 = vmatprep.mubr.f32.mxu0 %v11215_v7  ;;  %v9047_v50 = vld [vmem:[%s18331_s1 + $0x3f8] sm:$0xff] }
  0xa9   : > { %1065 = vmatprep.mubr.f32.mxu1 %v11215_v7  ;;  %v10317_v1 = vpack.c.bf16 %v9047_v50, %v9043_v46 }
  0xab   : > { %8920 = vmatmul.mubr.msk.f32.gmra.mrb[60].mxu0 %vm486_vm2, %v430_v57 }
  0xac   : > { %8954 = vmatmul.mubr.msk.f32.gmra.mrb[60].mxu1 %vm486_vm2, %v430_v57  ;;  %814 = vmatprep.mubr.f32.mxu0 %v11215_v7  ;;  %v10315_v57 = vpack.c.bf16 %v9038_v40, %v9034_v33  ;;  %v9054_v33 = vld [vmem:[%s18331_s1 + $0x430] sm:$0xff]  ;;  %v9061_v40 = vld [vmem:[%s18331_s1 + $0x468] sm:$0xff] }
  0xad   : > { %1071 = vmatprep.mubr.f32.mxu1 %v11215_v7  ;;  %v10323_v50 = vpack.c.bf16 %v9054_v33, %v9050_v27  ;;  %v9072_v33 = vld [vmem:[%s18331_s1 + $0x4c0] sm:$0x3f] }
  0xaf   : > { %8921 = vmatmul.mubr.msk.f32.gmra.mrb[62].mxu0 %vm486_vm2, %v432_v62 }
  0xb0   : > { %8955 = vmatmul.mubr.msk.f32.gmra.mrb[62].mxu1 %vm486_vm2, %v432_v62  ;;  %1218 = vmatprep.mubr.f32.mxu0 %v11215_v7  ;;  %v9044_v62 = vld [vmem:[%s18331_s1 + $0x3e0] sm:$0xff] }
  0xb1   : > { %1475 = vmatprep.mubr.f32.mxu1 %v11215_v7 }
  0xb3   : > { %8958 = vmatmul.mubr.msk.f32.vlgmr.msra.gmra.mrb[0].mxu0 %vm486_vm2, %v11462_v8 }
  0xb4   : > { %8992 = vmatmul.mubr.msk.f32.vlgmr.msra.gmra.mrb[0].mxu1 %vm486_vm2, %v11462_v8  ;;  %10288 = vmatpush1.bf16.msra.mxu0 %v10287_v14  ;;  %v9040_v8 = vld [vmem:[%s18331_s1 + $0x3c0] sm:$0xff]  ;;  %v9055_v14 = vld [vmem:[%s18331_s1 + $0x438] sm:$0xff] }
  0xb5   : > { %10312 = vmatpush1.bf16.msra.mxu1 %v10311_v23  ;;  %1224 = vmatprep.mubr.f32.mxu0 %v11215_v7  ;;  %v10295_v16 = vpack.c.bf16 %v9044_v62, %v9040_v8  ;;  %v10297_v23 = vpack.c.bf16 %v9053_v6, %v9049_v4  ;;  %v10321_v30 = vpack.c.bf16 %v9055_v14, %v9051_v12  ;;  %v9062_v62 = vld [vmem:[%s18331_s1 + $0x470] sm:$0xff]  ;;  %v9071_v4 = vld [vmem:[%s18331_s1 + $0x4b8] sm:$0xff] }
  0xb6   : > { %1481 = vmatprep.mubr.f32.mxu1 %v11215_v7  ;;  %10290 = vmatprep.subr.bf16.mxu0 %v10289_v25  ;;  %v9052_v25 = vld [vmem:[%s18331_s1 + $0x420] sm:$0xff]  ;;  %v10325_v8 = vpack.c.bf16 %v9063_v44, %v9059_v41 }
  0xb7   : > { %8959 = vmatmul.mubr.msk.f32.gmra.mrb[2].mxu0 %vm486_vm2, %v11465_v9  ;;  %10314 = vmatprep.subr.bf16.mxu1 %v10313_v39  ;;  %v9057_v39 = vld [vmem:[%s18331_s1 + $0x448] sm:$0xff] }
  0xb8   : > { %8993 = vmatmul.mubr.msk.f32.gmra.mrb[2].mxu1 %vm486_vm2, %v11465_v9  ;;  %1230 = vmatprep.mubr.f32.mxu0 %v11215_v7  ;;  %v9048_v9 = vld [vmem:[%s18331_s1 + $0x400] sm:$0xff] }
  0xb9   : > { %1487 = vmatprep.mubr.f32.mxu1 %v11215_v7  ;;  %10292 = vmatpush1.bf16.msra.mxu0 %v10291_v51  ;;  %v10299_v46 = vpack.c.bf16 %v9052_v25, %v9048_v9  ;;  %v10301_v51 = vpack.c.bf16 %v9061_v40, %v9057_v39  ;;  %v9070_v9 = vld [vmem:[%s18331_s1 + $0x4b0] sm:$0xff]  ;;  %v11144_v40 = vld [vmem:[%s11447_s8 + $0x8] sm:$0xff] }
  0xba   : > { %10316 = vmatpush1.bf16.msra.mxu1 %v10315_v57  ;;  %10294 = vmatprep.subr.bf16.mxu0 %v10293_v58  ;;  %v9060_v57 = vld [vmem:[%s18331_s1 + $0x460] sm:$0xff]  ;;  %v9058_v58 = vld [vmem:[%s18331_s1 + $0x450] sm:$0xff]  ;;  %v1669_v41 = vrot.slane %v11144_v40, 2  ;;  %v1704_v40 = vrot.slane %v11798_v37, 2 }
  0xbb   : > { %8960 = vmatmul.mubr.msk.f32.gmra.mrb[4].mxu0 %vm486_vm2, %v11485_v19  ;;  %10318 = vmatprep.subr.bf16.mxu1 %v10317_v1  ;;  %v9069_v1 = vld [vmem:[%s18331_s1 + $0x4a8] sm:$0xff]  ;;  %v10327_v12 = vpack.c.bf16 %v9062_v62, %v9058_v58 }
  0xbc   : > { %8994 = vmatmul.mubr.msk.f32.gmra.mrb[4].mxu1 %vm486_vm2, %v11485_v19  ;;  %1236 = vmatprep.mubr.f32.mxu0 %v11215_v7  ;;  %v9056_v19 = vld [vmem:[%s18331_s1 + $0x440] sm:$0xff]  ;;  %v10305_v14 = vpack.c.bf16 %v9069_v1, %v9065_v63  ;;  %v11148_v1 = vld [vmem:[%s11447_s8 + $0x28] sm:$0xff] }
  0xbd   : > { %1493 = vmatprep.mubr.f32.mxu1 %v11215_v7  ;;  %10296 = vmatpush1.bf16.msra.mxu0 %v10295_v16  ;;  %v10303_v6 = vpack.c.bf16 %v9060_v57, %v9056_v19  ;;  %v9068_v16 = vld [vmem:[%s18331_s1 + $0x4a0] sm:$0xff]  ;;  %v11146_v19 = vld [vmem:[%s11447_s8 + $0x18] sm:$0xff] }
  0xbe   : > { %10320 = vmatpush1.bf16.msra.mxu1 %v10319_v20  ;;  %10298 = vmatprep.subr.bf16.mxu0 %v10297_v23  ;;  %v10329_v20 = vpack.c.bf16 %v9071_v4, %v9067_v2  ;;  %v9066_v23 = vld [vmem:[%s18331_s1 + $0x490] sm:$0xff]  ;;  %v1673_v57 = vrot.slane %v11146_v19, 2  ;;  %v1677_v2 = vrot.slane %v11148_v1, 2  ;;  %v1716_v19 = vrot.slane %v11851_v61, 2 }
  0xbf   : > { %8961 = vmatmul.mubr.msk.f32.gmra.mrb[6].mxu0 %vm486_vm2, %v11513_v32  ;;  %10322 = vmatprep.subr.bf16.mxu1 %v10321_v30  ;;  %v10331_v27 = vpack.c.bf16 %v9070_v9, %v9066_v23  ;;  %v9073_v30 = vld [vmem:[%s18331_s1 + $0x4c8] sm:$0x3f]  ;;  %v11149_v4 = vld [vmem:[%s11447_s8 + $0x30] sm:$0xff]  ;;  %v1684_v9 = vrot.slane %v11681_v47, 2  ;;  %v1731_v1 = vrot.slane %v11918_v35, 2 }
  0xc0   : > { %8995 = vmatmul.mubr.msk.f32.gmra.mrb[6].mxu1 %vm486_vm2, %v11513_v32  ;;  %1242 = vmatprep.mubr.f32.mxu0 %v11215_v7  ;;  %v9064_v32 = vld [vmem:[%s18331_s1 + $0x480] sm:$0xff] }
  0xc1   : > { %1499 = vmatprep.mubr.f32.mxu1 %v11215_v7  ;;  %10300 = vmatpush1.bf16.msra.mxu0 %v10299_v46  ;;  %v10307_v25 = vpack.c.bf16 %v9068_v16, %v9064_v32  ;;  %v11145_v46 = vld [vmem:[%s11447_s8 + $0x10] sm:$0xff] }
  0xc2   : > { %10324 = vmatpush1.bf16.msra.mxu1 %v10323_v50  ;;  %10302 = vmatprep.subr.bf16.mxu0 %v10301_v51  ;;  %v1671_v50 = vrot.slane %v11145_v46, 2  ;;  %v1711_v46 = vrot.slane %v11829_v49, 2 }
  0xc3   : > { %8962 = vmatmul.mubr.msk.f32.gmra.mrb[8].mxu0 %vm486_vm2, %v11578_v59  ;;  %10326 = vmatprep.subr.bf16.mxu1 %v10325_v8  ;;  %v11147_v8 = vld [vmem:[%s11447_s8 + $0x20] sm:$0x3] }
  0xc4   : > { %8996 = vmatmul.mubr.msk.f32.gmra.mrb[8].mxu1 %vm486_vm2, %v11578_v59  ;;  %1248 = vmatprep.mubr.f32.mxu0 %v11215_v7  ;;  %v9075_v59 = vld [vmem:[%s18331_s1 + $0x4d8] sm:$0x3f]  ;;  %v1672_v51 = vsel %vm551_vm0, %v1669_v41, %v1671_v50  ;;  %v1674_v58 = vsel %vm551_vm0, %v1671_v50, %v1673_v57  ;;  %v1675_v62 = vrot.slane %v11147_v8, 2  ;;  %v1713_v50 = vrot.slane %v11838_v52, 2 }
  0xc5   : > { %1505 = vmatprep.mubr.f32.mxu1 %v11215_v7  ;;  %10304 = vmatpush1.bf16.msra.mxu0 %v10303_v6  ;;  %v1678_v6 = vrot.slane %v11149_v4, 2  ;;  %v1723_v8 = vrot.slane %v11881_v11, 2  ;;  %v1734_v4 = vrot.slane %v11931_v43, 2 }
  0xc6   : > { %10328 = vmatpush1.bf16.msra.mxu1 %v10327_v12  ;;  %10306 = vmatprep.subr.bf16.mxu0 %v10305_v14  ;;  %v1676_v63 = vsel %vm551_vm0, %v1673_v57, %v1675_v62  ;;  %v11150_v14 = vld [vmem:[%s11447_s8 + $0x38] sm:$0xff]  ;;  %v1720_v57 = vrot.slane %v11869_v3, 2  ;;  %v1725_v62 = vrot.slane %v11891_v18, 2 }
  0xc7   : > { %8963 = vmatmul.mubr.msk.f32.gmra.mrb[10].mxu0 %vm486_vm2, %v11581_v60  ;;  %10330 = vmatprep.subr.bf16.mxu1 %v10329_v20  ;;  %v1679_v12 = vsel %vm551_vm0, %v1677_v2, %v1678_v6  ;;  %v1680_v32 = vrot.slane %v11150_v14, 2  ;;  %v1682_v20 = vrot.slane %v11648_v31, 2  ;;  %v1732_v2 = vrot.slane %v11921_v36, 2  ;;  %v9144_v14 = vld [vmem:[%s18333_s3 + $0x100] sm:$0xff] }
  0xc8   : > { %8997 = vmatmul.mubr.msk.f32.gmra.mrb[10].mxu1 %vm486_vm2, %v11581_v60  ;;  %1254 = vmatprep.mubr.f32.mxu0 %v11215_v7  ;;  %v9074_v60 = vld [vmem:[%s18331_s1 + $0x4d0] sm:$0x3f] }
  0xc9   : > { %1511 = vmatprep.mubr.f32.mxu1 %v11215_v7  ;;  %10308 = vmatpush1.bf16.msra.mxu0 %v10307_v25  ;;  %v1681_v16 = vsel %vm551_vm0, %v1678_v6, %v1680_v32  ;;  %v1683_v23 = vsel %vm551_vm0, %v1680_v32, %v1682_v20  ;;  %v1686_v25 = vrot.slane %v11690_v54, 2  ;;  %v1738_v6 = vrot.slane %v11949_v56, 2  ;;  %v9160_v56 = vld [vmem:[%s18333_s3 + $0x180] sm:$0xff] }
  0xca   : > { %10332 = vmatpush1.bf16.msra.mxu1 %v10331_v27  ;;  %9076 = vmatprep.subr.msk.mxu0 %vm551_vm0, %v9073_v30  ;;  %v1687_v27 = vrot.slane %v11693_v55, 2  ;;  %v1689_v30 = vrot.slane %v11727_v5, 2 }
  0xcb   : > { %8964 = vmatmul.mubr.msk.f32.gmra.mrb[12].mxu0 %vm486_vm2, %v11615_v15  ;;  %9110 = vmatprep.subr.msk.mxu1 %vm551_vm0, %v9075_v59  ;;  %v1693_v59 = vrot.slane %v11749_v17, 2 }
  0xcc   : > { %8998 = vmatmul.mubr.msk.f32.gmra.mrb[12].mxu1 %vm486_vm2, %v11615_v15  ;;  %1260 = vmatprep.mubr.f32.mxu0 %v11215_v7  ;;  %v11143_v15 = vld [vmem:[%s11447_s8] sm:$0xff]  ;;  %v1688_v47 = vsel %vm551_vm0, %v1686_v25, %v1687_v27  ;;  %v6567_v25 = vld [vmem:[%s18333_s3 + $0x8] sm:$0xff] }
  0xcd   : > { %1517 = vmatprep.mubr.f32.mxu1 %v11215_v7  ;;  %9077 = vmatpush1.msk.msra.mxu0 %vm551_vm0, %v9072_v33  ;;  %v1668_v39 = vrot.slane %v11143_v15, 2  ;;  %v1695_v33 = vrot.slane %v11758_v21, 2  ;;  %v1698_v15 = vrot.slane %v11771_v26, 2 }
  0xce   : > { %9111 = vmatpush1.msk.msra.mxu1 %vm551_vm0, %v9074_v60  ;;  %v1696_v60 = vrot.slane %v11761_v22, 2 }
  0xcf   : > { %8965 = vmatmul.mubr.msk.f32.gmra.mrb[14].mxu0 %vm486_vm2, %v11648_v31  ;;  %v1670_v44 = vsel %vm551_vm0, %v1668_v39, %v1669_v41  ;;  %v1702_v39 = vrot.slane %v11789_v34, 2  ;;  %v1705_v41 = vrot.slane %v11801_v38, 2 }
  0xd0   : > { %8999 = vmatmul.mubr.msk.f32.gmra.mrb[14].mxu1 %vm486_vm2, %v11648_v31  ;;  %1266 = vmatprep.mubr.f32.mxu0 %v11215_v7  ;;  %v1685_v31 = vsel %vm551_vm0, %v1682_v20, %v1684_v9  ;;  %v1697_v17 = vsel %vm551_vm0, %v1695_v33, %v1696_v60  ;;  %v6583_v20 = vld [vmem:[%s18333_s3 + $0x88] sm:$0xff] }
  0xd1   : > { %1523 = vmatprep.mubr.f32.mxu1 %v11215_v7  ;;  %v1706_v34 = vsel %vm551_vm0, %v1704_v40, %v1705_v41 }
  0xd3   : > { %8966 = vmatmul.mubr.msk.f32.gmra.mrb[16].mxu0 %vm486_vm2, %v11690_v54 }
  0xd4   : > { %9000 = vmatmul.mubr.msk.f32.gmra.mrb[16].mxu1 %vm486_vm2, %v11690_v54  ;;  %1272 = vmatprep.mubr.f32.mxu0 %v11215_v7  ;;  %v1690_v54 = vsel %vm551_vm0, %v1687_v27, %v1689_v30 }
  0xd5   : > { %1529 = vmatprep.mubr.f32.mxu1 %v11215_v7 }
  0xd7   : > { %8967 = vmatmul.mubr.msk.f32.gmra.mrb[18].mxu0 %vm486_vm2, %v11693_v55 }
  0xd8   : > { %9001 = vmatmul.mubr.msk.f32.gmra.mrb[18].mxu1 %vm486_vm2, %v11693_v55  ;;  %1278 = vmatprep.mubr.f32.mxu0 %v11215_v7  ;;  %v1691_v55 = vrot.slane %v11740_v13, 2 }
  0xd9   : > { %1535 = vmatprep.mubr.f32.mxu1 %v11215_v7 }
  0xdb   : > { %8968 = vmatmul.mubr.msk.f32.gmra.mrb[20].mxu0 %vm486_vm2, %v11727_v5 }
  0xdc   : > { %9002 = vmatmul.mubr.msk.f32.gmra.mrb[20].mxu1 %vm486_vm2, %v11727_v5  ;;  %1284 = vmatprep.mubr.f32.mxu0 %v11215_v7  ;;  %v1692_v5 = vsel %vm551_vm0, %v1689_v30, %v1691_v55 }
  0xdd   : > { %1541 = vmatprep.mubr.f32.mxu1 %v11215_v7 }
  0xdf   : > { %8969 = vmatmul.mubr.msk.f32.gmra.mrb[22].mxu0 %vm486_vm2, %v11740_v13 }
  0xe0   : > { %9003 = vmatmul.mubr.msk.f32.gmra.mrb[22].mxu1 %vm486_vm2, %v11740_v13  ;;  %1290 = vmatprep.mubr.f32.mxu0 %v11215_v7  ;;  %v1694_v13 = vsel %vm551_vm0, %v1691_v55, %v1693_v59  ;;  %v2511_v55 = vld [vmem:[%s18332_s2] sm:$0xf] }
  0xe1   : > { %1547 = vmatprep.mubr.f32.mxu1 %v11215_v7 }
  0xe3   : > { %8970 = vmatmul.mubr.msk.f32.gmra.mrb[24].mxu0 %vm486_vm2, %v11758_v21 }
  0xe4   : > { %9004 = vmatmul.mubr.msk.f32.gmra.mrb[24].mxu1 %vm486_vm2, %v11758_v21  ;;  %1296 = vmatprep.mubr.f32.mxu0 %v11215_v7  ;;  %v1699_v21 = vsel %vm551_vm0, %v1696_v60, %v1698_v15 }
  0xe5   : > { %1553 = vmatprep.mubr.f32.mxu1 %v11215_v7 }
  0xe7   : > { %8971 = vmatmul.mubr.msk.f32.gmra.mrb[26].mxu0 %vm486_vm2, %v11761_v22 }
  0xe8   : > { %9005 = vmatmul.mubr.msk.f32.gmra.mrb[26].mxu1 %vm486_vm2, %v11761_v22  ;;  %1302 = vmatprep.mubr.f32.mxu0 %v11215_v7  ;;  %v1700_v22 = vrot.slane %v11780_v29, 2 }
  0xe9   : > { %1559 = vmatprep.mubr.f32.mxu1 %v11215_v7 }
  0xeb   : > { %8972 = vmatmul.mubr.msk.f32.gmra.mrb[28].mxu0 %vm486_vm2, %v11771_v26 }
  0xec   : > { %9006 = vmatmul.mubr.msk.f32.gmra.mrb[28].mxu1 %vm486_vm2, %v11771_v26  ;;  %1308 = vmatprep.mubr.f32.mxu0 %v11215_v7  ;;  %v1701_v26 = vsel %vm551_vm0, %v1698_v15, %v1700_v22 }
  0xed   : > { %1565 = vmatprep.mubr.f32.mxu1 %v11215_v7 }
  0xef   : > { %8973 = vmatmul.mubr.msk.f32.gmra.mrb[30].mxu0 %vm486_vm2, %v11780_v29 }
  0xf0   : > { %9007 = vmatmul.mubr.msk.f32.gmra.mrb[30].mxu1 %vm486_vm2, %v11780_v29  ;;  %1314 = vmatprep.mubr.f32.mxu0 %v11215_v7  ;;  %v1703_v29 = vsel %vm551_vm0, %v1700_v22, %v1702_v39 }
  0xf1   : > { %1571 = vmatprep.mubr.f32.mxu1 %v11215_v7 }
  0xf3   : > { %8974 = vmatmul.mubr.msk.f32.gmra.mrb[32].mxu0 %vm486_vm2, %v11798_v37 }
  0xf4   : > { %9008 = vmatmul.mubr.msk.f32.gmra.mrb[32].mxu1 %vm486_vm2, %v11798_v37  ;;  %1320 = vmatprep.mubr.f32.mxu0 %v11215_v7 }
  0xf5   : > { %1577 = vmatprep.mubr.f32.mxu1 %v11215_v7 }
  0xf7   : > { %8975 = vmatmul.mubr.msk.f32.gmra.mrb[34].mxu0 %vm486_vm2, %v11801_v38 }
  0xf8   : > { %9009 = vmatmul.mubr.msk.f32.gmra.mrb[34].mxu1 %vm486_vm2, %v11801_v38  ;;  %1326 = vmatprep.mubr.f32.mxu0 %v11215_v7  ;;  %v1709_v38 = vrot.slane %v11820_v45, 2 }
  0xf9   : > { %1583 = vmatprep.mubr.f32.mxu1 %v11215_v7 }
  0xfb   : > { %8976 = vmatmul.mubr.msk.f32.gmra.mrb[36].mxu0 %vm486_vm2, %v11811_v42 }
  0xfc   : > { %9010 = vmatmul.mubr.msk.f32.gmra.mrb[36].mxu1 %vm486_vm2, %v11811_v42  ;;  %1332 = vmatprep.mubr.f32.mxu0 %v11215_v7 }
  0xfd   : > { %1589 = vmatprep.mubr.f32.mxu1 %v11215_v7 }
  0xff   : > { %8977 = vmatmul.mubr.msk.f32.gmra.mrb[38].mxu0 %vm486_vm2, %v11820_v45 }
 0x100   : > { %9011 = vmatmul.mubr.msk.f32.gmra.mrb[38].mxu1 %vm486_vm2, %v11820_v45  ;;  %1338 = vmatprep.mubr.f32.mxu0 %v11215_v7  ;;  %v1712_v45 = vsel %vm551_vm0, %v1709_v38, %v1711_v46 }
 0x101   : > { %1595 = vmatprep.mubr.f32.mxu1 %v11215_v7 }
 0x103   : > { %8978 = vmatmul.mubr.msk.f32.gmra.mrb[40].mxu0 %vm486_vm2, %v11838_v52 }
 0x104   : > { %9012 = vmatmul.mubr.msk.f32.gmra.mrb[40].mxu1 %vm486_vm2, %v11838_v52  ;;  %1344 = vmatprep.mubr.f32.mxu0 %v11215_v7 }
 0x105   : > { %1601 = vmatprep.mubr.f32.mxu1 %v11215_v7 }
 0x107   : > { %8979 = vmatmul.mubr.msk.f32.gmra.mrb[42].mxu0 %vm486_vm2, %v11841_v53 }
 0x108   : > { %9013 = vmatmul.mubr.msk.f32.gmra.mrb[42].mxu1 %vm486_vm2, %v11841_v53  ;;  %1350 = vmatprep.mubr.f32.mxu0 %v11215_v7 }
 0x109   : > { %1607 = vmatprep.mubr.f32.mxu1 %v11215_v7 }
 0x10b   : > { %8980 = vmatmul.mubr.msk.f32.gmra.mrb[44].mxu0 %vm486_vm2, %v11851_v61 }
 0x10c   : > { %9014 = vmatmul.mubr.msk.f32.gmra.mrb[44].mxu1 %vm486_vm2, %v11851_v61  ;;  %1356 = vmatprep.mubr.f32.mxu0 %v11215_v7 }
 0x10d   : > { %1613 = vmatprep.mubr.f32.mxu1 %v11215_v7 }
 0x10f   : > { %8981 = vmatmul.mubr.msk.f32.gmra.mrb[46].mxu0 %vm486_vm2, %v11860_v0 }
 0x110   : > { %9015 = vmatmul.mubr.msk.f32.gmra.mrb[46].mxu1 %vm486_vm2, %v11860_v0  ;;  %1362 = vmatprep.mubr.f32.mxu0 %v11215_v7 }
 0x111   : > { %1619 = vmatprep.mubr.f32.mxu1 %v11215_v7 }
 0x113   : > { %8982 = vmatmul.mubr.msk.f32.gmra.mrb[48].mxu0 %vm486_vm2, %v11878_v10 }
 0x114   : > { %9016 = vmatmul.mubr.msk.f32.gmra.mrb[48].mxu1 %vm486_vm2, %v11878_v10  ;;  %1368 = vmatprep.mubr.f32.mxu0 %v11215_v7 }
 0x115   : > { %1625 = vmatprep.mubr.f32.mxu1 %v11215_v7 }
 0x117   : > { %8983 = vmatmul.mubr.msk.f32.gmra.mrb[50].mxu0 %vm486_vm2, %v11881_v11 }
 0x118   : > { %9017 = vmatmul.mubr.msk.f32.gmra.mrb[50].mxu1 %vm486_vm2, %v11881_v11  ;;  %1374 = vmatprep.mubr.f32.mxu0 %v11215_v7  ;;  %v1727_v11 = vrot.slane %v11900_v24, 2 }
 0x119   : > { %1631 = vmatprep.mubr.f32.mxu1 %v11215_v7 }
 0x11b   : > { %8984 = vmatmul.mubr.msk.f32.gmra.mrb[52].mxu0 %vm486_vm2, %v11891_v18 }
 0x11c   : > { %9018 = vmatmul.mubr.msk.f32.gmra.mrb[52].mxu1 %vm486_vm2, %v11891_v18  ;;  %1380 = vmatprep.mubr.f32.mxu0 %v11215_v7  ;;  %v1728_v18 = vsel %vm551_vm0, %v1725_v62, %v1727_v11 }
 0x11d   : > { %1637 = vmatprep.mubr.f32.mxu1 %v11215_v7 }
 0x11f   : > { %8985 = vmatmul.mubr.msk.f32.gmra.mrb[54].mxu0 %vm486_vm2, %v11900_v24 }
 0x120   : > { %9019 = vmatmul.mubr.msk.f32.gmra.mrb[54].mxu1 %vm486_vm2, %v11900_v24  ;;  %1386 = vmatprep.mubr.f32.mxu0 %v11215_v7 }
 0x121   : > { %1643 = vmatprep.mubr.f32.mxu1 %v11215_v7 }
 0x123   : > { %8986 = vmatmul.mubr.msk.f32.gmra.mrb[56].mxu0 %vm486_vm2, %v11918_v35 }
 0x124   : > { %9020 = vmatmul.mubr.msk.f32.gmra.mrb[56].mxu1 %vm486_vm2, %v11918_v35  ;;  %1392 = vmatprep.mubr.f32.mxu0 %v11215_v7  ;;  %v1735_v35 = vsel %vm551_vm0, %v1732_v2, %v1734_v4 }
 0x125   : > { %1649 = vmatprep.mubr.f32.mxu1 %v11215_v7 }
 0x127   : > { %8987 = vmatmul.mubr.msk.f32.gmra.mrb[58].mxu0 %vm486_vm2, %v11921_v36 }
 0x128   : > { %9021 = vmatmul.mubr.msk.f32.gmra.mrb[58].mxu1 %vm486_vm2, %v11921_v36  ;;  %1398 = vmatprep.mubr.f32.mxu0 %v11215_v7  ;;  %v1736_v36 = vrot.slane %v11940_v48, 2 }
 0x129   : > { %1655 = vmatprep.mubr.f32.mxu1 %v11215_v7 }
 0x12b   : > { %8988 = vmatmul.mubr.msk.f32.gmra.mrb[60].mxu0 %vm486_vm2, %v11931_v43 }
 0x12c   : > { %9022 = vmatmul.mubr.msk.f32.gmra.mrb[60].mxu1 %vm486_vm2, %v11931_v43  ;;  %1404 = vmatprep.mubr.f32.mxu0 %v11215_v7  ;;  %v1737_v43 = vsel %vm551_vm0, %v1734_v4, %v1736_v36 }
 0x12d   : > { %1661 = vmatprep.mubr.f32.mxu1 %v11215_v7 }
 0x12f   : > { %8989 = vmatmul.mubr.msk.f32.gmra.mrb[62].mxu0 %vm486_vm2, %v11940_v48 }
 0x130   : > { %9023 = vmatmul.mubr.msk.f32.gmra.mrb[62].mxu1 %vm486_vm2, %v11940_v48  ;;  %1933 = vmatprep.mubr.f32.mxu0 %v11215_v7  ;;  %v1739_v48 = vsel %vm551_vm0, %v1736_v36, %v1738_v6 }
 0x131   : > { %2190 = vmatprep.mubr.f32.mxu1 %v11215_v7 }
 0x133   : > { %9078 = vmatmul.mubr.msk.f32.vlgmr.msra.gmra.mrb[0].mxu0 %vm486_vm2, %v1670_v44 }
 0x134   : > { %9112 = vmatmul.mubr.msk.f32.vlgmr.msra.gmra.mrb[0].mxu1 %vm486_vm2, %v1670_v44  ;;  %1939 = vmatprep.mubr.f32.mxu0 %v11215_v7  ;;  %v1707_v44 = vrot.slane %v11811_v42, 2 }
 0x135   : > { %2196 = vmatprep.mubr.f32.mxu1 %v11215_v7 }
 0x136   : > { %v1708_v37 = vsel %vm551_vm0, %v1705_v41, %v1707_v44  ;;  %v1710_v42 = vsel %vm551_vm0, %v1707_v44, %v1709_v38 }
 0x137   : > { %9079 = vmatmul.mubr.msk.f32.gmra.mrb[2].mxu0 %vm486_vm2, %v1672_v51 }
 0x138   : > { %9113 = vmatmul.mubr.msk.f32.gmra.mrb[2].mxu1 %vm486_vm2, %v1672_v51  ;;  %1945 = vmatprep.mubr.f32.mxu0 %v11215_v7  ;;  %v1714_v51 = vrot.slane %v11841_v53, 2  ;;  %v1718_v53 = vrot.slane %v11860_v0, 2 }
 0x139   : > { %2202 = vmatprep.mubr.f32.mxu1 %v11215_v7 }
 0x13a   : > { %v1715_v49 = vsel %vm551_vm0, %v1713_v50, %v1714_v51  ;;  %v1717_v52 = vsel %vm551_vm0, %v1714_v51, %v1716_v19  ;;  %v1719_v61 = vsel %vm551_vm0, %v1716_v19, %v1718_v53  ;;  %v1721_v0 = vsel %vm551_vm0, %v1718_v53, %v1720_v57 }
 0x13b   : > { %9080 = vmatmul.mubr.msk.f32.gmra.mrb[4].mxu0 %vm486_vm2, %v1674_v58 }
 0x13c   : > { %9114 = vmatmul.mubr.msk.f32.gmra.mrb[4].mxu1 %vm486_vm2, %v1674_v58  ;;  %1951 = vmatprep.mubr.f32.mxu0 %v11215_v7  ;;  %v1722_v58 = vrot.slane %v11878_v10, 2  ;;  %v1726_v10 = vsel %vm551_vm0, %v1723_v8, %v1725_v62 }
 0x13d   : > { %2208 = vmatprep.mubr.f32.mxu1 %v11215_v7 }
 0x13e   : > { %v1724_v3 = vsel %vm551_vm0, %v1722_v58, %v1723_v8 }
 0x13f   : > { %9081 = vmatmul.mubr.msk.f32.gmra.mrb[6].mxu0 %vm486_vm2, %v1676_v63 }
 0x140   : > { %9115 = vmatmul.mubr.msk.f32.gmra.mrb[6].mxu1 %vm486_vm2, %v1676_v63  ;;  %1957 = vmatprep.mubr.f32.mxu0 %v11215_v7  ;;  %v1729_v63 = vrot.slane %v11909_v28, 2  ;;  %v1733_v28 = vsel %vm551_vm0, %v1731_v1, %v1732_v2 }
 0x141   : > { %2214 = vmatprep.mubr.f32.mxu1 %v11215_v7 }
 0x142   : > { %v1730_v24 = vsel %vm551_vm0, %v1727_v11, %v1729_v63 }
 0x143   : > { %9082 = vmatmul.mubr.msk.f32.gmra.mrb[8].mxu0 %vm486_vm2, %v1679_v12 }
 0x144   : > { %9116 = vmatmul.mubr.msk.f32.gmra.mrb[8].mxu1 %vm486_vm2, %v1679_v12  ;;  %1963 = vmatprep.mubr.f32.mxu0 %v11215_v7  ;;  %v9161_v12 = vld [vmem:[%s18333_s3 + $0x188] sm:$0xff] }
 0x145   : > { %2220 = vmatprep.mubr.f32.mxu1 %v11215_v7  ;;  %v10333_v32 = vpack.c.bf16 %v9161_v12, %v9160_v56 }
 0x147   : > { %9083 = vmatmul.mubr.msk.f32.gmra.mrb[10].mxu0 %vm486_vm2, %v1681_v16  ;;  %10334 = vmatprep.subr.bf16.mxu0 %v10333_v32 }
 0x148   : > { %9117 = vmatmul.mubr.msk.f32.gmra.mrb[10].mxu1 %vm486_vm2, %v1681_v16  ;;  %1969 = vmatprep.mubr.f32.mxu0 %v11215_v7  ;;  %v6582_v16 = vld [vmem:[%s18333_s3 + $0x80] sm:$0xff] }
 0x149   : > { %2226 = vmatprep.mubr.f32.mxu1 %v11215_v7  ;;  %v10365_v9 = vpack.c.bf16 %v6583_v20, %v6582_v16 }
 0x14b   : > { %9084 = vmatmul.mubr.msk.f32.gmra.mrb[12].mxu0 %vm486_vm2, %v1683_v23  ;;  %10366 = vmatprep.subr.bf16.mxu1 %v10365_v9 }
 0x14c   : > { %9118 = vmatmul.mubr.msk.f32.gmra.mrb[12].mxu1 %vm486_vm2, %v1683_v23  ;;  %1975 = vmatprep.mubr.f32.mxu0 %v11215_v7 }
 0x14d   : > { %2232 = vmatprep.mubr.f32.mxu1 %v11215_v7 }
 0x14f   : > { %9085 = vmatmul.mubr.msk.f32.gmra.mrb[14].mxu0 %vm486_vm2, %v1685_v31 }
 0x150   : > { %9119 = vmatmul.mubr.msk.f32.gmra.mrb[14].mxu1 %vm486_vm2, %v1685_v31  ;;  %1981 = vmatprep.mubr.f32.mxu0 %v11215_v7  ;;  %v6566_v31 = vld [vmem:[%s18333_s3] sm:$0xff] }
 0x151   : > { %2238 = vmatprep.mubr.f32.mxu1 %v11215_v7  ;;  %v10367_v27 = vpack.c.bf16 %v6567_v25, %v6566_v31 }
 0x153   : > { %9086 = vmatmul.mubr.msk.f32.gmra.mrb[16].mxu0 %vm486_vm2, %v1688_v47  ;;  %10368 = vmatpush3.bf16.msra.mxu1 %v10367_v27 }
 0x154   : > { %9120 = vmatmul.mubr.msk.f32.gmra.mrb[16].mxu1 %vm486_vm2, %v1688_v47  ;;  %1987 = vmatprep.mubr.f32.mxu0 %v11215_v7  ;;  %v2513_v47 = vlaneseq }
 0x155   : > { %2244 = vmatprep.mubr.f32.mxu1 %v11215_v7 }
 0x156   : > { %v2514_v30 = vshrl.u32 %v2513_v47, 7 }
 0x157   : > { %9087 = vmatmul.mubr.msk.f32.gmra.mrb[18].mxu0 %vm486_vm2, %v1690_v54 }
 0x158   : > { %9121 = vmatmul.mubr.msk.f32.gmra.mrb[18].mxu1 %vm486_vm2, %v1690_v54  ;;  %1993 = vmatprep.mubr.f32.mxu0 %v11215_v7  ;;  %v2515_v54 = vsub.s32 0, %v2514_v30  ;;  %v2519_v59 = vsub.s32 1, %v2514_v30 }
 0x159   : > { %2250 = vmatprep.mubr.f32.mxu1 %v11215_v7 }
 0x15a   : > { %v12531_v33 = vrot.slane %v2511_v55, %v2515_v54 }
 0x15b   : > { %9088 = vmatmul.mubr.msk.f32.gmra.mrb[20].mxu0 %vm486_vm2, %v1692_v5 }
 0x15c   : > { %9122 = vmatmul.mubr.msk.f32.gmra.mrb[20].mxu1 %vm486_vm2, %v1692_v5  ;;  %1999 = vmatprep.mubr.f32.mxu0 %v11215_v7  ;;  %v2523_v5 = vsub.s32 2, %v2514_v30 }
 0x15d   : > { %2256 = vmatprep.mubr.f32.mxu1 %v11215_v7 }
 0x15e   : > { %v12533_v60 = vrot.slane %v2511_v55, %v2523_v5 }
 0x15f   : > { %9089 = vmatmul.mubr.msk.f32.gmra.mrb[22].mxu0 %vm486_vm2, %v1694_v13 }
 0x160   : > { %9123 = vmatmul.mubr.msk.f32.gmra.mrb[22].mxu1 %vm486_vm2, %v1694_v13  ;;  %2005 = vmatprep.mubr.f32.mxu0 %v11215_v7  ;;  %v2527_v13 = vsub.s32 3, %v2514_v30 }
 0x161   : > { %2262 = vmatprep.mubr.f32.mxu1 %v11215_v7 }
 0x162   : > { %v12537_v15 = vrot.slane %v2511_v55, %v2527_v13 }
 0x163   : > { %9090 = vmatmul.mubr.msk.f32.gmra.mrb[24].mxu0 %vm486_vm2, %v1697_v17 }
 0x164   : > { %9124 = vmatmul.mubr.msk.f32.gmra.mrb[24].mxu1 %vm486_vm2, %v1697_v17  ;;  %2011 = vmatprep.mubr.f32.mxu0 %v11215_v7  ;;  %v12535_v17 = vrot.slane %v2511_v55, %v2519_v59 }
 0x165   : > { %2268 = vmatprep.mubr.f32.mxu1 %v11215_v7 }
 0x167   : > { %9091 = vmatmul.mubr.msk.f32.gmra.mrb[26].mxu0 %vm486_vm2, %v1699_v21 }
 0x168   : > { %9125 = vmatmul.mubr.msk.f32.gmra.mrb[26].mxu1 %vm486_vm2, %v1699_v21  ;;  %2017 = vmatprep.mubr.f32.mxu0 %v11215_v7  ;;  %v11216_v21 = vmov 1983009808  }
 0x169   : > { %2274 = vmatprep.mubr.f32.mxu1 %v11215_v7  ;;  %v2920_v22 = vunpack.c.l.s4 %v11216_v21 }
 0x16b   : > { %9092 = vmatmul.mubr.msk.f32.gmra.mrb[28].mxu0 %vm486_vm2, %v1701_v26 }
 0x16c   : > { %9126 = vmatmul.mubr.msk.f32.gmra.mrb[28].mxu1 %vm486_vm2, %v1701_v26  ;;  %2023 = vmatprep.mubr.f32.mxu0 %v11215_v7 }
 0x16d   : > { %2280 = vmatprep.mubr.f32.mxu1 %v11215_v7 }
 0x16f   : > { %9093 = vmatmul.mubr.msk.f32.gmra.mrb[30].mxu0 %vm486_vm2, %v1703_v29 }
 0x170   : > { %9127 = vmatmul.mubr.msk.f32.gmra.mrb[30].mxu1 %vm486_vm2, %v1703_v29  ;;  %2029 = vmatprep.mubr.f32.mxu0 %v11215_v7 }
 0x171   : > { %2286 = vmatprep.mubr.f32.mxu1 %v11215_v7 }
 0x173   : > { %9094 = vmatmul.mubr.msk.f32.gmra.mrb[32].mxu0 %vm486_vm2, %v1706_v34 }
 0x174   : > { %9128 = vmatmul.mubr.msk.f32.gmra.mrb[32].mxu1 %vm486_vm2, %v1706_v34  ;;  %2035 = vmatprep.mubr.f32.mxu0 %v11215_v7 }
 0x175   : > { %2292 = vmatprep.mubr.f32.mxu1 %v11215_v7 }
 0x177   : > { %9095 = vmatmul.mubr.msk.f32.gmra.mrb[34].mxu0 %vm486_vm2, %v1708_v37 }
 0x178   : > { %9129 = vmatmul.mubr.msk.f32.gmra.mrb[34].mxu1 %vm486_vm2, %v1708_v37  ;;  %2041 = vmatprep.mubr.f32.mxu0 %v11215_v7 }
 0x179   : > { %2298 = vmatprep.mubr.f32.mxu1 %v11215_v7 }
 0x17b   : > { %9096 = vmatmul.mubr.msk.f32.gmra.mrb[36].mxu0 %vm486_vm2, %v1710_v42 }
 0x17c   : > { %9130 = vmatmul.mubr.msk.f32.gmra.mrb[36].mxu1 %vm486_vm2, %v1710_v42  ;;  %2047 = vmatprep.mubr.f32.mxu0 %v11215_v7  ;;  %v2921_v42 = vunpack.c.0.s8 %v2920_v22 }
 0x17d   : > { %2304 = vmatprep.mubr.f32.mxu1 %v11215_v7 }
 0x17e   : > { %v12546_v8 = vsub.s32 %v2921_v42, %v2514_v30 }
 0x17f   : > { %9097 = vmatmul.mubr.msk.f32.gmra.mrb[38].mxu0 %vm486_vm2, %v1712_v45 }
 0x180   : > { %9131 = vmatmul.mubr.msk.f32.gmra.mrb[38].mxu1 %vm486_vm2, %v1712_v45  ;;  %2053 = vmatprep.mubr.f32.mxu0 %v11215_v7 }
 0x181   : > { %2310 = vmatprep.mubr.f32.mxu1 %v11215_v7 }
 0x183   : > { %9098 = vmatmul.mubr.msk.f32.gmra.mrb[40].mxu0 %vm486_vm2, %v1715_v49 }
 0x184   : > { %9132 = vmatmul.mubr.msk.f32.gmra.mrb[40].mxu1 %vm486_vm2, %v1715_v49  ;;  %2059 = vmatprep.mubr.f32.mxu0 %v11215_v7 }
 0x185   : > { %2316 = vmatprep.mubr.f32.mxu1 %v11215_v7 }
 0x187   : > { %9099 = vmatmul.mubr.msk.f32.gmra.mrb[42].mxu0 %vm486_vm2, %v1717_v52 }
 0x188   : > { %9133 = vmatmul.mubr.msk.f32.gmra.mrb[42].mxu1 %vm486_vm2, %v1717_v52  ;;  %2065 = vmatprep.mubr.f32.mxu0 %v11215_v7 }
 0x189   : > { %2322 = vmatprep.mubr.f32.mxu1 %v11215_v7 }
 0x18b   : > { %9100 = vmatmul.mubr.msk.f32.gmra.mrb[44].mxu0 %vm486_vm2, %v1719_v61 }
 0x18c   : > { %9134 = vmatmul.mubr.msk.f32.gmra.mrb[44].mxu1 %vm486_vm2, %v1719_v61  ;;  %2071 = vmatprep.mubr.f32.mxu0 %v11215_v7 }
 0x18d   : > { %2328 = vmatprep.mubr.f32.mxu1 %v11215_v7 }
 0x18f   : > { %9101 = vmatmul.mubr.msk.f32.gmra.mrb[46].mxu0 %vm486_vm2, %v1721_v0 }
 0x190   : > { %9135 = vmatmul.mubr.msk.f32.gmra.mrb[46].mxu1 %vm486_vm2, %v1721_v0  ;;  %2077 = vmatprep.mubr.f32.mxu0 %v11215_v7 }
 0x191   : > { %2334 = vmatprep.mubr.f32.mxu1 %v11215_v7 }
 0x193   : > { %9102 = vmatmul.mubr.msk.f32.gmra.mrb[48].mxu0 %vm486_vm2, %v1724_v3 }
 0x194   : > { %9136 = vmatmul.mubr.msk.f32.gmra.mrb[48].mxu1 %vm486_vm2, %v1724_v3  ;;  %2083 = vmatprep.mubr.f32.mxu0 %v11215_v7 }
 0x195   : > { %2340 = vmatprep.mubr.f32.mxu1 %v11215_v7 }
 0x197   : > { %9103 = vmatmul.mubr.msk.f32.gmra.mrb[50].mxu0 %vm486_vm2, %v1726_v10 }
 0x198   : > { %9137 = vmatmul.mubr.msk.f32.gmra.mrb[50].mxu1 %vm486_vm2, %v1726_v10  ;;  %2089 = vmatprep.mubr.f32.mxu0 %v11215_v7 }
 0x199   : > { %2346 = vmatprep.mubr.f32.mxu1 %v11215_v7 }
 0x19b   : > { %9104 = vmatmul.mubr.msk.f32.gmra.mrb[52].mxu0 %vm486_vm2, %v1728_v18 }
 0x19c   : > { %9138 = vmatmul.mubr.msk.f32.gmra.mrb[52].mxu1 %vm486_vm2, %v1728_v18  ;;  %2095 = vmatprep.mubr.f32.mxu0 %v11215_v7 }
 0x19d   : > { %2352 = vmatprep.mubr.f32.mxu1 %v11215_v7 }
 0x19f   : > { %9105 = vmatmul.mubr.msk.f32.gmra.mrb[54].mxu0 %vm486_vm2, %v1730_v24 }
 0x1a0   : > { %9139 = vmatmul.mubr.msk.f32.gmra.mrb[54].mxu1 %vm486_vm2, %v1730_v24  ;;  %2101 = vmatprep.mubr.f32.mxu0 %v11215_v7 }
 0x1a1   : > { %2358 = vmatprep.mubr.f32.mxu1 %v11215_v7 }
 0x1a3   : > { %9106 = vmatmul.mubr.msk.f32.gmra.mrb[56].mxu0 %vm486_vm2, %v1733_v28 }
 0x1a4   : > { %9140 = vmatmul.mubr.msk.f32.gmra.mrb[56].mxu1 %vm486_vm2, %v1733_v28  ;;  %2107 = vmatprep.mubr.f32.mxu0 %v11215_v7 }
 0x1a5   : > { %2364 = vmatprep.mubr.f32.mxu1 %v11215_v7 }
 0x1a7   : > { %9107 = vmatmul.mubr.msk.f32.gmra.mrb[58].mxu0 %vm486_vm2, %v1735_v35 }
 0x1a8   : > { %9141 = vmatmul.mubr.msk.f32.gmra.mrb[58].mxu1 %vm486_vm2, %v1735_v35  ;;  %2113 = vmatprep.mubr.f32.mxu0 %v11215_v7 }
 0x1a9   : > { %2370 = vmatprep.mubr.f32.mxu1 %v11215_v7 }
 0x1ab   : > { %9108 = vmatmul.mubr.msk.f32.gmra.mrb[60].mxu0 %vm486_vm2, %v1737_v43 }
 0x1ac   : > { %9142 = vmatmul.mubr.msk.f32.gmra.mrb[60].mxu1 %vm486_vm2, %v1737_v43  ;;  %2119 = vmatprep.mubr.f32.mxu0 %v11215_v7 }
 0x1ad   : > { %2376 = vmatprep.mubr.f32.mxu1 %v11215_v7  ;;  %v9145_v7 = vld [vmem:[%s18333_s3 + $0x108] sm:$0xff] }
 0x1ae   : > { %v10335_v23 = vpack.c.bf16 %v9145_v7, %v9144_v14 }
 0x1af   : > { %9109 = vmatmul.mubr.msk.f32.gmra.mrb[62].mxu0 %vm486_vm2, %v1739_v48 }
 0x1b0   : > { %9143 = vmatmul.mubr.msk.f32.gmra.mrb[62].mxu1 %vm486_vm2, %v1739_v48  ;;  %10336 = vmatpush3.bf16.msra.mxu0 %v10335_v23 }
 0x206   : > { %v1935_v26 = vpop.f32.mrb[0].mxu0 }
 0x207   : > { %v2533_v39 = vadd.f32 %v12531_v33, %v1935_v26  ;;  %v2192_v29 = vpop.f32.mrb[0].mxu1  ;;  %v1937_v40 = vpop.f32.mrb[1].mxu0 }
 0x208   : > { %v2535_v41 = vadd.f32 %v12533_v60, %v2192_v29  ;;  %v2534_v34 = vadd.f32 %v12535_v17, %v1937_v40  ;;  %v2194_v44 = vpop.f32.mrb[1].mxu1 }
 0x209   : > { %v2661_v37 = vmax.f32 %v2533_v39, 0.0  ;;  %v2536_v38 = vadd.f32 %v12537_v15, %v2194_v44 }
 0x20a   : > { %v2663_v46 = vmax.f32 %v2535_v41, 0.0  ;;  %v2662_v45 = vmax.f32 %v2534_v34, 0.0  ;;  %v1941_v50 = vpop.f32.mrb[2].mxu0 }
 0x20b   : > { %v2664_v51 = vmax.f32 %v2536_v38, 0.0  ;;  %v2537_v49 = vadd.f32 %v12531_v33, %v1941_v50  ;;  %v2198_v19 = vpop.f32.mrb[2].mxu1  ;;  %v1943_v52 = vpop.f32.mrb[3].mxu0 }
 0x20c   : > { %v2789_v53 = vmax.f32 %v2661_v37, %v2663_v46  ;;  %v2539_v61 = vadd.f32 %v12533_v60, %v2198_v19  ;;  %v2538_v57 = vadd.f32 %v12535_v17, %v1943_v52  ;;  %v2200_v0 = vpop.f32.mrb[3].mxu1 }
 0x20d   : > { %v2790_v58 = vmax.f32 %v2662_v45, %v2664_v51  ;;  %v2665_v3 = vmax.f32 %v2537_v49, 0.0  ;;  %v2540_v62 = vadd.f32 %v12537_v15, %v2200_v0 }
 0x20e   : > { %v2667_v10 = vmax.f32 %v2539_v61, 0.0  ;;  %v2666_v11 = vmax.f32 %v2538_v57, 0.0  ;;  %v1947_v18 = vpop.f32.mrb[4].mxu0 }
 0x20f   : > { %v2917_v63 = vcombine.low %v2789_v53, %v2790_v58  ;;  %v2918_v24 = vcombine.high %v2789_v53, %v2790_v58  ;;  %v2668_v1 = vmax.f32 %v2540_v62, 0.0  ;;  %v2541_v2 = vadd.f32 %v12531_v33, %v1947_v18  ;;  %v2204_v28 = vpop.f32.mrb[4].mxu1  ;;  %v1949_v4 = vpop.f32.mrb[5].mxu0 }
 0x210   : > { %v12550_v35 = vmax.f32 %v2665_v3, %v2667_v10  ;;  %v2543_v36 = vadd.f32 %v12533_v60, %v2204_v28  ;;  %v2206_v43 = vpop.f32.mrb[5].mxu1  ;;  %v12572_v30 = vadd.f32 %v12535_v17, %v1949_v4 }
 0x211   : > { %v2925_v6 = vrot.slane %v2917_v63, %v12546_v8  ;;  %v2932_v48 = vrot.slane %v2918_v24, %v12546_v8  ;;  %v12555_v56 = vmax.f32 %v2666_v11, %v2668_v1  ;;  %v2669_v12 = vmax.f32 %v2541_v2, 0.0 }
 0x212   : > { %v2671_v14 = vmax.f32 %v2543_v36, 0.0  ;;  %v12557_v32 = vpop.f32.mrb[6].mxu0  ;;  %v12584_v39 = vadd.f32 %v12537_v15, %v2206_v43 }
 0x213   : > { %v2933_v7 = vcombine.high %v2925_v6, %v2925_v6  ;;  %v2934_v16 = vcombine.high %v2932_v48, %v2932_v48  ;;  %v3499_v20 = vrot.slane %v2925_v6, %v12546_v8  ;;  %v3515_v23 = vrot.slane %v2932_v48, %v12546_v8  ;;  %v12561_v9 = vpop.f32.mrb[6].mxu1  ;;  %v12563_v31 = vpop.f32.mrb[7].mxu0 }
 0x214   : > { %v2935_v25 = vcombine.low %v12550_v35, %v12555_v56  ;;  %v2936_v27 = vcombine.high %v12550_v35, %v12555_v56  ;;  %v12569_v47 = vmax.f32 %v2669_v12, %v2671_v14  ;;  %v12574_v54 = vpop.f32.mrb[7].mxu1 }
 0x215   : > { %v3500_v55 = vcombine.high %v3499_v20, %v3499_v20  ;;  %v3507_v5 = vrot.slane %v2933_v7, %v12546_v8  ;;  %v3516_v59 = vcombine.high %v3515_v23, %v3515_v23  ;;  %v3523_v13 = vrot.slane %v2934_v16, %v12546_v8 }
 0x216   : > { %v4774_v21 = vsel %vm4773_vm3, %v3499_v20, -inf  ;;  %v4802_v22 = vsel %vm4773_vm3, %v3515_v23, -inf  ;;  %v12581_v26 = vrot.slane %v2935_v25, %v12546_v8  ;;  %v12586_v29 = vpop.f32.mrb[8].mxu0 }
 0x217   : > { %v3508_v40 = vcombine.high %v3507_v5, %v3507_v5  ;;  %v3524_v41 = vcombine.high %v3523_v13, %v3523_v13  ;;  %v4775_v34 = vrot.slane %v4774_v21, 4  ;;  %v4781_v44 = vsel %vm4773_vm3, %v3500_v55, -inf  ;;  %v12589_v37 = vpop.f32.mrb[8].mxu1  ;;  %v12591_v38 = vpop.f32.mrb[9].mxu0 }
 0x218   : > { %v4782_v42 = vrot.slane %v4781_v44, 4  ;;  %v4788_v46 = vsel %vm4773_vm3, %v3507_v5, -inf  ;;  %v4803_v45 = vrot.slane %v4802_v22, 4  ;;  %v4809_v50 = vsel %vm4773_vm3, %v3516_v59, -inf  ;;  %v12595_v51 = vpop.f32.mrb[9].mxu1 }
 0x219   : > { %v4776_v49 = vmax.f32 %v4774_v21, %v4775_v34  ;;  %v4789_v19 = vrot.slane %v4788_v46, 4  ;;  %v4795_v52 = vsel %vm4773_vm3, %v3508_v40, -inf  ;;  %v4810_v53 = vrot.slane %v4809_v50, 4 }
 0x21a   : > { %v4783_v61 = vmax.f32 %v4781_v44, %v4782_v42  ;;  %v4796_v57 = vrot.slane %v4795_v52, 4  ;;  %v4804_v0 = vmax.f32 %v4802_v22, %v4803_v45  ;;  %v4816_v58 = vsel %vm4773_vm3, %v3523_v13, -inf  ;;  %v12599_v3 = vpop.f32.mrb[10].mxu0 }
 0x21b   : > { %v4777_v62 = vrot.slane %v4776_v49, 2  ;;  %v4790_v10 = vmax.f32 %v4788_v46, %v4789_v19  ;;  %v4811_v11 = vmax.f32 %v4809_v50, %v4810_v53  ;;  %v4817_v18 = vrot.slane %v4816_v58, 4  ;;  %v12601_v63 = vpop.f32.mrb[10].mxu1  ;;  %v12603_v24 = vpop.f32.mrb[11].mxu0 }
 0x21c   : > { %v4784_v1 = vrot.slane %v4783_v61, 2  ;;  %v4797_v2 = vmax.f32 %v4795_v52, %v4796_v57  ;;  %v4805_v28 = vrot.slane %v4804_v0, 2  ;;  %v4823_v4 = vsel %vm4773_vm3, %v3524_v41, -inf  ;;  %v12606_v35 = vpop.f32.mrb[11].mxu1 }
 0x21d   : > { %v4778_v36 = vmax.f32 %v4776_v49, %v4777_v62  ;;  %v4791_v43 = vrot.slane %v4790_v10, 2  ;;  %v4812_v6 = vrot.slane %v4811_v11, 2  ;;  %v4818_v48 = vmax.f32 %v4816_v58, %v4817_v18 }
 0x21e   : > { %v4785_v56 = vmax.f32 %v4783_v61, %v4784_v1  ;;  %v4798_v12 = vrot.slane %v4797_v2, 2  ;;  %v12608_v14 = vmax.f32 %v4804_v0, %v4805_v28  ;;  %v4824_v7 = vrot.slane %v4823_v4, 4  ;;  %v12610_v16 = vpop.f32.mrb[12].mxu0 }
 0x21f   : > { %v4779_v20 = vrot.slane %v4778_v36, 1  ;;  %v12612_v23 = vmax.f32 %v4790_v10, %v4791_v43  ;;  %v12614_v25 = vmax.f32 %v4811_v11, %v4812_v6  ;;  %v4819_v55 = vrot.slane %v4818_v48, 2  ;;  %v12616_v5 = vpop.f32.mrb[12].mxu1  ;;  %v12618_v59 = vpop.f32.mrb[13].mxu0 }
 0x220   : > { %v4786_v13 = vrot.slane %v4785_v56, 1  ;;  %v4825_v21 = vmax.f32 %v4823_v4, %v4824_v7  ;;  %v2950_v22 = vrot.slane %v2936_v27, %v12546_v8  ;;  %v12621_v40 = vpop.f32.mrb[13].mxu1  ;;  %v12623_v41 = vmax.f32 %v4797_v2, %v4798_v12 }
 0x221   : > { %v12625_v34 = vmax.f32 %v4818_v48, %v4819_v55  ;;  %v2670_v44 = vmax.f32 %v12572_v30, 0.0  ;;  %v2672_v42 = vmax.f32 %v12584_v39, 0.0  ;;  %v12632_v49 = vmax.f32 %v4778_v36, %v4779_v20 }
 0x222   : > { %18571 = vst [vmem:[#allocation5_spill] sm:$0xff] %v12623_v41  ;;  %v4826_v45 = vrot.slane %v4825_v21, 2  ;;  %v12630_v50 = vpop.f32.mrb[14].mxu0  ;;  %v2951_v52 = vcombine.high %v12581_v26, %v12581_v26  ;;  %v12642_v30 = vmax.f32 %v4785_v56, %v4786_v13  ;;  %v2952_v39 = vcombine.high %v2950_v22, %v2950_v22 }
 0x223   : > { %18572 = vst [vmem:[#allocation6_spill] sm:$0xff] %v12632_v49  ;;  %v12638_v53 = vpop.f32.mrb[14].mxu1  ;;  %v12640_v61 = vpop.f32.mrb[15].mxu0  ;;  %v3531_v57 = vrot.slane %v12581_v26, %v12546_v8  ;;  %v3547_v0 = vrot.slane %v2950_v22, %v12546_v8  ;;  %v4821_v10 = vrot.slane %v12625_v34, 1  ;;  %v12652_v18 = vmax.f32 %v2670_v44, %v2672_v42 }
 0x224   : > { %18573 = vst [vmem:[#allocation7_spill] sm:$0xff] %v12642_v30  ;;  %v12647_v58 = vpop.f32.mrb[15].mxu1  ;;  %v3539_v11 = vrot.slane %v2951_v52, %v12546_v8  ;;  %v12654_v1 = vmax.f32 %v4825_v21, %v4826_v45  ;;  %v3555_v4 = vrot.slane %v2952_v39, %v12546_v8 }
 0x225   : > { %v3532_v2 = vcombine.high %v3531_v57, %v3531_v57  ;;  %v3548_v28 = vcombine.high %v3547_v0, %v3547_v0  ;;  %v4830_v43 = vsel %vm4773_vm3, %v3531_v57, -inf  ;;  %v4858_v48 = vsel %vm4773_vm3, %v3547_v0, -inf }
 0x226   : > { %18574 = vst [vmem:[#allocation8_spill] sm:$0xff] %v12654_v1  ;;  %v12657_v36 = vpop.f32.mrb[16].mxu0  ;;  %v3540_v26 = vcombine.high %v3539_v11, %v3539_v11  ;;  %v4844_v6 = vsel %vm4773_vm3, %v3539_v11, -inf  ;;  %v3556_v7 = vcombine.high %v3555_v4, %v3555_v4  ;;  %v4831_v20 = vrot.slane %v4830_v43, 4 }
 0x227   : > { %v12662_v56 = vpop.f32.mrb[16].mxu1  ;;  %v12664_v12 = vpop.f32.mrb[17].mxu0  ;;  %v4837_v55 = vsel %vm4773_vm3, %v3532_v2, -inf  ;;  %v4845_v13 = vrot.slane %v4844_v6, 4  ;;  %v4859_v42 = vrot.slane %v4858_v48, 4  ;;  %v4865_v45 = vsel %vm4773_vm3, %v3548_v28, -inf }
 0x228   : > { %v12667_v21 = vpop.f32.mrb[17].mxu1  ;;  %v4838_v22 = vrot.slane %v4837_v55, 4  ;;  %v4851_v44 = vsel %vm4773_vm3, %v3540_v26, -inf  ;;  %v4832_v52 = vmax.f32 %v4830_v43, %v4831_v20  ;;  %v4866_v0 = vrot.slane %v4865_v45, 4 }
 0x229   : > { %18575 = vst [vmem:[#allocation9_spill] sm:$0xff] %v12667_v21  ;;  %v4846_v39 = vmax.f32 %v4844_v6, %v4845_v13  ;;  %v4852_v57 = vrot.slane %v4851_v44, 4  ;;  %v4860_v27 = vmax.f32 %v4858_v48, %v4859_v42  ;;  %v4872_v19 = vsel %vm4773_vm3, %v3555_v4, -inf }
 0x22a   : > { %v12671_v11 = vpop.f32.mrb[18].mxu0  ;;  %v4839_v62 = vmax.f32 %v4837_v55, %v4838_v22  ;;  %v4879_v2 = vsel %vm4773_vm3, %v3556_v7, -inf  ;;  %v4833_v26 = vrot.slane %v4832_v52, 2  ;;  %v4867_v28 = vmax.f32 %v4865_v45, %v4866_v0 }
 0x22b   : > { %18576 = vst [vmem:[#allocation10_spill] sm:$0xff] %v12671_v11  ;;  %v12675_v46 = vpop.f32.mrb[18].mxu1  ;;  %v12677_v41 = vpop.f32.mrb[19].mxu0  ;;  %v4847_v49 = vrot.slane %v4846_v39, 2  ;;  %v4853_v30 = vmax.f32 %v4851_v44, %v4852_v57  ;;  %v4861_v20 = vrot.slane %v4860_v27, 2  ;;  %v4873_v13 = vrot.slane %v4872_v19, 4 }
 0x22c   : > { %18577 = vst [vmem:[#allocation11_spill] sm:$0xff] %v12675_v46  ;;  %18578 = vst [vmem:[#allocation12_spill] sm:$0xff] %v12677_v41  ;;  %v12679_v43 = vpop.f32.mrb[19].mxu1  ;;  %v4840_v6 = vrot.slane %v4839_v62, 2  ;;  %v4880_v11 = vrot.slane %v4879_v2, 4  ;;  %v4834_v55 = vmax.f32 %v4832_v52, %v4833_v26  ;;  %v4868_v4 = vrot.slane %v4867_v28, 2 }
 0x22d   : > { %v4848_v48 = vmax.f32 %v4846_v39, %v4847_v49  ;;  %v4854_v22 = vrot.slane %v4853_v30, 2  ;;  %v12683_v7 = vmax.f32 %v4860_v27, %v4861_v20  ;;  %v4874_v46 = vmax.f32 %v4872_v19, %v4873_v13 }
 0x22e   : > { %v12681_v42 = vmax.f32 %v4839_v62, %v4840_v6  ;;  %v4881_v41 = vmax.f32 %v4879_v2, %v4880_v11  ;;  %v18579_v21 = vrot.slane %v12608_v14, 1  ;;  %v4835_v45 = vrot.slane %v4834_v55, 1 }
 0x22f   : > { %v4849_v57 = vrot.slane %v4848_v48, 1  ;;  %v12690_v0 = vmax.f32 %v4867_v28, %v4868_v4  ;;  %v18581_v52 = vrot.slane %v12612_v23, 1  ;;  %v4875_v62 = vrot.slane %v4874_v46, 2 }
 0x230   : > { %v12688_v44 = vmax.f32 %v12608_v14, %v18579_v21  ;;  %v4882_v39 = vrot.slane %v4881_v41, 2  ;;  %v2545_v19 = vadd.f32 %v12531_v33, %v12557_v32  ;;  %v18583_v27 = vrot.slane %v12614_v25, 1 }
 0x231   : > { %v12695_v49 = vmax.f32 %v12612_v23, %v18581_v52  ;;  %v12705_v14 = vmax.f32 %v12625_v34, %v4821_v10  ;;  %v12708_v2 = vmax.f32 %v4853_v30, %v4854_v22  ;;  %v12710_v26 = vmax.f32 %v4834_v55, %v4835_v45 }
 0x232   : > { %18580 = vst [vmem:[#allocation13_spill] sm:$0xff] %v12688_v44  ;;  %v12702_v11 = vmax.f32 %v12614_v25, %v18583_v27  ;;  %v12714_v6 = vmax.f32 %v4874_v46, %v4875_v62  ;;  %v12716_v32 = vmax.f32 %v4848_v48, %v4849_v57  ;;  %v2953_v34 = vcombine.low %v12569_v47, %v12652_v18 }
 0x233   : > { %18582 = vst [vmem:[#allocation14_spill] sm:$0xff] %v12695_v49  ;;  %18585 = vst [vmem:[#allocation16_spill] sm:$0xff] %v12705_v14  ;;  %v2954_v10 = vcombine.high %v12569_v47, %v12652_v18  ;;  %v12723_v30 = vmax.f32 %v4881_v41, %v4882_v39  ;;  %v2673_v20 = vmax.f32 %v2545_v19, 0.0  ;;  %v2547_v13 = vadd.f32 %v12533_v60, %v12561_v9 }
 0x234   : > { %18584 = vst [vmem:[#allocation15_spill] sm:$0xff] %v12702_v11  ;;  %18586 = vst [vmem:[#allocation17_spill] sm:$0xff] %v12708_v2  ;;  %v2546_v46 = vadd.f32 %v12535_v17, %v12563_v31  ;;  %v2961_v55 = vrot.slane %v2953_v34, %v12546_v8  ;;  %v2548_v22 = vadd.f32 %v12537_v15, %v12574_v54 }
 0x235   : > { %18587 = vst [vmem:[#allocation18_spill] sm:$0xff] %v12710_v26  ;;  %18588 = vst [vmem:[#allocation19_spill] sm:$0xff] %v12716_v32  ;;  %v2968_v48 = vrot.slane %v2954_v10, %v12546_v8  ;;  %v2549_v4 = vadd.f32 %v12531_v33, %v12586_v29  ;;  %v2675_v41 = vmax.f32 %v2547_v13, 0.0  ;;  %v2551_v9 = vadd.f32 %v12533_v60, %v12589_v37 }
 0x236   : > { %18589 = vst [vmem:[#allocation20_spill] sm:$0xff] %v12723_v30  ;;  %v2674_v18 = vmax.f32 %v2546_v46, 0.0  ;;  %v2969_v45 = vcombine.high %v2961_v55, %v2961_v55  ;;  %v3563_v31 = vrot.slane %v2961_v55, %v12546_v8  ;;  %v2676_v39 = vmax.f32 %v2548_v22, 0.0 }
 0x237   : > { %v2970_v57 = vcombine.high %v2968_v48, %v2968_v48  ;;  %v3579_v52 = vrot.slane %v2968_v48, %v12546_v8  ;;  %v12740_v62 = vmax.f32 %v2673_v20, %v2675_v41  ;;  %v2677_v54 = vmax.f32 %v2549_v4, 0.0 }
 0x238   : > { %v2679_v19 = vmax.f32 %v2551_v9, 0.0  ;;  %v3564_v27 = vcombine.high %v3563_v31, %v3563_v31  ;;  %v3571_v29 = vrot.slane %v2969_v45, %v12546_v8  ;;  %v4886_v13 = vsel %vm4773_vm3, %v3563_v31, -inf  ;;  %v12755_v31 = vpop.f32.mrb[20].mxu1 }
 0x239   : > { %v3580_v34 = vcombine.high %v3579_v52, %v3579_v52  ;;  %v3587_v10 = vrot.slane %v2970_v57, %v12546_v8  ;;  %v4914_v37 = vsel %vm4773_vm3, %v3579_v52, -inf  ;;  %v12746_v46 = vmax.f32 %v2674_v18, %v2676_v39  ;;  %v12753_v57 = vpop.f32.mrb[20].mxu0  ;;  %v12760_v47 = vpop.f32.mrb[21].mxu1 }
 0x23a   : > { %v12748_v55 = vmax.f32 %v2677_v54, %v2679_v19  ;;  %v3572_v48 = vcombine.high %v3571_v29, %v3571_v29  ;;  %v4887_v41 = vrot.slane %v4886_v13, 4  ;;  %v4893_v22 = vsel %vm4773_vm3, %v3564_v27, -inf  ;;  %v12758_v19 = vpop.f32.mrb[21].mxu0  ;;  %18591 = vst [vmem:[#allocation22_spill] sm:$0xff] %v12760_v47 }
 0x23b   : > { %v3588_v20 = vcombine.high %v3587_v10, %v3587_v10  ;;  %v4894_v4 = vrot.slane %v4893_v22, 4  ;;  %v4900_v9 = vsel %vm4773_vm3, %v3571_v29, -inf  ;;  %v4915_v45 = vrot.slane %v4914_v37, 4  ;;  %18590 = vst [vmem:[#allocation21_spill] sm:$0xff] %v12758_v19 }
 0x23c   : > { %v4921_v21 = vsel %vm4773_vm3, %v3580_v34, -inf  ;;  %v4888_v52 = vmax.f32 %v4886_v13, %v4887_v41  ;;  %v4901_v18 = vrot.slane %v4900_v9, 4  ;;  %v4907_v39 = vsel %vm4773_vm3, %v3572_v48, -inf }
 0x23d   : > { %v4922_v54 = vrot.slane %v4921_v21, 4  ;;  %v4895_v27 = vmax.f32 %v4893_v22, %v4894_v4  ;;  %v4908_v25 = vrot.slane %v4907_v39, 4  ;;  %v4916_v28 = vmax.f32 %v4914_v37, %v4915_v45 }
 0x23e   : > { %v4928_v29 = vsel %vm4773_vm3, %v3587_v10, -inf  ;;  %v4889_v23 = vrot.slane %v4888_v52, 2  ;;  %v4902_v34 = vmax.f32 %v4900_v9, %v4901_v18  ;;  %v4935_v41 = vsel %vm4773_vm3, %v3588_v20, -inf }
 0x23f   : > { %v4923_v26 = vmax.f32 %v4921_v21, %v4922_v54  ;;  %v4929_v32 = vrot.slane %v4928_v29, 4  ;;  %v4896_v44 = vrot.slane %v4895_v27, 2  ;;  %v4909_v14 = vmax.f32 %v4907_v39, %v4908_v25 }
 0x240   : > { %v4917_v13 = vrot.slane %v4916_v28, 2  ;;  %v4890_v48 = vmax.f32 %v4888_v52, %v4889_v23  ;;  %v4903_v11 = vrot.slane %v4902_v34, 2  ;;  %v4936_v37 = vrot.slane %v4935_v41, 4 }
 0x241   : > { %v4924_v49 = vrot.slane %v4923_v26, 2  ;;  %v4930_v1 = vmax.f32 %v4928_v29, %v4929_v32  ;;  %v4897_v19 = vmax.f32 %v4895_v27, %v4896_v44  ;;  %v4910_v47 = vrot.slane %v4909_v14, 2 }
 0x242   : > { %v12764_v22 = vmax.f32 %v4916_v28, %v4917_v13  ;;  %v4891_v4 = vrot.slane %v4890_v48, 1  ;;  %v12766_v10 = vmax.f32 %v4902_v34, %v4903_v11  ;;  %v18592_v25 = vrot.slane %v12681_v42, 1 }
 0x243   : > { %v12768_v9 = vmax.f32 %v4923_v26, %v4924_v49  ;;  %v4931_v21 = vrot.slane %v4930_v1, 2  ;;  %v4898_v20 = vrot.slane %v4897_v19, 1  ;;  %v4937_v32 = vmax.f32 %v4935_v41, %v4936_v37 }
 0x244   : > { %v12773_v45 = vmax.f32 %v12681_v42, %v18592_v25  ;;  %v18594_v44 = vrot.slane %v12683_v7, 1  ;;  %v18596_v11 = vrot.slane %v12690_v0, 1  ;;  %v12787_v52 = vmax.f32 %v4909_v14, %v4910_v47 }
 0x245   : > { %v18599_v42 = vrot.slane %v12714_v6, 1  ;;  %v12794_v39 = vmax.f32 %v4890_v48, %v4891_v4  ;;  %v12799_v27 = vmax.f32 %v4897_v19, %v4898_v20  ;;  %v2971_v14 = vcombine.low %v12740_v62, %v12746_v46 }
 0x246   : > { %18593 = vst [vmem:[#allocation23_spill] sm:$0xff] %v12773_v45  ;;  %v12779_v28 = vmax.f32 %v12683_v7, %v18594_v44  ;;  %v12784_v49 = vmax.f32 %v12690_v0, %v18596_v11  ;;  %18598 = vst [vmem:[#allocation26_spill] sm:$0xff] %v12787_v52  ;;  %v12797_v7 = vmax.f32 %v4930_v1, %v4931_v21  ;;  %v4938_v47 = vrot.slane %v4937_v32, 2 }
 0x247   : > { %v12792_v18 = vmax.f32 %v12714_v6, %v18599_v42  ;;  %18601 = vst [vmem:[#allocation28_spill] sm:$0xff] %v12794_v39  ;;  %18602 = vst [vmem:[#allocation29_spill] sm:$0xff] %v12799_v27  ;;  %v2972_v6 = vcombine.high %v12740_v62, %v12746_v46  ;;  %v2550_v34 = vadd.f32 %v12535_v17, %v12591_v38  ;;  %v12825_v42 = vpop.f32.mrb[22].mxu0  ;;  %v18604_v2 = vrot.slane %v12766_v10, 1 }
 0x248   : > { %18595 = vst [vmem:[#allocation24_spill] sm:$0xff] %v12779_v28  ;;  %18597 = vst [vmem:[#allocation25_spill] sm:$0xff] %v12784_v49  ;;  %v2552_v1 = vadd.f32 %v12537_v15, %v12595_v51  ;;  %v2979_v13 = vrot.slane %v2971_v14, %v12546_v8  ;;  %v2553_v41 = vadd.f32 %v12531_v33, %v12599_v3 }
 0x249   : > { %18600 = vst [vmem:[#allocation27_spill] sm:$0xff] %v12792_v18  ;;  %v2555_v48 = vadd.f32 %v12533_v60, %v12601_v63  ;;  %v2986_v62 = vrot.slane %v2972_v6, %v12546_v8  ;;  %v2678_v46 = vmax.f32 %v2550_v34, 0.0  ;;  %v12820_v20 = vmax.f32 %v4937_v32, %v4938_v47  ;;  %v12827_v63 = vpop.f32.mrb[22].mxu1 }
 0x24a   : > { %v2680_v4 = vmax.f32 %v2552_v1, 0.0  ;;  %v2987_v38 = vcombine.high %v2979_v13, %v2979_v13  ;;  %v3595_v21 = vrot.slane %v2979_v13, %v12546_v8  ;;  %v2681_v51 = vmax.f32 %v2553_v41, 0.0  ;;  %v12833_v13 = vpop.f32.mrb[23].mxu0  ;;  %v12835_v32 = vpop.f32.mrb[23].mxu1 }
 0x24b   : > { %v2683_v25 = vmax.f32 %v2555_v48, 0.0  ;;  %18603 = vst [vmem:[#allocation30_spill] sm:$0xff] %v12820_v20  ;;  %v2988_v44 = vcombine.high %v2986_v62, %v2986_v62  ;;  %v3611_v11 = vrot.slane %v2986_v62, %v12546_v8 }
 0x24c   : > { %v12823_v3 = vmax.f32 %v2678_v46, %v2680_v4  ;;  %v3596_v14 = vcombine.high %v3595_v21, %v3595_v21  ;;  %v3603_v6 = vrot.slane %v2987_v38, %v12546_v8  ;;  %v4942_v34 = vsel %vm4773_vm3, %v3595_v21, -inf }
 0x24d   : > { %v12831_v1 = vmax.f32 %v2681_v51, %v2683_v25  ;;  %v3612_v47 = vcombine.high %v3611_v11, %v3611_v11  ;;  %v3619_v41 = vrot.slane %v2988_v44, %v12546_v8  ;;  %v4943_v48 = vrot.slane %v4942_v34, 4 }
 0x24e   : > { %v4970_v62 = vsel %vm4773_vm3, %v3611_v11, -inf  ;;  %v3604_v46 = vcombine.high %v3603_v6, %v3603_v6  ;;  %v4949_v4 = vsel %vm4773_vm3, %v3596_v14, -inf  ;;  %v4956_v19 = vsel %vm4773_vm3, %v3603_v6, -inf }
 0x24f   : > { %v4971_v38 = vrot.slane %v4970_v62, 4  ;;  %v3620_v26 = vcombine.high %v3619_v41, %v3619_v41  ;;  %v4944_v21 = vmax.f32 %v4942_v34, %v4943_v48  ;;  %v4950_v51 = vrot.slane %v4949_v4, 4 }
 0x250   : > { %v4957_v25 = vrot.slane %v4956_v19, 4  ;;  %v4963_v23 = vsel %vm4773_vm3, %v3604_v46, -inf  ;;  %v4977_v29 = vsel %vm4773_vm3, %v3612_v47, -inf  ;;  %v4984_v44 = vsel %vm4773_vm3, %v3619_v41, -inf }
 0x251   : > { %v4972_v37 = vmax.f32 %v4970_v62, %v4971_v38  ;;  %v4945_v54 = vrot.slane %v4944_v21, 2  ;;  %v4951_v0 = vmax.f32 %v4949_v4, %v4950_v51  ;;  %v4964_v39 = vrot.slane %v4963_v23, 4 }
 0x252   : > { %v4958_v11 = vmax.f32 %v4956_v19, %v4957_v25  ;;  %v4978_v14 = vrot.slane %v4977_v29, 4  ;;  %v4985_v28 = vrot.slane %v4984_v44, 4  ;;  %v4991_v6 = vsel %vm4773_vm3, %v3620_v26, -inf }
 0x253   : > { %v4973_v27 = vrot.slane %v4972_v37, 2  ;;  %v4946_v52 = vmax.f32 %v4944_v21, %v4945_v54  ;;  %v4952_v34 = vrot.slane %v4951_v0, 2  ;;  %v4965_v18 = vmax.f32 %v4963_v23, %v4964_v39 }
 0x254   : > { %v4959_v48 = vrot.slane %v4958_v11, 2  ;;  %v4979_v46 = vmax.f32 %v4977_v29, %v4978_v14  ;;  %v4986_v62 = vmax.f32 %v4984_v44, %v4985_v28  ;;  %v4992_v38 = vrot.slane %v4991_v6, 4 }
 0x255   : > { %v4974_v49 = vmax.f32 %v4972_v37, %v4973_v27  ;;  %v4947_v47 = vrot.slane %v4946_v52, 1  ;;  %v4953_v30 = vmax.f32 %v4951_v0, %v4952_v34  ;;  %v4966_v45 = vrot.slane %v4965_v18, 2 }
 0x256   : > { %v4960_v41 = vmax.f32 %v4958_v11, %v4959_v48  ;;  %v4980_v19 = vrot.slane %v4979_v46, 2  ;;  %v4987_v51 = vrot.slane %v4986_v62, 2  ;;  %v4993_v25 = vmax.f32 %v4991_v6, %v4992_v38 }
 0x257   : > { %v4975_v4 = vrot.slane %v4974_v49, 1  ;;  %v12848_v26 = vmax.f32 %v12766_v10, %v18604_v2  ;;  %v18606_v54 = vrot.slane %v12764_v22, 1  ;;  %v4954_v28 = vrot.slane %v4953_v30, 1 }
 0x258   : > { %v2554_v39 = vadd.f32 %v12535_v17, %v12603_v24  ;;  %v18608_v27 = vrot.slane %v12768_v9, 1  ;;  %v4961_v29 = vrot.slane %v4960_v41, 1  ;;  %v12862_v37 = vmax.f32 %v4965_v18, %v4966_v45 }
 0x259   : > { %18605 = vst [vmem:[#allocation31_spill] sm:$0xff] %v12848_v26  ;;  %v12853_v23 = vmax.f32 %v12764_v22, %v18606_v54  ;;  %v12864_v21 = vmax.f32 %v4979_v46, %v4980_v19  ;;  %v18611_v2 = vrot.slane %v12797_v7, 1  ;;  %v12872_v44 = vmax.f32 %v4986_v62, %v4987_v51 }
 0x25a   : > { %v12860_v0 = vmax.f32 %v12768_v9, %v18608_v27  ;;  %18610 = vst [vmem:[#allocation34_spill] sm:$0xff] %v12862_v37  ;;  %v2989_v24 = vcombine.low %v12748_v55, %v12823_v3  ;;  %v12876_v11 = vmax.f32 %v4946_v52, %v4947_v47  ;;  %v12878_v9 = vmax.f32 %v4974_v49, %v4975_v4 }
 0x25b   : > { %18607 = vst [vmem:[#allocation32_spill] sm:$0xff] %v12853_v23  ;;  %v12869_v10 = vmax.f32 %v12797_v7, %v18611_v2  ;;  %v4994_v45 = vrot.slane %v4993_v25, 2  ;;  %v2990_v18 = vcombine.high %v12748_v55, %v12823_v3  ;;  %v12882_v14 = vmax.f32 %v4953_v30, %v4954_v28 }
 0x25c   : > { %18609 = vst [vmem:[#allocation33_spill] sm:$0xff] %v12860_v0  ;;  %18613 = vst [vmem:[#allocation36_spill] sm:$0xff] %v12876_v11  ;;  %v2997_v7 = vrot.slane %v2989_v24, %v12546_v8  ;;  %v2682_v6 = vmax.f32 %v2554_v39, 0.0  ;;  %v2556_v34 = vadd.f32 %v12537_v15, %v12606_v35  ;;  %v12887_v48 = vmax.f32 %v4960_v41, %v4961_v29 }
 0x25d   : > { %18612 = vst [vmem:[#allocation35_spill] sm:$0xff] %v12869_v10  ;;  %18614 = vst [vmem:[#allocation37_spill] sm:$0xff] %v12878_v9  ;;  %v4982_v52 = vrot.slane %v12864_v21, 1  ;;  %v3004_v49 = vrot.slane %v2990_v18, %v12546_v8  ;;  %v4989_v62 = vrot.slane %v12872_v44, 1  ;;  %v12894_v3 = vmax.f32 %v4993_v25, %v4994_v45  ;;  %v12909_v45 = vpop.f32.mrb[24].mxu0  ;;  %v12911_v18 = vpop.f32.mrb[24].mxu1 }
 0x25e   : > { %18615 = vst [vmem:[#allocation38_spill] sm:$0xff] %v12882_v14  ;;  %18616 = vst [vmem:[#allocation39_spill] sm:$0xff] %v12887_v48  ;;  %v3005_v38 = vcombine.high %v2997_v7, %v2997_v7  ;;  %v3627_v30 = vrot.slane %v2997_v7, %v12546_v8  ;;  %v2684_v55 = vmax.f32 %v2556_v34, 0.0  ;;  %v12899_v35 = vadd.f32 %v12531_v33, %v12610_v16 }
 0x25f   : > { %18617 = vst [vmem:[#allocation40_spill] sm:$0xff] %v12894_v3  ;;  %v3006_v47 = vcombine.high %v3004_v49, %v3004_v49  ;;  %v3643_v4 = vrot.slane %v3004_v49, %v12546_v8 }
 0x260   : > { %v3628_v41 = vcombine.high %v3627_v30, %v3627_v30  ;;  %v3635_v19 = vrot.slane %v3005_v38, %v12546_v8  ;;  %v4998_v51 = vsel %vm4773_vm3, %v3627_v30, -inf  ;;  %v12903_v54 = vmax.f32 %v2682_v6, %v2684_v55  ;;  %v12913_v38 = vpop.f32.mrb[25].mxu0  ;;  %v12915_v30 = vpop.f32.mrb[25].mxu1 }
 0x261   : > { %v3644_v28 = vcombine.high %v3643_v4, %v3643_v4  ;;  %v3651_v39 = vrot.slane %v3006_v47, %v12546_v8  ;;  %v4999_v27 = vrot.slane %v4998_v51, 4  ;;  %v5026_v25 = vsel %vm4773_vm3, %v3643_v4, -inf  ;;  %18618 = vst [vmem:[#allocation41_spill] sm:$0xff] %v12915_v30 }
 0x262   : > { %v3636_v29 = vcombine.high %v3635_v19, %v3635_v19  ;;  %v5005_v2 = vsel %vm4773_vm3, %v3628_v41, -inf  ;;  %v5012_v24 = vsel %vm4773_vm3, %v3635_v19, -inf  ;;  %v5027_v16 = vrot.slane %v5026_v25, 4 }
 0x263   : > { %v3652_v7 = vcombine.high %v3651_v39, %v3651_v39  ;;  %v5000_v34 = vmax.f32 %v4998_v51, %v4999_v27  ;;  %v5006_v6 = vrot.slane %v5005_v2, 4  ;;  %v5013_v49 = vrot.slane %v5012_v24, 4 }
 0x264   : > { %v5019_v55 = vsel %vm4773_vm3, %v3636_v29, -inf  ;;  %v5028_v47 = vmax.f32 %v5026_v25, %v5027_v16  ;;  %v5033_v4 = vsel %vm4773_vm3, %v3644_v28, -inf  ;;  %v5040_v41 = vsel %vm4773_vm3, %v3651_v39, -inf }
 0x265   : > { %v5001_v19 = vrot.slane %v5000_v34, 2  ;;  %v5007_v46 = vmax.f32 %v5005_v2, %v5006_v6  ;;  %v5014_v22 = vmax.f32 %v5012_v24, %v5013_v49  ;;  %v5020_v9 = vrot.slane %v5019_v55, 4 }
 0x266   : > { %v5029_v11 = vrot.slane %v5028_v47, 2  ;;  %v5034_v48 = vrot.slane %v5033_v4, 4  ;;  %v5041_v51 = vrot.slane %v5040_v41, 4  ;;  %v5047_v27 = vsel %vm4773_vm3, %v3652_v7, -inf }
 0x267   : > { %v5002_v14 = vmax.f32 %v5000_v34, %v5001_v19  ;;  %v5008_v23 = vrot.slane %v5007_v46, 2  ;;  %v5015_v37 = vrot.slane %v5014_v22, 2  ;;  %v5021_v10 = vmax.f32 %v5019_v55, %v5020_v9 }
 0x268   : > { %v5030_v0 = vmax.f32 %v5028_v47, %v5029_v11  ;;  %v5035_v29 = vmax.f32 %v5033_v4, %v5034_v48  ;;  %v5042_v25 = vmax.f32 %v5040_v41, %v5041_v51  ;;  %v5048_v16 = vrot.slane %v5047_v27, 4 }
 0x269   : > { %v5003_v28 = vrot.slane %v5002_v14, 1  ;;  %v5009_v20 = vmax.f32 %v5007_v46, %v5008_v23  ;;  %v5016_v39 = vmax.f32 %v5014_v22, %v5015_v37  ;;  %v5022_v26 = vrot.slane %v5021_v10, 2 }
 0x26a   : > { %v5031_v2 = vrot.slane %v5030_v0, 1  ;;  %v5036_v24 = vrot.slane %v5035_v29, 2  ;;  %v5043_v6 = vrot.slane %v5042_v25, 2  ;;  %v5049_v49 = vmax.f32 %v5047_v27, %v5048_v16 }
 0x26b   : > { %v12922_v30 = vmax.f32 %v12864_v21, %v4982_v52  ;;  %v12925_v7 = vmax.f32 %v12872_v44, %v4989_v62  ;;  %v2559_v11 = vadd.f32 %v12533_v60, %v12616_v5  ;;  %v2558_v9 = vadd.f32 %v12535_v17, %v12618_v59 }
 0x26c   : > { %v5010_v37 = vrot.slane %v5009_v20, 1  ;;  %v5017_v22 = vrot.slane %v5016_v39, 1  ;;  %v12932_v48 = vmax.f32 %v5035_v29, %v5036_v24  ;;  %v12934_v46 = vmax.f32 %v5002_v14, %v5003_v28 }
 0x26d   : > { %18619 = vst [vmem:[#allocation42_spill] sm:$0xff] %v12922_v30  ;;  %18620 = vst [vmem:[#allocation43_spill] sm:$0xff] %v12925_v7  ;;  %v12936_v34 = vmax.f32 %v5021_v10, %v5022_v26  ;;  %v3007_v21 = vcombine.low %v12831_v1, %v12903_v54  ;;  %v2685_v44 = vmax.f32 %v12899_v35, 0.0  ;;  %v12941_v52 = vmax.f32 %v5030_v0, %v5031_v2 }
 0x26e   : > { %18621 = vst [vmem:[#allocation44_spill] sm:$0xff] %v12934_v46  ;;  %v12943_v5 = vmax.f32 %v5042_v25, %v5043_v6  ;;  %v5050_v59 = vrot.slane %v5049_v49, 2  ;;  %v3008_v62 = vcombine.high %v12831_v1, %v12903_v54  ;;  %v2687_v47 = vmax.f32 %v2559_v11, 0.0  ;;  %v12965_v25 = vpop.f32.mrb[26].mxu1 }
 0x26f   : > { %18622 = vst [vmem:[#allocation45_spill] sm:$0xff] %v12936_v34  ;;  %18623 = vst [vmem:[#allocation46_spill] sm:$0xff] %v12941_v52  ;;  %v3015_v55 = vrot.slane %v3007_v21, %v12546_v8  ;;  %v2686_v14 = vmax.f32 %v2558_v9, 0.0  ;;  %v2560_v26 = vadd.f32 %v12537_v15, %v12621_v40  ;;  %v12950_v10 = vmax.f32 %v5009_v20, %v5010_v37  ;;  %v12963_v20 = vpop.f32.mrb[26].mxu0  ;;  %v12973_v6 = vpop.f32.mrb[27].mxu1 }
 0x270   : > { %v12952_v4 = vmax.f32 %v5016_v39, %v5017_v22  ;;  %v5038_v0 = vrot.slane %v12932_v48, 1  ;;  %v3022_v35 = vrot.slane %v3008_v62, %v12546_v8  ;;  %v12957_v51 = vmax.f32 %v2685_v44, %v2687_v47  ;;  %v12971_v24 = vpop.f32.mrb[27].mxu0  ;;  %18628 = vst [vmem:[#allocation51_spill] sm:$0xff] %v12973_v6 }
 0x271   : > { %18624 = vst [vmem:[#allocation47_spill] sm:$0xff] %v12950_v10  ;;  %v3023_v41 = vcombine.high %v3015_v55, %v3015_v55  ;;  %v3659_v19 = vrot.slane %v3015_v55, %v12546_v8  ;;  %v2688_v1 = vmax.f32 %v2560_v26, 0.0  ;;  %v5045_v54 = vrot.slane %v12943_v5, 1  ;;  %18627 = vst [vmem:[#allocation50_spill] sm:$0xff] %v12971_v24 }
 0x272   : > { %18625 = vst [vmem:[#allocation48_spill] sm:$0xff] %v12952_v4  ;;  %v12960_v27 = vmax.f32 %v5049_v49, %v5050_v59  ;;  %v3024_v29 = vcombine.high %v3022_v35, %v3022_v35  ;;  %v3675_v40 = vrot.slane %v3022_v35, %v12546_v8 }
 0x273   : > { %v3660_v16 = vcombine.high %v3659_v19, %v3659_v19  ;;  %v3667_v28 = vrot.slane %v3023_v41, %v12546_v8  ;;  %v5054_v39 = vsel %vm4773_vm3, %v3659_v19, -inf  ;;  %v12969_v2 = vmax.f32 %v2686_v14, %v2688_v1 }
 0x274   : > { %18626 = vst [vmem:[#allocation49_spill] sm:$0xff] %v12960_v27  ;;  %v3676_v49 = vcombine.high %v3675_v40, %v3675_v40  ;;  %v3683_v11 = vrot.slane %v3024_v29, %v12546_v8  ;;  %v5055_v9 = vrot.slane %v5054_v39, 4  ;;  %v5082_v37 = vsel %vm4773_vm3, %v3675_v40, -inf }
 0x275   : > { %v3668_v22 = vcombine.high %v3667_v28, %v3667_v28  ;;  %v5061_v21 = vsel %vm4773_vm3, %v3660_v16, -inf  ;;  %v5068_v44 = vsel %vm4773_vm3, %v3667_v28, -inf  ;;  %v5083_v59 = vrot.slane %v5082_v37, 4 }
 0x276   : > { %v3684_v62 = vcombine.high %v3683_v11, %v3683_v11  ;;  %v5056_v55 = vmax.f32 %v5054_v39, %v5055_v9  ;;  %v5062_v47 = vrot.slane %v5061_v21, 4  ;;  %v5069_v14 = vrot.slane %v5068_v44, 4 }
 0x277   : > { %v5075_v26 = vsel %vm4773_vm3, %v3668_v22, -inf  ;;  %v5084_v35 = vmax.f32 %v5082_v37, %v5083_v59  ;;  %v5089_v41 = vsel %vm4773_vm3, %v3676_v49, -inf  ;;  %v5096_v19 = vsel %vm4773_vm3, %v3683_v11, -inf }
 0x278   : > { %v5057_v1 = vrot.slane %v5056_v55, 2  ;;  %v5063_v29 = vmax.f32 %v5061_v21, %v5062_v47  ;;  %v5070_v40 = vmax.f32 %v5068_v44, %v5069_v14  ;;  %v5076_v23 = vrot.slane %v5075_v26, 4 }
 0x279   : > { %v5085_v7 = vrot.slane %v5084_v35, 2  ;;  %v5090_v16 = vrot.slane %v5089_v41, 4  ;;  %v5097_v30 = vrot.slane %v5096_v19, 4  ;;  %v5103_v28 = vsel %vm4773_vm3, %v3684_v62, -inf }
 0x27a   : > { %v5058_v3 = vmax.f32 %v5056_v55, %v5057_v1  ;;  %v5064_v39 = vrot.slane %v5063_v29, 2  ;;  %v5071_v9 = vrot.slane %v5070_v40, 2  ;;  %v5077_v52 = vmax.f32 %v5075_v26, %v5076_v23 }
 0x27b   : > { %v5086_v4 = vmax.f32 %v5084_v35, %v5085_v7  ;;  %v5091_v22 = vmax.f32 %v5089_v41, %v5090_v16  ;;  %v5098_v37 = vmax.f32 %v5096_v19, %v5097_v30  ;;  %v5104_v59 = vrot.slane %v5103_v28, 4 }
 0x27c   : > { %v5059_v49 = vrot.slane %v5058_v3, 1  ;;  %v5065_v46 = vmax.f32 %v5063_v29, %v5064_v39  ;;  %v5072_v11 = vmax.f32 %v5070_v40, %v5071_v9  ;;  %v5078_v10 = vrot.slane %v5077_v52, 2 }
 0x27d   : > { %v5087_v21 = vrot.slane %v5086_v4, 1  ;;  %v5092_v44 = vrot.slane %v5091_v22, 2  ;;  %v5099_v47 = vrot.slane %v5098_v37, 2  ;;  %v5105_v14 = vmax.f32 %v5103_v28, %v5104_v59 }
 0x27e   : > { %v5066_v24 = vrot.slane %v5065_v46, 1  ;;  %v2561_v62 = vadd.f32 %v12531_v33, %v12630_v50  ;;  %v2563_v7 = vadd.f32 %v12533_v60, %v12638_v53  ;;  %v12989_v30 = vmax.f32 %v12932_v48, %v5038_v0 }
 0x27f   : > { %v5073_v23 = vrot.slane %v5072_v11, 1  ;;  %v12991_v55 = vmax.f32 %v5091_v22, %v5092_v44  ;;  %v12993_v26 = vmax.f32 %v5098_v37, %v5099_v47  ;;  %v12996_v35 = vmax.f32 %v12943_v5, %v5045_v54 }
 0x280   : > { %18629 = vst [vmem:[#allocation52_spill] sm:$0xff] %v12989_v30  ;;  %v5106_v19 = vrot.slane %v5105_v14, 2  ;;  %v3025_v50 = vcombine.low %v12957_v51, %v12969_v2  ;;  %v13001_v1 = vmax.f32 %v5058_v3, %v5059_v49  ;;  %v13003_v53 = vmax.f32 %v5077_v52, %v5078_v10 }
 0x281   : > { %18630 = vst [vmem:[#allocation53_spill] sm:$0xff] %v12996_v35  ;;  %v13005_v48 = vmax.f32 %v5086_v4, %v5087_v21  ;;  %v3026_v0 = vcombine.high %v12957_v51, %v12969_v2  ;;  %v13009_v29 = vmax.f32 %v5065_v46, %v5066_v24  ;;  %v2689_v54 = vmax.f32 %v2561_v62, 0.0  ;;  %v13039_v21 = vpop.f32.mrb[28].mxu1 }
 0x282   : > { %18631 = vst [vmem:[#allocation54_spill] sm:$0xff] %v13001_v1  ;;  %18632 = vst [vmem:[#allocation55_spill] sm:$0xff] %v13003_v53  ;;  %v3033_v5 = vrot.slane %v3025_v50, %v12546_v8  ;;  %v2691_v40 = vmax.f32 %v2563_v7, 0.0  ;;  %v13012_v16 = vmax.f32 %v5072_v11, %v5073_v23  ;;  %v5094_v28 = vrot.slane %v12991_v55, 1  ;;  %v13037_v11 = vpop.f32.mrb[28].mxu0 }
 0x283   : > { %18633 = vst [vmem:[#allocation56_spill] sm:$0xff] %v13005_v48  ;;  %18634 = vst [vmem:[#allocation57_spill] sm:$0xff] %v13009_v29  ;;  %v5101_v3 = vrot.slane %v12993_v26, 1  ;;  %v3040_v52 = vrot.slane %v3026_v0, %v12546_v8  ;;  %v13017_v10 = vmax.f32 %v5105_v14, %v5106_v19  ;;  %v13025_v24 = vadd.f32 %v12535_v17, %v12640_v61  ;;  %v13043_v14 = vpop.f32.mrb[29].mxu0 }
 0x284   : > { %18635 = vst [vmem:[#allocation58_spill] sm:$0xff] %v13012_v16  ;;  %v3041_v4 = vcombine.high %v3033_v5, %v3033_v5  ;;  %v3691_v39 = vrot.slane %v3033_v5, %v12546_v8  ;;  %v13020_v51 = vmax.f32 %v2689_v54, %v2691_v40  ;;  %v13029_v9 = vadd.f32 %v12537_v15, %v12647_v58  ;;  %v13047_v54 = vpop.f32.mrb[29].mxu1 }
 0x285   : > { %18636 = vst [vmem:[#allocation59_spill] sm:$0xff] %v13017_v10  ;;  %v3042_v46 = vcombine.high %v3040_v52, %v3040_v52  ;;  %v3707_v2 = vrot.slane %v3040_v52, %v12546_v8  ;;  %v13035_v49 = vadd.f32 %v12531_v33, %v12657_v36 }
 0x286   : > { %v3692_v22 = vcombine.high %v3691_v39, %v3691_v39  ;;  %v3699_v37 = vrot.slane %v3041_v4, %v12546_v8  ;;  %v5110_v59 = vsel %vm4773_vm3, %v3691_v39, -inf }
 0x287   : > { %v3708_v44 = vcombine.high %v3707_v2, %v3707_v2  ;;  %v3715_v61 = vrot.slane %v3042_v46, %v12546_v8  ;;  %v5111_v47 = vrot.slane %v5110_v59, 4  ;;  %v5138_v58 = vsel %vm4773_vm3, %v3707_v2, -inf }
 0x288   : > { %v3700_v62 = vcombine.high %v3699_v37, %v3699_v37  ;;  %v5117_v7 = vsel %vm4773_vm3, %v3692_v22, -inf  ;;  %v5124_v23 = vsel %vm4773_vm3, %v3699_v37, -inf  ;;  %v5139_v19 = vrot.slane %v5138_v58, 4 }
 0x289   : > { %v3716_v36 = vcombine.high %v3715_v61, %v3715_v61  ;;  %v5112_v50 = vmax.f32 %v5110_v59, %v5111_v47  ;;  %v5118_v0 = vrot.slane %v5117_v7, 4  ;;  %v5125_v5 = vrot.slane %v5124_v23, 4 }
 0x28a   : > { %v5131_v40 = vsel %vm4773_vm3, %v3700_v62, -inf  ;;  %v5140_v52 = vmax.f32 %v5138_v58, %v5139_v19  ;;  %v5145_v4 = vsel %vm4773_vm3, %v3708_v44, -inf  ;;  %v5152_v39 = vsel %vm4773_vm3, %v3715_v61, -inf }
 0x28b   : > { %v5113_v46 = vrot.slane %v5112_v50, 2  ;;  %v5119_v2 = vmax.f32 %v5117_v7, %v5118_v0  ;;  %v5126_v41 = vmax.f32 %v5124_v23, %v5125_v5  ;;  %v5132_v22 = vrot.slane %v5131_v40, 4 }
 0x28c   : > { %v5141_v6 = vrot.slane %v5140_v52, 2  ;;  %v5146_v37 = vrot.slane %v5145_v4, 4  ;;  %v5153_v48 = vrot.slane %v5152_v39, 4  ;;  %v5159_v59 = vsel %vm4773_vm3, %v3716_v36, -inf }
 0x28d   : > { %v5114_v47 = vmax.f32 %v5112_v50, %v5113_v46  ;;  %v5120_v1 = vrot.slane %v5119_v2, 2  ;;  %v5127_v16 = vrot.slane %v5126_v41, 2  ;;  %v5133_v29 = vmax.f32 %v5131_v40, %v5132_v22  ;;  %v9146_v46 = vld [vmem:[%s18333_s3 + $0x110] sm:$0xff] }
 0x28e   : > { %v5142_v35 = vmax.f32 %v5140_v52, %v5141_v6  ;;  %v5147_v62 = vmax.f32 %v5145_v4, %v5146_v37  ;;  %v5154_v58 = vmax.f32 %v5152_v39, %v5153_v48  ;;  %v5160_v19 = vrot.slane %v5159_v59, 4  ;;  %v18642_v37 = vld [vmem:[#allocation9_spill] sm:$0xff] }
 0x28f   : > { %v5115_v44 = vrot.slane %v5114_v47, 1  ;;  %v5121_v30 = vmax.f32 %v5119_v2, %v5120_v1  ;;  %v5128_v61 = vmax.f32 %v5126_v41, %v5127_v16  ;;  %v5134_v27 = vrot.slane %v5133_v29, 2 }
 0x290   : > { %v5143_v7 = vrot.slane %v5142_v35, 1  ;;  %v5148_v23 = vrot.slane %v5147_v62, 2  ;;  %v5155_v0 = vrot.slane %v5154_v58, 2  ;;  %v5161_v5 = vmax.f32 %v5159_v59, %v5160_v19 }
 0x291   : > { %v13055_v36 = vmax.f32 %v12991_v55, %v5094_v28  ;;  %v2690_v50 = vmax.f32 %v13025_v24, 0.0  ;;  %v2567_v6 = vadd.f32 %v12533_v60, %v12662_v56  ;;  %v13061_v48 = vmax.f32 %v12993_v26, %v5101_v3  ;;  %v9162_v55 = vld [vmem:[%s18333_s3 + $0x190] sm:$0xff]  ;;  %v9163_v56 = vld [vmem:[%s18333_s3 + $0x198] sm:$0xff] }
 0x292   : > { %v5122_v1 = vrot.slane %v5121_v30, 1  ;;  %v5149_v41 = vmax.f32 %v5147_v62, %v5148_v23  ;;  %v5156_v16 = vmax.f32 %v5154_v58, %v5155_v0  ;;  %v13064_v52 = vmax.f32 %v5114_v47, %v5115_v44  ;;  %v13096_v47 = vpop.f32.mrb[30].mxu1  ;;  %v6568_v44 = vld [vmem:[%s18333_s3 + $0x10] sm:$0xff] }
 0x293   : > { %18637 = vst [vmem:[#allocation60_spill] sm:$0xff] %v13055_v36  ;;  %18638 = vst [vmem:[#allocation61_spill] sm:$0xff] %v13061_v48  ;;  %v5129_v4 = vrot.slane %v5128_v61, 1  ;;  %v2692_v39 = vmax.f32 %v13029_v9, 0.0  ;;  %v13073_v26 = vmax.f32 %v5133_v29, %v5134_v27  ;;  %v13075_v28 = vmax.f32 %v5142_v35, %v5143_v7  ;;  %v9147_v27 = vld [vmem:[%s18333_s3 + $0x118] sm:$0xff]  ;;  %v6584_v35 = vld [vmem:[%s18333_s3 + $0x90] sm:$0xff] }
 0x294   : > { %18639 = vst [vmem:[#allocation62_spill] sm:$0xff] %v13064_v52  ;;  %v5162_v3 = vrot.slane %v5161_v5, 2  ;;  %v2693_v24 = vmax.f32 %v13035_v49, 0.0  ;;  %v2695_v2 = vmax.f32 %v2567_v6, 0.0  ;;  %v2566_v22 = vadd.f32 %v12535_v17, %v12664_v12  ;;  %v6585_v29 = vld [vmem:[%s18333_s3 + $0x98] sm:$0xff]  ;;  %v13094_v49 = vpop.f32.mrb[30].mxu0 }
 0x295   : > { %18640 = vst [vmem:[#allocation63_spill] sm:$0xff] %v13073_v26  ;;  %18641 = vst [vmem:[#allocation64_spill] sm:$0xff] %v13075_v28  ;;  %v2804_v9 = vmax.f32 %v2690_v50, %v2692_v39  ;;  %v2568_v59 = vadd.f32 %v12537_v15, %v18642_v37  ;;  %v13098_v12 = vmax.f32 %v5121_v30, %v5122_v1  ;;  %v5150_v62 = vrot.slane %v5149_v41, 1  ;;  %v6569_v7 = vld [vmem:[%s18333_s3 + $0x18] sm:$0xff]  ;;  %v13106_v23 = vpop.f32.mrb[31].mxu0  ;;  %v13108_v0 = vpop.f32.mrb[31].mxu1 }
 0x296   : > { %18643 = vst [vmem:[#allocation9_spill] sm:$0xff] %v13096_v47  ;;  %v5157_v58 = vrot.slane %v5156_v16, 1  ;;  %v10337_v19 = vpack.c.bf16 %v9163_v56, %v9162_v55  ;;  %18645 = vst [vmem:[#allocation66_spill] sm:$0xff] %v13106_v23  ;;  %v13112_v6 = vmax.f32 %v2693_v24, %v2695_v2  ;;  %v2694_v1 = vmax.f32 %v2566_v22, 0.0  ;;  %v18651_v2 = vld [vmem:[#allocation10_spill] sm:$0xff] }
 0x297   : > { %18644 = vst [vmem:[#allocation65_spill] sm:$0xff] %v13098_v12  ;;  %18646 = vst [vmem:[#allocation67_spill] sm:$0xff] %v13108_v0  ;;  %v3043_v50 = vcombine.low %v13020_v51, %v2804_v9  ;;  %v3044_v30 = vcombine.high %v13020_v51, %v2804_v9  ;;  %v13114_v39 = vmax.f32 %v5128_v61, %v5129_v4  ;;  %v2696_v55 = vmax.f32 %v2568_v59, 0.0 }
 0x298   : > { %10338 = vmatprep.subr.bf16.mxu0 %v10337_v19  ;;  %v10339_v56 = vpack.c.bf16 %v9147_v27, %v9146_v46  ;;  %v10369_v37 = vpack.c.bf16 %v6585_v29, %v6584_v35  ;;  %v13116_v40 = vmax.f32 %v5161_v5, %v5162_v3  ;;  %v10371_v52 = vpack.c.bf16 %v6569_v7, %v6568_v44 }
 0x299   : > { %18647 = vst [vmem:[#allocation68_spill] sm:$0xff] %v13114_v39  ;;  %v3051_v34 = vrot.slane %v3043_v50, %v12546_v8  ;;  %v3058_v28 = vrot.slane %v3044_v30, %v12546_v8  ;;  %v13121_v48 = vmax.f32 %v5149_v41, %v5150_v62  ;;  %v13123_v51 = vmax.f32 %v5156_v16, %v5157_v58  ;;  %v18652_v16 = vld [vmem:[#allocation11_spill] sm:$0xff]  ;;  %v18653_v62 = vld [vmem:[#allocation12_spill] sm:$0xff] }
 0x29a   : > { %18648 = vst [vmem:[#allocation69_spill] sm:$0xff] %v13116_v40  ;;  %v2806_v24 = vmax.f32 %v2694_v1, %v2696_v55  ;;  %10340 = vmatpush3.bf16.msra.mxu0 %v10339_v56  ;;  %10370 = vmatprep.subr.bf16.mxu1 %v10369_v37  ;;  %v13131_v41 = vadd.f32 %v12531_v33, %v18651_v2 }
 0x29b   : > { %18649 = vst [vmem:[#allocation70_spill] sm:$0xff] %v13121_v48  ;;  %18650 = vst [vmem:[#allocation71_spill] sm:$0xff] %v13123_v51  ;;  %v3059_v61 = vcombine.high %v3051_v34, %v3051_v34  ;;  %v3060_v4 = vcombine.high %v3058_v28, %v3058_v28  ;;  %v3723_v46 = vrot.slane %v3051_v34, %v12546_v8  ;;  %10372 = vmatpush3.bf16.msra.mxu1 %v10371_v52 }
 0x29c   : > { %v3739_v5 = vrot.slane %v3058_v28, %v12546_v8  ;;  %v3061_v3 = vcombine.low %v13112_v6, %v2806_v24  ;;  %v3062_v9 = vcombine.high %v13112_v6, %v2806_v24  ;;  %v13135_v22 = vadd.f32 %v12533_v60, %v18652_v16 }
 0x29d   : > { %v3724_v59 = vcombine.high %v3723_v46, %v3723_v46  ;;  %v3731_v27 = vrot.slane %v3059_v61, %v12546_v8  ;;  %v3747_v34 = vrot.slane %v3060_v4, %v12546_v8  ;;  %v5166_v52 = vsel %vm4773_vm3, %v3723_v46, -inf }
 0x29e   : > { %v3740_v35 = vcombine.high %v3739_v5, %v3739_v5  ;;  %v5194_v28 = vsel %vm4773_vm3, %v3739_v5, -inf  ;;  %v13142_v29 = vrot.slane %v3061_v3, %v12546_v8  ;;  %v13146_v58 = vadd.f32 %v12535_v17, %v18653_v62 }
 0x29f   : > { %v3732_v19 = vcombine.high %v3731_v27, %v3731_v27  ;;  %v3748_v44 = vcombine.high %v3747_v34, %v3747_v34  ;;  %v5167_v7 = vrot.slane %v5166_v52, 4  ;;  %v5173_v50 = vsel %vm4773_vm3, %v3724_v59, -inf }
 0x2a0   : > { %v5174_v30 = vrot.slane %v5173_v50, 4  ;;  %v5180_v6 = vsel %vm4773_vm3, %v3731_v27, -inf  ;;  %v5195_v1 = vrot.slane %v5194_v28, 4  ;;  %v5201_v55 = vsel %vm4773_vm3, %v3740_v35, -inf }
 0x2a1   : > { %v5168_v56 = vmax.f32 %v5166_v52, %v5167_v7  ;;  %v5181_v37 = vrot.slane %v5180_v6, 4  ;;  %v5187_v24 = vsel %vm4773_vm3, %v3732_v19, -inf  ;;  %v5202_v61 = vrot.slane %v5201_v55, 4 }
 0x2a2   : > { %v5175_v4 = vmax.f32 %v5173_v50, %v5174_v30  ;;  %v5188_v46 = vrot.slane %v5187_v24, 4  ;;  %v5196_v5 = vmax.f32 %v5194_v28, %v5195_v1  ;;  %v5208_v3 = vsel %vm4773_vm3, %v3747_v34, -inf }
 0x2a3   : > { %v5169_v2 = vrot.slane %v5168_v56, 2  ;;  %v5182_v16 = vmax.f32 %v5180_v6, %v5181_v37  ;;  %v5203_v62 = vmax.f32 %v5201_v55, %v5202_v61  ;;  %v5209_v59 = vrot.slane %v5208_v3, 4 }
 0x2a4   : > { %v5176_v12 = vrot.slane %v5175_v4, 2  ;;  %v5189_v51 = vmax.f32 %v5187_v24, %v5188_v46  ;;  %v5197_v27 = vrot.slane %v5196_v5, 2  ;;  %v5215_v48 = vsel %vm4773_vm3, %v3748_v44, -inf }
 0x2a5   : > { %v5170_v35 = vmax.f32 %v5168_v56, %v5169_v2  ;;  %v5183_v52 = vrot.slane %v5182_v16, 2  ;;  %v5204_v7 = vrot.slane %v5203_v62, 2  ;;  %v5210_v39 = vmax.f32 %v5208_v3, %v5209_v59 }
 0x2a6   : > { %v5177_v19 = vmax.f32 %v5175_v4, %v5176_v12  ;;  %v5190_v26 = vrot.slane %v5189_v51, 2  ;;  %v13154_v50 = vmax.f32 %v5196_v5, %v5197_v27  ;;  %v5216_v28 = vrot.slane %v5215_v48, 4 }
 0x2a7   : > { %v5171_v30 = vrot.slane %v5170_v35, 1  ;;  %v13156_v34 = vmax.f32 %v5182_v16, %v5183_v52  ;;  %v13158_v6 = vmax.f32 %v5203_v62, %v5204_v7  ;;  %v5211_v1 = vrot.slane %v5210_v39, 2 }
 0x2a8   : > { %v5178_v37 = vrot.slane %v5177_v19, 1  ;;  %v5217_v24 = vmax.f32 %v5215_v48, %v5216_v28  ;;  %v3076_v44 = vrot.slane %v3062_v9, %v12546_v8  ;;  %v2697_v12 = vmax.f32 %v13131_v41, 0.0  ;;  %v13174_v48 = vpop.f32.mrb[32].mxu0  ;;  %v13176_v9 = vpop.f32.mrb[32].mxu1 }
 0x2a9   : > { %v13162_v56 = vmax.f32 %v5210_v39, %v5211_v1  ;;  %v2699_v61 = vmax.f32 %v13135_v22, 0.0  ;;  %v13168_v4 = vadd.f32 %v12537_v15, %v12679_v43  ;;  %v13170_v46 = vmax.f32 %v5189_v51, %v5190_v26  ;;  %18655 = vst [vmem:[#allocation11_spill] sm:$0xff] %v13174_v48  ;;  %18656 = vst [vmem:[#allocation12_spill] sm:$0xff] %v13176_v9  ;;  %v13184_v26 = vpop.f32.mrb[33].mxu0  ;;  %v13186_v51 = vpop.f32.mrb[33].mxu1 }
 0x2aa   : > { %v5199_v5 = vrot.slane %v13154_v50, 1  ;;  %v5218_v3 = vrot.slane %v5217_v24, 2  ;;  %v13178_v39 = vmax.f32 %v5170_v35, %v5171_v30  ;;  %v5185_v41 = vrot.slane %v13156_v34, 1  ;;  %18658 = vst [vmem:[#allocation73_spill] sm:$0xff] %v13184_v26  ;;  %18659 = vst [vmem:[#allocation74_spill] sm:$0xff] %v13186_v51 }
 0x2ab   : > { %18654 = vst [vmem:[#allocation10_spill] sm:$0xff] %v13170_v46  ;;  %v5206_v22 = vrot.slane %v13158_v6, 1  ;;  %v3077_v43 = vcombine.high %v13142_v29, %v13142_v29  ;;  %v13188_v16 = vmax.f32 %v5177_v19, %v5178_v37  ;;  %v3078_v62 = vcombine.high %v3076_v44, %v3076_v44 }
 0x2ac   : > { %18657 = vst [vmem:[#allocation72_spill] sm:$0xff] %v13178_v39  ;;  %v3755_v59 = vrot.slane %v13142_v29, %v12546_v8  ;;  %v3771_v27 = vrot.slane %v3076_v44, %v12546_v8  ;;  %v5213_v35 = vrot.slane %v13162_v56, 1  ;;  %v13194_v52 = vmax.f32 %v5217_v24, %v5218_v3 }
 0x2ad   : > { %18660 = vst [vmem:[#allocation75_spill] sm:$0xff] %v13188_v16  ;;  %v3763_v7 = vrot.slane %v3077_v43, %v12546_v8  ;;  %v13197_v28 = vmax.f32 %v2697_v12, %v2699_v61  ;;  %v3779_v55 = vrot.slane %v3078_v62, %v12546_v8  ;;  %v2700_v19 = vmax.f32 %v13168_v4, 0.0 }
 0x2ae   : > { %18661 = vst [vmem:[#allocation76_spill] sm:$0xff] %v13194_v52  ;;  %v3756_v30 = vcombine.high %v3755_v59, %v3755_v59  ;;  %v3772_v1 = vcombine.high %v3771_v27, %v3771_v27  ;;  %v5222_v2 = vsel %vm4773_vm3, %v3755_v59, -inf  ;;  %v5250_v44 = vsel %vm4773_vm3, %v3771_v27, -inf }
 0x2af   : > { %v3764_v37 = vcombine.high %v3763_v7, %v3763_v7  ;;  %v5236_v29 = vsel %vm4773_vm3, %v3763_v7, -inf  ;;  %v3780_v39 = vcombine.high %v3779_v55, %v3779_v55  ;;  %v5223_v24 = vrot.slane %v5222_v2, 4 }
 0x2b0   : > { %v5229_v3 = vsel %vm4773_vm3, %v3756_v30, -inf  ;;  %v5237_v43 = vrot.slane %v5236_v29, 4  ;;  %v5251_v16 = vrot.slane %v5250_v44, 4  ;;  %v5257_v62 = vsel %vm4773_vm3, %v3772_v1, -inf }
 0x2b1   : > { %v5230_v12 = vrot.slane %v5229_v3, 4  ;;  %v5243_v61 = vsel %vm4773_vm3, %v3764_v37, -inf  ;;  %v5224_v40 = vmax.f32 %v5222_v2, %v5223_v24  ;;  %v5258_v10 = vrot.slane %v5257_v62, 4 }
 0x2b2   : > { %v5238_v4 = vmax.f32 %v5236_v29, %v5237_v43  ;;  %v5244_v36 = vrot.slane %v5243_v61, 4  ;;  %v5252_v53 = vmax.f32 %v5250_v44, %v5251_v16  ;;  %v5264_v7 = vsel %vm4773_vm3, %v3779_v55, -inf  ;;  %v13216_v44 = vpop.f32.mrb[34].mxu1 }
 0x2b3   : > { %v5231_v59 = vmax.f32 %v5229_v3, %v5230_v12  ;;  %v5271_v27 = vsel %vm4773_vm3, %v3780_v39, -inf  ;;  %v5225_v51 = vrot.slane %v5224_v40, 2  ;;  %v5259_v9 = vmax.f32 %v5257_v62, %v5258_v10  ;;  %v13214_v39 = vpop.f32.mrb[34].mxu0 }
 0x2b4   : > { %v5239_v26 = vrot.slane %v5238_v4, 2  ;;  %v5245_v30 = vmax.f32 %v5243_v61, %v5244_v36  ;;  %v5253_v0 = vrot.slane %v5252_v53, 2  ;;  %v5265_v37 = vrot.slane %v5264_v7, 4 }
 0x2b5   : > { %v5232_v48 = vrot.slane %v5231_v59, 2  ;;  %v5272_v23 = vrot.slane %v5271_v27, 4  ;;  %v5226_v47 = vmax.f32 %v5224_v40, %v5225_v51  ;;  %v5260_v29 = vrot.slane %v5259_v9, 2 }
 0x2b6   : > { %v5240_v1 = vmax.f32 %v5238_v4, %v5239_v26  ;;  %v5246_v2 = vrot.slane %v5245_v30, 2  ;;  %v13212_v16 = vmax.f32 %v5252_v53, %v5253_v0  ;;  %v5266_v55 = vmax.f32 %v5264_v7, %v5265_v37  ;;  %v13232_v53 = vpop.f32.mrb[35].mxu1  ;;  %v18670_v4 = vld [vmem:[#allocation21_spill] sm:$0xff]  ;;  %v18671_v7 = vld [vmem:[#allocation22_spill] sm:$0xff] }
 0x2b7   : > { %v13210_v3 = vmax.f32 %v5231_v59, %v5232_v48  ;;  %v13219_v10 = vmax.f32 %v13156_v34, %v5185_v41  ;;  %v13222_v36 = vmax.f32 %v13154_v50, %v5199_v5  ;;  %v13225_v40 = vmax.f32 %v13158_v6, %v5206_v22  ;;  %v13230_v48 = vpop.f32.mrb[35].mxu0 }
 0x2b8   : > { %v13228_v26 = vmax.f32 %v13162_v56, %v5213_v35  ;;  %v5227_v51 = vrot.slane %v5226_v47, 1  ;;  %v5267_v43 = vrot.slane %v5266_v55, 2  ;;  %v13235_v12 = vmax.f32 %v5271_v27, %v5272_v23 }
 0x2b9   : > { %18662 = vst [vmem:[#allocation77_spill] sm:$0xff] %v13210_v3  ;;  %18663 = vst [vmem:[#allocation78_spill] sm:$0xff] %v13219_v10  ;;  %v5241_v34 = vrot.slane %v5240_v1, 1  ;;  %v13237_v41 = vmax.f32 %v5245_v30, %v5246_v2  ;;  %v13239_v50 = vmax.f32 %v5259_v9, %v5260_v29  ;;  %v18669_v6 = vmax.f32 %v13146_v58, 0.0 }
 0x2ba   : > { %18664 = vst [vmem:[#allocation79_spill] sm:$0xff] %v13222_v36  ;;  %18665 = vst [vmem:[#allocation80_spill] sm:$0xff] %v13225_v40  ;;  %v13245_v35 = vmax.f32 %v5266_v55, %v5267_v43  ;;  %v2573_v61 = vadd.f32 %v12531_v33, %v12753_v57  ;;  %v2575_v9 = vadd.f32 %v12533_v60, %v12755_v31 }
 0x2bb   : > { %18666 = vst [vmem:[#allocation81_spill] sm:$0xff] %v13228_v26  ;;  %18667 = vst [vmem:[#allocation82_spill] sm:$0xff] %v13237_v41  ;;  %v2808_v5 = vmax.f32 %v18669_v6, %v2700_v19  ;;  %v2574_v58 = vadd.f32 %v12535_v17, %v18670_v4  ;;  %v2576_v27 = vadd.f32 %v12537_v15, %v18671_v7 }
 0x2bc   : > { %18668 = vst [vmem:[#allocation83_spill] sm:$0xff] %v13239_v50  ;;  %v2701_v59 = vmax.f32 %v2573_v61, 0.0  ;;  %v13260_v30 = vadd.f32 %v12531_v33, %v12825_v42  ;;  %v2703_v37 = vmax.f32 %v2575_v9, 0.0  ;;  %v13264_v31 = vmax.f32 %v5226_v47, %v5227_v51 }
 0x2bd   : > { %v3079_v23 = vcombine.low %v13197_v28, %v2808_v5  ;;  %v3080_v62 = vcombine.high %v13197_v28, %v2808_v5  ;;  %v2702_v2 = vmax.f32 %v2574_v58, 0.0  ;;  %v13266_v29 = vmax.f32 %v5240_v1, %v5241_v34 }
 0x2be   : > { %18672 = vst [vmem:[#allocation21_spill] sm:$0xff] %v13264_v31  ;;  %v5269_v55 = vrot.slane %v13245_v35, 1  ;;  %v2704_v43 = vmax.f32 %v2576_v27, 0.0  ;;  %v13271_v4 = vmax.f32 %v2701_v59, %v2703_v37  ;;  %v13278_v47 = vadd.f32 %v12533_v60, %v12827_v63 }
 0x2bf   : > { %v3087_v57 = vrot.slane %v3079_v23, %v12546_v8  ;;  %v3094_v28 = vrot.slane %v3080_v62, %v12546_v8  ;;  %18673 = vst [vmem:[#allocation22_spill] sm:$0xff] %v13266_v29 }
 0x2c0   : > { %v13273_v23 = vmax.f32 %v2702_v2, %v2704_v43 }
 0x2c1   : > { %v3095_v6 = vcombine.high %v3087_v57, %v3087_v57  ;;  %v3096_v5 = vcombine.high %v3094_v28, %v3094_v28  ;;  %v3787_v61 = vrot.slane %v3087_v57, %v12546_v8  ;;  %v3803_v42 = vrot.slane %v3094_v28, %v12546_v8 }
 0x2c2   : > { %v3097_v59 = vcombine.low %v13271_v4, %v13273_v23  ;;  %v3098_v27 = vcombine.high %v13271_v4, %v13273_v23 }
 0x2c3   : > { %v3788_v1 = vcombine.high %v3787_v61, %v3787_v61  ;;  %v3795_v51 = vrot.slane %v3095_v6, %v12546_v8  ;;  %v3804_v34 = vcombine.high %v3803_v42, %v3803_v42  ;;  %v3811_v9 = vrot.slane %v3096_v5, %v12546_v8 }
 0x2c4   : > { %v5278_v58 = vsel %vm4773_vm3, %v3787_v61, -inf  ;;  %v5306_v7 = vsel %vm4773_vm3, %v3803_v42, -inf }
 0x2c5   : > { %v3796_v57 = vcombine.high %v3795_v51, %v3795_v51  ;;  %v3812_v28 = vcombine.high %v3811_v9, %v3811_v9  ;;  %v5279_v63 = vrot.slane %v5278_v58, 4  ;;  %v5285_v37 = vsel %vm4773_vm3, %v3788_v1, -inf }
 0x2c6   : > { %v5286_v2 = vrot.slane %v5285_v37, 4  ;;  %v5292_v43 = vsel %vm4773_vm3, %v3795_v51, -inf  ;;  %v5307_v6 = vrot.slane %v5306_v7, 4  ;;  %v5313_v5 = vsel %vm4773_vm3, %v3804_v34, -inf }
 0x2c7   : > { %v5280_v61 = vmax.f32 %v5278_v58, %v5279_v63  ;;  %v5293_v0 = vrot.slane %v5292_v43, 4  ;;  %v5299_v42 = vsel %vm4773_vm3, %v3796_v57, -inf  ;;  %v5314_v24 = vrot.slane %v5313_v5, 4  ;;  %v13294_v57 = vpop.f32.mrb[36].mxu0 }
 0x2c8   : > { %v5287_v56 = vmax.f32 %v5285_v37, %v5286_v2  ;;  %v5300_v62 = vrot.slane %v5299_v42, 4  ;;  %v5308_v19 = vmax.f32 %v5306_v7, %v5307_v6  ;;  %v5320_v4 = vsel %vm4773_vm3, %v3811_v9, -inf  ;;  %v13305_v6 = vpop.f32.mrb[37].mxu0 }
 0x2c9   : > { %v5281_v23 = vrot.slane %v5280_v61, 2  ;;  %v5294_v22 = vmax.f32 %v5292_v43, %v5293_v0  ;;  %v5315_v36 = vmax.f32 %v5313_v5, %v5314_v24  ;;  %v5321_v1 = vrot.slane %v5320_v4, 4  ;;  %v13299_v0 = vpop.f32.mrb[36].mxu1 }
 0x2ca   : > { %v5288_v26 = vrot.slane %v5287_v56, 2  ;;  %v5301_v40 = vmax.f32 %v5299_v42, %v5300_v62  ;;  %v5309_v51 = vrot.slane %v5308_v19, 2  ;;  %v5327_v52 = vsel %vm4773_vm3, %v3812_v28, -inf  ;;  %v13307_v5 = vpop.f32.mrb[37].mxu1 }
 0x2cb   : > { %v5282_v34 = vmax.f32 %v5280_v61, %v5281_v23  ;;  %v5295_v58 = vrot.slane %v5294_v22, 2  ;;  %v5316_v63 = vrot.slane %v5315_v36, 2  ;;  %v5322_v10 = vmax.f32 %v5320_v4, %v5321_v1  ;;  %18675 = vst [vmem:[#allocation85_spill] sm:$0xff] %v13307_v5 }
 0x2cc   : > { %v13296_v37 = vmax.f32 %v5287_v56, %v5288_v26  ;;  %v5302_v7 = vrot.slane %v5301_v40, 2  ;;  %v5328_v2 = vrot.slane %v5327_v52, 4  ;;  %v2707_v9 = vmax.f32 %v13278_v47, 0.0 }
 0x2cd   : > { %v5283_v24 = vrot.slane %v5282_v34, 1  ;;  %v13301_v43 = vmax.f32 %v5294_v22, %v5295_v58  ;;  %v13303_v62 = vmax.f32 %v5308_v19, %v5309_v51  ;;  %v5323_v28 = vrot.slane %v5322_v10, 2 }
 0x2ce   : > { %18674 = vst [vmem:[#allocation84_spill] sm:$0xff] %v13296_v37  ;;  %v18676_v61 = vrot.slane %v13212_v16, 1  ;;  %v18678_v47 = vrot.slane %v13235_v12, 2  ;;  %v13320_v22 = vmax.f32 %v5327_v52, %v5328_v2  ;;  %v13323_v19 = vmax.f32 %v13245_v35, %v5269_v55 }
 0x2cf   : > { %v13325_v4 = vmax.f32 %v5315_v36, %v5316_v63  ;;  %v13327_v23 = vmax.f32 %v5322_v10, %v5323_v28  ;;  %v13334_v51 = vmax.f32 %v5301_v40, %v5302_v7  ;;  %v3112_v52 = vrot.slane %v3098_v27, %v12546_v8 }
 0x2d0   : > { %v13312_v26 = vmax.f32 %v13212_v16, %v18676_v61  ;;  %v13318_v42 = vmax.f32 %v13235_v12, %v18678_v47  ;;  %18680 = vst [vmem:[#allocation88_spill] sm:$0xff] %v13323_v19  ;;  %v13331_v16 = vadd.f32 %v12535_v17, %v12833_v13  ;;  %v3105_v12 = vrot.slane %v3097_v59, %v12546_v8 }
 0x2d1   : > { %18681 = vst [vmem:[#allocation89_spill] sm:$0xff] %v13325_v4  ;;  %18682 = vst [vmem:[#allocation90_spill] sm:$0xff] %v13334_v51  ;;  %v13338_v58 = vmax.f32 %v5282_v34, %v5283_v24  ;;  %v5297_v35 = vrot.slane %v13301_v43, 1  ;;  %v5311_v36 = vrot.slane %v13303_v62, 1  ;;  %v18684_v10 = vmax.f32 %v13260_v30, 0.0 }
 0x2d2   : > { %18677 = vst [vmem:[#allocation86_spill] sm:$0xff] %v13312_v26  ;;  %18679 = vst [vmem:[#allocation87_spill] sm:$0xff] %v13318_v42  ;;  %v5330_v13 = vrot.slane %v13320_v22, 2  ;;  %v3113_v63 = vcombine.high %v3105_v12, %v3105_v12  ;;  %v3114_v2 = vcombine.high %v3112_v52, %v3112_v52  ;;  %v3819_v40 = vrot.slane %v3105_v12, %v12546_v8  ;;  %v13369_v26 = vpop.f32.mrb[38].mxu1 }
 0x2d3   : > { %18683 = vst [vmem:[#allocation91_spill] sm:$0xff] %v13338_v58  ;;  %v13344_v55 = vmax.f32 %v18684_v10, %v2707_v9  ;;  %v5325_v59 = vrot.slane %v13327_v23, 1  ;;  %v3835_v27 = vrot.slane %v3112_v52, %v12546_v8  ;;  %v2706_v34 = vmax.f32 %v13331_v16, 0.0  ;;  %18686 = vst [vmem:[#allocation93_spill] sm:$0xff] %v13369_v26 }
 0x2d4   : > { %v2580_v7 = vadd.f32 %v12537_v15, %v12835_v32  ;;  %v3820_v24 = vcombine.high %v3819_v40, %v3819_v40  ;;  %v3827_v30 = vrot.slane %v3113_v63, %v12546_v8  ;;  %v3843_v9 = vrot.slane %v3114_v2, %v12546_v8 }
 0x2d5   : > { %v5334_v28 = vsel %vm4773_vm3, %v3819_v40, -inf  ;;  %v3836_v61 = vcombine.high %v3835_v27, %v3835_v27  ;;  %v5362_v12 = vsel %vm4773_vm3, %v3835_v27, -inf  ;;  %v13359_v10 = vadd.f32 %v12531_v33, %v12909_v45  ;;  %v13367_v45 = vpop.f32.mrb[38].mxu0 }
 0x2d6   : > { %v5335_v47 = vrot.slane %v5334_v28, 4  ;;  %v3828_v52 = vcombine.high %v3827_v30, %v3827_v30  ;;  %v3844_v16 = vcombine.high %v3843_v9, %v3843_v9  ;;  %v5341_v1 = vsel %vm4773_vm3, %v3820_v24, -inf  ;;  %18685 = vst [vmem:[#allocation92_spill] sm:$0xff] %v13367_v45 }
 0x2d7   : > { %v5348_v32 = vsel %vm4773_vm3, %v3827_v30, -inf  ;;  %v5342_v63 = vrot.slane %v5341_v1, 4  ;;  %v5363_v2 = vrot.slane %v5362_v12, 4  ;;  %v5369_v58 = vsel %vm4773_vm3, %v3836_v61, -inf }
 0x2d8   : > { %v5336_v56 = vmax.f32 %v5334_v28, %v5335_v47  ;;  %v5349_v46 = vrot.slane %v5348_v32, 4  ;;  %v5355_v40 = vsel %vm4773_vm3, %v3828_v52, -inf  ;;  %v5376_v27 = vsel %vm4773_vm3, %v3843_v9, -inf  ;;  %v13371_v28 = vpop.f32.mrb[39].mxu0  ;;  %v13373_v47 = vpop.f32.mrb[39].mxu1 }
 0x2d9   : > { %v5383_v37 = vsel %vm4773_vm3, %v3844_v16, -inf  ;;  %v5343_v24 = vmax.f32 %v5341_v1, %v5342_v63  ;;  %v5356_v30 = vrot.slane %v5355_v40, 4  ;;  %18687 = vst [vmem:[#allocation94_spill] sm:$0xff] %v13373_v47  ;;  %v5364_v50 = vmax.f32 %v5362_v12, %v5363_v2 }
 0x2da   : > { %v5337_v51 = vrot.slane %v5336_v56, 2  ;;  %v5350_v19 = vmax.f32 %v5348_v32, %v5349_v46  ;;  %v5370_v52 = vrot.slane %v5369_v58, 4  ;;  %v5377_v29 = vrot.slane %v5376_v27, 4 }
 0x2db   : > { %v5384_v61 = vrot.slane %v5383_v37, 4  ;;  %v5344_v9 = vrot.slane %v5343_v24, 2  ;;  %v5357_v16 = vmax.f32 %v5355_v40, %v5356_v30  ;;  %v5365_v31 = vrot.slane %v5364_v50, 2  ;;  %v6571_v30 = vld [vmem:[%s18333_s3 + $0x28] sm:$0xff] }
 0x2dc   : > { %v5338_v42 = vmax.f32 %v5336_v56, %v5337_v51  ;;  %v5351_v41 = vrot.slane %v5350_v19, 2  ;;  %v5371_v3 = vmax.f32 %v5369_v58, %v5370_v52  ;;  %v5378_v45 = vmax.f32 %v5376_v27, %v5377_v29  ;;  %v18696_v27 = vld [vmem:[#allocation41_spill] sm:$0xff] }
 0x2dd   : > { %v5385_v26 = vmax.f32 %v5383_v37, %v5384_v61  ;;  %v13375_v1 = vmax.f32 %v5343_v24, %v5344_v9  ;;  %v2708_v32 = vmax.f32 %v2580_v7, 0.0  ;;  %v5358_v12 = vrot.slane %v5357_v16, 2 }
 0x2de   : > { %v5339_v5 = vrot.slane %v5338_v42, 1  ;;  %v13377_v46 = vmax.f32 %v5350_v19, %v5351_v41  ;;  %v13380_v2 = vmax.f32 %v5364_v50, %v5365_v31  ;;  %v5372_v47 = vrot.slane %v5371_v3, 2  ;;  %v9164_v31 = vld [vmem:[%s18333_s3 + $0x1a0] sm:$0xff] }
 0x2df   : > { %18688 = vst [vmem:[#allocation95_spill] sm:$0xff] %v13375_v1  ;;  %v13383_v56 = vmax.f32 %v13301_v43, %v5297_v35  ;;  %v13386_v51 = vmax.f32 %v13303_v62, %v5311_v36  ;;  %v13389_v29 = vmax.f32 %v13327_v23, %v5325_v59  ;;  %v13392_v37 = vmax.f32 %v13320_v22, %v5330_v13  ;;  %v9149_v22 = vld [vmem:[%s18333_s3 + $0x128] sm:$0xff] }
 0x2e0   : > { %v13394_v41 = vmax.f32 %v5338_v42, %v5339_v5  ;;  %v5379_v58 = vrot.slane %v5378_v45, 2  ;;  %v5386_v50 = vrot.slane %v5385_v26, 2  ;;  %v2812_v62 = vmax.f32 %v2706_v34, %v2708_v32  ;;  %v9165_v5 = vld [vmem:[%s18333_s3 + $0x1a8] sm:$0xff]  ;;  %v9148_v42 = vld [vmem:[%s18333_s3 + $0x120] sm:$0xff] }
 0x2e1   : > { %18689 = vst [vmem:[#allocation96_spill] sm:$0xff] %v13383_v56  ;;  %18690 = vst [vmem:[#allocation97_spill] sm:$0xff] %v13386_v51  ;;  %v2709_v35 = vmax.f32 %v13359_v10, 0.0  ;;  %v2583_v23 = vadd.f32 %v12533_v60, %v12911_v18  ;;  %v13413_v36 = vmax.f32 %v5357_v16, %v5358_v12  ;;  %v13416_v59 = vmax.f32 %v5371_v3, %v5372_v47  ;;  %v6586_v34 = vld [vmem:[%s18333_s3 + $0xa0] sm:$0xff]  ;;  %v6587_v3 = vld [vmem:[%s18333_s3 + $0xa8] sm:$0xff] }
 0x2e2   : > { %18691 = vst [vmem:[#allocation98_spill] sm:$0xff] %v13389_v29  ;;  %18692 = vst [vmem:[#allocation99_spill] sm:$0xff] %v13392_v37  ;;  %v2582_v18 = vadd.f32 %v12535_v17, %v12913_v38  ;;  %v3115_v7 = vcombine.low %v13344_v55, %v2812_v62  ;;  %v3116_v10 = vcombine.high %v13344_v55, %v2812_v62  ;;  %v6570_v38 = vld [vmem:[%s18333_s3 + $0x20] sm:$0xff] }
 0x2e3   : > { %18693 = vst [vmem:[#allocation100_spill] sm:$0xff] %v13394_v41  ;;  %18694 = vst [vmem:[#allocation101_spill] sm:$0xff] %v13413_v36  ;;  %v2711_v40 = vmax.f32 %v2583_v23, 0.0  ;;  %v2584_v24 = vadd.f32 %v12537_v15, %v18696_v27  ;;  %v13436_v47 = vmax.f32 %v5378_v45, %v5379_v58  ;;  %v10341_v55 = vpack.c.bf16 %v9165_v5, %v9164_v31  ;;  %v13448_v58 = vpop.f32.mrb[40].mxu0  ;;  %v13450_v31 = vpop.f32.mrb[40].mxu1 }
 0x2e4   : > { %18695 = vst [vmem:[#allocation102_spill] sm:$0xff] %v13416_v59  ;;  %v2710_v52 = vmax.f32 %v2582_v18, 0.0  ;;  %v10343_v61 = vpack.c.bf16 %v9149_v22, %v9148_v42  ;;  %v3123_v9 = vrot.slane %v3115_v7, %v12546_v8  ;;  %v3130_v16 = vrot.slane %v3116_v10, %v12546_v8 }
 0x2e5   : > { %v13440_v32 = vmax.f32 %v2709_v35, %v2711_v40  ;;  %v2712_v12 = vmax.f32 %v2584_v24, 0.0  ;;  %v13442_v62 = vmax.f32 %v5385_v26, %v5386_v50  ;;  %10342 = vmatprep.subr.bf16.mxu0 %v10341_v55  ;;  %v10373_v23 = vpack.c.bf16 %v6587_v3, %v6586_v34  ;;  %v13454_v26 = vpop.f32.mrb[41].mxu0  ;;  %v13464_v3 = vpop.f32.mrb[41].mxu1 }
 0x2e6   : > { %v13446_v27 = vadd.f32 %v12531_v33, %v12963_v20  ;;  %v10375_v45 = vpack.c.bf16 %v6571_v30, %v6570_v38  ;;  %v3131_v5 = vcombine.high %v3123_v9, %v3123_v9  ;;  %v3132_v42 = vcombine.high %v3130_v16, %v3130_v16  ;;  %10344 = vmatpush3.bf16.msra.mxu0 %v10343_v61 }
 0x2e7   : > { %18697 = vst [vmem:[#allocation41_spill] sm:$0xff] %v13442_v62  ;;  %v3851_v22 = vrot.slane %v3123_v9, %v12546_v8  ;;  %v3867_v35 = vrot.slane %v3130_v16, %v12546_v8  ;;  %v5381_v50 = vrot.slane %v13436_v47, 1  ;;  %v2814_v18 = vmax.f32 %v2710_v52, %v2712_v12  ;;  %10374 = vmatprep.subr.bf16.mxu1 %v10373_v23 }
 0x2e8   : > { %v13460_v34 = vadd.f32 %v12533_v60, %v12965_v25  ;;  %v3859_v10 = vrot.slane %v3131_v5, %v12546_v8  ;;  %v3875_v24 = vrot.slane %v3132_v42, %v12546_v8  ;;  %10376 = vmatpush3.bf16.msra.mxu1 %v10375_v45 }
 0x2e9   : > { %v3852_v7 = vcombine.high %v3851_v22, %v3851_v22  ;;  %v3868_v40 = vcombine.high %v3867_v35, %v3867_v35  ;;  %v5390_v38 = vsel %vm4773_vm3, %v3851_v22, -inf  ;;  %v5418_v30 = vsel %vm4773_vm3, %v3867_v35, -inf }
 0x2ea   : > { %v3133_v52 = vcombine.low %v13440_v32, %v2814_v18  ;;  %v3134_v55 = vcombine.high %v13440_v32, %v2814_v18  ;;  %v3860_v61 = vcombine.high %v3859_v10, %v3859_v10  ;;  %v3876_v25 = vcombine.high %v3875_v24, %v3875_v24 }
 0x2eb   : > { %v5391_v9 = vrot.slane %v5390_v38, 4  ;;  %v5397_v16 = vsel %vm4773_vm3, %v3852_v7, -inf  ;;  %v5404_v23 = vsel %vm4773_vm3, %v3859_v10, -inf  ;;  %v5419_v5 = vrot.slane %v5418_v30, 4 }
 0x2ec   : > { %v5398_v12 = vrot.slane %v5397_v16, 4  ;;  %v5425_v45 = vsel %vm4773_vm3, %v3868_v40, -inf  ;;  %v5405_v19 = vrot.slane %v5404_v23, 4  ;;  %v5411_v22 = vsel %vm4773_vm3, %v3860_v61, -inf }
 0x2ed   : > { %v5392_v42 = vmax.f32 %v5390_v38, %v5391_v9  ;;  %v5426_v35 = vrot.slane %v5425_v45, 4  ;;  %v5412_v20 = vrot.slane %v5411_v22, 4  ;;  %v5420_v13 = vmax.f32 %v5418_v30, %v5419_v5 }
 0x2ee   : > { %v5399_v63 = vmax.f32 %v5397_v16, %v5398_v12  ;;  %v5432_v32 = vsel %vm4773_vm3, %v3875_v24, -inf  ;;  %v5406_v43 = vmax.f32 %v5404_v23, %v5405_v19  ;;  %v5439_v51 = vsel %vm4773_vm3, %v3876_v25, -inf }
 0x2ef   : > { %v5393_v18 = vrot.slane %v5392_v42, 2  ;;  %v5427_v41 = vmax.f32 %v5425_v45, %v5426_v35  ;;  %v5433_v7 = vrot.slane %v5432_v32, 4  ;;  %v5413_v1 = vmax.f32 %v5411_v22, %v5412_v20  ;;  %v18705_v22 = vld [vmem:[#allocation50_spill] sm:$0xff] }
 0x2f0   : > { %v5400_v62 = vrot.slane %v5399_v63, 2  ;;  %v5421_v10 = vrot.slane %v5420_v13, 2  ;;  %v5407_v38 = vrot.slane %v5406_v43, 2  ;;  %v5440_v12 = vrot.slane %v5439_v51, 4 }
 0x2f1   : > { %v5394_v40 = vmax.f32 %v5392_v42, %v5393_v18  ;;  %v5428_v9 = vrot.slane %v5427_v41, 2  ;;  %v5434_v36 = vmax.f32 %v5432_v32, %v5433_v7  ;;  %v5414_v16 = vrot.slane %v5413_v1, 2  ;;  %v13520_v7 = vpop.f32.mrb[42].mxu0 }
 0x2f2   : > { %v13476_v61 = vmax.f32 %v5399_v63, %v5400_v62  ;;  %v2715_v30 = vmax.f32 %v13460_v34, 0.0  ;;  %v13479_v5 = vmax.f32 %v5406_v43, %v5407_v38  ;;  %v13481_v19 = vmax.f32 %v5420_v13, %v5421_v10  ;;  %v13522_v10 = vpop.f32.mrb[42].mxu1 }
 0x2f3   : > { %v5395_v24 = vrot.slane %v5394_v40, 1  ;;  %v5435_v23 = vrot.slane %v5434_v36, 2  ;;  %v18699_v20 = vrot.slane %v13377_v46, 1  ;;  %v18701_v45 = vrot.slane %v13380_v2, 1 }
 0x2f4   : > { %18698 = vst [vmem:[#allocation103_spill] sm:$0xff] %v13476_v61  ;;  %v13494_v42 = vmax.f32 %v5439_v51, %v5440_v12  ;;  %v13497_v43 = vmax.f32 %v13436_v47, %v5381_v50  ;;  %v13499_v13 = vmax.f32 %v5427_v41, %v5428_v9  ;;  %v13508_v32 = vmax.f32 %v5413_v1, %v5414_v16  ;;  %v18709_v12 = vld [vmem:[#allocation51_spill] sm:$0xff] }
 0x2f5   : > { %v13486_v25 = vmax.f32 %v13377_v46, %v18699_v20  ;;  %v13491_v63 = vmax.f32 %v13380_v2, %v18701_v45  ;;  %v13501_v34 = vmax.f32 %v5434_v36, %v5435_v23  ;;  %v13505_v46 = vadd.f32 %v12535_v17, %v18705_v22 }
 0x2f6   : > { %18703 = vst [vmem:[#allocation106_spill] sm:$0xff] %v13497_v43  ;;  %18704 = vst [vmem:[#allocation107_spill] sm:$0xff] %v13499_v13  ;;  %v3141_v2 = vrot.slane %v3133_v52, %v12546_v8  ;;  %v3148_v51 = vrot.slane %v3134_v55, %v12546_v8  ;;  %v13512_v18 = vmax.f32 %v5394_v40, %v5395_v24  ;;  %v5409_v47 = vrot.slane %v13479_v5, 1  ;;  %v13533_v24 = vpop.f32.mrb[43].mxu1 }
 0x2f7   : > { %18700 = vst [vmem:[#allocation104_spill] sm:$0xff] %v13486_v25  ;;  %18702 = vst [vmem:[#allocation105_spill] sm:$0xff] %v13491_v63  ;;  %v5423_v41 = vrot.slane %v13481_v19, 1  ;;  %v18708_v36 = vmax.f32 %v13446_v27, 0.0  ;;  %v5442_v1 = vrot.slane %v13494_v42, 2  ;;  %v5437_v40 = vrot.slane %v13501_v34, 1 }
 0x2f8   : > { %18706 = vst [vmem:[#allocation50_spill] sm:$0xff] %v13508_v32  ;;  %18707 = vst [vmem:[#allocation108_spill] sm:$0xff] %v13512_v18  ;;  %v3149_v38 = vcombine.high %v3141_v2, %v3141_v2  ;;  %v3150_v52 = vcombine.high %v3148_v51, %v3148_v51  ;;  %v3883_v55 = vrot.slane %v3141_v2, %v12546_v8  ;;  %v2714_v16 = vmax.f32 %v13505_v46, 0.0 }
 0x2f9   : > { %v13518_v50 = vmax.f32 %v18708_v36, %v2715_v30  ;;  %v3899_v9 = vrot.slane %v3148_v51, %v12546_v8  ;;  %v2588_v27 = vadd.f32 %v12537_v15, %v18709_v12  ;;  %v13531_v30 = vpop.f32.mrb[43].mxu0  ;;  %18711 = vst [vmem:[#allocation109_spill] sm:$0xff] %v13533_v24 }
 0x2fa   : > { %18710 = vst [vmem:[#allocation51_spill] sm:$0xff] %v13531_v30  ;;  %v3884_v23 = vcombine.high %v3883_v55, %v3883_v55  ;;  %v3891_v20 = vrot.slane %v3149_v38, %v12546_v8  ;;  %v3907_v45 = vrot.slane %v3150_v52, %v12546_v8  ;;  %v5446_v22 = vsel %vm4773_vm3, %v3883_v55, -inf }
 0x2fb   : > { %v3900_v2 = vcombine.high %v3899_v9, %v3899_v9  ;;  %v5447_v36 = vrot.slane %v5446_v22, 4  ;;  %v5474_v51 = vsel %vm4773_vm3, %v3899_v9, -inf  ;;  %v2716_v35 = vmax.f32 %v2588_v27, 0.0 }
 0x2fc   : > { %v3892_v46 = vcombine.high %v3891_v20, %v3891_v20  ;;  %v3908_v62 = vcombine.high %v3907_v45, %v3907_v45  ;;  %v5453_v12 = vsel %vm4773_vm3, %v3884_v23, -inf  ;;  %v5460_v18 = vsel %vm4773_vm3, %v3891_v20, -inf }
 0x2fd   : > { %v5448_v61 = vmax.f32 %v5446_v22, %v5447_v36  ;;  %v5454_v63 = vrot.slane %v5453_v12, 4  ;;  %v5461_v32 = vrot.slane %v5460_v18, 4  ;;  %v5475_v43 = vrot.slane %v5474_v51, 4 }
 0x2fe   : > { %v5467_v38 = vsel %vm4773_vm3, %v3892_v46, -inf  ;;  %v5481_v52 = vsel %vm4773_vm3, %v3900_v2, -inf  ;;  %v5488_v55 = vsel %vm4773_vm3, %v3907_v45, -inf  ;;  %v5495_v59 = vsel %vm4773_vm3, %v3908_v62, -inf  ;;  %v13551_v45 = vpop.f32.mrb[44].mxu0 }
 0x2ff   : > { %v5449_v9 = vrot.slane %v5448_v61, 2  ;;  %v5455_v27 = vmax.f32 %v5453_v12, %v5454_v63  ;;  %v5462_v25 = vmax.f32 %v5460_v18, %v5461_v32  ;;  %v5468_v29 = vrot.slane %v5467_v38, 4  ;;  %v13553_v63 = vpop.f32.mrb[44].mxu1 }
 0x300   : > { %v5476_v4 = vmax.f32 %v5474_v51, %v5475_v43  ;;  %v5482_v23 = vrot.slane %v5481_v52, 4  ;;  %v5489_v37 = vrot.slane %v5488_v55, 4  ;;  %v5496_v20 = vrot.slane %v5495_v59, 4 }
 0x301   : > { %v5450_v22 = vmax.f32 %v5448_v61, %v5449_v9  ;;  %v5456_v36 = vrot.slane %v5455_v27, 2  ;;  %v5463_v56 = vrot.slane %v5462_v25, 2  ;;  %v13545_v24 = vmax.f32 %v5467_v38, %v5468_v29 }
 0x302   : > { %v5477_v46 = vrot.slane %v5476_v4, 2  ;;  %v13547_v30 = vmax.f32 %v5481_v52, %v5482_v23  ;;  %v5490_v2 = vmax.f32 %v5488_v55, %v5489_v37  ;;  %v2589_v62 = vadd.f32 %v12531_v33, %v13037_v11 }
 0x303   : > { %18712 = vst [vmem:[#allocation110_spill] sm:$0xff] %v13545_v24  ;;  %v13556_v43 = vmax.f32 %v13479_v5, %v5409_v47  ;;  %v13559_v61 = vmax.f32 %v13481_v19, %v5423_v41  ;;  %v13562_v32 = vmax.f32 %v5495_v59, %v5496_v20  ;;  %v13565_v18 = vmax.f32 %v13501_v34, %v5437_v40  ;;  %v13580_v40 = vpop.f32.mrb[45].mxu0 }
 0x304   : > { %v13568_v37 = vmax.f32 %v13494_v42, %v5442_v1  ;;  %v5451_v11 = vrot.slane %v5450_v22, 1  ;;  %v13570_v51 = vmax.f32 %v5462_v25, %v5463_v56  ;;  %v13572_v12 = vmax.f32 %v5455_v27, %v5456_v36 }
 0x305   : > { %18713 = vst [vmem:[#allocation111_spill] sm:$0xff] %v13556_v43  ;;  %18714 = vst [vmem:[#allocation112_spill] sm:$0xff] %v13559_v61  ;;  %v13575_v47 = vmax.f32 %v5476_v4, %v5477_v46  ;;  %v2816_v19 = vmax.f32 %v2714_v16, %v2716_v35  ;;  %v5491_v59 = vrot.slane %v5490_v2, 2  ;;  %v2717_v38 = vmax.f32 %v2589_v62, 0.0 }
 0x306   : > { %18715 = vst [vmem:[#allocation113_spill] sm:$0xff] %v13562_v32  ;;  %18716 = vst [vmem:[#allocation114_spill] sm:$0xff] %v13565_v18  ;;  %v2591_v34 = vadd.f32 %v12533_v60, %v13039_v21  ;;  %v2590_v4 = vadd.f32 %v12535_v17, %v13043_v14  ;;  %v13587_v1 = vmax.f32 %v5450_v22, %v5451_v11  ;;  %v5465_v35 = vrot.slane %v13570_v51, 1 }
 0x307   : > { %18717 = vst [vmem:[#allocation115_spill] sm:$0xff] %v13568_v37  ;;  %18718 = vst [vmem:[#allocation116_spill] sm:$0xff] %v13572_v12  ;;  %v3151_v56 = vcombine.low %v13518_v50, %v2816_v19  ;;  %v3152_v25 = vcombine.high %v13518_v50, %v2816_v19  ;;  %v2592_v52 = vadd.f32 %v12537_v15, %v13047_v54  ;;  %v5479_v50 = vrot.slane %v13575_v47, 1  ;;  %v18721_v19 = vld [vmem:[#allocation9_spill] sm:$0xff] }
 0x308   : > { %18719 = vst [vmem:[#allocation117_spill] sm:$0xff] %v13587_v1  ;;  %v2719_v16 = vmax.f32 %v2591_v34, 0.0  ;;  %v2718_v9 = vmax.f32 %v2590_v4, 0.0  ;;  %v13596_v27 = vadd.f32 %v12531_v33, %v13094_v49  ;;  %v13599_v14 = vmax.f32 %v5490_v2, %v5491_v59  ;;  %v18722_v49 = vld [vmem:[#allocation66_spill] sm:$0xff] }
 0x309   : > { %v3159_v21 = vrot.slane %v3151_v56, %v12546_v8  ;;  %v3166_v55 = vrot.slane %v3152_v25, %v12546_v8  ;;  %v2720_v20 = vmax.f32 %v2592_v52, 0.0  ;;  %v2595_v34 = vadd.f32 %v12533_v60, %v18721_v19  ;;  %v13615_v19 = vpop.f32.mrb[45].mxu1 }
 0x30a   : > { %18720 = vst [vmem:[#allocation118_spill] sm:$0xff] %v13599_v14  ;;  %v2817_v23 = vmax.f32 %v2717_v38, %v2719_v16  ;;  %v2721_v11 = vmax.f32 %v13596_v27, 0.0  ;;  %v13608_v56 = vadd.f32 %v12535_v17, %v18722_v49 }
 0x30b   : > { %v3167_v22 = vcombine.high %v3159_v21, %v3159_v21  ;;  %v3168_v36 = vcombine.high %v3166_v55, %v3166_v55  ;;  %v3915_v46 = vrot.slane %v3159_v21, %v12546_v8  ;;  %v3931_v54 = vrot.slane %v3166_v55, %v12546_v8 }
 0x30c   : > { %v2818_v62 = vmax.f32 %v2718_v9, %v2720_v20  ;;  %v2723_v24 = vmax.f32 %v2595_v34, 0.0 }
 0x30d   : > { %v3916_v2 = vcombine.high %v3915_v46, %v3915_v46  ;;  %v3923_v59 = vrot.slane %v3167_v22, %v12546_v8  ;;  %v3932_v38 = vcombine.high %v3931_v54, %v3931_v54  ;;  %v3939_v25 = vrot.slane %v3168_v36, %v12546_v8 }
 0x30e   : > { %v5502_v4 = vsel %vm4773_vm3, %v3915_v46, -inf  ;;  %v5530_v16 = vsel %vm4773_vm3, %v3931_v54, -inf  ;;  %v3169_v52 = vcombine.low %v2817_v23, %v2818_v62  ;;  %v3170_v21 = vcombine.high %v2817_v23, %v2818_v62 }
 0x30f   : > { %v3924_v55 = vcombine.high %v3923_v59, %v3923_v59  ;;  %v3940_v9 = vcombine.high %v3939_v25, %v3939_v25  ;;  %v5503_v27 = vrot.slane %v5502_v4, 4  ;;  %v5509_v20 = vsel %vm4773_vm3, %v3916_v2, -inf }
 0x310   : > { %v5510_v49 = vrot.slane %v5509_v20, 4  ;;  %v5516_v29 = vsel %vm4773_vm3, %v3923_v59, -inf  ;;  %v5531_v22 = vrot.slane %v5530_v16, 4  ;;  %v5537_v42 = vsel %vm4773_vm3, %v3932_v38, -inf }
 0x311   : > { %v5504_v36 = vmax.f32 %v5502_v4, %v5503_v27  ;;  %v5517_v5 = vrot.slane %v5516_v29, 4  ;;  %v5523_v46 = vsel %vm4773_vm3, %v3924_v55, -inf  ;;  %v5538_v54 = vrot.slane %v5537_v42, 4 }
 0x312   : > { %v5511_v41 = vmax.f32 %v5509_v20, %v5510_v49  ;;  %v5524_v23 = vrot.slane %v5523_v46, 4  ;;  %v5532_v62 = vmax.f32 %v5530_v16, %v5531_v22  ;;  %v5544_v61 = vsel %vm4773_vm3, %v3939_v25, -inf  ;;  %v13626_v20 = vpop.f32.mrb[46].mxu0  ;;  %v13628_v16 = vpop.f32.mrb[46].mxu1 }
 0x313   : > { %v5505_v18 = vrot.slane %v5504_v36, 2  ;;  %v5518_v2 = vmax.f32 %v5516_v29, %v5517_v5  ;;  %v5539_v13 = vmax.f32 %v5537_v42, %v5538_v54  ;;  %v5545_v37 = vrot.slane %v5544_v61, 4  ;;  %18724 = vst [vmem:[#allocation66_spill] sm:$0xff] %v13628_v16  ;;  %v13640_v34 = vpop.f32.mrb[47].mxu0  ;;  %v18737_v54 = vld [vmem:[#allocation11_spill] sm:$0xff] }
 0x314   : > { %v5512_v43 = vrot.slane %v5511_v41, 2  ;;  %v5533_v32 = vrot.slane %v5532_v62, 2  ;;  %v5551_v59 = vsel %vm4773_vm3, %v3940_v9, -inf  ;;  %v13624_v27 = vmax.f32 %v5523_v46, %v5524_v23  ;;  %18728 = vst [vmem:[#allocation121_spill] sm:$0xff] %v13640_v34  ;;  %v13642_v9 = vpop.f32.mrb[47].mxu1 }
 0x315   : > { %v13622_v38 = vmax.f32 %v5504_v36, %v5505_v18  ;;  %v5519_v4 = vrot.slane %v5518_v2, 2  ;;  %v5546_v55 = vmax.f32 %v5544_v61, %v5545_v37  ;;  %v13631_v25 = vmax.f32 %v13570_v51, %v5465_v35  ;;  %18729 = vst [vmem:[#allocation122_spill] sm:$0xff] %v13642_v9 }
 0x316   : > { %18723 = vst [vmem:[#allocation9_spill] sm:$0xff] %v13624_v27  ;;  %v18726_v29 = vrot.slane %v13547_v30, 2  ;;  %v13638_v42 = vmax.f32 %v5532_v62, %v5533_v32  ;;  %v5540_v18 = vrot.slane %v5539_v13, 2  ;;  %v13645_v61 = vmax.f32 %v13575_v47, %v5479_v50 }
 0x317   : > { %18725 = vst [vmem:[#allocation119_spill] sm:$0xff] %v13631_v25  ;;  %v5547_v49 = vrot.slane %v5546_v55, 2  ;;  %v5552_v51 = vrot.slane %v5551_v59, 4  ;;  %v13648_v35 = vmax.f32 %v5511_v41, %v5512_v43  ;;  %v3177_v22 = vrot.slane %v3169_v52, %v12546_v8 }
 0x318   : > { %v13636_v5 = vmax.f32 %v13547_v30, %v18726_v29  ;;  %18730 = vst [vmem:[#allocation123_spill] sm:$0xff] %v13645_v61  ;;  %v3184_v30 = vrot.slane %v3170_v21, %v12546_v8  ;;  %v5507_v36 = vrot.slane %v13622_v38, 1  ;;  %v13654_v46 = vmax.f32 %v5518_v2, %v5519_v4 }
 0x319   : > { %18731 = vst [vmem:[#allocation124_spill] sm:$0xff] %v13648_v35  ;;  %v13657_v47 = vmax.f32 %v2721_v11, %v2723_v24  ;;  %v5535_v50 = vrot.slane %v13638_v42, 1  ;;  %v13660_v23 = vmax.f32 %v5539_v13, %v5540_v18  ;;  %v3185_v43 = vcombine.high %v3177_v22, %v3177_v22  ;;  %v18736_v24 = vld [vmem:[#allocation67_spill] sm:$0xff] }
 0x31a   : > { %18727 = vst [vmem:[#allocation120_spill] sm:$0xff] %v13636_v5  ;;  %18732 = vst [vmem:[#allocation125_spill] sm:$0xff] %v13654_v46  ;;  %v3186_v41 = vcombine.high %v3184_v30, %v3184_v30  ;;  %v13662_v62 = vmax.f32 %v5546_v55, %v5547_v49  ;;  %v13664_v52 = vmax.f32 %v5551_v59, %v5552_v51 }
 0x31b   : > { %18733 = vst [vmem:[#allocation126_spill] sm:$0xff] %v13660_v23  ;;  %v3947_v21 = vrot.slane %v3177_v22, %v12546_v8  ;;  %v3963_v29 = vrot.slane %v3184_v30, %v12546_v8  ;;  %v3955_v2 = vrot.slane %v3185_v43, %v12546_v8  ;;  %v2596_v11 = vadd.f32 %v12537_v15, %v18736_v24  ;;  %v13681_v23 = vpop.f32.mrb[48].mxu0 }
 0x31c   : > { %18734 = vst [vmem:[#allocation127_spill] sm:$0xff] %v13662_v62  ;;  %18735 = vst [vmem:[#allocation128_spill] sm:$0xff] %v13664_v52  ;;  %v3971_v4 = vrot.slane %v3186_v41, %v12546_v8  ;;  %v13674_v13 = vadd.f32 %v12531_v33, %v18737_v54  ;;  %v13683_v54 = vpop.f32.mrb[48].mxu1  ;;  %v13686_v27 = vpop.f32.mrb[49].mxu0 }
 0x31d   : > { %v3948_v18 = vcombine.high %v3947_v21, %v3947_v21  ;;  %v3964_v55 = vcombine.high %v3963_v29, %v3963_v29  ;;  %v5558_v59 = vsel %vm4773_vm3, %v3947_v21, -inf  ;;  %v5586_v49 = vsel %vm4773_vm3, %v3963_v29, -inf  ;;  %18738 = vst [vmem:[#allocation67_spill] sm:$0xff] %v13681_v23  ;;  %18739 = vst [vmem:[#allocation11_spill] sm:$0xff] %v13683_v54  ;;  %v13688_v14 = vpop.f32.mrb[49].mxu1 }
 0x31e   : > { %v3956_v51 = vcombine.high %v3955_v2, %v3955_v2  ;;  %v3972_v22 = vcombine.high %v3971_v4, %v3971_v4  ;;  %v5559_v30 = vrot.slane %v5558_v59, 4  ;;  %v5572_v43 = vsel %vm4773_vm3, %v3955_v2, -inf  ;;  %18740 = vst [vmem:[#allocation129_spill] sm:$0xff] %v13686_v27 }
 0x31f   : > { %v5565_v41 = vsel %vm4773_vm3, %v3948_v18, -inf  ;;  %v5573_v37 = vrot.slane %v5572_v43, 4  ;;  %v5587_v32 = vrot.slane %v5586_v49, 4  ;;  %v5593_v24 = vsel %vm4773_vm3, %v3964_v55, -inf }
 0x320   : > { %v5560_v35 = vmax.f32 %v5558_v59, %v5559_v30  ;;  %v5566_v61 = vrot.slane %v5565_v41, 4  ;;  %v5579_v21 = vsel %vm4773_vm3, %v3956_v51, -inf  ;;  %v5594_v29 = vrot.slane %v5593_v24, 4  ;;  %v18742_v30 = vld [vmem:[#allocation12_spill] sm:$0xff] }
 0x321   : > { %v5574_v2 = vmax.f32 %v5572_v43, %v5573_v37  ;;  %v5580_v5 = vrot.slane %v5579_v21, 4  ;;  %v5588_v18 = vmax.f32 %v5586_v49, %v5587_v32  ;;  %v5600_v25 = vsel %vm4773_vm3, %v3971_v4, -inf }
 0x322   : > { %v5561_v1 = vrot.slane %v5560_v35, 2  ;;  %v5567_v55 = vmax.f32 %v5565_v41, %v5566_v61  ;;  %v5595_v12 = vmax.f32 %v5593_v24, %v5594_v29  ;;  %v5601_v23 = vrot.slane %v5600_v25, 4  ;;  %v13727_v29 = vpop.f32.mrb[50].mxu0 }
 0x323   : > { %v5575_v9 = vrot.slane %v5574_v2, 2  ;;  %v13691_v54 = vmax.f32 %v5579_v21, %v5580_v5  ;;  %v5589_v59 = vrot.slane %v5588_v18, 2  ;;  %v2599_v51 = vadd.f32 %v12533_v60, %v18742_v30  ;;  %v9150_v21 = vld [vmem:[%s18333_s3 + $0x130] sm:$0xff] }
 0x324   : > { %v5562_v34 = vmax.f32 %v5560_v35, %v5561_v1  ;;  %v5568_v27 = vrot.slane %v5567_v55, 2  ;;  %v5596_v16 = vrot.slane %v5595_v12, 2  ;;  %v5607_v37 = vsel %vm4773_vm3, %v3972_v22, -inf }
 0x325   : > { %18741 = vst [vmem:[#allocation130_spill] sm:$0xff] %v13691_v54  ;;  %v13697_v32 = vmax.f32 %v13622_v38, %v5507_v36  ;;  %v13700_v61 = vmax.f32 %v5574_v2, %v5575_v9  ;;  %v5602_v49 = vmax.f32 %v5600_v25, %v5601_v23  ;;  %v13703_v5 = vmax.f32 %v13638_v42, %v5535_v50  ;;  %v9166_v9 = vld [vmem:[%s18333_s3 + $0x1b0] sm:$0xff]  ;;  %v9167_v25 = vld [vmem:[%s18333_s3 + $0x1b8] sm:$0xff] }
 0x326   : > { %v13707_v1 = vmax.f32 %v5588_v18, %v5589_v59  ;;  %v5563_v35 = vrot.slane %v5562_v34, 1  ;;  %v5608_v24 = vrot.slane %v5607_v37, 4  ;;  %v2724_v38 = vmax.f32 %v2596_v11, 0.0  ;;  %v9151_v11 = vld [vmem:[%s18333_s3 + $0x138] sm:$0xff] }
 0x327   : > { %18743 = vst [vmem:[#allocation12_spill] sm:$0xff] %v13697_v32  ;;  %18744 = vst [vmem:[#allocation131_spill] sm:$0xff] %v13700_v61  ;;  %v13716_v42 = vmax.f32 %v5567_v55, %v5568_v27  ;;  %v13718_v36 = vmax.f32 %v5595_v12, %v5596_v16  ;;  %v2725_v50 = vmax.f32 %v13674_v13, 0.0  ;;  %v2727_v23 = vmax.f32 %v2599_v51, 0.0  ;;  %v18749_v16 = vld [vmem:[#allocation73_spill] sm:$0xff]  ;;  %v6589_v59 = vld [vmem:[%s18333_s3 + $0xb8] sm:$0xff] }
 0x328   : > { %18745 = vst [vmem:[#allocation132_spill] sm:$0xff] %v13703_v5  ;;  %v5603_v18 = vrot.slane %v5602_v49, 2  ;;  %v18748_v27 = vmax.f32 %v13608_v56, 0.0  ;;  %v2598_v13 = vadd.f32 %v12535_v17, %v18749_v16  ;;  %v6588_v55 = vld [vmem:[%s18333_s3 + $0xb0] sm:$0xff]  ;;  %v18750_v2 = vld [vmem:[#allocation74_spill] sm:$0xff]  ;;  %v10345_v56 = vpack.c.bf16 %v9167_v25, %v9166_v9 }
 0x329   : > { %18746 = vst [vmem:[#allocation133_spill] sm:$0xff] %v13716_v42  ;;  %18747 = vst [vmem:[#allocation134_spill] sm:$0xff] %v13718_v36  ;;  %v13741_v51 = vmax.f32 %v2725_v50, %v2727_v23  ;;  %v2600_v22 = vadd.f32 %v12537_v15, %v18750_v2  ;;  %v10347_v4 = vpack.c.bf16 %v9151_v11, %v9150_v21 }
 0x32a   : > { %v2820_v12 = vmax.f32 %v18748_v27, %v2724_v38  ;;  %v6572_v38 = vld [vmem:[%s18333_s3 + $0x30] sm:$0xff]  ;;  %v6573_v27 = vld [vmem:[%s18333_s3 + $0x38] sm:$0xff]  ;;  %v2726_v41 = vmax.f32 %v2598_v13, 0.0  ;;  %10346 = vmatprep.subr.bf16.mxu0 %v10345_v56  ;;  %v10377_v23 = vpack.c.bf16 %v6589_v59, %v6588_v55  ;;  %v2601_v9 = vadd.f32 %v12531_v33, %v13214_v39 }
 0x32b   : > { %v2728_v50 = vmax.f32 %v2600_v22, 0.0  ;;  %v2603_v25 = vadd.f32 %v12533_v60, %v13216_v44  ;;  %v13757_v2 = vmax.f32 %v5607_v37, %v5608_v24  ;;  %10348 = vmatpush3.bf16.msra.mxu0 %v10347_v4  ;;  %v10379_v61 = vpack.c.bf16 %v6573_v27, %v6572_v38  ;;  %v13783_v27 = vpop.f32.mrb[51].mxu0 }
 0x32c   : > { %v3187_v16 = vcombine.low %v13657_v47, %v2820_v12  ;;  %v3188_v43 = vcombine.high %v13657_v47, %v2820_v12  ;;  %v13761_v47 = vmax.f32 %v5562_v34, %v5563_v35  ;;  %10378 = vmatprep.subr.bf16.mxu1 %v10377_v23  ;;  %v2729_v22 = vmax.f32 %v2601_v9, 0.0  ;;  %v13763_v12 = vpop.f32.mrb[50].mxu1 }
 0x32d   : > { %18751 = vst [vmem:[#allocation73_spill] sm:$0xff] %v13757_v2  ;;  %v2822_v21 = vmax.f32 %v2726_v41, %v2728_v50  ;;  %v2731_v11 = vmax.f32 %v2603_v25, 0.0  ;;  %10380 = vmatpush3.bf16.msra.mxu1 %v10379_v61  ;;  %v13767_v24 = vmax.f32 %v5602_v49, %v5603_v18  ;;  %v13780_v49 = vadd.f32 %v12535_v17, %v13230_v48  ;;  %v13788_v48 = vpop.f32.mrb[51].mxu1 }
 0x32e   : > { %v3195_v30 = vrot.slane %v3187_v16, %v12546_v8  ;;  %v3202_v36 = vrot.slane %v3188_v43, %v12546_v8  ;;  %18752 = vst [vmem:[#allocation74_spill] sm:$0xff] %v13761_v47 }
 0x32f   : > { %18753 = vst [vmem:[#allocation135_spill] sm:$0xff] %v13767_v24  ;;  %v3205_v4 = vcombine.low %v13741_v51, %v2822_v21  ;;  %v3206_v34 = vcombine.high %v13741_v51, %v2822_v21  ;;  %v13771_v43 = vmax.f32 %v2729_v22, %v2731_v11 }
 0x330   : > { %v3203_v39 = vcombine.high %v3195_v30, %v3195_v30  ;;  %v3204_v13 = vcombine.high %v3202_v36, %v3202_v36  ;;  %v3979_v44 = vrot.slane %v3195_v30, %v12546_v8  ;;  %v3995_v37 = vrot.slane %v3202_v36, %v12546_v8 }
 0x331   : > { %v3213_v61 = vrot.slane %v3205_v4, %v12546_v8 }
 0x332   : > { %v3980_v41 = vcombine.high %v3979_v44, %v3979_v44  ;;  %v3987_v35 = vrot.slane %v3203_v39, %v12546_v8  ;;  %v3996_v55 = vcombine.high %v3995_v37, %v3995_v37  ;;  %v4003_v59 = vrot.slane %v3204_v13, %v12546_v8 }
 0x333   : > { %v5614_v56 = vsel %vm4773_vm3, %v3979_v44, -inf  ;;  %v5642_v30 = vsel %vm4773_vm3, %v3995_v37, -inf }
 0x334   : > { %v3988_v36 = vcombine.high %v3987_v35, %v3987_v35  ;;  %v4004_v18 = vcombine.high %v4003_v59, %v4003_v59  ;;  %v5615_v51 = vrot.slane %v5614_v56, 4  ;;  %v5621_v38 = vsel %vm4773_vm3, %v3980_v41, -inf }
 0x335   : > { %v5622_v16 = vrot.slane %v5621_v38, 4  ;;  %v5628_v50 = vsel %vm4773_vm3, %v3987_v35, -inf  ;;  %v5643_v23 = vrot.slane %v5642_v30, 4  ;;  %v5649_v9 = vsel %vm4773_vm3, %v3996_v55, -inf }
 0x336   : > { %v5616_v25 = vmax.f32 %v5614_v56, %v5615_v51  ;;  %v5629_v21 = vrot.slane %v5628_v50, 4  ;;  %v5635_v22 = vsel %vm4773_vm3, %v3988_v36, -inf  ;;  %v5650_v11 = vrot.slane %v5649_v9, 4 }
 0x337   : > { %v5623_v39 = vmax.f32 %v5621_v38, %v5622_v16  ;;  %v5636_v13 = vrot.slane %v5635_v22, 4  ;;  %v5644_v44 = vmax.f32 %v5642_v30, %v5643_v23  ;;  %v5656_v37 = vsel %vm4773_vm3, %v4003_v59, -inf  ;;  %v13803_v23 = vpop.f32.mrb[52].mxu1 }
 0x338   : > { %v5617_v4 = vrot.slane %v5616_v25, 2  ;;  %v5630_v41 = vmax.f32 %v5628_v50, %v5629_v21  ;;  %v5657_v47 = vrot.slane %v5656_v37, 4  ;;  %v3220_v35 = vrot.slane %v3206_v34, %v12546_v8  ;;  %v13801_v34 = vpop.f32.mrb[52].mxu0 }
 0x339   : > { %v5624_v42 = vrot.slane %v5623_v39, 2  ;;  %v5645_v5 = vrot.slane %v5644_v44, 2  ;;  %v5651_v55 = vmax.f32 %v5649_v9, %v5650_v11  ;;  %v5663_v56 = vsel %vm4773_vm3, %v4004_v18, -inf  ;;  %v13811_v21 = vpop.f32.mrb[53].mxu0 }
 0x33a   : > { %v5618_v51 = vmax.f32 %v5616_v25, %v5617_v4  ;;  %v5631_v36 = vrot.slane %v5630_v41, 2  ;;  %v13793_v54 = vmax.f32 %v5635_v22, %v5636_v13  ;;  %v5658_v62 = vmax.f32 %v5656_v37, %v5657_v47  ;;  %18757 = vst [vmem:[#allocation138_spill] sm:$0xff] %v13811_v21 }
 0x33b   : > { %v18755_v38 = vrot.slane %v13707_v1, 1  ;;  %v5646_v16 = vmax.f32 %v5644_v44, %v5645_v5  ;;  %v5664_v50 = vrot.slane %v5663_v56, 4  ;;  %v13809_v47 = vadd.f32 %v12537_v15, %v13232_v53 }
 0x33c   : > { %18754 = vst [vmem:[#allocation136_spill] sm:$0xff] %v13793_v54  ;;  %v5659_v9 = vrot.slane %v5658_v62, 2  ;;  %v13815_v22 = vmax.f32 %v5623_v39, %v5624_v42  ;;  %v5652_v5 = vrot.slane %v5651_v55, 2  ;;  %v3221_v11 = vcombine.high %v3213_v61, %v3213_v61  ;;  %v13832_v54 = vpop.f32.mrb[54].mxu0 }
 0x33d   : > { %v13798_v30 = vmax.f32 %v13707_v1, %v18755_v38  ;;  %v13813_v1 = vpop.f32.mrb[53].mxu1  ;;  %v3222_v13 = vcombine.high %v3220_v35, %v3220_v35  ;;  %v5619_v44 = vrot.slane %v5618_v51, 1  ;;  %v13817_v37 = vmax.f32 %v5630_v41, %v5631_v36  ;;  %18763 = vst [vmem:[#allocation144_spill] sm:$0xff] %v13832_v54  ;;  %v13837_v2 = vpop.f32.mrb[55].mxu0 }
 0x33e   : > { %18758 = vst [vmem:[#allocation139_spill] sm:$0xff] %v13813_v1  ;;  %18759 = vst [vmem:[#allocation140_spill] sm:$0xff] %v13815_v22  ;;  %v4011_v38 = vrot.slane %v3213_v61, %v12546_v8  ;;  %v5647_v18 = vrot.slane %v5646_v16, 1  ;;  %v13821_v59 = vmax.f32 %v5663_v56, %v5664_v50  ;;  %v4019_v53 = vrot.slane %v3221_v11, %v12546_v8 }
 0x33f   : > { %18756 = vst [vmem:[#allocation137_spill] sm:$0xff] %v13798_v30  ;;  %18760 = vst [vmem:[#allocation141_spill] sm:$0xff] %v13817_v37  ;;  %v4027_v25 = vrot.slane %v3220_v35, %v12546_v8  ;;  %v13825_v30 = vmax.f32 %v5658_v62, %v5659_v9  ;;  %v4035_v39 = vrot.slane %v3222_v13, %v12546_v8  ;;  %v13834_v62 = vpop.f32.mrb[54].mxu1 }
 0x340   : > { %18761 = vst [vmem:[#allocation142_spill] sm:$0xff] %v13821_v59  ;;  %v4012_v42 = vcombine.high %v4011_v38, %v4011_v38  ;;  %v5670_v22 = vsel %vm4773_vm3, %v4011_v38, -inf  ;;  %v4020_v41 = vcombine.high %v4019_v53, %v4019_v53  ;;  %v5684_v4 = vsel %vm4773_vm3, %v4019_v53, -inf  ;;  %18764 = vst [vmem:[#allocation145_spill] sm:$0xff] %v13834_v62  ;;  %v13839_v32 = vpop.f32.mrb[55].mxu1 }
 0x341   : > { %18762 = vst [vmem:[#allocation143_spill] sm:$0xff] %v13825_v30  ;;  %v4028_v36 = vcombine.high %v4027_v25, %v4027_v25  ;;  %v5671_v24 = vrot.slane %v5670_v22, 4  ;;  %v4036_v61 = vcombine.high %v4035_v39, %v4035_v39  ;;  %v5685_v50 = vrot.slane %v5684_v4, 4  ;;  %18765 = vst [vmem:[#allocation146_spill] sm:$0xff] %v13837_v2 }
 0x342   : > { %v5677_v56 = vsel %vm4773_vm3, %v4012_v42, -inf  ;;  %v5698_v11 = vsel %vm4773_vm3, %v4027_v25, -inf  ;;  %v5691_v13 = vsel %vm4773_vm3, %v4020_v41, -inf  ;;  %18766 = vst [vmem:[#allocation147_spill] sm:$0xff] %v13839_v32  ;;  %v5712_v46 = vsel %vm4773_vm3, %v4035_v39, -inf }
 0x343   : > { %v5672_v35 = vmax.f32 %v5670_v22, %v5671_v24  ;;  %v5678_v9 = vrot.slane %v5677_v56, 4  ;;  %v5699_v38 = vrot.slane %v5698_v11, 4  ;;  %v5686_v53 = vmax.f32 %v5684_v4, %v5685_v50 }
 0x344   : > { %v5692_v52 = vrot.slane %v5691_v13, 4  ;;  %v5705_v42 = vsel %vm4773_vm3, %v4028_v36, -inf  ;;  %v13845_v24 = vmax.f32 %v5618_v51, %v5619_v44  ;;  %v13847_v22 = vmax.f32 %v5651_v55, %v5652_v5 }
 0x345   : > { %v5673_v25 = vrot.slane %v5672_v35, 2  ;;  %v13843_v1 = vmax.f32 %v5677_v56, %v5678_v9  ;;  %v5700_v54 = vmax.f32 %v5698_v11, %v5699_v38  ;;  %v5706_v62 = vrot.slane %v5705_v42, 4 }
 0x346   : > { %18768 = vst [vmem:[#allocation149_spill] sm:$0xff] %v13845_v24  ;;  %18769 = vst [vmem:[#allocation150_spill] sm:$0xff] %v13847_v22  ;;  %v5687_v41 = vrot.slane %v5686_v53, 2  ;;  %v5713_v21 = vrot.slane %v5712_v46, 4  ;;  %v13853_v36 = vsel %vm4773_vm3, %v4036_v61, -inf  ;;  %v13855_v39 = vmax.f32 %v5646_v16, %v5647_v18 }
 0x347   : > { %18767 = vst [vmem:[#allocation148_spill] sm:$0xff] %v13843_v1  ;;  %v13850_v32 = vmax.f32 %v5672_v35, %v5673_v25  ;;  %v5701_v4 = vrot.slane %v5700_v54, 2  ;;  %v13858_v50 = vmax.f32 %v5705_v42, %v5706_v62  ;;  %v2732_v51 = vmax.f32 %v13809_v47, 0.0 }
 0x348   : > { %18770 = vst [vmem:[#allocation151_spill] sm:$0xff] %v13855_v39  ;;  %v13863_v44 = vmax.f32 %v5691_v13, %v5692_v52  ;;  %v2605_v11 = vadd.f32 %v12531_v33, %v13294_v57  ;;  %v13867_v35 = vmax.f32 %v5686_v53, %v5687_v41  ;;  %v13869_v61 = vmax.f32 %v5712_v46, %v5713_v21  ;;  %v13884_v53 = vpop.f32.mrb[56].mxu0  ;;  %v18777_v41 = vld [vmem:[#allocation92_spill] sm:$0xff] }
 0x349   : > { %18771 = vst [vmem:[#allocation152_spill] sm:$0xff] %v13858_v50  ;;  %v18774_v18 = vmax.f32 %v13780_v49, 0.0  ;;  %v5675_v47 = vrot.slane %v13850_v32, 1  ;;  %v13875_v9 = vmax.f32 %v5700_v54, %v5701_v4  ;;  %v2607_v52 = vadd.f32 %v12533_v60, %v13299_v0  ;;  %v13886_v49 = vpop.f32.mrb[56].mxu1  ;;  %v18776_v54 = vld [vmem:[#allocation85_spill] sm:$0xff] }
 0x34a   : > { %18772 = vst [vmem:[#allocation153_spill] sm:$0xff] %v13863_v44  ;;  %18773 = vst [vmem:[#allocation154_spill] sm:$0xff] %v13867_v35  ;;  %v2733_v38 = vmax.f32 %v2605_v11, 0.0  ;;  %v2606_v21 = vadd.f32 %v12535_v17, %v13305_v6  ;;  %v2608_v25 = vadd.f32 %v12537_v15, %v18776_v54  ;;  %v2609_v0 = vadd.f32 %v12531_v33, %v18777_v41  ;;  %v18778_v4 = vld [vmem:[#allocation93_spill] sm:$0xff]  ;;  %v13899_v54 = vpop.f32.mrb[57].mxu1 }
 0x34b   : > { %v2824_v62 = vmax.f32 %v18774_v18, %v2732_v51  ;;  %18775 = vst [vmem:[#allocation155_spill] sm:$0xff] %v13875_v9  ;;  %v2735_v42 = vmax.f32 %v2607_v52, 0.0  ;;  %v2611_v51 = vadd.f32 %v12533_v60, %v18778_v4  ;;  %v5715_v11 = vrot.slane %v13869_v61, 2 }
 0x34c   : > { %v2734_v18 = vmax.f32 %v2606_v21, 0.0  ;;  %v2736_v52 = vmax.f32 %v2608_v25, 0.0  ;;  %v2737_v56 = vmax.f32 %v2609_v0, 0.0 }
 0x34d   : > { %v3223_v57 = vcombine.low %v13771_v43, %v2824_v62  ;;  %v3224_v46 = vcombine.high %v13771_v43, %v2824_v62  ;;  %v13897_v62 = vpop.f32.mrb[57].mxu0  ;;  %v2825_v55 = vmax.f32 %v2733_v38, %v2735_v42  ;;  %v2739_v2 = vmax.f32 %v2611_v51, 0.0 }
 0x34f   : > { %v3231_v43 = vrot.slane %v3223_v57, %v12546_v8  ;;  %v3238_v6 = vrot.slane %v3224_v46, %v12546_v8  ;;  %v2826_v57 = vmax.f32 %v2734_v18, %v2736_v52  ;;  %v13904_v16 = vmax.f32 %v2737_v56, %v2739_v2 }
 0x350   : > { %v2610_v46 = vadd.f32 %v12535_v17, %v13371_v28 }
 0x351   : > { %v3239_v13 = vcombine.high %v3231_v43, %v3231_v43  ;;  %v3240_v41 = vcombine.high %v3238_v6, %v3238_v6  ;;  %v4043_v5 = vrot.slane %v3231_v43, %v12546_v8  ;;  %v4059_v4 = vrot.slane %v3238_v6, %v12546_v8 }
 0x352   : > { %v3241_v43 = vcombine.low %v2825_v55, %v2826_v57  ;;  %v3242_v6 = vcombine.high %v2825_v55, %v2826_v57  ;;  %v18780_v57 = vld [vmem:[#allocation94_spill] sm:$0xff] }
 0x353   : > { %v4044_v38 = vcombine.high %v4043_v5, %v4043_v5  ;;  %v4051_v21 = vrot.slane %v3239_v13, %v12546_v8  ;;  %v4060_v42 = vcombine.high %v4059_v4, %v4059_v4  ;;  %v4067_v25 = vrot.slane %v3240_v41, %v12546_v8 }
 0x354   : > { %v5726_v0 = vsel %vm4773_vm3, %v4043_v5, -inf  ;;  %v5754_v51 = vsel %vm4773_vm3, %v4059_v4, -inf  ;;  %v2612_v37 = vadd.f32 %v12537_v15, %v18780_v57 }
 0x355   : > { %v4052_v39 = vcombine.high %v4051_v21, %v4051_v21  ;;  %v4068_v30 = vcombine.high %v4067_v25, %v4067_v25  ;;  %v5727_v18 = vrot.slane %v5726_v0, 4  ;;  %v5733_v2 = vsel %vm4773_vm3, %v4044_v38, -inf  ;;  %v13921_v38 = vpop.f32.mrb[58].mxu0 }
 0x356   : > { %v5734_v56 = vrot.slane %v5733_v2, 4  ;;  %v5740_v28 = vsel %vm4773_vm3, %v4051_v21, -inf  ;;  %v5755_v52 = vrot.slane %v5754_v51, 4  ;;  %v5761_v13 = vsel %vm4773_vm3, %v4060_v42, -inf }
 0x357   : > { %v5728_v22 = vmax.f32 %v5726_v0, %v5727_v18  ;;  %v5741_v24 = vrot.slane %v5740_v28, 4  ;;  %v5747_v41 = vsel %vm4773_vm3, %v4052_v39, -inf  ;;  %v5762_v5 = vrot.slane %v5761_v13, 4 }
 0x358   : > { %v13916_v59 = vmax.f32 %v5733_v2, %v5734_v56  ;;  %v5756_v4 = vmax.f32 %v5754_v51, %v5755_v52  ;;  %v5768_v55 = vsel %vm4773_vm3, %v4067_v25, -inf  ;;  %v5748_v35 = vrot.slane %v5747_v41, 4  ;;  %v13933_v25 = vpop.f32.mrb[58].mxu1 }
 0x359   : > { %v5729_v50 = vrot.slane %v5728_v22, 2  ;;  %v5742_v21 = vmax.f32 %v5740_v28, %v5741_v24  ;;  %v5769_v44 = vrot.slane %v5768_v55, 4  ;;  %v13924_v42 = vmax.f32 %v13850_v32, %v5675_v47  ;;  %v13940_v32 = vpop.f32.mrb[59].mxu0 }
 0x35a   : > { %18779 = vst [vmem:[#allocation85_spill] sm:$0xff] %v13916_v59  ;;  %v18782_v39 = vrot.slane %v13853_v36, 4  ;;  %v5757_v51 = vrot.slane %v5756_v4, 2  ;;  %v13931_v18 = vmax.f32 %v5761_v13, %v5762_v5  ;;  %v13937_v56 = vmax.f32 %v13869_v61, %v5715_v11  ;;  %v13946_v5 = vpop.f32.mrb[59].mxu1 }
 0x35b   : > { %18781 = vst [vmem:[#allocation92_spill] sm:$0xff] %v13924_v42  ;;  %v5775_v24 = vsel %vm4773_vm3, %v4068_v30, -inf  ;;  %v2738_v28 = vmax.f32 %v2610_v46, 0.0  ;;  %v13942_v47 = vmax.f32 %v5728_v22, %v5729_v50  ;;  %v5770_v52 = vmax.f32 %v5768_v55, %v5769_v44  ;;  %18787 = vst [vmem:[#allocation158_spill] sm:$0xff] %v13946_v5 }
 0x35c   : > { %v13929_v0 = vmax.f32 %v13853_v36, %v18782_v39  ;;  %18784 = vst [vmem:[#allocation94_spill] sm:$0xff] %v13931_v18  ;;  %18785 = vst [vmem:[#allocation156_spill] sm:$0xff] %v13937_v56  ;;  %v3249_v36 = vrot.slane %v3241_v43, %v12546_v8  ;;  %v3256_v13 = vrot.slane %v3242_v6, %v12546_v8  ;;  %v5743_v39 = vrot.slane %v5742_v21, 2 }
 0x35d   : > { %18786 = vst [vmem:[#allocation157_spill] sm:$0xff] %v13942_v47  ;;  %v13949_v2 = vmax.f32 %v5747_v41, %v5748_v35  ;;  %v2740_v61 = vmax.f32 %v2612_v37, 0.0  ;;  %v13951_v11 = vmax.f32 %v5756_v4, %v5757_v51  ;;  %v5776_v50 = vrot.slane %v5775_v24, 4  ;;  %v13959_v37 = vpop.f32.mrb[60].mxu0  ;;  %v13961_v41 = vpop.f32.mrb[60].mxu1 }
 0x35e   : > { %18783 = vst [vmem:[#allocation93_spill] sm:$0xff] %v13929_v0  ;;  %v3257_v46 = vcombine.high %v3249_v36, %v3249_v36  ;;  %v3258_v22 = vcombine.high %v3256_v13, %v3256_v13  ;;  %v4075_v44 = vrot.slane %v3249_v36, %v12546_v8  ;;  %v4091_v43 = vrot.slane %v3256_v13, %v12546_v8  ;;  %v13969_v42 = vpop.f32.mrb[61].mxu0 }
 0x35f   : > { %18788 = vst [vmem:[#allocation159_spill] sm:$0xff] %v13949_v2  ;;  %18789 = vst [vmem:[#allocation160_spill] sm:$0xff] %v13951_v11  ;;  %v2828_v6 = vmax.f32 %v2738_v28, %v2740_v61  ;;  %v5771_v9 = vrot.slane %v5770_v52, 2 }
 0x360   : > { %v4083_v57 = vrot.slane %v3257_v46, %v12546_v8  ;;  %v4099_v35 = vrot.slane %v3258_v22, %v12546_v8  ;;  %18790 = vst [vmem:[#allocation161_spill] sm:$0xff] %v13959_v37  ;;  %18791 = vst [vmem:[#allocation162_spill] sm:$0xff] %v13961_v41  ;;  %v4076_v4 = vcombine.high %v4075_v44, %v4075_v44  ;;  %v5782_v30 = vsel %vm4773_vm3, %v4075_v44, -inf  ;;  %v13971_v44 = vpop.f32.mrb[61].mxu1 }
 0x361   : > { %v4092_v51 = vcombine.high %v4091_v43, %v4091_v43  ;;  %v5810_v36 = vsel %vm4773_vm3, %v4091_v43, -inf  ;;  %v5783_v28 = vrot.slane %v5782_v30, 4 }
 0x362   : > { %v4084_v18 = vcombine.high %v4083_v57, %v4083_v57  ;;  %v4100_v13 = vcombine.high %v4099_v35, %v4099_v35  ;;  %v5796_v61 = vsel %vm4773_vm3, %v4083_v57, -inf  ;;  %v5789_v55 = vsel %vm4773_vm3, %v4076_v4, -inf }
 0x363   : > { %v5797_v46 = vrot.slane %v5796_v61, 4  ;;  %v5811_v47 = vrot.slane %v5810_v36, 4  ;;  %v5817_v22 = vsel %vm4773_vm3, %v4092_v51, -inf  ;;  %v5784_v59 = vmax.f32 %v5782_v30, %v5783_v28 }
 0x364   : > { %v5790_v2 = vrot.slane %v5789_v55, 4  ;;  %v5803_v56 = vsel %vm4773_vm3, %v4084_v18, -inf  ;;  %v5818_v0 = vrot.slane %v5817_v22, 4  ;;  %v5824_v57 = vsel %vm4773_vm3, %v4099_v35, -inf }
 0x365   : > { %v13973_v43 = vmax.f32 %v5796_v61, %v5797_v46  ;;  %v5804_v1 = vrot.slane %v5803_v56, 4  ;;  %v5812_v41 = vmax.f32 %v5810_v36, %v5811_v47  ;;  %v5785_v4 = vrot.slane %v5784_v59, 2 }
 0x366   : > { %v13976_v37 = vmax.f32 %v5789_v55, %v5790_v2  ;;  %v5825_v5 = vrot.slane %v5824_v57, 4  ;;  %v2613_v30 = vadd.f32 %v12531_v33, %v13448_v58  ;;  %v13980_v51 = vmax.f32 %v5742_v21, %v5743_v39  ;;  %v13994_v55 = vpop.f32.mrb[62].mxu0  ;;  %v13996_v58 = vpop.f32.mrb[62].mxu1 }
 0x367   : > { %v5813_v28 = vrot.slane %v5812_v41, 2  ;;  %v2615_v61 = vadd.f32 %v12533_v60, %v13450_v31  ;;  %v13985_v46 = vmax.f32 %v5770_v52, %v5771_v9  ;;  %v13987_v47 = vmax.f32 %v5775_v24, %v5776_v50  ;;  %18796 = vst [vmem:[#allocation167_spill] sm:$0xff] %v13994_v55  ;;  %18797 = vst [vmem:[#allocation168_spill] sm:$0xff] %v13996_v58  ;;  %v9168_v50 = vld [vmem:[%s18333_s3 + $0x1c0] sm:$0xff] }
 0x368   : > { %18792 = vst [vmem:[#allocation163_spill] sm:$0xff] %v13976_v37  ;;  %18793 = vst [vmem:[#allocation164_spill] sm:$0xff] %v13980_v51  ;;  %v13989_v35 = vmax.f32 %v5824_v57, %v5825_v5  ;;  %v13992_v2 = vsel %vm4773_vm3, %v4100_v13, -inf  ;;  %v13999_v39 = vmax.f32 %v5803_v56, %v5804_v1  ;;  %v14001_v36 = vmax.f32 %v5817_v22, %v5818_v0  ;;  %v9169_v1 = vld [vmem:[%s18333_s3 + $0x1c8] sm:$0xff]  ;;  %v14018_v22 = vpop.f32.mrb[63].mxu0 }
 0x369   : > { %18794 = vst [vmem:[#allocation165_spill] sm:$0xff] %v13985_v46  ;;  %18795 = vst [vmem:[#allocation166_spill] sm:$0xff] %v13987_v47  ;;  %v3259_v31 = vcombine.low %v13904_v16, %v2828_v6  ;;  %v14004_v9 = vmax.f32 %v5784_v59, %v5785_v4  ;;  %v3260_v52 = vcombine.high %v13904_v16, %v2828_v6  ;;  %v2741_v5 = vmax.f32 %v2613_v30, 0.0  ;;  %v9153_v30 = vld [vmem:[%s18333_s3 + $0x148] sm:$0xff] }
 0x36a   : > { %18798 = vst [vmem:[#allocation169_spill] sm:$0xff] %v13999_v39  ;;  %18799 = vst [vmem:[#allocation170_spill] sm:$0xff] %v14001_v36  ;;  %v14014_v56 = vmax.f32 %v5812_v41, %v5813_v28  ;;  %v5832_v0 = vrot.slane %v13992_v2, 4  ;;  %v2743_v13 = vmax.f32 %v2615_v61, 0.0  ;;  %v5827_v16 = vrot.slane %v13989_v35, 2  ;;  %v9152_v41 = vld [vmem:[%s18333_s3 + $0x140] sm:$0xff] }
 0x36b   : > { %18800 = vst [vmem:[#allocation171_spill] sm:$0xff] %v14004_v9  ;;  %v3267_v59 = vrot.slane %v3259_v31, %v12546_v8  ;;  %18802 = vst [vmem:[#allocation173_spill] sm:$0xff] %v14018_v22  ;;  %v3274_v6 = vrot.slane %v3260_v52, %v12546_v8  ;;  %v2614_v57 = vadd.f32 %v12535_v17, %v13454_v26  ;;  %v14032_v28 = vpop.f32.mrb[63].mxu1 }
 0x36c   : > { %18801 = vst [vmem:[#allocation172_spill] sm:$0xff] %v14014_v56  ;;  %v2616_v4 = vadd.f32 %v12537_v15, %v13464_v3  ;;  %18803 = vst [vmem:[#allocation174_spill] sm:$0xff] %v14032_v28  ;;  %v14035_v52 = vmax.f32 %v2741_v5, %v2743_v13  ;;  %v10349_v24 = vpack.c.bf16 %v9169_v1, %v9168_v50 }
 0x36d   : > { %v3275_v61 = vcombine.high %v3267_v59, %v3267_v59  ;;  %v4107_v31 = vrot.slane %v3267_v59, %v12546_v8  ;;  %v3276_v26 = vcombine.high %v3274_v6, %v3274_v6  ;;  %v4123_v18 = vrot.slane %v3274_v6, %v12546_v8 }
 0x36e   : > { %v2742_v3 = vmax.f32 %v2614_v57, 0.0  ;;  %v2744_v21 = vmax.f32 %v2616_v4, 0.0  ;;  %10350 = vmatprep.subr.bf16.mxu0 %v10349_v24  ;;  %v10351_v46 = vpack.c.bf16 %v9153_v30, %v9152_v41 }
 0x36f   : > { %v4108_v37 = vcombine.high %v4107_v31, %v4107_v31  ;;  %v4115_v11 = vrot.slane %v3275_v61, %v12546_v8  ;;  %v5838_v39 = vsel %vm4773_vm3, %v4107_v31, -inf  ;;  %v4124_v47 = vcombine.high %v4123_v18, %v4123_v18 }
 0x370   : > { %v4131_v51 = vrot.slane %v3276_v26, %v12546_v8  ;;  %v5839_v28 = vrot.slane %v5838_v39, 4  ;;  %v5866_v5 = vsel %vm4773_vm3, %v4123_v18, -inf  ;;  %10352 = vmatpush3.bf16.msra.mxu0 %v10351_v46  ;;  %v2830_v36 = vmax.f32 %v2742_v3, %v2744_v21 }
 0x371   : > { %v4116_v59 = vcombine.high %v4115_v11, %v4115_v11  ;;  %v5845_v50 = vsel %vm4773_vm3, %v4108_v37, -inf  ;;  %v5852_v1 = vsel %vm4773_vm3, %v4115_v11, -inf  ;;  %v5867_v13 = vrot.slane %v5866_v5, 4 }
 0x372   : > { %v4132_v6 = vcombine.high %v4131_v51, %v4131_v51  ;;  %v5840_v57 = vmax.f32 %v5838_v39, %v5839_v28  ;;  %v5846_v4 = vrot.slane %v5845_v50, 4  ;;  %v5853_v61 = vrot.slane %v5852_v1, 4  ;;  %v6590_v39 = vld [vmem:[%s18333_s3 + $0xc0] sm:$0xff] }
 0x373   : > { %v5859_v24 = vsel %vm4773_vm3, %v4116_v59, -inf  ;;  %v5868_v41 = vmax.f32 %v5866_v5, %v5867_v13  ;;  %v5873_v30 = vsel %vm4773_vm3, %v4124_v47, -inf  ;;  %v5880_v31 = vsel %vm4773_vm3, %v4131_v51, -inf  ;;  %v6591_v47 = vld [vmem:[%s18333_s3 + $0xc8] sm:$0xff] }
 0x374   : > { %v5841_v26 = vrot.slane %v5840_v57, 2  ;;  %v14047_v18 = vmax.f32 %v5845_v50, %v5846_v4  ;;  %v5854_v22 = vmax.f32 %v5852_v1, %v5853_v61  ;;  %v5860_v37 = vrot.slane %v5859_v24, 4 }
 0x375   : > { %v5869_v58 = vrot.slane %v5868_v41, 2  ;;  %v5874_v46 = vrot.slane %v5873_v30, 4  ;;  %v5881_v55 = vrot.slane %v5880_v31, 4  ;;  %v18805_v28 = vrot.slane %v13973_v43, 2 }
 0x376   : > { %18804 = vst [vmem:[#allocation175_spill] sm:$0xff] %v14047_v18  ;;  %v5887_v50 = vsel %vm4773_vm3, %v4132_v6, -inf  ;;  %v14065_v1 = vmax.f32 %v13989_v35, %v5827_v16  ;;  %v14068_v13 = vmax.f32 %v13992_v2, %v5832_v0  ;;  %v14070_v4 = vmax.f32 %v5840_v57, %v5841_v26  ;;  %v6575_v35 = vld [vmem:[%s18333_s3 + $0x48] sm:$0xff] }
 0x377   : > { %v14060_v5 = vmax.f32 %v13973_v43, %v18805_v28  ;;  %v5855_v11 = vrot.slane %v5854_v22, 2  ;;  %v14073_v51 = vmax.f32 %v5859_v24, %v5860_v37  ;;  %v10381_v43 = vpack.c.bf16 %v6591_v47, %v6590_v39  ;;  %v6574_v28 = vld [vmem:[%s18333_s3 + $0x40] sm:$0xff] }
 0x378   : > { %18807 = vst [vmem:[#allocation177_spill] sm:$0xff] %v14065_v1  ;;  %18808 = vst [vmem:[#allocation178_spill] sm:$0xff] %v14068_v13  ;;  %v14081_v16 = vmax.f32 %v5868_v41, %v5869_v58  ;;  %v14083_v2 = vmax.f32 %v5873_v30, %v5874_v46  ;;  %v5882_v0 = vmax.f32 %v5880_v31, %v5881_v55  ;;  %v5888_v6 = vrot.slane %v5887_v50, 4  ;;  %v18813_v58 = vld [vmem:[#allocation51_spill] sm:$0xff]  ;;  %v18814_v30 = vld [vmem:[#allocation109_spill] sm:$0xff] }
 0x379   : > { %18806 = vst [vmem:[#allocation176_spill] sm:$0xff] %v14060_v5  ;;  %18809 = vst [vmem:[#allocation179_spill] sm:$0xff] %v14070_v4  ;;  %v3277_v57 = vcombine.low %v14035_v52, %v2830_v36  ;;  %v3278_v24 = vcombine.high %v14035_v52, %v2830_v36  ;;  %10382 = vmatprep.subr.bf16.mxu1 %v10381_v43  ;;  %v2617_v21 = vadd.f32 %v12531_v33, %v13520_v7 }
 0x37a   : > { %18810 = vst [vmem:[#allocation180_spill] sm:$0xff] %v14073_v51  ;;  %18811 = vst [vmem:[#allocation181_spill] sm:$0xff] %v14081_v16  ;;  %v2619_v3 = vadd.f32 %v12533_v60, %v13522_v10  ;;  %v10383_v37 = vpack.c.bf16 %v6575_v35, %v6574_v28  ;;  %v2618_v41 = vadd.f32 %v12535_v17, %v18813_v58 }
 0x37b   : > { %18812 = vst [vmem:[#allocation182_spill] sm:$0xff] %v14083_v2  ;;  %v2620_v55 = vadd.f32 %v12537_v15, %v18814_v30  ;;  %v3285_v31 = vrot.slane %v3277_v57, %v12546_v8  ;;  %v3292_v36 = vrot.slane %v3278_v24, %v12546_v8  ;;  %v2745_v52 = vmax.f32 %v2617_v21, 0.0 }
 0x37c   : > { %v2747_v46 = vmax.f32 %v2619_v3, 0.0  ;;  %v14098_v39 = vmax.f32 %v5854_v22, %v5855_v11  ;;  %10384 = vmatpush3.bf16.msra.mxu1 %v10383_v37  ;;  %v2746_v10 = vmax.f32 %v2618_v41, 0.0  ;;  %v5883_v57 = vrot.slane %v5882_v0, 2 }
 0x37d   : > { %v2748_v47 = vmax.f32 %v2620_v55, 0.0  ;;  %v3293_v43 = vcombine.high %v3285_v31, %v3285_v31  ;;  %v3294_v28 = vcombine.high %v3292_v36, %v3292_v36  ;;  %v4139_v35 = vrot.slane %v3285_v31, %v12546_v8 }
 0x37e   : > { %18815 = vst [vmem:[#allocation51_spill] sm:$0xff] %v14098_v39  ;;  %v4155_v58 = vrot.slane %v3292_v36, %v12546_v8  ;;  %v2831_v26 = vmax.f32 %v2745_v52, %v2747_v46  ;;  %v14108_v31 = vmax.f32 %v5887_v50, %v5888_v6 }
 0x37f   : > { %v2832_v24 = vmax.f32 %v2746_v10, %v2748_v47  ;;  %v4140_v21 = vcombine.high %v4139_v35, %v4139_v35  ;;  %v4147_v22 = vrot.slane %v3293_v43, %v12546_v8  ;;  %v4163_v3 = vrot.slane %v3294_v28, %v12546_v8 }
 0x380   : > { %v4156_v11 = vcombine.high %v4155_v58, %v4155_v58  ;;  %v5894_v37 = vsel %vm4773_vm3, %v4139_v35, -inf  ;;  %v5922_v41 = vsel %vm4773_vm3, %v4155_v58, -inf  ;;  %18816 = vst [vmem:[#allocation109_spill] sm:$0xff] %v14108_v31  ;;  %v2621_v10 = vadd.f32 %v12531_v33, %v13551_v45 }
 0x381   : > { %v3295_v55 = vcombine.low %v2831_v26, %v2832_v24  ;;  %v3296_v7 = vcombine.high %v2831_v26, %v2832_v24  ;;  %v4148_v36 = vcombine.high %v4147_v22, %v4147_v22  ;;  %v5895_v61 = vrot.slane %v5894_v37, 4 }
 0x382   : > { %v5901_v30 = vsel %vm4773_vm3, %v4140_v21, -inf  ;;  %v5908_v52 = vsel %vm4773_vm3, %v4147_v22, -inf  ;;  %v5923_v46 = vrot.slane %v5922_v41, 4  ;;  %v2623_v47 = vadd.f32 %v12533_v60, %v13553_v63 }
 0x383   : > { %v4164_v43 = vcombine.high %v4163_v3, %v4163_v3  ;;  %v5896_v28 = vmax.f32 %v5894_v37, %v5895_v61  ;;  %v5902_v35 = vrot.slane %v5901_v30, 4  ;;  %v5909_v58 = vrot.slane %v5908_v52, 4 }
 0x384   : > { %v14117_v50 = vsel %vm4773_vm3, %v4148_v36, -inf  ;;  %v5924_v6 = vmax.f32 %v5922_v41, %v5923_v46  ;;  %v5929_v26 = vsel %vm4773_vm3, %v4156_v11, -inf  ;;  %v5936_v24 = vsel %vm4773_vm3, %v4163_v3, -inf }
 0x385   : > { %v14121_v21 = vmax.f32 %v5882_v0, %v5883_v57  ;;  %v5897_v22 = vrot.slane %v5896_v28, 2  ;;  %v5910_v59 = vmax.f32 %v5908_v52, %v5909_v58  ;;  %v5937_v45 = vrot.slane %v5936_v24, 4 }
 0x386   : > { %v3303_v16 = vrot.slane %v3295_v55, %v12546_v8  ;;  %v3310_v63 = vrot.slane %v3296_v7, %v12546_v8  ;;  %v2749_v61 = vmax.f32 %v2621_v10, 0.0  ;;  %v2751_v37 = vmax.f32 %v2623_v47, 0.0 }
 0x387   : > { %18817 = vst [vmem:[#allocation183_spill] sm:$0xff] %v14121_v21  ;;  %v14125_v2 = vmax.f32 %v5901_v30, %v5902_v35  ;;  %v5925_v41 = vrot.slane %v5924_v6, 2  ;;  %v5930_v46 = vrot.slane %v5929_v26, 4  ;;  %v14129_v11 = vsel %vm4773_vm3, %v4164_v43, -inf }
 0x388   : > { %v3311_v0 = vcombine.high %v3303_v16, %v3303_v16  ;;  %v3312_v57 = vcombine.high %v3310_v63, %v3310_v63  ;;  %v4171_v3 = vrot.slane %v3303_v16, %v12546_v8  ;;  %v14132_v52 = vmax.f32 %v5896_v28, %v5897_v22 }
 0x389   : > { %v5911_v55 = vrot.slane %v5910_v59, 2  ;;  %v14134_v58 = vmax.f32 %v5936_v24, %v5937_v45  ;;  %v4187_v7 = vrot.slane %v3310_v63, %v12546_v8  ;;  %v2833_v4 = vmax.f32 %v2749_v61, %v2751_v37 }
 0x38a   : > { %v4172_v30 = vcombine.high %v4171_v3, %v4171_v3  ;;  %v4179_v10 = vrot.slane %v3311_v0, %v12546_v8  ;;  %v4195_v47 = vrot.slane %v3312_v57, %v12546_v8  ;;  %v5950_v35 = vsel %vm4773_vm3, %v4171_v3, -inf }
 0x38b   : > { %v4188_v43 = vcombine.high %v4187_v7, %v4187_v7  ;;  %v5951_v36 = vrot.slane %v5950_v35, 4  ;;  %v5978_v21 = vsel %vm4773_vm3, %v4187_v7, -inf  ;;  %v14143_v45 = vmax.f32 %v5929_v26, %v5930_v46 }
 0x38c   : > { %v4180_v16 = vcombine.high %v4179_v10, %v4179_v10  ;;  %v4196_v28 = vcombine.high %v4195_v47, %v4195_v47  ;;  %v5957_v22 = vsel %vm4773_vm3, %v4172_v30, -inf  ;;  %v5964_v24 = vsel %vm4773_vm3, %v4179_v10, -inf }
 0x38d   : > { %v5952_v63 = vmax.f32 %v5950_v35, %v5951_v36  ;;  %v5958_v31 = vrot.slane %v5957_v22, 4  ;;  %v5965_v0 = vrot.slane %v5964_v24, 4  ;;  %v14145_v39 = vmax.f32 %v5924_v6, %v5925_v41  ;;  %v18822_v35 = vld [vmem:[#allocation121_spill] sm:$0xff] }
 0x38e   : > { %v14149_v3 = vsel %vm4773_vm3, %v4180_v16, -inf  ;;  %v5979_v7 = vrot.slane %v5978_v21, 4  ;;  %v14152_v37 = vmax.f32 %v5910_v59, %v5911_v55  ;;  %v14155_v30 = vsel %vm4773_vm3, %v4188_v43, -inf }
 0x38f   : > { %18818 = vst [vmem:[#allocation184_spill] sm:$0xff] %v14145_v39  ;;  %v14158_v26 = vsel %vm4773_vm3, %v4195_v47, -inf  ;;  %v5953_v6 = vrot.slane %v5952_v63, 2  ;;  %v14161_v41 = vmax.f32 %v5957_v22, %v5958_v31  ;;  %v14164_v46 = vsel %vm4773_vm3, %v4196_v28, -inf }
 0x390   : > { %18820 = vst [vmem:[#allocation186_spill] sm:$0xff] %v14164_v46  ;;  %v14166_v10 = vmax.f32 %v5964_v24, %v5965_v0  ;;  %v2622_v59 = vadd.f32 %v12535_v17, %v13580_v40  ;;  %v2624_v55 = vadd.f32 %v12537_v15, %v13615_v19  ;;  %v14173_v47 = vmax.f32 %v5978_v21, %v5979_v7  ;;  %v18821_v24 = vld [vmem:[#allocation66_spill] sm:$0xff] }
 0x391   : > { %18819 = vst [vmem:[#allocation185_spill] sm:$0xff] %v14161_v41  ;;  %v5993_v31 = vrot.slane %v14158_v26, 4  ;;  %v2625_v16 = vadd.f32 %v12531_v33, %v13626_v20  ;;  %v2627_v0 = vadd.f32 %v12533_v60, %v18821_v24  ;;  %v2626_v40 = vadd.f32 %v12535_v17, %v18822_v35  ;;  %v18824_v7 = vld [vmem:[#allocation122_spill] sm:$0xff]  ;;  %v18825_v20 = vld [vmem:[#allocation67_spill] sm:$0xff] }
 0x392   : > { %v2750_v28 = vmax.f32 %v2622_v59, 0.0  ;;  %v2752_v22 = vmax.f32 %v2624_v55, 0.0  ;;  %v14183_v36 = vmax.f32 %v5952_v63, %v5953_v6  ;;  %v2628_v57 = vadd.f32 %v12537_v15, %v18824_v7  ;;  %v9170_v55 = vld [vmem:[%s18333_s3 + $0x1d0] sm:$0xff]  ;;  %v18826_v35 = vld [vmem:[#allocation11_spill] sm:$0xff] }
 0x393   : > { %v2753_v21 = vmax.f32 %v2625_v16, 0.0  ;;  %v2755_v43 = vmax.f32 %v2627_v0, 0.0  ;;  %v2754_v18 = vmax.f32 %v2626_v40, 0.0  ;;  %v2629_v59 = vadd.f32 %v12531_v33, %v18825_v20  ;;  %v18827_v6 = vld [vmem:[#allocation129_spill] sm:$0xff] }
 0x394   : > { %18823 = vst [vmem:[#allocation66_spill] sm:$0xff] %v14183_v36  ;;  %v2834_v61 = vmax.f32 %v2750_v28, %v2752_v22  ;;  %v2756_v24 = vmax.f32 %v2628_v57, 0.0  ;;  %v2631_v63 = vadd.f32 %v12533_v60, %v18826_v35  ;;  %v2630_v16 = vadd.f32 %v12535_v17, %v18827_v6  ;;  %v9171_v28 = vld [vmem:[%s18333_s3 + $0x1d8] sm:$0xff]  ;;  %v9154_v22 = vld [vmem:[%s18333_s3 + $0x150] sm:$0xff] }
 0x395   : > { %v2632_v7 = vadd.f32 %v12537_v15, %v13688_v14  ;;  %v9155_v57 = vld [vmem:[%s18333_s3 + $0x158] sm:$0xff]  ;;  %v2835_v20 = vmax.f32 %v2753_v21, %v2755_v43  ;;  %v2757_v35 = vmax.f32 %v2629_v59, 0.0  ;;  %v10353_v9 = vpack.c.bf16 %v9171_v28, %v9170_v55 }
 0x396   : > { %v3313_v0 = vcombine.low %v2833_v4, %v2834_v61  ;;  %v3314_v40 = vcombine.high %v2833_v4, %v2834_v61  ;;  %v2836_v6 = vmax.f32 %v2754_v18, %v2756_v24  ;;  %v2759_v19 = vmax.f32 %v2631_v63, 0.0 }
 0x397   : > { %v2758_v56 = vmax.f32 %v2630_v16, 0.0  ;;  %v2760_v14 = vmax.f32 %v2632_v7, 0.0  ;;  %v10355_v13 = vpack.c.bf16 %v9155_v57, %v9154_v22  ;;  %10354 = vmatprep.subr.bf16.mxu0 %v10353_v9 }
 0x398   : > { %v3321_v51 = vrot.slane %v3313_v0, %v12546_v8  ;;  %v3328_v1 = vrot.slane %v3314_v40, %v12546_v8  ;;  %v3331_v5 = vcombine.low %v2835_v20, %v2836_v6  ;;  %v3332_v36 = vcombine.high %v2835_v20, %v2836_v6 }
 0x399   : > { %v14210_v46 = vmax.f32 %v2757_v35, %v2759_v19  ;;  %v14212_v41 = vmax.f32 %v2758_v56, %v2760_v14  ;;  %10356 = vmatpush3.bf16.msra.mxu0 %v10355_v13  ;;  %v5981_v56 = vrot.slane %v14173_v47, 2 }
 0x39a   : > { %v3329_v39 = vcombine.high %v3321_v51, %v3321_v51  ;;  %v3330_v4 = vcombine.high %v3328_v1, %v3328_v1  ;;  %v4203_v61 = vrot.slane %v3321_v51, %v12546_v8  ;;  %v4219_v18 = vrot.slane %v3328_v1, %v12546_v8 }
 0x39b   : > { %v3339_v21 = vrot.slane %v3331_v5, %v12546_v8  ;;  %v14225_v1 = vmax.f32 %v14158_v26, %v5993_v31  ;;  %v3346_v13 = vrot.slane %v3332_v36, %v12546_v8  ;;  %v18829_v26 = vrot.slane %v14155_v30, 4 }
 0x39c   : > { %v4204_v55 = vcombine.high %v4203_v61, %v4203_v61  ;;  %v4211_v24 = vrot.slane %v3329_v39, %v12546_v8  ;;  %v4220_v51 = vcombine.high %v4219_v18, %v4219_v18  ;;  %v4227_v9 = vrot.slane %v3330_v4, %v12546_v8 }
 0x39d   : > { %18828 = vst [vmem:[#allocation121_spill] sm:$0xff] %v14225_v1  ;;  %v6006_v5 = vsel %vm4773_vm3, %v4203_v61, -inf  ;;  %v6034_v63 = vsel %vm4773_vm3, %v4219_v18, -inf  ;;  %v3347_v0 = vcombine.high %v3339_v21, %v3339_v21  ;;  %v14236_v31 = vmax.f32 %v14155_v30, %v18829_v26 }
 0x39e   : > { %v4212_v16 = vcombine.high %v4211_v24, %v4211_v24  ;;  %v6007_v7 = vrot.slane %v6006_v5, 4  ;;  %v6013_v28 = vsel %vm4773_vm3, %v4204_v55, -inf  ;;  %v6020_v57 = vsel %vm4773_vm3, %v4211_v24, -inf }
 0x39f   : > { %v6014_v22 = vrot.slane %v6013_v28, 4  ;;  %v6035_v39 = vrot.slane %v6034_v63, 4  ;;  %v6021_v20 = vrot.slane %v6020_v57, 4  ;;  %v6041_v35 = vsel %vm4773_vm3, %v4220_v51, -inf }
 0x3a0   : > { %v6008_v40 = vmax.f32 %v6006_v5, %v6007_v7  ;;  %v4228_v6 = vcombine.high %v4227_v9, %v4227_v9  ;;  %v14240_v14 = vsel %vm4773_vm3, %v4212_v16, -inf  ;;  %v6048_v36 = vsel %vm4773_vm3, %v4227_v9, -inf }
 0x3a1   : > { %18830 = vst [vmem:[#allocation122_spill] sm:$0xff] %v14240_v14  ;;  %v6036_v4 = vmax.f32 %v6034_v63, %v6035_v39  ;;  %v14244_v61 = vmax.f32 %v14173_v47, %v5981_v56  ;;  %v6049_v55 = vrot.slane %v6048_v36, 4  ;;  %v3348_v24 = vcombine.high %v3346_v13, %v3346_v13 }
 0x3a2   : > { %v14247_v30 = vmax.f32 %v6013_v28, %v6014_v22  ;;  %v6042_v5 = vrot.slane %v6041_v35, 4  ;;  %v4235_v7 = vrot.slane %v3339_v21, %v12546_v8  ;;  %v4243_v51 = vrot.slane %v3347_v0, %v12546_v8 }
 0x3a3   : > { %18831 = vst [vmem:[#allocation67_spill] sm:$0xff] %v14244_v61  ;;  %v6009_v26 = vrot.slane %v6008_v40, 2  ;;  %v14251_v16 = vmax.f32 %v6020_v57, %v6021_v20  ;;  %v6037_v9 = vrot.slane %v6036_v4, 2  ;;  %v14255_v47 = vsel %vm4773_vm3, %v4228_v6, -inf }
 0x3a4   : > { %18832 = vst [vmem:[#allocation11_spill] sm:$0xff] %v14247_v30  ;;  %18834 = vst [vmem:[#allocation187_spill] sm:$0xff] %v14255_v47  ;;  %v4236_v56 = vcombine.high %v4235_v7, %v4235_v7  ;;  %v4244_v39 = vcombine.high %v4243_v51, %v4243_v51  ;;  %v4251_v18 = vrot.slane %v3346_v13, %v12546_v8  ;;  %v6062_v21 = vsel %vm4773_vm3, %v4235_v7, -inf }
 0x3a5   : > { %18833 = vst [vmem:[#allocation129_spill] sm:$0xff] %v14251_v16  ;;  %v14258_v28 = vmax.f32 %v6048_v36, %v6049_v55  ;;  %v4259_v22 = vrot.slane %v3348_v24, %v12546_v8  ;;  %v6076_v0 = vsel %vm4773_vm3, %v4243_v51, -inf  ;;  %v6063_v20 = vrot.slane %v6062_v21, 4 }
 0x3a6   : > { %v4252_v57 = vcombine.high %v4251_v18, %v4251_v18  ;;  %v6069_v63 = vsel %vm4773_vm3, %v4236_v56, -inf  ;;  %v6077_v43 = vrot.slane %v6076_v0, 4  ;;  %v14264_v19 = vmax.f32 %v6041_v35, %v6042_v5  ;;  %v6592_v5 = vld [vmem:[%s18333_s3 + $0xd0] sm:$0xff] }
 0x3a7   : > { %18835 = vst [vmem:[#allocation188_spill] sm:$0xff] %v14258_v28  ;;  %v4260_v6 = vcombine.high %v4259_v22, %v4259_v22  ;;  %v14267_v59 = vsel %vm4773_vm3, %v4244_v39, -inf  ;;  %v6090_v13 = vsel %vm4773_vm3, %v4251_v18, -inf  ;;  %v6064_v36 = vmax.f32 %v6062_v21, %v6063_v20  ;;  %v6593_v18 = vld [vmem:[%s18333_s3 + $0xd8] sm:$0xff] }
 0x3a8   : > { %18836 = vst [vmem:[#allocation189_spill] sm:$0xff] %v14264_v19  ;;  %18837 = vst [vmem:[#allocation190_spill] sm:$0xff] %v14267_v59  ;;  %v6070_v55 = vrot.slane %v6069_v63, 4  ;;  %v14270_v24 = vmax.f32 %v6076_v0, %v6077_v43  ;;  %v6091_v7 = vrot.slane %v6090_v13, 4  ;;  %v14272_v30 = vmax.f32 %v6008_v40, %v6009_v26 }
 0x3a9   : > { %v14275_v61 = vmax.f32 %v6036_v4, %v6037_v9  ;;  %v6097_v40 = vsel %vm4773_vm3, %v4252_v57, -inf  ;;  %v6104_v26 = vsel %vm4773_vm3, %v4259_v22, -inf  ;;  %v6065_v4 = vrot.slane %v6064_v36, 2 }
 0x3aa   : > { %18838 = vst [vmem:[#allocation191_spill] sm:$0xff] %v14270_v24  ;;  %18839 = vst [vmem:[#allocation192_spill] sm:$0xff] %v14272_v30  ;;  %v14289_v9 = vsel %vm4773_vm3, %v4260_v6, -inf  ;;  %v18842_v39 = vcombine.low %v14210_v46, %v14212_v41  ;;  %v18843_v0 = vcombine.high %v14210_v46, %v14212_v41  ;;  %v14299_v43 = vmax.f32 %v6069_v63, %v6070_v55 }
 0x3ab   : > { %18840 = vst [vmem:[#allocation193_spill] sm:$0xff] %v14275_v61  ;;  %18841 = vst [vmem:[#allocation194_spill] sm:$0xff] %v14289_v9  ;;  %v14302_v56 = vmax.f32 %v6090_v13, %v6091_v7  ;;  %v10385_v22 = vpack.c.bf16 %v6593_v18, %v6592_v5  ;;  %v6098_v35 = vrot.slane %v6097_v40, 4  ;;  %v6105_v59 = vrot.slane %v6104_v26, 4 }
 0x3ac   : > { %v3357_v21 = vrot.slane %v18842_v39, %v12546_v8  ;;  %v3364_v20 = vrot.slane %v18843_v0, %v12546_v8  ;;  %18844 = vst [vmem:[#allocation195_spill] sm:$0xff] %v14299_v43  ;;  %v2633_v41 = vadd.f32 %v12531_v33, %v13727_v29  ;;  %v14309_v46 = vmax.f32 %v6064_v36, %v6065_v4 }
 0x3ad   : > { %18845 = vst [vmem:[#allocation196_spill] sm:$0xff] %v14302_v56  ;;  %10386 = vmatprep.subr.bf16.mxu1 %v10385_v22  ;;  %v14322_v29 = vmax.f32 %v6097_v40, %v6098_v35  ;;  %v14338_v40 = vmax.f32 %v6104_v26, %v6105_v59  ;;  %v2634_v59 = vadd.f32 %v12535_v17, %v13783_v27  ;;  %v18849_v56 = vld [vmem:[#allocation138_spill] sm:$0xff] }
 0x3ae   : > { %v3365_v6 = vcombine.high %v3357_v21, %v3357_v21  ;;  %v3366_v51 = vcombine.high %v3364_v20, %v3364_v20  ;;  %v4267_v61 = vrot.slane %v3357_v21, %v12546_v8  ;;  %v4283_v28 = vrot.slane %v3364_v20, %v12546_v8  ;;  %18846 = vst [vmem:[#allocation197_spill] sm:$0xff] %v14309_v46  ;;  %v6576_v20 = vld [vmem:[%s18333_s3 + $0x50] sm:$0xff] }
 0x3af   : > { %v2635_v21 = vadd.f32 %v12533_v60, %v13763_v12  ;;  %18847 = vst [vmem:[#allocation198_spill] sm:$0xff] %v14322_v29  ;;  %v2761_v4 = vmax.f32 %v2633_v41, 0.0  ;;  %18848 = vst [vmem:[#allocation199_spill] sm:$0xff] %v14338_v40  ;;  %v2636_v26 = vadd.f32 %v12537_v15, %v13788_v48  ;;  %v2639_v27 = vadd.f32 %v12533_v60, %v13803_v23  ;;  %v18854_v23 = vld [vmem:[#allocation147_spill] sm:$0xff] }
 0x3b0   : > { %v4268_v63 = vcombine.high %v4267_v61, %v4267_v61  ;;  %v14312_v13 = vrot.slane %v3365_v6, %v12546_v8  ;;  %v14315_v55 = vrot.slane %v3366_v51, %v12546_v8  ;;  %v4284_v7 = vcombine.high %v4283_v28, %v4283_v28  ;;  %v6577_v51 = vld [vmem:[%s18333_s3 + $0x58] sm:$0xff] }
 0x3b1   : > { %v6118_v5 = vsel %vm4773_vm3, %v4267_v61, -inf  ;;  %v6146_v18 = vsel %vm4773_vm3, %v4283_v28, -inf  ;;  %v2763_v39 = vmax.f32 %v2635_v21, 0.0  ;;  %v10387_v57 = vpack.c.bf16 %v6577_v51, %v6576_v20 }
 0x3b2   : > { %v6119_v36 = vrot.slane %v6118_v5, 4  ;;  %v14331_v61 = vsel %vm4773_vm3, %v4268_v63, -inf  ;;  %v6132_v12 = vsel %vm4773_vm3, %v14312_v13, -inf  ;;  %v6147_v28 = vrot.slane %v6146_v18, 4 }
 0x3b3   : > { %v14336_v35 = vsel %vm4773_vm3, %v4284_v7, -inf  ;;  %v6133_v6 = vrot.slane %v6132_v12, 4  ;;  %v6160_v41 = vsel %vm4773_vm3, %v14315_v55, -inf  ;;  %v2839_v40 = vmax.f32 %v2761_v4, %v2763_v39  ;;  %10388 = vmatpush3.bf16.msra.mxu1 %v10387_v57  ;;  %v18851_v57 = vld [vmem:[#allocation144_spill] sm:$0xff] }
 0x3b4   : > { %v6120_v22 = vmax.f32 %v6118_v5, %v6119_v36  ;;  %v14352_v5 = vmax.f32 %v6146_v18, %v6147_v28  ;;  %v6161_v36 = vrot.slane %v6160_v41, 4  ;;  %v2637_v63 = vadd.f32 %v12531_v33, %v13801_v34  ;;  %v18850_v18 = vld [vmem:[#allocation139_spill] sm:$0xff]  ;;  %v18852_v34 = vld [vmem:[#allocation145_spill] sm:$0xff] }
 0x3b5   : > { %v14356_v20 = vmax.f32 %v6132_v12, %v6133_v6  ;;  %v2762_v51 = vmax.f32 %v2634_v59, 0.0  ;;  %v2764_v0 = vmax.f32 %v2636_v26, 0.0  ;;  %v2638_v48 = vadd.f32 %v12535_v17, %v18849_v56  ;;  %v18853_v6 = vld [vmem:[#allocation146_spill] sm:$0xff] }
 0x3b6   : > { %v6121_v21 = vrot.slane %v6120_v22, 2  ;;  %v2765_v7 = vmax.f32 %v2637_v63, 0.0  ;;  %v2640_v28 = vadd.f32 %v12537_v15, %v18850_v18  ;;  %v2641_v4 = vadd.f32 %v12531_v33, %v18851_v57 }
 0x3b7   : > { %v2840_v39 = vmax.f32 %v2762_v51, %v2764_v0  ;;  %v2643_v12 = vadd.f32 %v12533_v60, %v18852_v34  ;;  %v2642_v59 = vadd.f32 %v12535_v17, %v18853_v6  ;;  %v2767_v63 = vmax.f32 %v2639_v27, 0.0 }
 0x3b8   : > { %v2766_v26 = vmax.f32 %v2638_v48, 0.0  ;;  %v2768_v29 = vmax.f32 %v2640_v28, 0.0  ;;  %v2644_v46 = vadd.f32 %v12537_v15, %v18854_v23  ;;  %v2769_v24 = vmax.f32 %v2641_v4, 0.0 }
 0x3b9   : > { %v3367_v56 = vcombine.low %v2839_v40, %v2840_v39  ;;  %v3368_v9 = vcombine.high %v2839_v40, %v2840_v39  ;;  %v2771_v18 = vmax.f32 %v2643_v12, 0.0  ;;  %v2841_v0 = vmax.f32 %v2765_v7, %v2767_v63 }
 0x3ba   : > { %v2842_v51 = vmax.f32 %v2766_v26, %v2768_v29  ;;  %v2770_v43 = vmax.f32 %v2642_v59, 0.0  ;;  %v2772_v57 = vmax.f32 %v2644_v46, 0.0  ;;  %v14377_v48 = vmax.f32 %v6160_v41, %v6161_v36 }
 0x3bb   : > { %v3375_v34 = vrot.slane %v3367_v56, %v12546_v8  ;;  %v3382_v6 = vrot.slane %v3368_v9, %v12546_v8  ;;  %v14375_v27 = vmax.f32 %v2769_v24, %v2771_v18  ;;  %v14391_v59 = vmax.f32 %v6120_v22, %v6121_v21 }
 0x3bc   : > { %v3385_v28 = vcombine.low %v2841_v0, %v2842_v51  ;;  %v3386_v23 = vcombine.high %v2841_v0, %v2842_v51  ;;  %v2844_v30 = vmax.f32 %v2770_v43, %v2772_v57  ;;  %v2647_v21 = vadd.f32 %v12533_v60, %v13886_v49 }
 0x3bd   : > { %v3383_v40 = vcombine.high %v3375_v34, %v3375_v34  ;;  %v3384_v39 = vcombine.high %v3382_v6, %v3382_v6  ;;  %v4299_v7 = vrot.slane %v3375_v34, %v12546_v8  ;;  %v4315_v29 = vrot.slane %v3382_v6, %v12546_v8 }
 0x3be   : > { %v3393_v46 = vrot.slane %v3385_v28, %v12546_v8  ;;  %v3400_v4 = vrot.slane %v3386_v23, %v12546_v8  ;;  %v3403_v12 = vcombine.low %v14375_v27, %v2844_v30  ;;  %v3404_v24 = vcombine.high %v14375_v27, %v2844_v30 }
 0x3bf   : > { %v4300_v9 = vcombine.high %v4299_v7, %v4299_v7  ;;  %v14386_v41 = vrot.slane %v3383_v40, %v12546_v8  ;;  %v4316_v36 = vcombine.high %v4315_v29, %v4315_v29  ;;  %v14389_v43 = vrot.slane %v3384_v39, %v12546_v8 }
 0x3c0   : > { %v6174_v63 = vsel %vm4773_vm3, %v4299_v7, -inf  ;;  %v6202_v26 = vsel %vm4773_vm3, %v4315_v29, -inf  ;;  %v3401_v56 = vcombine.high %v3393_v46, %v3393_v46  ;;  %v3402_v51 = vcombine.high %v3400_v4, %v3400_v4 }
 0x3c1   : > { %v6175_v0 = vrot.slane %v6174_v63, 4  ;;  %v2645_v30 = vadd.f32 %v12531_v33, %v13884_v53  ;;  %v14399_v57 = vsel %vm4773_vm3, %v4300_v9, -inf  ;;  %v6188_v34 = vsel %vm4773_vm3, %v14386_v41, -inf }
 0x3c2   : > { %v6203_v22 = vrot.slane %v6202_v26, 4  ;;  %v6189_v27 = vrot.slane %v6188_v34, 4  ;;  %v14408_v28 = vsel %vm4773_vm3, %v4316_v36, -inf  ;;  %v6216_v23 = vsel %vm4773_vm3, %v14389_v43, -inf }
 0x3c3   : > { %v14405_v6 = vmax.f32 %v6174_v63, %v6175_v0  ;;  %18855 = vst [vmem:[#allocation138_spill] sm:$0xff] %v14408_v28  ;;  %v4331_v39 = vrot.slane %v3393_v46, %v12546_v8  ;;  %v14418_v7 = vrot.slane %v3401_v56, %v12546_v8  ;;  %v6217_v29 = vrot.slane %v6216_v23, 4 }
 0x3c4   : > { %v14420_v49 = vmax.f32 %v6202_v26, %v6203_v22  ;;  %v4347_v9 = vrot.slane %v3400_v4, %v12546_v8  ;;  %v14424_v36 = vrot.slane %v3402_v51, %v12546_v8  ;;  %v14429_v53 = vmax.f32 %v6188_v34, %v6189_v27 }
 0x3c5   : > { %18856 = vst [vmem:[#allocation139_spill] sm:$0xff] %v14418_v7  ;;  %v4332_v40 = vcombine.high %v4331_v39, %v4331_v39  ;;  %v6230_v56 = vsel %vm4773_vm3, %v4331_v39, -inf  ;;  %v6244_v26 = vsel %vm4773_vm3, %v14418_v7, -inf  ;;  %v14439_v18 = vmax.f32 %v6216_v23, %v6217_v29 }
 0x3c6   : > { %18857 = vst [vmem:[#allocation144_spill] sm:$0xff] %v14420_v49  ;;  %18858 = vst [vmem:[#allocation145_spill] sm:$0xff] %v14424_v36  ;;  %v4348_v46 = vcombine.high %v4347_v9, %v4347_v9  ;;  %v6231_v22 = vrot.slane %v6230_v56, 4  ;;  %v6245_v51 = vrot.slane %v6244_v26, 4  ;;  %v6258_v63 = vsel %vm4773_vm3, %v4347_v9, -inf }
 0x3c7   : > { %v14435_v4 = vsel %vm4773_vm3, %v4332_v40, -inf  ;;  %18860 = vst [vmem:[#allocation147_spill] sm:$0xff] %v14439_v18  ;;  %v6259_v19 = vrot.slane %v6258_v63, 4  ;;  %v6272_v34 = vsel %vm4773_vm3, %v14424_v36, -inf  ;;  %v3411_v23 = vrot.slane %v3403_v12, %v12546_v8 }
 0x3c8   : > { %18859 = vst [vmem:[#allocation146_spill] sm:$0xff] %v14435_v4  ;;  %v14449_v47 = vsel %vm4773_vm3, %v4348_v46, -inf  ;;  %v14451_v9 = vmax.f32 %v6230_v56, %v6231_v22  ;;  %v3418_v29 = vrot.slane %v3404_v24, %v12546_v8  ;;  %v2773_v0 = vmax.f32 %v2645_v30, 0.0 }
 0x3c9   : > { %18861 = vst [vmem:[#allocation200_spill] sm:$0xff] %v14449_v47  ;;  %v14455_v16 = vmax.f32 %v6244_v26, %v6245_v51  ;;  %v6273_v49 = vrot.slane %v6272_v34, 4  ;;  %v2775_v14 = vmax.f32 %v2647_v21, 0.0  ;;  %v2646_v27 = vadd.f32 %v12535_v17, %v13897_v62 }
 0x3ca   : > { %18862 = vst [vmem:[#allocation201_spill] sm:$0xff] %v14451_v9  ;;  %v14459_v39 = vmax.f32 %v6258_v63, %v6259_v19  ;;  %v3419_v40 = vcombine.high %v3411_v23, %v3411_v23  ;;  %v3420_v36 = vcombine.high %v3418_v29, %v3418_v29  ;;  %v4363_v46 = vrot.slane %v3411_v23, %v12546_v8 }
 0x3cb   : > { %18863 = vst [vmem:[#allocation202_spill] sm:$0xff] %v14455_v16  ;;  %v4379_v56 = vrot.slane %v3418_v29, %v12546_v8  ;;  %v2845_v22 = vmax.f32 %v2773_v0, %v2775_v14  ;;  %v2774_v12 = vmax.f32 %v2646_v27, 0.0  ;;  %v2648_v24 = vadd.f32 %v12537_v15, %v13899_v54  ;;  %v9172_v14 = vld [vmem:[%s18333_s3 + $0x1e0] sm:$0xff]  ;;  %v9173_v54 = vld [vmem:[%s18333_s3 + $0x1e8] sm:$0xff] }
 0x3cc   : > { %18864 = vst [vmem:[#allocation203_spill] sm:$0xff] %v14459_v39  ;;  %v4364_v30 = vcombine.high %v4363_v46, %v4363_v46  ;;  %v14466_v26 = vrot.slane %v3419_v40, %v12546_v8  ;;  %v14469_v21 = vrot.slane %v3420_v36, %v12546_v8  ;;  %v6286_v62 = vsel %vm4773_vm3, %v4363_v46, -inf  ;;  %v9156_v16 = vld [vmem:[%s18333_s3 + $0x160] sm:$0xff]  ;;  %v9157_v36 = vld [vmem:[%s18333_s3 + $0x168] sm:$0xff] }
 0x3cd   : > { %v4380_v19 = vcombine.high %v4379_v56, %v4379_v56  ;;  %v6287_v63 = vrot.slane %v6286_v62, 4  ;;  %v6314_v51 = vsel %vm4773_vm3, %v4379_v56, -inf  ;;  %v2776_v23 = vmax.f32 %v2648_v24, 0.0 }
 0x3ce   : > { %18865 = vst [vmem:[#allocation204_spill] sm:$0xff] %v14466_v26  ;;  %18866 = vst [vmem:[#allocation205_spill] sm:$0xff] %v14469_v21  ;;  %v14482_v27 = vsel %vm4773_vm3, %v4364_v30, -inf  ;;  %v6300_v40 = vsel %vm4773_vm3, %v14466_v26, -inf  ;;  %v14487_v46 = vmax.f32 %v6272_v34, %v6273_v49  ;;  %v6315_v0 = vrot.slane %v6314_v51, 4  ;;  %v6594_v49 = vld [vmem:[%s18333_s3 + $0xe0] sm:$0xff] }
 0x3cf   : > { %18867 = vst [vmem:[#allocation206_spill] sm:$0xff] %v14482_v27  ;;  %v14489_v56 = vmax.f32 %v6286_v62, %v6287_v63  ;;  %v6301_v24 = vrot.slane %v6300_v40, 4  ;;  %v2846_v47 = vmax.f32 %v2774_v12, %v2776_v23  ;;  %v10357_v9 = vpack.c.bf16 %v9173_v54, %v9172_v14  ;;  %v6595_v34 = vld [vmem:[%s18333_s3 + $0xe8] sm:$0xff]  ;;  %v6578_v23 = vld [vmem:[%s18333_s3 + $0x60] sm:$0xff] }
 0x3d0   : > { %18868 = vst [vmem:[#allocation207_spill] sm:$0xff] %v14487_v46  ;;  %v14509_v29 = vsel %vm4773_vm3, %v4380_v19, -inf  ;;  %v14513_v12 = vsel %vm4773_vm3, %v14469_v21, -inf  ;;  %v6579_v14 = vld [vmem:[%s18333_s3 + $0x68] sm:$0xff]  ;;  %v10359_v63 = vpack.c.bf16 %v9157_v36, %v9156_v16  ;;  %v10389_v27 = vpack.c.bf16 %v6595_v34, %v6594_v49  ;;  %v18877_v34 = vld [vmem:[#allocation167_spill] sm:$0xff] }
 0x3d1   : > { %18869 = vst [vmem:[#allocation208_spill] sm:$0xff] %v14489_v56  ;;  %18870 = vst [vmem:[#allocation209_spill] sm:$0xff] %v14509_v29  ;;  %v3421_v62 = vcombine.low %v2845_v22, %v2846_v47  ;;  %v3422_v30 = vcombine.high %v2845_v22, %v2846_v47  ;;  %10358 = vmatprep.subr.bf16.mxu0 %v10357_v9  ;;  %v14522_v19 = vmax.f32 %v6300_v40, %v6301_v24  ;;  %v18874_v22 = vld [vmem:[#allocation158_spill] sm:$0xff] }
 0x3d2   : > { %18871 = vst [vmem:[#allocation210_spill] sm:$0xff] %v14513_v12  ;;  %v2649_v21 = vadd.f32 %v12531_v33, %v13921_v38  ;;  %v2651_v39 = vadd.f32 %v12533_v60, %v13933_v25  ;;  %v14528_v26 = vmax.f32 %v6314_v51, %v6315_v0  ;;  %10360 = vmatpush3.bf16.msra.mxu0 %v10359_v63 }
 0x3d3   : > { %18872 = vst [vmem:[#allocation211_spill] sm:$0xff] %v14522_v19  ;;  %v3429_v46 = vrot.slane %v3421_v62, %v12546_v8  ;;  %v3436_v4 = vrot.slane %v3422_v30, %v12546_v8  ;;  %v10391_v54 = vpack.c.bf16 %v6579_v14, %v6578_v23  ;;  %10390 = vmatprep.subr.bf16.mxu1 %v10389_v27 }
 0x3d4   : > { %18873 = vst [vmem:[#allocation212_spill] sm:$0xff] %v14528_v26  ;;  %v2777_v47 = vmax.f32 %v2649_v21, 0.0  ;;  %v2779_v16 = vmax.f32 %v2651_v39, 0.0  ;;  %v2650_v9 = vadd.f32 %v12535_v17, %v13940_v32  ;;  %v2652_v38 = vadd.f32 %v12537_v15, %v18874_v22  ;;  %v18875_v21 = vld [vmem:[#allocation161_spill] sm:$0xff]  ;;  %v18882_v26 = vld [vmem:[#allocation174_spill] sm:$0xff] }
 0x3d5   : > { %v3437_v36 = vcombine.high %v3429_v46, %v3429_v46  ;;  %v3438_v40 = vcombine.high %v3436_v4, %v3436_v4  ;;  %v14537_v25 = vrot.slane %v3429_v46, %v12546_v8  ;;  %v14540_v51 = vrot.slane %v3436_v4, %v12546_v8  ;;  %10392 = vmatpush3.bf16.msra.mxu1 %v10391_v54 }
 0x3d6   : > { %v2847_v0 = vmax.f32 %v2777_v47, %v2779_v16  ;;  %v2778_v24 = vmax.f32 %v2650_v9, 0.0  ;;  %v2780_v27 = vmax.f32 %v2652_v38, 0.0  ;;  %v2653_v39 = vadd.f32 %v12531_v33, %v18875_v21 }
 0x3d7   : > { %v14547_v49 = vrot.slane %v3437_v36, %v12546_v8  ;;  %v14550_v46 = vrot.slane %v3438_v40, %v12546_v8  ;;  %v6342_v62 = vsel %vm4773_vm3, %v14537_v25, -inf  ;;  %v14562_v54 = vsel %vm4773_vm3, %v14540_v51, -inf  ;;  %v18876_v40 = vld [vmem:[#allocation162_spill] sm:$0xff] }
 0x3d8   : > { %v2848_v63 = vmax.f32 %v2778_v24, %v2780_v27  ;;  %v6343_v23 = vrot.slane %v6342_v62, 4  ;;  %v2781_v47 = vmax.f32 %v2653_v39, 0.0  ;;  %v2655_v24 = vadd.f32 %v12533_v60, %v18876_v40 }
 0x3d9   : > { %v6356_v14 = vsel %vm4773_vm3, %v14547_v49, -inf  ;;  %v2654_v27 = vadd.f32 %v12535_v17, %v13969_v42  ;;  %v2656_v21 = vadd.f32 %v12537_v15, %v13971_v44  ;;  %v2657_v9 = vadd.f32 %v12531_v33, %v18877_v34 }
 0x3da   : > { %v3439_v22 = vcombine.low %v2847_v0, %v2848_v63  ;;  %v3440_v38 = vcombine.high %v2847_v0, %v2848_v63  ;;  %v6357_v36 = vrot.slane %v6356_v14, 4  ;;  %v14574_v30 = vmax.f32 %v6342_v62, %v6343_v23  ;;  %v18881_v0 = vld [vmem:[#allocation173_spill] sm:$0xff] }
 0x3db   : > { %v2783_v63 = vmax.f32 %v2655_v24, 0.0  ;;  %v2782_v16 = vmax.f32 %v2654_v27, 0.0  ;;  %v2784_v40 = vmax.f32 %v2656_v21, 0.0  ;;  %v2785_v21 = vmax.f32 %v2657_v9, 0.0  ;;  %v9175_v9 = vld [vmem:[%s18333_s3 + $0x1f8] sm:$0xff] }
 0x3dc   : > { %v3447_v39 = vrot.slane %v3439_v22, %v12546_v8  ;;  %v3454_v32 = vrot.slane %v3440_v38, %v12546_v8  ;;  %v14587_v62 = vmax.f32 %v6356_v14, %v6357_v36  ;;  %v18879_v38 = vld [vmem:[#allocation168_spill] sm:$0xff]  ;;  %v6596_v14 = vld [vmem:[%s18333_s3 + $0xf0] sm:$0xff]  ;;  %v2658_v34 = vadd.f32 %v12535_v17, %v18881_v0 }
 0x3dd   : > { %v2849_v23 = vmax.f32 %v2781_v47, %v2783_v63  ;;  %v2850_v22 = vmax.f32 %v2782_v16, %v2784_v40  ;;  %v2659_v33 = vadd.f32 %v12533_v60, %v18879_v38  ;;  %v6597_v60 = vld [vmem:[%s18333_s3 + $0xf8] sm:$0xff]  ;;  %v9158_v36 = vld [vmem:[%s18333_s3 + $0x170] sm:$0xff]  ;;  %v2660_v29 = vadd.f32 %v12537_v15, %v18882_v26 }
 0x3de   : > { %v3455_v4 = vcombine.high %v3447_v39, %v3447_v39  ;;  %v3456_v12 = vcombine.high %v3454_v32, %v3454_v32  ;;  %v14582_v42 = vrot.slane %v3447_v39, %v12546_v8  ;;  %v14585_v44 = vrot.slane %v3454_v32, %v12546_v8  ;;  %v9174_v32 = vld [vmem:[%s18333_s3 + $0x1f0] sm:$0xff]  ;;  %v9159_v39 = vld [vmem:[%s18333_s3 + $0x178] sm:$0xff] }
 0x3df   : > { %v3457_v47 = vcombine.low %v2849_v23, %v2850_v22  ;;  %v3458_v16 = vcombine.high %v2849_v23, %v2850_v22  ;;  %v6580_v40 = vld [vmem:[%s18333_s3 + $0x70] sm:$0xff]  ;;  %v6581_v63 = vld [vmem:[%s18333_s3 + $0x78] sm:$0xff]  ;;  %v10361_v56 = vpack.c.bf16 %v9175_v9, %v9174_v32  ;;  %v10363_v19 = vpack.c.bf16 %v9159_v39, %v9158_v36 }
 0x3e0   : > { %18878 = vst [vmem:[#allocation158_spill] sm:$0xff] %v14585_v44  ;;  %v14593_v24 = vrot.slane %v3455_v4, %v12546_v8  ;;  %v14596_v27 = vrot.slane %v3456_v12, %v12546_v8  ;;  %v14626_v23 = vsel %vm4773_vm3, %v14582_v42, -inf  ;;  %v14630_v22 = vsel %vm4773_vm3, %v14585_v44, -inf }
 0x3e1   : > { %18880 = vst [vmem:[#allocation161_spill] sm:$0xff] %v14630_v22  ;;  %v3465_v38 = vrot.slane %v3457_v47, %v12546_v8  ;;  %v3472_v12 = vrot.slane %v3458_v16, %v12546_v8  ;;  %v2787_v4 = vmax.f32 %v2659_v33, 0.0  ;;  %v10393_v47 = vpack.c.bf16 %v6597_v60, %v6596_v14  ;;  %10362 = vmatprep.subr.bf16.mxu0 %v10361_v56  ;;  %v18889_v60 = vld [vmem:[#allocation77_spill] sm:$0xff] }
 0x3e2   : > { %v2786_v1 = vmax.f32 %v2658_v34, 0.0  ;;  %v2788_v18 = vmax.f32 %v2660_v29, 0.0  ;;  %v10395_v44 = vpack.c.bf16 %v6581_v63, %v6580_v40  ;;  %10364 = vmatpush3.bf16.msra.mxu0 %v10363_v19  ;;  %v18893_v63 = vld [vmem:[#allocation116_spill] sm:$0xff]  ;;  %v18895_v29 = vcombine.high %v14537_v25, %v14537_v25 }
 0x3e3   : > { %v3473_v7 = vcombine.high %v3465_v38, %v3465_v38  ;;  %v3474_v16 = vcombine.high %v3472_v12, %v3472_v12  ;;  %v14645_v33 = vrot.slane %v3465_v38, %v12546_v8  ;;  %v14648_v17 = vrot.slane %v3472_v12, %v12546_v8  ;;  %10394 = vmatprep.subr.bf16.mxu1 %v10393_v47 }
 0x3e4   : > { %v2851_v0 = vmax.f32 %v2785_v21, %v2787_v4  ;;  %v2852_v34 = vmax.f32 %v2786_v1, %v2788_v18  ;;  %10396 = vmatpush3.bf16.msra.mxu1 %v10395_v44  ;;  %v18890_v4 = vrot.slane %v18889_v60, 1  ;;  %v18891_v1 = vld [vmem:[#allocation148_spill] sm:$0xff]  ;;  %v5458_v40 = vrot.slane %v18893_v63, 1 }
 0x3e5   : > { %18883 = vst [vmem:[#allocation162_spill] sm:$0xff] %v14645_v33  ;;  %18884 = vst [vmem:[#allocation167_spill] sm:$0xff] %v14648_v17  ;;  %v14653_v26 = vrot.slane %v3473_v7, %v12546_v8  ;;  %v14656_v32 = vrot.slane %v3474_v16, %v12546_v8  ;;  %v14664_v56 = vsel %vm4773_vm3, %v14645_v33, -inf  ;;  %v14672_v19 = vsel %vm4773_vm3, %v14648_v17, -inf  ;;  %v15111_v17 = vld [vmem:[%s18333_s3 + $0x2e0] sm:$0xff] }
 0x3e6   : > { %18887 = vst [vmem:[#allocation174_spill] sm:$0xff] %v14664_v56  ;;  %18888 = vst [vmem:[#allocation213_spill] sm:$0xff] %v14672_v19  ;;  %v5235_v12 = vmax.f32 %v18889_v60, %v18890_v4  ;;  %v3475_v36 = vcombine.low %v2851_v0, %v2852_v34  ;;  %v3476_v39 = vcombine.high %v2851_v0, %v2852_v34  ;;  %v18892_v18 = vrot.slane %v18891_v1, 2  ;;  %v15082_v19 = vld [vmem:[%s18333_s3 + $0x258] sm:$0xff]  ;;  %v15116_v56 = vld [vmem:[%s18333_s3 + $0x2e8] sm:$0xff] }
 0x3e7   : > { %18885 = vst [vmem:[#allocation168_spill] sm:$0xff] %v14653_v26  ;;  %18886 = vst [vmem:[#allocation173_spill] sm:$0xff] %v14656_v32  ;;  %v5904_v38 = vrot.slane %v14125_v2, 2  ;;  %v18894_v47 = vrot.slane %v14331_v61, 4  ;;  %v6349_v60 = vsel %vm4773_vm3, %v18895_v29, -inf  ;;  %v5459_v29 = vmax.f32 %v18893_v63, %v5458_v40  ;;  %v9225_v40 = vld [vmem:[%s18333_s3 + $0x388] sm:$0xff] }
 0x3e8   : > { %v5681_v44 = vmax.f32 %v18891_v1, %v18892_v18  ;;  %v3483_v0 = vrot.slane %v3475_v36, %v12546_v8  ;;  %v3490_v34 = vrot.slane %v3476_v39, %v12546_v8  ;;  %v6350_v21 = vrot.slane %v6349_v60, 4  ;;  %v15138_v32 = vld [vmem:[%s18333_s3 + $0x3f0] sm:$0xff] }
 0x3e9   : > { %v6127_v16 = vmax.f32 %v14331_v61, %v18894_v47  ;;  %v5905_v18 = vmax.f32 %v14125_v2, %v5904_v38 }
 0x3ea   : > { %v5682_v1 = vrot.slane %v5681_v44, 1  ;;  %v3491_v14 = vcombine.high %v3483_v0, %v3483_v0  ;;  %v3492_v15 = vcombine.high %v3490_v34, %v3490_v34  ;;  %v14695_v61 = vrot.slane %v3483_v0, %v12546_v8 }
 0x3eb   : > { %v6128_v9 = vrot.slane %v6127_v16, 2  ;;  %v14698_v25 = vrot.slane %v3490_v34, %v12546_v8  ;;  %v5906_v47 = vrot.slane %v5905_v18, 1  ;;  %v6351_v4 = vmax.f32 %v6349_v60, %v6350_v21  ;;  %v18902_v34 = vld [vmem:[#allocation47_spill] sm:$0xff] }
 0x3ec   : > { %18896 = vst [vmem:[#allocation77_spill] sm:$0xff] %v14695_v61  ;;  %v14702_v39 = vrot.slane %v3491_v14, %v12546_v8  ;;  %v14705_v2 = vrot.slane %v3492_v15, %v12546_v8  ;;  %v5683_v38 = vmax.f32 %v5681_v44, %v5682_v1  ;;  %v14713_v63 = vsel %vm4773_vm3, %v14695_v61, -inf  ;;  %v9224_v44 = vld [vmem:[%s18333_s3 + $0x380] sm:$0xff] }
 0x3ed   : > { %18897 = vst [vmem:[#allocation148_spill] sm:$0xff] %v14698_v25  ;;  %v6129_v36 = vmax.f32 %v6127_v16, %v6128_v9  ;;  %18900 = vst [vmem:[#allocation215_spill] sm:$0xff] %v14713_v63  ;;  %v5907_v21 = vmax.f32 %v5905_v18, %v5906_v47  ;;  %v6352_v60 = vrot.slane %v6351_v4, 2  ;;  %v18901_v1 = vld [vmem:[#allocation7_spill] sm:$0xff]  ;;  %v9209_v47 = vld [vmem:[%s18333_s3 + $0x308] sm:$0xff]  ;;  %v18903_v0 = vrot.slane %v14132_v52, 1 }
 0x3ee   : > { %18898 = vst [vmem:[#allocation116_spill] sm:$0xff] %v14702_v39  ;;  %18899 = vst [vmem:[#allocation214_spill] sm:$0xff] %v14705_v2  ;;  %v6763_v15 = vsel %vm6647_vm4, %v18902_v34, %v18901_v1  ;;  %v9208_v18 = vld [vmem:[%s18333_s3 + $0x300] sm:$0xff]  ;;  %v6123_v34 = vrot.slane %v14391_v59, 1  ;;  %v18904_v1 = vrot.slane %v14574_v30, 2  ;;  %v18905_v25 = vld [vmem:[#allocation6_spill] sm:$0xff] }
 0x3ef   : > { %v6130_v9 = vrot.slane %v6129_v36, 1  ;;  %v6353_v8 = vmax.f32 %v6351_v4, %v6352_v60  ;;  %v5900_v14 = vmax.f32 %v14132_v52, %v18903_v0  ;;  %v18906_v63 = vld [vmem:[#allocation44_spill] sm:$0xff]  ;;  %v10431_v52 = vpack.c.bf16 %v9209_v47, %v9208_v18  ;;  %v18908_v60 = vld [vmem:[#allocation117_spill] sm:$0xff] }
 0x3f0   : > { %v6346_v28 = vmax.f32 %v14574_v30, %v18904_v1  ;;  %v6756_v2 = vsel %vm6647_vm4, %v18906_v63, %v18905_v25  ;;  %v6124_v0 = vmax.f32 %v14391_v59, %v6123_v34  ;;  %v18909_v25 = vld [vmem:[#allocation92_spill] sm:$0xff]  ;;  %v18914_v34 = vld [vmem:[#allocation82_spill] sm:$0xff] }
 0x3f1   : > { %v6131_v16 = vmax.f32 %v6129_v36, %v6130_v9  ;;  %v6764_v36 = vsel %vm6649_vm5, %v5235_v12, %v6763_v15  ;;  %v10429_v9 = vpack.c.bf16 %v9225_v40, %v9224_v44  ;;  %v6354_v4 = vrot.slane %v6353_v8, 1  ;;  %v18907_v15 = vld [vmem:[#allocation21_spill] sm:$0xff] }
 0x3f2   : > { %v6765_v7 = vsel %vm6651_vm6, %v5459_v29, %v6764_v36  ;;  %v6757_v44 = vsel %vm6649_vm5, %v18907_v15, %v6756_v2  ;;  %v6347_v40 = vrot.slane %v6346_v28, 1 }
 0x3f3   : > { %v6766_v12 = vsel %vm6653_vm7, %v5683_v38, %v6765_v7  ;;  %10430 = vmatprep.subr.bf16.mxu1 %v10429_v9  ;;  %v6758_v30 = vsel %vm6651_vm6, %v18908_v60, %v6757_v44  ;;  %v6355_v36 = vmax.f32 %v6353_v8, %v6354_v4  ;;  %v18910_v7 = vld [vmem:[#allocation5_spill] sm:$0xff]  ;;  %v18915_v4 = vld [vmem:[#allocation110_spill] sm:$0xff] }
 0x3f4   : > { %v6767_v29 = vsel %vm6655_vm8, %v5907_v21, %v6766_v12  ;;  %v6759_v63 = vsel %vm6653_vm7, %v18909_v25, %v6758_v30  ;;  %v18911_v38 = vrot.slane %v18910_v7, 1  ;;  %v6348_v2 = vmax.f32 %v6346_v28, %v6347_v40  ;;  %v18912_v21 = vld [vmem:[#allocation45_spill] sm:$0xff]  ;;  %v9192_v28 = vld [vmem:[%s18333_s3 + $0x280] sm:$0xff] }
 0x3f5   : > { %v6768_v1 = vsel %vm6657_vm9, %v6131_v16, %v6767_v29  ;;  %v6760_v18 = vsel %vm6655_vm8, %v5900_v14, %v6759_v63  ;;  %v18913_v47 = vrot.slane %v18912_v21, 1  ;;  %v5248_v12 = vrot.slane %v18914_v34, 1  ;;  %v18917_v29 = vld [vmem:[#allocation153_spill] sm:$0xff]  ;;  %v9193_v14 = vld [vmem:[%s18333_s3 + $0x288] sm:$0xff] }
 0x3f6   : > { %v4801_v9 = vmax.f32 %v18910_v7, %v18911_v38  ;;  %v6769_v8 = vsel %vm6659_vm10, %v6355_v36, %v6768_v1  ;;  %v6761_v16 = vsel %vm6657_vm9, %v6124_v0, %v6760_v18  ;;  %v18916_v15 = vrot.slane %v18915_v4, 2 }
 0x3f7   : > { %v5025_v59 = vmax.f32 %v18912_v21, %v18913_v47  ;;  %v5694_v60 = vrot.slane %v18917_v29, 2  ;;  %6836 = vmatprep.mubr.f32.mxu1 %v6769_v8  ;;  %v6762_v40 = vsel %vm6659_vm10, %v6348_v2, %v6761_v16  ;;  %v5249_v30 = vmax.f32 %v18914_v34, %v5248_v12 }
 0x3f8   : > { %v5471_v44 = vmax.f32 %v18915_v4, %v18916_v15  ;;  %v18918_v0 = vrot.slane %v14117_v50, 4  ;;  %v18919_v1 = vcombine.high %v14312_v13, %v14312_v13  ;;  %6837 = vmatmul.mubr.f32.vlgmr.msra.gmra.mrb[64].mxu1 %v6762_v40  ;;  %v18920_v18 = vcombine.high %v14547_v49, %v14547_v49  ;;  %v18923_v40 = vld [vmem:[#allocation49_spill] sm:$0xff] }
 0x3f9   : > { %v5695_v7 = vmax.f32 %v18917_v29, %v5694_v60  ;;  %10432 = vmatpush3.bf16.msra.mxu1 %v10431_v52  ;;  %v10397_v34 = vpack.c.bf16 %v9193_v14, %v9192_v28  ;;  %v18921_v29 = vld [vmem:[#allocation8_spill] sm:$0xff] }
 0x3fa   : > { %v5917_v36 = vmax.f32 %v14117_v50, %v18918_v0  ;;  %v6139_v25 = vsel %vm4773_vm3, %v18919_v1, -inf  ;;  %v5472_v63 = vrot.slane %v5471_v44, 1  ;;  %v6363_v2 = vsel %vm4773_vm3, %v18920_v18, -inf }
 0x3fb   : > { %v6140_v38 = vrot.slane %v6139_v25, 4  ;;  %v6364_v47 = vrot.slane %v6363_v2, 4  ;;  %v6661_v50 = vsel %vm6647_vm4, %v5025_v59, %v4801_v9  ;;  %v5696_v13 = vrot.slane %v5695_v7, 1  ;;  %10398 = vmatprep.subr.bf16.mxu0 %v10397_v34  ;;  %v18925_v59 = vld [vmem:[#allocation87_spill] sm:$0xff] }
 0x3fc   : > { %v5918_v21 = vrot.slane %v5917_v36, 2  ;;  %v5473_v12 = vmax.f32 %v5471_v44, %v5472_v63  ;;  %v6662_v16 = vsel %vm6649_vm5, %v5249_v30, %v6661_v50  ;;  %v18922_v60 = vrot.slane %v18921_v29, 1  ;;  %v18926_v30 = vld [vmem:[#allocation113_spill] sm:$0xff] }
 0x3fd   : > { %v6141_v8 = vmax.f32 %v6139_v25, %v6140_v38  ;;  %v6365_v15 = vmax.f32 %v6363_v2, %v6364_v47  ;;  %v18924_v0 = vrot.slane %v18923_v40, 1  ;;  %v5697_v1 = vmax.f32 %v5695_v7, %v5696_v13  ;;  %v18928_v63 = vld [vmem:[#allocation93_spill] sm:$0xff] }
 0x3fe   : > { %v5919_v4 = vmax.f32 %v5917_v36, %v5918_v21  ;;  %v4829_v49 = vmax.f32 %v18921_v29, %v18922_v60  ;;  %v6663_v9 = vsel %vm6651_vm6, %v5473_v12, %v6662_v16  ;;  %v5276_v44 = vrot.slane %v18925_v59, 1 }
 0x3ff   : > { %v5053_v52 = vmax.f32 %v18923_v40, %v18924_v0  ;;  %v6142_v18 = vrot.slane %v6141_v8, 2  ;;  %v6366_v14 = vrot.slane %v6365_v15, 2  ;;  %v18927_v36 = vrot.slane %v18926_v30, 2 }
 0x400   : > { %v5920_v28 = vrot.slane %v5919_v4, 1  ;;  %v5722_v38 = vrot.slane %v18928_v63, 2  ;;  %v6664_v21 = vsel %vm6653_vm7, %v5697_v1, %v6663_v9  ;;  %v5277_v47 = vmax.f32 %v18925_v59, %v5276_v44 }
 0x401   : > { %v5499_v25 = vmax.f32 %v18926_v30, %v18927_v36  ;;  %v6143_v2 = vmax.f32 %v6141_v8, %v6142_v18  ;;  %v18929_v7 = vrot.slane %v14129_v11, 4  ;;  %v6367_v12 = vmax.f32 %v6365_v15, %v6366_v14  ;;  %v18932_v36 = vld [vmem:[#allocation154_spill] sm:$0xff] }
 0x402   : > { %v5921_v34 = vmax.f32 %v5919_v4, %v5920_v28  ;;  %v5723_v16 = vmax.f32 %v18928_v63, %v5722_v38  ;;  %v18930_v40 = vcombine.high %v14315_v55, %v14315_v55  ;;  %v18931_v0 = vcombine.high %v14550_v46, %v14550_v46 }
 0x403   : > { %v5945_v50 = vmax.f32 %v14129_v11, %v18929_v7  ;;  %v5500_v13 = vrot.slane %v5499_v25, 1  ;;  %v6144_v29 = vrot.slane %v6143_v2, 1  ;;  %v6368_v18 = vrot.slane %v6367_v12, 1 }
 0x404   : > { %v6167_v8 = vsel %vm4773_vm3, %v18930_v40, -inf  ;;  %v6391_v1 = vsel %vm4773_vm3, %v18931_v0, -inf  ;;  %v6665_v11 = vsel %vm6655_vm8, %v5921_v34, %v6664_v21  ;;  %v5724_v15 = vrot.slane %v5723_v16, 1 }
 0x405   : > { %v5946_v60 = vrot.slane %v5945_v50, 2  ;;  %v5501_v4 = vmax.f32 %v5499_v25, %v5500_v13  ;;  %v6145_v9 = vmax.f32 %v6143_v2, %v6144_v29  ;;  %v6168_v44 = vrot.slane %v6167_v8, 4 }
 0x406   : > { %v6392_v28 = vrot.slane %v6391_v1, 4  ;;  %v6369_v14 = vmax.f32 %v6367_v12, %v6368_v18  ;;  %v5725_v30 = vmax.f32 %v5723_v16, %v5724_v15  ;;  %v7034_v55 = vsel %vm6647_vm4, %v5053_v52, %v4829_v49  ;;  %v14835_v16 = vld [vmem:[%s18333_s3 + $0x200] sm:$0xff]  ;;  %v18936_v15 = vld [vmem:[#allocation48_spill] sm:$0xff] }
 0x407   : > { %v5947_v59 = vmax.f32 %v5945_v50, %v5946_v60  ;;  %v18933_v63 = vrot.slane %v18932_v36, 1  ;;  %v6666_v7 = vsel %vm6657_vm9, %v6145_v9, %v6665_v11  ;;  %v6169_v0 = vmax.f32 %v6167_v8, %v6168_v44 }
 0x408   : > { %v6393_v61 = vmax.f32 %v6391_v1, %v6392_v28  ;;  %v6667_v25 = vsel %vm6659_vm10, %v6369_v14, %v6666_v7  ;;  %v7035_v2 = vsel %vm6649_vm5, %v5277_v47, %v7034_v55  ;;  %v5913_v21 = vrot.slane %v14152_v37, 1  ;;  %v14840_v47 = vld [vmem:[%s18333_s3 + $0x208] sm:$0xff]  ;;  %v18937_v28 = vld [vmem:[#allocation22_spill] sm:$0xff] }
 0x409   : > { %v5690_v38 = vmax.f32 %v18932_v36, %v18933_v63  ;;  %v5948_v40 = vrot.slane %v5947_v59, 1  ;;  %v18934_v50 = vrot.slane %v14356_v20, 2  ;;  %6734 = vmatprep.mubr.f32.mxu0 %v6667_v25  ;;  %v6170_v52 = vrot.slane %v6169_v0, 2  ;;  %v18938_v36 = vld [vmem:[#allocation119_spill] sm:$0xff] }
 0x40a   : > { %v6394_v12 = vrot.slane %v6393_v61, 2  ;;  %v7036_v13 = vsel %vm6651_vm6, %v5501_v4, %v7035_v2  ;;  %v6359_v8 = vrot.slane %v14587_v62, 2  ;;  %v18935_v4 = vld [vmem:[#allocation14_spill] sm:$0xff]  ;;  %v18939_v63 = vld [vmem:[#allocation83_spill] sm:$0xff]  ;;  %v18941_v2 = vld [vmem:[#allocation120_spill] sm:$0xff] }
 0x40b   : > { %v6136_v34 = vmax.f32 %v14356_v20, %v18934_v50  ;;  %v5949_v49 = vmax.f32 %v5947_v59, %v5948_v40  ;;  %v7037_v29 = vsel %vm6653_vm7, %v5725_v30, %v7036_v13  ;;  %v5914_v20 = vmax.f32 %v14152_v37, %v5913_v21  ;;  %v18942_v21 = vld [vmem:[#allocation152_spill] sm:$0xff] }
 0x40c   : > { %v6171_v1 = vmax.f32 %v6169_v0, %v6170_v52  ;;  %v6395_v18 = vmax.f32 %v6393_v61, %v6394_v12  ;;  %v6648_v9 = vsel %vm6647_vm4, %v18936_v15, %v18935_v4  ;;  %v6360_v44 = vmax.f32 %v14587_v62, %v6359_v8  ;;  %v9227_v52 = vld [vmem:[%s18333_s3 + $0x398] sm:$0xff]  ;;  %v14889_v15 = vld [vmem:[%s18333_s3 + $0x210] sm:$0xff] }
 0x40d   : > { %v6137_v60 = vrot.slane %v6136_v34, 1  ;;  %v7038_v11 = vsel %vm6655_vm8, %v5949_v49, %v7037_v29  ;;  %v6650_v14 = vsel %vm6649_vm5, %v18937_v28, %v6648_v9  ;;  %v10399_v37 = vpack.c.bf16 %v14840_v47, %v14835_v16  ;;  %v9226_v49 = vld [vmem:[%s18333_s3 + $0x390] sm:$0xff]  ;;  %v9211_v29 = vld [vmem:[%s18333_s3 + $0x318] sm:$0xff] }
 0x40e   : > { %v6172_v30 = vrot.slane %v6171_v1, 1  ;;  %v6396_v55 = vrot.slane %v6395_v18, 1  ;;  %v6652_v61 = vsel %vm6651_vm6, %v18938_v36, %v6650_v14  ;;  %v18940_v7 = vrot.slane %v18939_v63, 1  ;;  %v9210_v47 = vld [vmem:[%s18333_s3 + $0x310] sm:$0xff]  ;;  %v9195_v4 = vld [vmem:[%s18333_s3 + $0x298] sm:$0xff]  ;;  %v14908_v36 = vld [vmem:[%s18333_s3 + $0x3a0] sm:$0xff] }
 0x40f   : > { %v6138_v59 = vmax.f32 %v6136_v34, %v6137_v60  ;;  %v6361_v0 = vrot.slane %v6360_v44, 1  ;;  %v6654_v25 = vsel %vm6653_vm7, %v5690_v38, %v6652_v61  ;;  %v5486_v62 = vrot.slane %v18941_v2, 1  ;;  %v9194_v60 = vld [vmem:[%s18333_s3 + $0x290] sm:$0xff]  ;;  %v14894_v9 = vld [vmem:[%s18333_s3 + $0x218] sm:$0xff] }
 0x410   : > { %v5263_v40 = vmax.f32 %v18939_v63, %v18940_v7  ;;  %v18943_v50 = vrot.slane %v18942_v21, 2  ;;  %v6173_v12 = vmax.f32 %v6171_v1, %v6172_v30  ;;  %v6397_v13 = vmax.f32 %v6395_v18, %v6396_v55 }
 0x411   : > { %v6656_v16 = vsel %vm6655_vm8, %v5914_v20, %v6654_v25  ;;  %v5932_v38 = vrot.slane %v14143_v45, 2  ;;  %v6362_v8 = vmax.f32 %v6360_v44, %v6361_v0  ;;  %v5487_v18 = vmax.f32 %v18941_v2, %v5486_v62  ;;  %v14930_v0 = vld [vmem:[%s18333_s3 + $0x2a0] sm:$0xff]  ;;  %v14935_v25 = vld [vmem:[%s18333_s3 + $0x2a8] sm:$0xff] }
 0x412   : > { %v5709_v34 = vmax.f32 %v18942_v21, %v18943_v50  ;;  %v6658_v1 = vsel %vm6657_vm9, %v6138_v59, %v6656_v16  ;;  %v7039_v44 = vsel %vm6657_vm9, %v6173_v12, %v7038_v11  ;;  %v18944_v28 = vrot.slane %v14336_v35, 4  ;;  %v14913_v11 = vld [vmem:[%s18333_s3 + $0x3a8] sm:$0xff]  ;;  %v14940_v2 = vld [vmem:[%s18333_s3 + $0x220] sm:$0xff] }
 0x413   : > { %v5933_v59 = vmax.f32 %v14143_v45, %v5932_v38  ;;  %v18945_v30 = vcombine.high %v14540_v51, %v14540_v51  ;;  %v14918_v45 = vld [vmem:[%s18333_s3 + $0x320] sm:$0xff]  ;;  %v7040_v51 = vsel %vm6659_vm10, %v6397_v13, %v7039_v44  ;;  %v6660_v61 = vsel %vm6659_vm10, %v6362_v8, %v6658_v1  ;;  %v14945_v62 = vld [vmem:[%s18333_s3 + $0x228] sm:$0xff]  ;;  %v14953_v38 = vld [vmem:[%s18333_s3 + $0x3b0] sm:$0xff] }
 0x414   : > { %v5710_v20 = vrot.slane %v5709_v34, 1  ;;  %v6155_v14 = vmax.f32 %v14336_v35, %v18944_v28  ;;  %v14923_v35 = vld [vmem:[%s18333_s3 + $0x328] sm:$0xff]  ;;  %7107 = vmatprep.mubr.f32.mxu1 %v7040_v51  ;;  %6735 = vmatmul.mubr.f32.vlgmr.msra.gmra.mrb[64].mxu0 %v6660_v61  ;;  %v10433_v16 = vpack.c.bf16 %v9227_v52, %v9226_v49  ;;  %v14958_v8 = vld [vmem:[%s18333_s3 + $0x3b8] sm:$0xff]  ;;  %v14963_v1 = vld [vmem:[%s18333_s3 + $0x330] sm:$0xff]  ;;  %v10435_v44 = vpack.c.bf16 %v9211_v29, %v9210_v47 }
 0x415   : > { %v6377_v55 = vsel %vm4773_vm3, %v18945_v30, -inf  ;;  %v5934_v21 = vrot.slane %v5933_v59, 1  ;;  %v18947_v12 = vld [vmem:[#allocation52_spill] sm:$0xff]  ;;  %10400 = vmatpush3.bf16.msra.mxu0 %v10399_v37  ;;  %v10401_v28 = vpack.c.bf16 %v9195_v4, %v9194_v60  ;;  %v14974_v30 = vld [vmem:[%s18333_s3 + $0x2b0] sm:$0xff]  ;;  %v14979_v51 = vld [vmem:[%s18333_s3 + $0x2b8] sm:$0xff] }
 0x416   : > { %v5711_v63 = vmax.f32 %v5709_v34, %v5710_v20  ;;  %v6378_v7 = vrot.slane %v6377_v55, 4  ;;  %v6156_v50 = vrot.slane %v6155_v14, 2  ;;  %v18946_v34 = vld [vmem:[#allocation15_spill] sm:$0xff]  ;;  %v14968_v20 = vld [vmem:[%s18333_s3 + $0x338] sm:$0xff]  ;;  %v14984_v61 = vld [vmem:[%s18333_s3 + $0x230] sm:$0xff]  ;;  %10434 = vmatprep.subr.bf16.mxu1 %v10433_v16 }
 0x417   : > { %v6898_v13 = vsel %vm6647_vm4, %v18947_v12, %v18946_v34  ;;  %v14989_v37 = vld [vmem:[%s18333_s3 + $0x238] sm:$0xff]  ;;  %v14999_v47 = vld [vmem:[%s18333_s3 + $0x3c8] sm:$0xff]  ;;  %v5935_v29 = vmax.f32 %v5933_v59, %v5934_v21  ;;  %v15017_v59 = vld [vmem:[%s18333_s3 + $0x2c0] sm:$0xff]  ;;  %10436 = vmatpush3.bf16.msra.mxu1 %v10435_v44  ;;  %10402 = vmatprep.subr.bf16.mxu0 %v10401_v28  ;;  %v10439_v12 = vpack.c.bf16 %v14923_v35, %v14918_v45 }
 0x418   : > { %v6379_v49 = vmax.f32 %v6377_v55, %v6378_v7  ;;  %v6899_v52 = vsel %vm6649_vm5, %v5263_v40, %v6898_v13  ;;  %v14994_v40 = vld [vmem:[%s18333_s3 + $0x3c0] sm:$0xff]  ;;  %v6157_v60 = vmax.f32 %v6155_v14, %v6156_v50  ;;  %v10403_v55 = vpack.c.bf16 %v14894_v9, %v14889_v15  ;;  %v15012_v34 = vld [vmem:[%s18333_s3 + $0x348] sm:$0xff]  ;;  %v15042_v13 = vld [vmem:[%s18333_s3 + $0x3d0] sm:$0xff] }
 0x419   : > { %v6900_v4 = vsel %vm6651_vm6, %v5487_v18, %v6899_v52  ;;  %v15007_v7 = vld [vmem:[%s18333_s3 + $0x340] sm:$0xff]  ;;  %v15022_v18 = vld [vmem:[%s18333_s3 + $0x2c8] sm:$0xff]  ;;  %v10437_v50 = vpack.c.bf16 %v14913_v11, %v14908_v36  ;;  %v15047_v16 = vld [vmem:[%s18333_s3 + $0x3d8] sm:$0xff]  ;;  %v10405_v44 = vpack.c.bf16 %v14935_v25, %v14930_v0  ;;  %v10407_v28 = vpack.c.bf16 %v14945_v62, %v14940_v2 }
 0x41a   : > { %v15027_v15 = vld [vmem:[%s18333_s3 + $0x240] sm:$0xff]  ;;  %v15032_v9 = vld [vmem:[%s18333_s3 + $0x248] sm:$0xff]  ;;  %v6380_v14 = vrot.slane %v6379_v49, 2  ;;  %v6901_v21 = vsel %vm6653_vm7, %v5711_v63, %v6900_v4  ;;  %v15052_v63 = vld [vmem:[%s18333_s3 + $0x350] sm:$0xff]  ;;  %v6158_v35 = vrot.slane %v6157_v60, 1  ;;  %10404 = vmatpush3.bf16.msra.mxu0 %v10403_v55  ;;  %v10443_v39 = vpack.c.bf16 %v14968_v20, %v14963_v1 }
 0x41b   : > { %v15057_v36 = vld [vmem:[%s18333_s3 + $0x358] sm:$0xff]  ;;  %v15062_v11 = vld [vmem:[%s18333_s3 + $0x2d0] sm:$0xff]  ;;  %v6902_v52 = vsel %vm6655_vm8, %v5935_v29, %v6901_v21  ;;  %v15087_v29 = vld [vmem:[%s18333_s3 + $0x3e0] sm:$0xff]  ;;  %10438 = vmatprep.subr.bf16.mxu1 %v10437_v50  ;;  %v10441_v21 = vpack.c.bf16 %v14958_v8, %v14953_v38  ;;  %10406 = vmatprep.subr.bf16.mxu0 %v10405_v44  ;;  %v10409_v1 = vpack.c.bf16 %v14979_v51, %v14974_v30 }
 0x41c   : > { %v15067_v45 = vld [vmem:[%s18333_s3 + $0x2d8] sm:$0xff]  ;;  %v15077_v4 = vld [vmem:[%s18333_s3 + $0x250] sm:$0xff]  ;;  %v15092_v0 = vld [vmem:[%s18333_s3 + $0x3e8] sm:$0xff]  ;;  %v6381_v62 = vmax.f32 %v6379_v49, %v6380_v14  ;;  %v6159_v8 = vmax.f32 %v6157_v60, %v6158_v35  ;;  %v10411_v20 = vpack.c.bf16 %v14989_v37, %v14984_v61  ;;  %v10445_v14 = vpack.c.bf16 %v14999_v47, %v14994_v40  ;;  %10440 = vmatpush3.bf16.msra.mxu1 %v10439_v12 }
 0x41d   : > { %v15097_v25 = vld [vmem:[%s18333_s3 + $0x360] sm:$0xff]  ;;  %v15102_v2 = vld [vmem:[%s18333_s3 + $0x368] sm:$0xff]  ;;  %v15143_v30 = vld [vmem:[%s18333_s3 + $0x3f8] sm:$0xff]  ;;  %v10447_v61 = vpack.c.bf16 %v15012_v34, %v15007_v7  ;;  %v10413_v37 = vpack.c.bf16 %v15022_v18, %v15017_v59  ;;  %v10415_v40 = vpack.c.bf16 %v15032_v9, %v15027_v15  ;;  %10442 = vmatprep.subr.bf16.mxu1 %v10441_v21  ;;  %v10449_v59 = vpack.c.bf16 %v15047_v16, %v15042_v13 }
 0x41e   : > { %v15121_v49 = vld [vmem:[%s18333_s3 + $0x260] sm:$0xff]  ;;  %v18948_v55 = vld [vmem:[#allocation156_spill] sm:$0xff]  ;;  %v6382_v51 = vrot.slane %v6381_v62, 1  ;;  %v15154_v47 = vld [vmem:[%s18333_s3 + $0x370] sm:$0xff]  ;;  %v6903_v34 = vsel %vm6657_vm9, %v6159_v8, %v6902_v52  ;;  %v10451_v18 = vpack.c.bf16 %v15057_v36, %v15052_v63  ;;  %v10417_v15 = vpack.c.bf16 %v15067_v45, %v15062_v11  ;;  %10408 = vmatpush3.bf16.msra.mxu0 %v10407_v28 }
 0x41f   : > { %v5717_v38 = vrot.slane %v18948_v55, 1  ;;  %v15133_v50 = vld [vmem:[%s18333_s3 + $0x268] sm:$0xff]  ;;  %v15159_v60 = vld [vmem:[%s18333_s3 + $0x378] sm:$0xff]  ;;  %v15164_v7 = vld [vmem:[%s18333_s3 + $0x2f0] sm:$0xff]  ;;  %v10453_v36 = vpack.c.bf16 %v15092_v0, %v15087_v29  ;;  %10410 = vmatprep.subr.bf16.mxu0 %v10409_v1  ;;  %v18951_v11 = vrot.slane %v14134_v58, 2 }
 0x420   : > { %v15176_v9 = vld [vmem:[%s18333_s3 + $0x2f8] sm:$0xff]  ;;  %v15181_v12 = vld [vmem:[%s18333_s3 + $0x270] sm:$0xff]  ;;  %v6383_v16 = vmax.f32 %v6381_v62, %v6382_v51  ;;  %v15197_v45 = vld [vmem:[%s18333_s3 + $0x580] sm:$0xff]  ;;  %10444 = vmatpush3.bf16.msra.mxu1 %v10443_v39  ;;  %v6163_v39 = vrot.slane %v14377_v48, 2 }
 0x421   : > { %v15186_v13 = vld [vmem:[%s18333_s3 + $0x278] sm:$0xff]  ;;  %v15210_v29 = vld [vmem:[%s18333_s3 + $0x588] sm:$0xff]  ;;  %v15215_v0 = vld [vmem:[%s18333_s3 + $0x500] sm:$0xff]  ;;  %10446 = vmatprep.subr.bf16.mxu1 %v10445_v14  ;;  %v5718_v44 = vmax.f32 %v18948_v55, %v5717_v38  ;;  %v5940_v35 = vmax.f32 %v14134_v58, %v18951_v11 }
 0x422   : > { %v15220_v62 = vld [vmem:[%s18333_s3 + $0x508] sm:$0xff]  ;;  %v6904_v21 = vsel %vm6659_vm10, %v6383_v16, %v6903_v34  ;;  %v18949_v51 = vld [vmem:[#allocation118_spill] sm:$0xff]  ;;  %v6384_v34 = vsel %vm4773_vm3, %v14550_v46, -inf  ;;  %10412 = vmatpush3.bf16.msra.mxu0 %v10411_v20  ;;  %v18953_v8 = vld [vmem:[#allocation53_spill] sm:$0xff]  ;;  %v6164_v58 = vmax.f32 %v14377_v48, %v6163_v39 }
 0x423   : > { %v18950_v28 = vrot.slane %v18949_v51, 1  ;;  %6971 = vmatprep.mubr.f32.mxu0 %v6904_v21  ;;  %v6385_v16 = vrot.slane %v6384_v34, 4  ;;  %v18952_v1 = vld [vmem:[#allocation16_spill] sm:$0xff]  ;;  %10414 = vmatprep.subr.bf16.mxu0 %v10413_v37  ;;  %v5941_v38 = vrot.slane %v5940_v35, 1  ;;  %v18955_v46 = vld [vmem:[#allocation17_spill] sm:$0xff]  ;;  %v18959_v55 = vld [vmem:[#allocation90_spill] sm:$0xff] }
 0x424   : > { %v7027_v63 = vsel %vm6647_vm4, %v18953_v8, %v18952_v1  ;;  %v18954_v11 = vld [vmem:[#allocation88_spill] sm:$0xff]  ;;  %v18956_v20 = vrot.slane %v18955_v46, 1  ;;  %10448 = vmatpush3.bf16.msra.mxu1 %v10447_v61  ;;  %v18957_v1 = vld [vmem:[#allocation55_spill] sm:$0xff]  ;;  %v5304_v37 = vrot.slane %v18959_v55, 1  ;;  %v6165_v48 = vrot.slane %v6164_v58, 1 }
 0x425   : > { %v5494_v52 = vmax.f32 %v18949_v51, %v18950_v28  ;;  %v7028_v28 = vsel %vm6649_vm5, %v18954_v11, %v7027_v63  ;;  %v6386_v51 = vmax.f32 %v6384_v34, %v6385_v16  ;;  %v18958_v14 = vrot.slane %v18957_v1, 1  ;;  %10450 = vmatprep.subr.bf16.mxu1 %v10449_v59  ;;  %v18960_v63 = vld [vmem:[#allocation9_spill] sm:$0xff] }
 0x426   : > { %v4857_v21 = vmax.f32 %v18955_v46, %v18956_v20  ;;  %v5942_v22 = vmax.f32 %v5940_v35, %v5941_v38  ;;  %v18961_v11 = vrot.slane %v18960_v63, 2  ;;  %10416 = vmatpush3.bf16.msra.mxu0 %v10415_v40  ;;  %v5305_v34 = vmax.f32 %v18959_v55, %v5304_v37 }
 0x427   : > { %v7029_v8 = vsel %vm6651_vm6, %v5494_v52, %v7028_v28  ;;  %v5081_v33 = vmax.f32 %v18957_v1, %v18958_v14  ;;  %v6387_v61 = vrot.slane %v6386_v51, 2  ;;  %v18962_v52 = vld [vmem:[#allocation159_spill] sm:$0xff]  ;;  %v18963_v28 = vrot.slane %v14149_v3, 4  ;;  %10418 = vmatprep.subr.bf16.mxu0 %v10417_v15 }
 0x428   : > { %v7030_v39 = vsel %vm6653_vm7, %v5718_v44, %v7029_v8  ;;  %v5527_v26 = vmax.f32 %v18960_v63, %v18961_v11  ;;  %v5750_v16 = vrot.slane %v18962_v52, 2  ;;  %v6166_v59 = vmax.f32 %v6164_v58, %v6165_v48  ;;  %10452 = vmatpush3.bf16.msra.mxu1 %v10451_v18  ;;  %v18968_v63 = vld [vmem:[#allocation155_spill] sm:$0xff] }
 0x429   : > { %v5973_v14 = vmax.f32 %v14149_v3, %v18963_v28  ;;  %v7031_v35 = vsel %vm6655_vm8, %v5942_v22, %v7030_v39  ;;  %v18964_v44 = vcombine.high %v14386_v41, %v14386_v41  ;;  %v6388_v40 = vmax.f32 %v6386_v51, %v6387_v61  ;;  %10454 = vmatprep.subr.bf16.mxu1 %v10453_v36 }
 0x42a   : > { %v5528_v38 = vrot.slane %v5527_v26, 1  ;;  %v5751_v55 = vmax.f32 %v18962_v52, %v5750_v16  ;;  %v7032_v1 = vsel %vm6657_vm9, %v6166_v59, %v7031_v35  ;;  %v18965_v15 = vcombine.high %v14593_v24, %v14593_v24 }
 0x42b   : > { %v6195_v46 = vsel %vm4773_vm3, %v18964_v44, -inf  ;;  %v5974_v20 = vrot.slane %v5973_v14, 2  ;;  %v7306_v58 = vsel %vm6647_vm4, %v5081_v33, %v4857_v21  ;;  %v18966_v41 = vpack.c.bf16 %v15082_v19, %v15077_v4  ;;  %v18970_v33 = vld [vmem:[#allocation184_spill] sm:$0xff] }
 0x42c   : > { %v6196_v8 = vrot.slane %v6195_v46, 4  ;;  %v5529_v3 = vmax.f32 %v5527_v26, %v5528_v38  ;;  %v6419_v22 = vsel %vm4773_vm3, %v18965_v15, -inf  ;;  %v6389_v18 = vrot.slane %v6388_v40, 1  ;;  %v18978_v15 = vld [vmem:[#allocation46_spill] sm:$0xff] }
 0x42d   : > { %10420 = vmatpush3.bf16.msra.mxu0 %v18966_v41  ;;  %v5752_v51 = vrot.slane %v5751_v55, 1  ;;  %v5975_v37 = vmax.f32 %v5973_v14, %v5974_v20  ;;  %v18967_v36 = vpack.c.bf16 %v15116_v56, %v15111_v17  ;;  %v6420_v26 = vrot.slane %v6419_v22, 4 }
 0x42e   : > { %v6197_v48 = vmax.f32 %v6195_v46, %v6196_v8  ;;  %v7307_v39 = vsel %vm6649_vm5, %v5305_v34, %v7306_v58  ;;  %v18969_v11 = vrot.slane %v18968_v63, 1  ;;  %v5927_v21 = vrot.slane %v18970_v33, 1 }
 0x42f   : > { %10422 = vmatprep.subr.bf16.mxu0 %v18967_v36  ;;  %v18971_v19 = vpack.c.bf16 %v15102_v2, %v15097_v25  ;;  %v6390_v4 = vmax.f32 %v6388_v40, %v6389_v18  ;;  %v5753_v52 = vmax.f32 %v5751_v55, %v5752_v51  ;;  %v5976_v16 = vrot.slane %v5975_v37, 1  ;;  %v9256_v25 = vld [vmem:[%s18333_s3 + $0x480] sm:$0xff]  ;;  %v9257_v2 = vld [vmem:[%s18333_s3 + $0x488] sm:$0xff] }
 0x430   : > { %v5704_v61 = vmax.f32 %v18968_v63, %v18969_v11  ;;  %v6198_v28 = vrot.slane %v6197_v48, 2  ;;  %v18972_v17 = vpack.c.bf16 %v15143_v30, %v15138_v32  ;;  %v6421_v56 = vmax.f32 %v6419_v22, %v6420_v26  ;;  %v18980_v22 = vld [vmem:[#allocation86_spill] sm:$0xff]  ;;  %v18982_v36 = vld [vmem:[#allocation123_spill] sm:$0xff]  ;;  %v18984_v11 = vld [vmem:[#allocation84_spill] sm:$0xff] }
 0x431   : > { %10456 = vmatpush3.bf16.msra.mxu1 %v18971_v19  ;;  %v7308_v34 = vsel %vm6651_vm6, %v5529_v3, %v7307_v39  ;;  %v5928_v14 = vmax.f32 %v18970_v33, %v5927_v21  ;;  %v18973_v59 = vrot.slane %v14352_v5, 2  ;;  %v18974_v32 = vpack.c.bf16 %v15133_v50, %v15121_v49  ;;  %v18977_v3 = vld [vmem:[#allocation13_spill] sm:$0xff]  ;;  %v15321_v50 = vld [vmem:[%s18333_s3 + $0x400] sm:$0xff] }
 0x432   : > { %10458 = vmatprep.subr.bf16.mxu1 %v18972_v17  ;;  %v7033_v30 = vsel %vm6659_vm10, %v6390_v4, %v7032_v1  ;;  %v5977_v38 = vmax.f32 %v5975_v37, %v5976_v16  ;;  %v6199_v44 = vmax.f32 %v6197_v48, %v6198_v28  ;;  %v7309_v46 = vsel %vm6653_vm7, %v5753_v52, %v7308_v34  ;;  %v18986_v4 = vld [vmem:[#allocation124_spill] sm:$0xff]  ;;  %v18988_v16 = vld [vmem:[#allocation85_spill] sm:$0xff] }
 0x433   : > { %v6150_v35 = vmax.f32 %v14352_v5, %v18973_v59  ;;  %10424 = vmatpush3.bf16.msra.mxu0 %v18974_v32  ;;  %v18975_v5 = vpack.c.bf16 %v15176_v9, %v15164_v7  ;;  %v6422_v40 = vrot.slane %v6421_v56, 2  ;;  %v18976_v20 = vrot.slane %v14562_v54, 4  ;;  %v15326_v7 = vld [vmem:[%s18333_s3 + $0x408] sm:$0xff]  ;;  %v15372_v32 = vld [vmem:[%s18333_s3 + $0x510] sm:$0xff] }
 0x434   : > { %v6891_v49 = vsel %vm6647_vm4, %v18978_v15, %v18977_v3  ;;  %v18979_v9 = vpack.c.bf16 %v15159_v60, %v15154_v47  ;;  %v6200_v1 = vrot.slane %v6199_v44, 1  ;;  %v10461_v41 = vpack.c.bf16 %v9257_v2, %v9256_v25  ;;  %v9291_v2 = vld [vmem:[%s18333_s3 + $0x598] sm:$0xff] }
 0x435   : > { %10426 = vmatprep.subr.bf16.mxu0 %v18975_v5  ;;  %v6151_v55 = vrot.slane %v6150_v35, 1  ;;  %v6372_v8 = vmax.f32 %v14562_v54, %v18976_v20  ;;  %v7310_v54 = vsel %vm6655_vm8, %v5977_v38, %v7309_v46  ;;  %v6892_v58 = vsel %vm6649_vm5, %v18980_v22, %v6891_v49  ;;  %v18993_v5 = vld [vmem:[#allocation23_spill] sm:$0xff]  ;;  %v15390_v20 = vld [vmem:[%s18333_s3 + $0x490] sm:$0xff]  ;;  %v15405_v3 = vld [vmem:[%s18333_s3 + $0x418] sm:$0xff] }
 0x436   : > { %10460 = vmatpush3.bf16.msra.mxu1 %v18979_v9  ;;  %v18981_v18 = vpack.c.bf16 %v15210_v29, %v15197_v45  ;;  %v6423_v51 = vmax.f32 %v6421_v56, %v6422_v40  ;;  %v6893_v26 = vsel %vm6651_vm6, %v18982_v36, %v6892_v58  ;;  %v18983_v47 = vpack.c.bf16 %v15186_v13, %v15181_v12  ;;  %v18990_v56 = vld [vmem:[#allocation185_spill] sm:$0xff]  ;;  %v15416_v22 = vld [vmem:[%s18333_s3 + $0x5a8] sm:$0xff]  ;;  %v15421_v58 = vld [vmem:[%s18333_s3 + $0x520] sm:$0xff] }
 0x437   : > { %v6152_v37 = vmax.f32 %v6150_v35, %v6151_v55  ;;  %v6373_v48 = vrot.slane %v6372_v8, 2  ;;  %v6201_v60 = vmax.f32 %v6199_v44, %v6200_v1  ;;  %v6894_v39 = vsel %vm6653_vm7, %v5704_v61, %v6893_v26  ;;  %v18994_v40 = vld [vmem:[#allocation57_spill] sm:$0xff] }
 0x438   : > { %10494 = vmatprep.subr.bf16.mxu1 %v18981_v18  ;;  %10428 = vmatpush3.bf16.msra.mxu0 %v18983_v47  ;;  %v10463_v63 = vpack.c.bf16 %v15326_v7, %v15321_v50  ;;  %v18985_v33 = vrot.slane %v18984_v11, 1  ;;  %v6424_v29 = vrot.slane %v6423_v51, 1  ;;  %v6895_v19 = vsel %vm6655_vm8, %v5928_v14, %v6894_v39  ;;  %v9290_v14 = vld [vmem:[%s18333_s3 + $0x590] sm:$0xff]  ;;  %v15431_v18 = vld [vmem:[%s18333_s3 + $0x4a0] sm:$0xff]  ;;  %v15550_v7 = vld [vmem:[%s18333_s3 + $0x5d8] sm:$0xff] }
 0x439   : > { %7108 = vmatmul.mubr.f32.vlgmr.msra.gmra.mrb[66].mxu1 %v7033_v30  ;;  %v6374_v21 = vmax.f32 %v6372_v8, %v6373_v48  ;;  %10462 = vmatprep.subr.bf16.mxu0 %v10461_v41  ;;  %v5514_v52 = vrot.slane %v18986_v4, 1  ;;  %v18987_v12 = vpack.c.bf16 %v15220_v62, %v15215_v0  ;;  %v7311_v13 = vsel %vm6657_vm9, %v6201_v60, %v7310_v54  ;;  %v15377_v30 = vld [vmem:[%s18333_s3 + $0x518] sm:$0xff]  ;;  %v15411_v54 = vld [vmem:[%s18333_s3 + $0x5a0] sm:$0xff]  ;;  %v15426_v41 = vld [vmem:[%s18333_s3 + $0x528] sm:$0xff] }
 0x43a   : > { %v5291_v45 = vmax.f32 %v18984_v11, %v18985_v33  ;;  %v6896_v61 = vsel %vm6657_vm9, %v6152_v37, %v6895_v19  ;;  %v18989_v28 = vrot.slane %v18988_v16, 2  ;;  %v5960_v34 = vrot.slane %v18990_v56, 2  ;;  %v15395_v8 = vld [vmem:[%s18333_s3 + $0x498] sm:$0xff]  ;;  %v15442_v47 = vld [vmem:[%s18333_s3 + $0x420] sm:$0xff]  ;;  %v15447_v60 = vld [vmem:[%s18333_s3 + $0x428] sm:$0xff] }
 0x43b   : > { %10496 = vmatpush3.bf16.msra.mxu1 %v18987_v12  ;;  %v6425_v59 = vmax.f32 %v6423_v51, %v6424_v29  ;;  %v6375_v35 = vrot.slane %v6374_v21, 1  ;;  %v5515_v25 = vmax.f32 %v18986_v4, %v5514_v52  ;;  %v18991_v0 = vrot.slane %v14399_v57, 4  ;;  %v15436_v51 = vld [vmem:[%s18333_s3 + $0x4a8] sm:$0xff]  ;;  %v15452_v39 = vld [vmem:[%s18333_s3 + $0x5b0] sm:$0xff]  ;;  %v15457_v11 = vld [vmem:[%s18333_s3 + $0x5b8] sm:$0xff] }
 0x43c   : > { %v5737_v17 = vmax.f32 %v18988_v16, %v18989_v28  ;;  %v5961_v44 = vmax.f32 %v18990_v56, %v5960_v34  ;;  %v7170_v55 = vsel %vm6647_vm4, %v18994_v40, %v18993_v5  ;;  %v10497_v26 = vpack.c.bf16 %v9291_v2, %v9290_v14  ;;  %v15464_v19 = vld [vmem:[%s18333_s3 + $0x530] sm:$0xff]  ;;  %v15469_v4 = vld [vmem:[%s18333_s3 + $0x538] sm:$0xff]  ;;  %v15494_v16 = vld [vmem:[%s18333_s3 + $0x5c0] sm:$0xff] }
 0x43d   : > { %v6183_v62 = vmax.f32 %v14399_v57, %v18991_v0  ;;  %v18992_v57 = vcombine.high %v14582_v42, %v14582_v42  ;;  %v15400_v42 = vld [vmem:[%s18333_s3 + $0x410] sm:$0xff]  ;;  %v7312_v15 = vsel %vm6659_vm10, %v6425_v59, %v7311_v13  ;;  %v6376_v49 = vmax.f32 %v6374_v21, %v6375_v35  ;;  %v15479_v12 = vld [vmem:[%s18333_s3 + $0x4b8] sm:$0xff]  ;;  %v15499_v28 = vld [vmem:[%s18333_s3 + $0x5c8] sm:$0xff] }
 0x43e   : > { %v5738_v38 = vrot.slane %v5737_v17, 1  ;;  %7379 = vmatprep.mubr.f32.mxu1 %v7312_v15  ;;  %v5962_v48 = vrot.slane %v5961_v44, 1  ;;  %v7171_v36 = vsel %vm6649_vm5, %v5291_v45, %v7170_v55  ;;  %v15474_v52 = vld [vmem:[%s18333_s3 + $0x4b0] sm:$0xff]  ;;  %10498 = vmatprep.subr.bf16.mxu1 %v10497_v26  ;;  %v10499_v34 = vpack.c.bf16 %v15377_v30, %v15372_v32  ;;  %v15507_v14 = vld [vmem:[%s18333_s3 + $0x540] sm:$0xff]  ;;  %v15512_v59 = vld [vmem:[%s18333_s3 + $0x548] sm:$0xff] }
 0x43f   : > { %v6405_v46 = vsel %vm4773_vm3, %v18992_v57, -inf  ;;  %v6184_v9 = vrot.slane %v6183_v62, 2  ;;  %v6897_v33 = vsel %vm6659_vm10, %v6376_v49, %v6896_v61  ;;  %v7172_v21 = vsel %vm6651_vm6, %v5515_v25, %v7171_v36  ;;  %v15484_v13 = vld [vmem:[%s18333_s3 + $0x430] sm:$0xff]  ;;  %v15489_v61 = vld [vmem:[%s18333_s3 + $0x438] sm:$0xff]  ;;  %v15517_v35 = vld [vmem:[%s18333_s3 + $0x4c0] sm:$0xff] }
 0x440   : > { %v6406_v1 = vrot.slane %v6405_v46, 4  ;;  %v5739_v37 = vmax.f32 %v5737_v17, %v5738_v38  ;;  %6972 = vmatmul.mubr.f32.vlgmr.msra.gmra.mrb[66].mxu0 %v6897_v33  ;;  %v5963_v17 = vmax.f32 %v5961_v44, %v5962_v48  ;;  %v15522_v25 = vld [vmem:[%s18333_s3 + $0x4c8] sm:$0xff]  ;;  %v10465_v30 = vpack.c.bf16 %v15395_v8, %v15390_v20  ;;  %v15535_v44 = vld [vmem:[%s18333_s3 + $0x440] sm:$0xff]  ;;  %v15545_v50 = vld [vmem:[%s18333_s3 + $0x5d0] sm:$0xff]  ;;  %10500 = vmatpush3.bf16.msra.mxu1 %v10499_v34 }
 0x441   : > { %v6185_v45 = vmax.f32 %v6183_v62, %v6184_v9  ;;  %v18995_v0 = vld [vmem:[#allocation164_spill] sm:$0xff]  ;;  %10464 = vmatpush3.bf16.msra.mxu0 %v10463_v63  ;;  %v10467_v38 = vpack.c.bf16 %v15405_v3, %v15400_v42  ;;  %v15555_v63 = vld [vmem:[%s18333_s3 + $0x550] sm:$0xff]  ;;  %v10501_v40 = vpack.c.bf16 %v15416_v22, %v15411_v54  ;;  %v10503_v55 = vpack.c.bf16 %v15426_v41, %v15421_v58  ;;  %v15577_v42 = vld [vmem:[%s18333_s3 + $0x4d8] sm:$0xff] }
 0x442   : > { %v6407_v29 = vmax.f32 %v6405_v46, %v6406_v1  ;;  %v7173_v56 = vsel %vm6653_vm7, %v5739_v37, %v7172_v21  ;;  %v5745_v62 = vrot.slane %v18995_v0, 1  ;;  %v15540_v57 = vld [vmem:[%s18333_s3 + $0x448] sm:$0xff]  ;;  %v15560_v46 = vld [vmem:[%s18333_s3 + $0x558] sm:$0xff]  ;;  %v10469_v20 = vpack.c.bf16 %v15436_v51, %v15431_v18  ;;  %v15572_v8 = vld [vmem:[%s18333_s3 + $0x4d0] sm:$0xff]  ;;  %10466 = vmatprep.subr.bf16.mxu0 %v10465_v30 }
 0x443   : > { %v6186_v2 = vrot.slane %v6185_v45, 1  ;;  %v7174_v5 = vsel %vm6655_vm8, %v5963_v17, %v7173_v56  ;;  %v15582_v3 = vld [vmem:[%s18333_s3 + $0x450] sm:$0xff]  ;;  %v15587_v15 = vld [vmem:[%s18333_s3 + $0x458] sm:$0xff]  ;;  %v15592_v49 = vld [vmem:[%s18333_s3 + $0x5e0] sm:$0xff]  ;;  %v10471_v22 = vpack.c.bf16 %v15447_v60, %v15442_v47  ;;  %v10505_v58 = vpack.c.bf16 %v15457_v11, %v15452_v39  ;;  %10502 = vmatprep.subr.bf16.mxu1 %v10501_v40 }
 0x444   : > { %v6408_v32 = vrot.slane %v6407_v29, 2  ;;  %v15597_v9 = vld [vmem:[%s18333_s3 + $0x5e8] sm:$0xff]  ;;  %v15606_v41 = vld [vmem:[%s18333_s3 + $0x560] sm:$0xff]  ;;  %v10507_v36 = vpack.c.bf16 %v15469_v4, %v15464_v19  ;;  %v10473_v26 = vpack.c.bf16 %v15479_v12, %v15474_v52  ;;  %v10475_v47 = vpack.c.bf16 %v15489_v61, %v15484_v13  ;;  %v15644_v11 = vld [vmem:[%s18333_s3 + $0x5f0] sm:$0xff]  ;;  %10504 = vmatpush3.bf16.msra.mxu1 %v10503_v55 }
 0x445   : > { %v6187_v1 = vmax.f32 %v6185_v45, %v6186_v2  ;;  %v15611_v18 = vld [vmem:[%s18333_s3 + $0x568] sm:$0xff]  ;;  %v15616_v51 = vld [vmem:[%s18333_s3 + $0x4e0] sm:$0xff]  ;;  %v10509_v60 = vpack.c.bf16 %v15499_v28, %v15494_v16  ;;  %v15649_v33 = vld [vmem:[%s18333_s3 + $0x5f8] sm:$0xff]  ;;  %10468 = vmatpush3.bf16.msra.mxu0 %v10467_v38  ;;  %v10511_v21 = vpack.c.bf16 %v15512_v59, %v15507_v14  ;;  %v10477_v19 = vpack.c.bf16 %v15522_v25, %v15517_v35 }
 0x446   : > { %v6409_v54 = vmax.f32 %v6407_v29, %v6408_v32  ;;  %v15621_v37 = vld [vmem:[%s18333_s3 + $0x4e8] sm:$0xff]  ;;  %v15626_v48 = vld [vmem:[%s18333_s3 + $0x460] sm:$0xff]  ;;  %v15659_v4 = vld [vmem:[%s18333_s3 + $0x570] sm:$0xff]  ;;  %10470 = vmatprep.subr.bf16.mxu0 %v10469_v20  ;;  %v10479_v13 = vpack.c.bf16 %v15540_v57, %v15535_v44  ;;  %v10513_v61 = vpack.c.bf16 %v15550_v7, %v15545_v50  ;;  %v10515_v16 = vpack.c.bf16 %v15560_v46, %v15555_v63 }
 0x447   : > { %v15639_v39 = vld [vmem:[%s18333_s3 + $0x468] sm:$0xff]  ;;  %v7175_v29 = vsel %vm6657_vm9, %v6187_v1, %v7174_v5  ;;  %v15664_v52 = vld [vmem:[%s18333_s3 + $0x578] sm:$0xff]  ;;  %v15669_v12 = vld [vmem:[%s18333_s3 + $0x4f0] sm:$0xff]  ;;  %v6191_v34 = vrot.slane %v14429_v53, 2  ;;  %10506 = vmatprep.subr.bf16.mxu1 %v10505_v58  ;;  %v10481_v59 = vpack.c.bf16 %v15577_v42, %v15572_v8  ;;  %v10483_v35 = vpack.c.bf16 %v15587_v15, %v15582_v3 }
 0x448   : > { %v6410_v45 = vrot.slane %v6409_v54, 1  ;;  %v15680_v28 = vld [vmem:[%s18333_s3 + $0x4f8] sm:$0xff]  ;;  %v15685_v17 = vld [vmem:[%s18333_s3 + $0x470] sm:$0xff]  ;;  %v10517_v25 = vpack.c.bf16 %v15597_v9, %v15592_v49  ;;  %v10519_v2 = vpack.c.bf16 %v15611_v18, %v15606_v41  ;;  %v10485_v32 = vpack.c.bf16 %v15621_v37, %v15616_v51  ;;  %v15710_v44 = vld [vmem:[%s18333_s3 + $0x780] sm:$0xff]  ;;  %10508 = vmatpush3.bf16.msra.mxu1 %v10507_v36 }
 0x449   : > { %v15690_v56 = vld [vmem:[%s18333_s3 + $0x478] sm:$0xff]  ;;  %v10487_v30 = vpack.c.bf16 %v15639_v39, %v15626_v48  ;;  %v10521_v38 = vpack.c.bf16 %v15649_v33, %v15644_v11  ;;  %v15715_v57 = vld [vmem:[%s18333_s3 + $0x788] sm:$0xff]  ;;  %10472 = vmatpush3.bf16.msra.mxu0 %v10471_v22  ;;  %v10523_v7 = vpack.c.bf16 %v15664_v52, %v15659_v4  ;;  %v15727_v55 = vld [vmem:[%s18333_s3 + $0x700] sm:$0xff]  ;;  %v5746_v9 = vmax.f32 %v18995_v0, %v5745_v62 }
 0x44a   : > { %v6411_v14 = vmax.f32 %v6409_v54, %v6410_v45  ;;  %v15732_v20 = vld [vmem:[%s18333_s3 + $0x708] sm:$0xff]  ;;  %v18996_v8 = vld [vmem:[#allocation125_spill] sm:$0xff]  ;;  %v18998_v1 = vrot.slane %v14166_v10, 2  ;;  %v6412_v22 = vsel %vm4773_vm3, %v14593_v24, -inf  ;;  %10474 = vmatprep.subr.bf16.mxu0 %v10473_v26  ;;  %10510 = vmatprep.subr.bf16.mxu1 %v10509_v60  ;;  %v6192_v58 = vmax.f32 %v14429_v53, %v6191_v34  ;;  %v18999_v45 = vld [vmem:[#allocation19_spill] sm:$0xff] }
 0x44b   : > { %v18997_v42 = vrot.slane %v18996_v8, 1  ;;  %v6413_v36 = vrot.slane %v6412_v22, 4  ;;  %v19001_v62 = vld [vmem:[#allocation96_spill] sm:$0xff]  ;;  %v19014_v63 = vld [vmem:[#allocation157_spill] sm:$0xff]  ;;  %v19017_v3 = vrot.slane %v14405_v6, 2  ;;  %v15826_v11 = vld [vmem:[%s18333_s3 + $0x600] sm:$0xff] }
 0x44c   : > { %v7176_v50 = vsel %vm6659_vm10, %v6411_v14, %v7175_v29  ;;  %v5968_v54 = vmax.f32 %v14166_v10, %v18998_v1  ;;  %v19000_v29 = vld [vmem:[#allocation58_spill] sm:$0xff]  ;;  %v19002_v24 = vld [vmem:[#allocation20_spill] sm:$0xff]  ;;  %v6193_v53 = vrot.slane %v6192_v58, 1  ;;  %v19004_v1 = vld [vmem:[#allocation59_spill] sm:$0xff]  ;;  %10512 = vmatpush3.bf16.msra.mxu1 %v10511_v21  ;;  %v19015_v46 = vrot.slane %v19014_v63, 1 }
 0x44d   : > { %7243 = vmatprep.mubr.f32.mxu0 %v7176_v50  ;;  %v5522_v49 = vmax.f32 %v18996_v8, %v18997_v42  ;;  %v7299_v14 = vsel %vm6647_vm4, %v19000_v29, %v18999_v45  ;;  %v19003_v26 = vrot.slane %v19002_v24, 1  ;;  %10476 = vmatpush3.bf16.msra.mxu0 %v10475_v47  ;;  %v6414_v34 = vmax.f32 %v6412_v22, %v6413_v36  ;;  %v19007_v50 = vld [vmem:[#allocation128_spill] sm:$0xff]  ;;  %v19009_v36 = vld [vmem:[#allocation166_spill] sm:$0xff]  ;;  %v19025_v52 = vld [vmem:[#allocation89_spill] sm:$0xff] }
 0x44e   : > { %v5969_v0 = vrot.slane %v5968_v54, 1  ;;  %v7300_v8 = vsel %vm6649_vm5, %v19001_v62, %v7299_v14  ;;  %v19005_v45 = vrot.slane %v19004_v1, 1  ;;  %10478 = vmatprep.subr.bf16.mxu0 %v10477_v19  ;;  %v19006_v62 = vld [vmem:[#allocation99_spill] sm:$0xff]  ;;  %v19008_v5 = vrot.slane %v19007_v50, 2  ;;  %10514 = vmatprep.subr.bf16.mxu1 %v10513_v61  ;;  %v9321_v41 = vld [vmem:[%s18333_s3 + $0x688] sm:$0xff] }
 0x44f   : > { %v4885_v60 = vmax.f32 %v19002_v24, %v19003_v26  ;;  %v7301_v42 = vsel %vm6651_vm6, %v5522_v49, %v7300_v8  ;;  %v5332_v10 = vrot.slane %v19006_v62, 1  ;;  %v6194_v47 = vmax.f32 %v6192_v58, %v6193_v53  ;;  %v19010_v8 = vld [vmem:[#allocation186_spill] sm:$0xff]  ;;  %v15831_v33 = vld [vmem:[%s18333_s3 + $0x608] sm:$0xff] }
 0x450   : > { %v5109_v29 = vmax.f32 %v19004_v1, %v19005_v45  ;;  %v5970_v40 = vmax.f32 %v5968_v54, %v5969_v0  ;;  %v7302_v14 = vsel %vm6653_vm7, %v5746_v9, %v7301_v42  ;;  %v5555_v24 = vmax.f32 %v19007_v50, %v19008_v5  ;;  %10516 = vmatpush3.bf16.msra.mxu1 %v10515_v16  ;;  %v19023_v48 = vld [vmem:[#allocation12_spill] sm:$0xff] }
 0x451   : > { %v6415_v22 = vrot.slane %v6414_v34, 2  ;;  %v5778_v49 = vrot.slane %v19009_v36, 2  ;;  %v19011_v26 = vrot.slane %v19010_v8, 4  ;;  %v5333_v19 = vmax.f32 %v19006_v62, %v5332_v10  ;;  %10480 = vmatpush3.bf16.msra.mxu0 %v10479_v13  ;;  %10518 = vmatprep.subr.bf16.mxu1 %v10517_v25 }
 0x452   : > { %v7303_v21 = vsel %vm6655_vm8, %v5970_v40, %v7302_v14  ;;  %v5556_v9 = vrot.slane %v5555_v24, 1  ;;  %v19012_v54 = vcombine.high %v14389_v43, %v14389_v43  ;;  %10482 = vmatprep.subr.bf16.mxu0 %v10481_v59  ;;  %v19013_v53 = vcombine.high %v14596_v27, %v14596_v27  ;;  %v19016_v59 = vld [vmem:[#allocation66_spill] sm:$0xff] }
 0x453   : > { %v6001_v1 = vmax.f32 %v19010_v8, %v19011_v26  ;;  %v6416_v61 = vmax.f32 %v6414_v34, %v6415_v22  ;;  %v7304_v5 = vsel %vm6657_vm9, %v6194_v47, %v7303_v21  ;;  %v5779_v58 = vmax.f32 %v19009_v36, %v5778_v49  ;;  %v19019_v21 = vld [vmem:[#allocation18_spill] sm:$0xff] }
 0x454   : > { %v6223_v0 = vsel %vm4773_vm3, %v19012_v54, -inf  ;;  %v5557_v40 = vmax.f32 %v5555_v24, %v5556_v9  ;;  %v6447_v43 = vsel %vm4773_vm3, %v19013_v53, -inf  ;;  %v7578_v13 = vsel %vm6647_vm4, %v5109_v29, %v4885_v60  ;;  %10520 = vmatpush3.bf16.msra.mxu1 %v10519_v2  ;;  %v19021_v54 = vld [vmem:[#allocation91_spill] sm:$0xff] }
 0x455   : > { %v6002_v50 = vrot.slane %v6001_v1, 2  ;;  %v6224_v10 = vrot.slane %v6223_v0, 4  ;;  %v6417_v34 = vrot.slane %v6416_v61, 1  ;;  %v5780_v42 = vrot.slane %v5779_v58, 1  ;;  %10484 = vmatpush3.bf16.msra.mxu0 %v10483_v35  ;;  %v9320_v35 = vld [vmem:[%s18333_s3 + $0x680] sm:$0xff]  ;;  %10522 = vmatprep.subr.bf16.mxu1 %v10521_v38 }
 0x456   : > { %v6448_v14 = vrot.slane %v6447_v43, 4  ;;  %v7579_v47 = vsel %vm6649_vm5, %v5333_v19, %v7578_v13  ;;  %v5732_v16 = vmax.f32 %v19014_v63, %v19015_v46  ;;  %v5955_v24 = vrot.slane %v19016_v59, 1  ;;  %10486 = vmatprep.subr.bf16.mxu0 %v10485_v32  ;;  %v19020_v19 = vld [vmem:[#allocation54_spill] sm:$0xff]  ;;  %v9354_v46 = vld [vmem:[%s18333_s3 + $0x790] sm:$0xff] }
 0x457   : > { %v6003_v45 = vmax.f32 %v6001_v1, %v6002_v50  ;;  %v6225_v62 = vmax.f32 %v6223_v0, %v6224_v10  ;;  %v6418_v22 = vmax.f32 %v6416_v61, %v6417_v34  ;;  %v5781_v60 = vmax.f32 %v5779_v58, %v5780_v42  ;;  %v19027_v34 = vld [vmem:[#allocation126_spill] sm:$0xff] }
 0x458   : > { %v6449_v29 = vmax.f32 %v6447_v43, %v6448_v14  ;;  %v7580_v49 = vsel %vm6651_vm6, %v5557_v40, %v7579_v47  ;;  %v5956_v8 = vmax.f32 %v19016_v59, %v5955_v24  ;;  %v6178_v15 = vmax.f32 %v14405_v6, %v19017_v3  ;;  %10524 = vmatpush3.bf16.msra.mxu1 %v10523_v7  ;;  %v19029_v14 = vld [vmem:[#allocation94_spill] sm:$0xff] }
 0x459   : > { %v6004_v25 = vrot.slane %v6003_v45, 1  ;;  %v6226_v36 = vrot.slane %v6225_v62, 2  ;;  %v7305_v18 = vsel %vm6659_vm10, %v6418_v22, %v7304_v5  ;;  %v7581_v2 = vsel %vm6653_vm7, %v5781_v60, %v7580_v49  ;;  %10488 = vmatpush3.bf16.msra.mxu0 %v10487_v30  ;;  %v19032_v24 = vld [vmem:[#allocation138_spill] sm:$0xff] }
 0x45a   : > { %v6450_v37 = vrot.slane %v6449_v29, 2  ;;  %v6179_v6 = vrot.slane %v6178_v15, 1  ;;  %v19018_v26 = vrot.slane %v14626_v23, 4  ;;  %v7163_v9 = vsel %vm6647_vm4, %v19020_v19, %v19019_v21  ;;  %v15927_v21 = vld [vmem:[%s18333_s3 + $0x7a8] sm:$0xff]  ;;  %v15932_v19 = vld [vmem:[%s18333_s3 + $0x720] sm:$0xff] }
 0x45b   : > { %v6005_v51 = vmax.f32 %v6003_v45, %v6004_v25  ;;  %v6227_v32 = vmax.f32 %v6225_v62, %v6226_v36  ;;  %v7164_v0 = vsel %vm6649_vm5, %v19021_v54, %v7163_v9  ;;  %v10525_v61 = vpack.c.bf16 %v9321_v41, %v9320_v35  ;;  %7380 = vmatmul.mubr.f32.vlgmr.msra.gmra.mrb[68].mxu1 %v7305_v18  ;;  %v9355_v25 = vld [vmem:[%s18333_s3 + $0x798] sm:$0xff]  ;;  %v15899_v35 = vld [vmem:[%s18333_s3 + $0x690] sm:$0xff]  ;;  %v15937_v9 = vld [vmem:[%s18333_s3 + $0x728] sm:$0xff] }
 0x45c   : > { %v6400_v1 = vmax.f32 %v14626_v23, %v19018_v26  ;;  %v6451_v38 = vmax.f32 %v6449_v29, %v6450_v37  ;;  %v19022_v5 = vpack.c.bf16 %v15680_v28, %v15669_v12  ;;  %v6180_v50 = vmax.f32 %v6178_v15, %v6179_v6  ;;  %v15883_v29 = vld [vmem:[%s18333_s3 + $0x710] sm:$0xff]  ;;  %v15904_v41 = vld [vmem:[%s18333_s3 + $0x698] sm:$0xff]  ;;  %v19037_v6 = vld [vmem:[#allocation60_spill] sm:$0xff] }
 0x45d   : > { %v7582_v23 = vsel %vm6655_vm8, %v6005_v51, %v7581_v2  ;;  %v6228_v58 = vrot.slane %v6227_v32, 1  ;;  %v7165_v39 = vsel %vm6651_vm6, %v19023_v48, %v7164_v0  ;;  %v19024_v30 = vpack.c.bf16 %v15715_v57, %v15710_v44  ;;  %v15909_v18 = vld [vmem:[%s18333_s3 + $0x610] sm:$0xff]  ;;  %v15968_v48 = vld [vmem:[%s18333_s3 + $0x7b8] sm:$0xff] }
 0x45e   : > { %10490 = vmatprep.subr.bf16.mxu0 %v19022_v5  ;;  %v6401_v40 = vrot.slane %v6400_v1, 2  ;;  %v6452_v10 = vrot.slane %v6451_v38, 1  ;;  %v7166_v53 = vsel %vm6653_vm7, %v5732_v16, %v7165_v39  ;;  %v10527_v4 = vpack.c.bf16 %v15831_v33, %v15826_v11  ;;  %v16056_v11 = vld [vmem:[%s18333_s3 + $0x7d0] sm:$0xff]  ;;  %v16061_v33 = vld [vmem:[%s18333_s3 + $0x7d8] sm:$0xff] }
 0x45f   : > { %10558 = vmatprep.subr.bf16.mxu1 %v19024_v30  ;;  %v19026_v7 = vrot.slane %v19025_v52, 1  ;;  %v6229_v28 = vmax.f32 %v6227_v32, %v6228_v58  ;;  %v7167_v13 = vsel %vm6655_vm8, %v5956_v8, %v7166_v53  ;;  %v5542_v42 = vrot.slane %v19027_v34, 1  ;;  %v19034_v8 = vld [vmem:[#allocation158_spill] sm:$0xff]  ;;  %v19036_v32 = vld [vmem:[#allocation25_spill] sm:$0xff]  ;;  %v15953_v58 = vld [vmem:[%s18333_s3 + $0x620] sm:$0xff] }
 0x460   : > { %v6402_v43 = vmax.f32 %v6400_v1, %v6401_v40  ;;  %v19028_v44 = vpack.c.bf16 %v15690_v56, %v15685_v17  ;;  %v6453_v57 = vmax.f32 %v6451_v38, %v6452_v10  ;;  %v7168_v45 = vsel %vm6657_vm9, %v6180_v50, %v7167_v13  ;;  %v15922_v1 = vld [vmem:[%s18333_s3 + $0x7a0] sm:$0xff]  ;;  %v15958_v50 = vld [vmem:[%s18333_s3 + $0x628] sm:$0xff]  ;;  %v15963_v40 = vld [vmem:[%s18333_s3 + $0x7b0] sm:$0xff] }
 0x461   : > { %v5319_v12 = vmax.f32 %v19025_v52, %v19026_v7  ;;  %v19030_v62 = vrot.slane %v19029_v14, 2  ;;  %v5988_v63 = vrot.slane %v14236_v31, 2  ;;  %v19031_v16 = vpack.c.bf16 %v15732_v20, %v15727_v55  ;;  %v15888_v55 = vld [vmem:[%s18333_s3 + $0x718] sm:$0xff]  ;;  %v15942_v38 = vld [vmem:[%s18333_s3 + $0x6a0] sm:$0xff]  ;;  %v15975_v52 = vld [vmem:[%s18333_s3 + $0x730] sm:$0xff] }
 0x462   : > { %10492 = vmatpush3.bf16.msra.mxu0 %v19028_v44  ;;  %v7583_v17 = vsel %vm6657_vm9, %v6229_v28, %v7582_v23  ;;  %v6403_v56 = vrot.slane %v6402_v43, 1  ;;  %v5543_v59 = vmax.f32 %v19027_v34, %v5542_v42  ;;  %v19033_v22 = vrot.slane %v19032_v24, 4  ;;  %v15947_v23 = vld [vmem:[%s18333_s3 + $0x6a8] sm:$0xff]  ;;  %v15980_v7 = vld [vmem:[%s18333_s3 + $0x738] sm:$0xff]  ;;  %v16005_v34 = vld [vmem:[%s18333_s3 + $0x7c0] sm:$0xff] }
 0x463   : > { %v5765_v47 = vmax.f32 %v19029_v14, %v19030_v62  ;;  %10560 = vmatpush3.bf16.msra.mxu1 %v19031_v16  ;;  %10526 = vmatprep.subr.bf16.mxu0 %v10525_v61  ;;  %v7584_v20 = vsel %vm6659_vm10, %v6453_v57, %v7583_v17  ;;  %v5989_v49 = vmax.f32 %v14236_v31, %v5988_v63  ;;  %v15914_v31 = vld [vmem:[%s18333_s3 + $0x618] sm:$0xff]  ;;  %v16010_v42 = vld [vmem:[%s18333_s3 + $0x7c8] sm:$0xff]  ;;  %v16018_v14 = vld [vmem:[%s18333_s3 + $0x740] sm:$0xff] }
 0x464   : > { %v6211_v60 = vmax.f32 %v19032_v24, %v19033_v22  ;;  %v19035_v3 = vcombine.high %v19034_v8, %v19034_v8  ;;  %7651 = vmatprep.mubr.f32.mxu1 %v7584_v20  ;;  %v6404_v51 = vmax.f32 %v6402_v43, %v6403_v56  ;;  %v7442_v26 = vsel %vm6647_vm4, %v19037_v6, %v19036_v32  ;;  %v15990_v28 = vld [vmem:[%s18333_s3 + $0x6b8] sm:$0xff]  ;;  %v15995_v43 = vld [vmem:[%s18333_s3 + $0x630] sm:$0xff]  ;;  %v16023_v62 = vld [vmem:[%s18333_s3 + $0x748] sm:$0xff] }
 0x465   : > { %v5766_v36 = vrot.slane %v5765_v47, 1  ;;  %v5990_v0 = vrot.slane %v5989_v49, 1  ;;  %v7443_v61 = vsel %vm6649_vm5, %v5319_v12, %v7442_v26  ;;  %v10561_v5 = vpack.c.bf16 %v9355_v25, %v9354_v46  ;;  %v15985_v12 = vld [vmem:[%s18333_s3 + $0x6b0] sm:$0xff]  ;;  %v16000_v13 = vld [vmem:[%s18333_s3 + $0x638] sm:$0xff]  ;;  %v16033_v63 = vld [vmem:[%s18333_s3 + $0x6c8] sm:$0xff] }
 0x466   : > { %v6433_v15 = vsel %vm4773_vm3, %v19035_v3, -inf  ;;  %v6212_v37 = vrot.slane %v6211_v60, 2  ;;  %v7169_v39 = vsel %vm6659_vm10, %v6404_v51, %v7168_v45  ;;  %v7444_v53 = vsel %vm6651_vm6, %v5543_v59, %v7443_v61  ;;  %v19038_v46 = vld [vmem:[#allocation165_spill] sm:$0xff]  ;;  %v16046_v22 = vld [vmem:[%s18333_s3 + $0x640] sm:$0xff]  ;;  %v16071_v25 = vld [vmem:[%s18333_s3 + $0x758] sm:$0xff] }
 0x467   : > { %v6434_v2 = vrot.slane %v6433_v15, 4  ;;  %v5767_v54 = vmax.f32 %v5765_v47, %v5766_v36  ;;  %7244 = vmatmul.mubr.f32.vlgmr.msra.gmra.mrb[68].mxu0 %v7169_v39  ;;  %v5991_v44 = vmax.f32 %v5989_v49, %v5990_v0  ;;  %10562 = vmatprep.subr.bf16.mxu1 %v10561_v5  ;;  %v10563_v45 = vpack.c.bf16 %v15888_v55, %v15883_v29  ;;  %v16028_v47 = vld [vmem:[%s18333_s3 + $0x6c0] sm:$0xff]  ;;  %v16083_v49 = vld [vmem:[%s18333_s3 + $0x6d0] sm:$0xff]  ;;  %v16088_v8 = vld [vmem:[%s18333_s3 + $0x6d8] sm:$0xff] }
 0x468   : > { %v6213_v30 = vmax.f32 %v6211_v60, %v6212_v37  ;;  %v5773_v16 = vrot.slane %v19038_v46, 1  ;;  %10528 = vmatpush3.bf16.msra.mxu0 %v10527_v4  ;;  %v10529_v59 = vpack.c.bf16 %v15904_v41, %v15899_v35  ;;  %v10531_v24 = vpack.c.bf16 %v15914_v31, %v15909_v18  ;;  %v16051_v60 = vld [vmem:[%s18333_s3 + $0x648] sm:$0xff]  ;;  %v16066_v4 = vld [vmem:[%s18333_s3 + $0x750] sm:$0xff]  ;;  %v16103_v35 = vld [vmem:[%s18333_s3 + $0x7e0] sm:$0xff] }
 0x469   : > { %v6435_v10 = vmax.f32 %v6433_v15, %v6434_v2  ;;  %v7445_v57 = vsel %vm6653_vm7, %v5767_v54, %v7444_v53  ;;  %10564 = vmatpush3.bf16.msra.mxu1 %v10563_v45  ;;  %v10565_v55 = vpack.c.bf16 %v15927_v21, %v15922_v1  ;;  %v10567_v20 = vpack.c.bf16 %v15937_v9, %v15932_v19  ;;  %v16093_v3 = vld [vmem:[%s18333_s3 + $0x650] sm:$0xff]  ;;  %v16098_v15 = vld [vmem:[%s18333_s3 + $0x658] sm:$0xff]  ;;  %v16108_v41 = vld [vmem:[%s18333_s3 + $0x7e8] sm:$0xff] }
 0x46a   : > { %v6214_v17 = vrot.slane %v6213_v30, 1  ;;  %v7446_v29 = vsel %vm6655_vm8, %v5991_v44, %v7445_v57  ;;  %v10533_v36 = vpack.c.bf16 %v15947_v23, %v15942_v38  ;;  %10530 = vmatprep.subr.bf16.mxu0 %v10529_v59  ;;  %v10535_v51 = vpack.c.bf16 %v15958_v50, %v15953_v58  ;;  %v16117_v2 = vld [vmem:[%s18333_s3 + $0x760] sm:$0xff]  ;;  %v16122_v32 = vld [vmem:[%s18333_s3 + $0x768] sm:$0xff]  ;;  %v16155_v54 = vld [vmem:[%s18333_s3 + $0x7f0] sm:$0xff] }
 0x46b   : > { %v6436_v56 = vrot.slane %v6435_v10, 2  ;;  %v10569_v37 = vpack.c.bf16 %v15968_v48, %v15963_v40  ;;  %v16127_v6 = vld [vmem:[%s18333_s3 + $0x6e0] sm:$0xff]  ;;  %v16132_v26 = vld [vmem:[%s18333_s3 + $0x6e8] sm:$0xff]  ;;  %10566 = vmatprep.subr.bf16.mxu1 %v10565_v55  ;;  %v10571_v21 = vpack.c.bf16 %v15980_v7, %v15975_v52  ;;  %v10537_v19 = vpack.c.bf16 %v15990_v28, %v15985_v12  ;;  %v16160_v0 = vld [vmem:[%s18333_s3 + $0x7f8] sm:$0xff] }
 0x46c   : > { %v6215_v18 = vmax.f32 %v6213_v30, %v6214_v17  ;;  %v16137_v1 = vld [vmem:[%s18333_s3 + $0x660] sm:$0xff]  ;;  %v10539_v9 = vpack.c.bf16 %v16000_v13, %v15995_v43  ;;  %v10573_v38 = vpack.c.bf16 %v16010_v42, %v16005_v34  ;;  %v16150_v23 = vld [vmem:[%s18333_s3 + $0x668] sm:$0xff]  ;;  %10532 = vmatpush3.bf16.msra.mxu0 %v10531_v24  ;;  %v10575_v58 = vpack.c.bf16 %v16023_v62, %v16018_v14  ;;  %v16170_v40 = vld [vmem:[%s18333_s3 + $0x770] sm:$0xff] }
 0x46d   : > { %v6437_v31 = vmax.f32 %v6435_v10, %v6436_v56  ;;  %v10541_v50 = vpack.c.bf16 %v16033_v63, %v16028_v47  ;;  %v16175_v48 = vld [vmem:[%s18333_s3 + $0x778] sm:$0xff]  ;;  %v16180_v39 = vld [vmem:[%s18333_s3 + $0x6f0] sm:$0xff]  ;;  %10568 = vmatpush3.bf16.msra.mxu1 %v10567_v20  ;;  %10534 = vmatprep.subr.bf16.mxu0 %v10533_v36  ;;  %v10543_v30 = vpack.c.bf16 %v16051_v60, %v16046_v22  ;;  %v19039_v28 = vld [vmem:[#allocation147_spill] sm:$0xff] }
 0x46e   : > { %v7447_v5 = vsel %vm6657_vm9, %v6215_v18, %v7446_v29  ;;  %v10577_v10 = vpack.c.bf16 %v16061_v33, %v16056_v11  ;;  %v10579_v53 = vpack.c.bf16 %v16071_v25, %v16066_v4  ;;  %v16191_v52 = vld [vmem:[%s18333_s3 + $0x6f8] sm:$0xff]  ;;  %v16196_v7 = vld [vmem:[%s18333_s3 + $0x670] sm:$0xff]  ;;  %v6219_v43 = vrot.slane %v19039_v28, 2  ;;  %10570 = vmatprep.subr.bf16.mxu1 %v10569_v37  ;;  %v16221_v47 = vld [vmem:[%s18333_s3 + $0x980] sm:$0xff] }
 0x46f   : > { %v6438_v61 = vrot.slane %v6437_v31, 1  ;;  %v16201_v12 = vld [vmem:[%s18333_s3 + $0x678] sm:$0xff]  ;;  %v10545_v34 = vpack.c.bf16 %v16088_v8, %v16083_v49  ;;  %v10547_v42 = vpack.c.bf16 %v16098_v15, %v16093_v3  ;;  %v10581_v44 = vpack.c.bf16 %v16108_v41, %v16103_v35  ;;  %v16226_v63 = vld [vmem:[%s18333_s3 + $0x988] sm:$0xff]  ;;  %v16238_v22 = vld [vmem:[%s18333_s3 + $0x900] sm:$0xff] }
 0x470   : > { %v10583_v57 = vpack.c.bf16 %v16122_v32, %v16117_v2  ;;  %v10549_v45 = vpack.c.bf16 %v16132_v26, %v16127_v6  ;;  %v10551_v14 = vpack.c.bf16 %v16150_v23, %v16137_v1  ;;  %v10585_v62 = vpack.c.bf16 %v16160_v0, %v16155_v54  ;;  %10536 = vmatpush3.bf16.msra.mxu0 %v10535_v51  ;;  %v16243_v60 = vld [vmem:[%s18333_s3 + $0x908] sm:$0xff]  ;;  %v19040_v11 = vld [vmem:[#allocation127_spill] sm:$0xff]  ;;  %v19042_v20 = vld [vmem:[#allocation121_spill] sm:$0xff] }
 0x471   : > { %v6439_v13 = vmax.f32 %v6437_v31, %v6438_v61  ;;  %v10587_v56 = vpack.c.bf16 %v16175_v48, %v16170_v40  ;;  %v10553_v59 = vpack.c.bf16 %v16191_v52, %v16180_v39  ;;  %v10555_v24 = vpack.c.bf16 %v16201_v12, %v16196_v7  ;;  %10572 = vmatpush3.bf16.msra.mxu1 %v10571_v21  ;;  %v19044_v18 = vld [vmem:[#allocation27_spill] sm:$0xff]  ;;  %v19045_v31 = vld [vmem:[#allocation61_spill] sm:$0xff]  ;;  %v19061_v4 = vld [vmem:[#allocation160_spill] sm:$0xff] }
 0x472   : > { %v19041_v33 = vrot.slane %v19040_v11, 1  ;;  %v5774_v55 = vmax.f32 %v19038_v46, %v5773_v16  ;;  %v19043_v36 = vrot.slane %v19042_v20, 2  ;;  %v6440_v8 = vsel %vm4773_vm3, %v14596_v27, -inf  ;;  %10538 = vmatprep.subr.bf16.mxu0 %v10537_v19  ;;  %10574 = vmatprep.subr.bf16.mxu1 %v10573_v38  ;;  %v19046_v16 = vld [vmem:[#allocation98_spill] sm:$0xff]  ;;  %v9385_v2 = vld [vmem:[%s18333_s3 + $0x888] sm:$0xff]  ;;  %v16337_v54 = vld [vmem:[%s18333_s3 + $0x800] sm:$0xff] }
 0x473   : > { %v7448_v17 = vsel %vm6659_vm10, %v6439_v13, %v7447_v5  ;;  %v6220_v35 = vmax.f32 %v19039_v28, %v6219_v43  ;;  %v6441_v41 = vrot.slane %v6440_v8, 4  ;;  %v7571_v51 = vsel %vm6647_vm4, %v19045_v31, %v19044_v18  ;;  %v19047_v27 = vld [vmem:[#allocation26_spill] sm:$0xff]  ;;  %v19049_v13 = vld [vmem:[#allocation63_spill] sm:$0xff]  ;;  %v16342_v0 = vld [vmem:[%s18333_s3 + $0x808] sm:$0xff] }
 0x474   : > { %7515 = vmatprep.mubr.f32.mxu0 %v7448_v17  ;;  %v5550_v29 = vmax.f32 %v19040_v11, %v19041_v33  ;;  %v5996_v49 = vmax.f32 %v19042_v20, %v19043_v36  ;;  %v10621_v37 = vpack.c.bf16 %v16226_v63, %v16221_v47  ;;  %v7572_v21 = vsel %vm6649_vm5, %v19046_v16, %v7571_v51  ;;  %v19051_v36 = vld [vmem:[#allocation101_spill] sm:$0xff]  ;;  %v19052_v31 = vld [vmem:[#allocation130_spill] sm:$0xff]  ;;  %v19071_v1 = vld [vmem:[#allocation132_spill] sm:$0xff] }
 0x475   : > { %v10623_v61 = vpack.c.bf16 %v16243_v60, %v16238_v22  ;;  %v19048_v19 = vrot.slane %v19047_v27, 1  ;;  %10540 = vmatpush3.bf16.msra.mxu0 %v10539_v9  ;;  %v6221_v5 = vrot.slane %v6220_v35, 1  ;;  %v6442_v28 = vmax.f32 %v6440_v8, %v6441_v41  ;;  %10576 = vmatpush3.bf16.msra.mxu1 %v10575_v58  ;;  %v19054_v41 = vld [vmem:[#allocation169_spill] sm:$0xff]  ;;  %v19072_v48 = vld [vmem:[#allocation95_spill] sm:$0xff]  ;;  %v16399_v22 = vld [vmem:[%s18333_s3 + $0x918] sm:$0xff] }
 0x476   : > { %v5997_v46 = vrot.slane %v5996_v49, 1  ;;  %v7573_v43 = vsel %vm6651_vm6, %v5550_v29, %v7572_v21  ;;  %v19050_v17 = vrot.slane %v19049_v13, 1  ;;  %10542 = vmatprep.subr.bf16.mxu0 %v10541_v50  ;;  %v5360_v18 = vrot.slane %v19051_v36, 1  ;;  %10578 = vmatprep.subr.bf16.mxu1 %v10577_v10  ;;  %v19055_v21 = vld [vmem:[#allocation122_spill] sm:$0xff] }
 0x477   : > { %v4913_v38 = vmax.f32 %v19047_v27, %v19048_v19  ;;  %v7574_v20 = vsel %vm6653_vm7, %v5774_v55, %v7573_v43  ;;  %v19053_v51 = vrot.slane %v19052_v31, 2  ;;  %v6222_v9 = vmax.f32 %v6220_v35, %v6221_v5 }
 0x478   : > { %v5137_v11 = vmax.f32 %v19049_v13, %v19050_v17  ;;  %v5998_v33 = vmax.f32 %v5996_v49, %v5997_v46  ;;  %v6443_v8 = vrot.slane %v6442_v28, 2  ;;  %v5806_v29 = vrot.slane %v19054_v41, 2  ;;  %v19057_v49 = vld [vmem:[#allocation139_spill] sm:$0xff] }
 0x479   : > { %v5583_v16 = vmax.f32 %v19052_v31, %v19053_v51  ;;  %v19056_v27 = vrot.slane %v19055_v21, 4  ;;  %v5361_v50 = vmax.f32 %v19051_v36, %v5360_v18  ;;  %v19058_v46 = vcombine.high %v19057_v49, %v19057_v49  ;;  %10544 = vmatpush3.bf16.msra.mxu0 %v10543_v30  ;;  %10580 = vmatpush3.bf16.msra.mxu1 %v10579_v53 }
 0x47a   : > { %v7575_v58 = vsel %vm6655_vm8, %v5998_v33, %v7574_v20  ;;  %v6444_v10 = vmax.f32 %v6442_v28, %v6443_v8  ;;  %v5807_v5 = vmax.f32 %v19054_v41, %v5806_v29  ;;  %10546 = vmatprep.subr.bf16.mxu0 %v10545_v34  ;;  %v19059_v20 = vld [vmem:[#allocation168_spill] sm:$0xff]  ;;  %v7850_v30 = vsel %vm6647_vm4, %v5137_v11, %v4913_v38  ;;  %v19063_v34 = vld [vmem:[#allocation67_spill] sm:$0xff] }
 0x47b   : > { %v6029_v19 = vmax.f32 %v19055_v21, %v19056_v27  ;;  %v5584_v55 = vrot.slane %v5583_v16, 1  ;;  %v6251_v43 = vsel %vm4773_vm3, %v19058_v46, -inf  ;;  %v7576_v35 = vsel %vm6657_vm9, %v6222_v9, %v7575_v58  ;;  %10582 = vmatprep.subr.bf16.mxu1 %v10581_v44  ;;  %v19064_v58 = vld [vmem:[#allocation144_spill] sm:$0xff] }
 0x47c   : > { %v6252_v33 = vrot.slane %v6251_v43, 4  ;;  %v19060_v36 = vcombine.high %v19059_v20, %v19059_v20  ;;  %v6445_v28 = vrot.slane %v6444_v10, 1  ;;  %v5808_v31 = vrot.slane %v5807_v5, 1 }
 0x47d   : > { %v6030_v13 = vrot.slane %v6029_v19, 2  ;;  %v5585_v17 = vmax.f32 %v5583_v16, %v5584_v55  ;;  %v7851_v41 = vsel %vm6649_vm5, %v5361_v50, %v7850_v30  ;;  %v19062_v25 = vrot.slane %v19061_v4, 1  ;;  %10548 = vmatpush3.bf16.msra.mxu0 %v10547_v42  ;;  %10584 = vmatpush3.bf16.msra.mxu1 %v10583_v57  ;;  %v9384_v42 = vld [vmem:[%s18333_s3 + $0x880] sm:$0xff]  ;;  %v19066_v55 = vld [vmem:[#allocation161_spill] sm:$0xff] }
 0x47e   : > { %v6475_v18 = vsel %vm4773_vm3, %v19060_v36, -inf  ;;  %v6253_v8 = vmax.f32 %v6251_v43, %v6252_v33  ;;  %v5983_v16 = vrot.slane %v19063_v34, 1  ;;  %v6446_v29 = vmax.f32 %v6444_v10, %v6445_v28  ;;  %10550 = vmatprep.subr.bf16.mxu0 %v10549_v45  ;;  %10586 = vmatprep.subr.bf16.mxu1 %v10585_v62  ;;  %v19068_v43 = vld [vmem:[#allocation24_spill] sm:$0xff] }
 0x47f   : > { %v6031_v51 = vmax.f32 %v6029_v19, %v6030_v13  ;;  %v6476_v9 = vrot.slane %v6475_v18, 4  ;;  %v5760_v53 = vmax.f32 %v19061_v4, %v19062_v25  ;;  %v5809_v38 = vmax.f32 %v5807_v5, %v5808_v31  ;;  %v19069_v10 = vld [vmem:[#allocation56_spill] sm:$0xff]  ;;  %v19070_v13 = vld [vmem:[#allocation97_spill] sm:$0xff]  ;;  %v19077_v4 = vld [vmem:[#allocation11_spill] sm:$0xff] }
 0x480   : > { %v6254_v21 = vrot.slane %v6253_v8, 2  ;;  %v7852_v27 = vsel %vm6651_vm6, %v5585_v17, %v7851_v41  ;;  %v5984_v19 = vmax.f32 %v19063_v34, %v5983_v16  ;;  %v19065_v3 = vrot.slane %v19064_v58, 2  ;;  %v19078_v34 = vld [vmem:[#allocation146_spill] sm:$0xff] }
 0x481   : > { %v6032_v44 = vrot.slane %v6031_v51, 1  ;;  %v6477_v11 = vmax.f32 %v6475_v18, %v6476_v9  ;;  %v7577_v32 = vsel %vm6659_vm10, %v6446_v29, %v7576_v35  ;;  %v7853_v57 = vsel %vm6653_vm7, %v5809_v38, %v7852_v27  ;;  %10552 = vmatpush3.bf16.msra.mxu0 %v10551_v14  ;;  %10588 = vmatpush3.bf16.msra.mxu1 %v10587_v56  ;;  %v9419_v38 = vld [vmem:[%s18333_s3 + $0x998] sm:$0xff] }
 0x482   : > { %v6206_v15 = vmax.f32 %v19064_v58, %v19065_v3  ;;  %v6255_v45 = vmax.f32 %v6253_v8, %v6254_v21  ;;  %v19067_v49 = vrot.slane %v19066_v55, 4  ;;  %v7435_v5 = vsel %vm6647_vm4, %v19069_v10, %v19068_v43  ;;  %10554 = vmatprep.subr.bf16.mxu0 %v10553_v59  ;;  %10622 = vmatprep.subr.bf16.mxu1 %v10621_v37  ;;  %v19075_v37 = vld [vmem:[#allocation163_spill] sm:$0xff]  ;;  %v19080_v21 = vld [vmem:[#allocation162_spill] sm:$0xff]  ;;  %v16410_v58 = vld [vmem:[%s18333_s3 + $0x890] sm:$0xff] }
 0x483   : > { %v6033_v6 = vmax.f32 %v6031_v51, %v6032_v44  ;;  %v6478_v26 = vrot.slane %v6477_v11, 2  ;;  %v7436_v17 = vsel %vm6649_vm5, %v19070_v13, %v7435_v5  ;;  %v10589_v33 = vpack.c.bf16 %v9385_v2, %v9384_v42  ;;  %v19074_v51 = vld [vmem:[#allocation133_spill] sm:$0xff]  ;;  %v16415_v3 = vld [vmem:[%s18333_s3 + $0x898] sm:$0xff]  ;;  %v16453_v43 = vld [vmem:[%s18333_s3 + $0x8a0] sm:$0xff] }
 0x484   : > { %v6207_v50 = vrot.slane %v6206_v15, 1  ;;  %v6428_v46 = vmax.f32 %v19066_v55, %v19067_v49  ;;  %v6256_v36 = vrot.slane %v6255_v45, 1  ;;  %v7437_v23 = vsel %vm6651_vm6, %v19071_v1, %v7436_v17  ;;  %7652 = vmatmul.mubr.f32.vlgmr.msra.gmra.mrb[70].mxu1 %v7577_v32  ;;  %v16394_v44 = vld [vmem:[%s18333_s3 + $0x910] sm:$0xff]  ;;  %v16425_v42 = vld [vmem:[%s18333_s3 + $0x818] sm:$0xff]  ;;  %v16438_v55 = vld [vmem:[%s18333_s3 + $0x9a8] sm:$0xff] }
 0x485   : > { %v6479_v62 = vmax.f32 %v6477_v11, %v6478_v26  ;;  %v7854_v35 = vsel %vm6655_vm8, %v6033_v6, %v7853_v57  ;;  %v7438_v28 = vsel %vm6653_vm7, %v5760_v53, %v7437_v23  ;;  %v10591_v40 = vpack.c.bf16 %v16342_v0, %v16337_v54  ;;  %10556 = vmatpush3.bf16.msra.mxu0 %v10555_v24  ;;  %v9418_v53 = vld [vmem:[%s18333_s3 + $0x990] sm:$0xff]  ;;  %v16443_v49 = vld [vmem:[%s18333_s3 + $0x920] sm:$0xff]  ;;  %v16458_v10 = vld [vmem:[%s18333_s3 + $0x8a8] sm:$0xff] }
 0x486   : > { %v6208_v18 = vmax.f32 %v6206_v15, %v6207_v50  ;;  %v6429_v30 = vrot.slane %v6428_v46, 2  ;;  %v19073_v56 = vrot.slane %v19072_v48, 1  ;;  %v6257_v52 = vmax.f32 %v6255_v45, %v6256_v36  ;;  %10624 = vmatpush3.bf16.msra.mxu1 %v10623_v61  ;;  %10590 = vmatprep.subr.bf16.mxu0 %v10589_v33  ;;  %v16420_v15 = vld [vmem:[%s18333_s3 + $0x810] sm:$0xff]  ;;  %v16433_v50 = vld [vmem:[%s18333_s3 + $0x9a0] sm:$0xff]  ;;  %v16469_v33 = vld [vmem:[%s18333_s3 + $0x828] sm:$0xff] }
 0x487   : > { %v6480_v14 = vrot.slane %v6479_v62, 1  ;;  %v7439_v31 = vsel %vm6655_vm8, %v5984_v19, %v7438_v28  ;;  %v5570_v9 = vrot.slane %v19074_v51, 1  ;;  %v19076_v8 = vrot.slane %v19075_v37, 2  ;;  %v19082_v26 = vld [vmem:[#allocation29_spill] sm:$0xff]  ;;  %v16464_v17 = vld [vmem:[%s18333_s3 + $0x820] sm:$0xff]  ;;  %v16572_v0 = vld [vmem:[%s18333_s3 + $0x9d8] sm:$0xff] }
 0x488   : > { %v5347_v39 = vmax.f32 %v19072_v48, %v19073_v56  ;;  %v6430_v59 = vmax.f32 %v6428_v46, %v6429_v30  ;;  %v7440_v63 = vsel %vm6657_vm9, %v6208_v18, %v7439_v31  ;;  %v6016_v25 = vrot.slane %v19077_v4, 2  ;;  %v19083_v57 = vld [vmem:[#allocation65_spill] sm:$0xff]  ;;  %v16448_v46 = vld [vmem:[%s18333_s3 + $0x928] sm:$0xff]  ;;  %v16479_v18 = vld [vmem:[%s18333_s3 + $0x9b8] sm:$0xff] }
 0x489   : > { %v6481_v47 = vmax.f32 %v6479_v62, %v6480_v14  ;;  %v5793_v41 = vmax.f32 %v19075_v37, %v19076_v8  ;;  %v7855_v7 = vsel %vm6657_vm9, %v6257_v52, %v7854_v35  ;;  %v5571_v24 = vmax.f32 %v19074_v51, %v5570_v9  ;;  %v16474_v36 = vld [vmem:[%s18333_s3 + $0x9b0] sm:$0xff]  ;;  %v16491_v48 = vld [vmem:[%s18333_s3 + $0x938] sm:$0xff]  ;;  %v16516_v31 = vld [vmem:[%s18333_s3 + $0x9c0] sm:$0xff] }
 0x48a   : > { %v6431_v12 = vrot.slane %v6430_v59, 1  ;;  %v19079_v16 = vrot.slane %v19078_v34, 4  ;;  %v6017_v11 = vmax.f32 %v19077_v4, %v6016_v25  ;;  %v19081_v27 = vcombine.high %v19080_v21, %v19080_v21  ;;  %v16486_v28 = vld [vmem:[%s18333_s3 + $0x930] sm:$0xff]  ;;  %v16521_v51 = vld [vmem:[%s18333_s3 + $0x9c8] sm:$0xff]  ;;  %v16529_v37 = vld [vmem:[%s18333_s3 + $0x940] sm:$0xff] }
 0x48b   : > { %v7856_v60 = vsel %vm6659_vm10, %v6481_v47, %v7855_v7  ;;  %v5794_v61 = vrot.slane %v5793_v41, 1  ;;  %v7714_v45 = vsel %vm6647_vm4, %v19083_v57, %v19082_v26  ;;  %v10625_v13 = vpack.c.bf16 %v9419_v38, %v9418_v53  ;;  %v16496_v56 = vld [vmem:[%s18333_s3 + $0x8b0] sm:$0xff]  ;;  %v16534_v8 = vld [vmem:[%s18333_s3 + $0x948] sm:$0xff]  ;;  %v16582_v38 = vld [vmem:[%s18333_s3 + $0x958] sm:$0xff] }
 0x48c   : > { %v6239_v29 = vmax.f32 %v19078_v34, %v19079_v16  ;;  %v6461_v19 = vsel %vm4773_vm3, %v19081_v27, -inf  ;;  %7923 = vmatprep.mubr.f32.mxu1 %v7856_v60  ;;  %v6432_v2 = vmax.f32 %v6430_v59, %v6431_v12  ;;  %v6018_v62 = vrot.slane %v6017_v11, 1  ;;  %v16506_v52 = vld [vmem:[%s18333_s3 + $0x830] sm:$0xff]  ;;  %v16511_v59 = vld [vmem:[%s18333_s3 + $0x838] sm:$0xff]  ;;  %v16544_v4 = vld [vmem:[%s18333_s3 + $0x8c8] sm:$0xff] }
 0x48d   : > { %v6462_v6 = vrot.slane %v6461_v19, 4  ;;  %v5795_v5 = vmax.f32 %v5793_v41, %v5794_v61  ;;  %v7715_v35 = vsel %vm6649_vm5, %v5347_v39, %v7714_v45  ;;  %v16501_v39 = vld [vmem:[%s18333_s3 + $0x8b8] sm:$0xff]  ;;  %10626 = vmatprep.subr.bf16.mxu1 %v10625_v13  ;;  %v16539_v41 = vld [vmem:[%s18333_s3 + $0x8c0] sm:$0xff]  ;;  %v19084_v25 = vld [vmem:[#allocation176_spill] sm:$0xff]  ;;  %v10595_v34 = vpack.c.bf16 %v16425_v42, %v16420_v15 }
 0x48e   : > { %v6240_v32 = vrot.slane %v6239_v29, 2  ;;  %v7441_v30 = vsel %vm6659_vm10, %v6432_v2, %v7440_v63  ;;  %v7716_v14 = vsel %vm6651_vm6, %v5571_v24, %v7715_v35  ;;  %v6019_v9 = vmax.f32 %v6017_v11, %v6018_v62  ;;  %v16557_v16 = vld [vmem:[%s18333_s3 + $0x840] sm:$0xff]  ;;  %v16567_v54 = vld [vmem:[%s18333_s3 + $0x9d0] sm:$0xff]  ;;  %v16599_v21 = vld [vmem:[%s18333_s3 + $0x8d8] sm:$0xff] }
 0x48f   : > { %v6463_v23 = vmax.f32 %v6461_v19, %v6462_v6  ;;  %7516 = vmatmul.mubr.f32.vlgmr.msra.gmra.mrb[70].mxu0 %v7441_v30  ;;  %v7717_v47 = vsel %vm6653_vm7, %v5795_v5, %v7716_v14  ;;  %v10627_v63 = vpack.c.bf16 %v16399_v22, %v16394_v44  ;;  %v5801_v53 = vrot.slane %v19084_v25, 1  ;;  %v16594_v11 = vld [vmem:[%s18333_s3 + $0x8d0] sm:$0xff]  ;;  %v16609_v19 = vld [vmem:[%s18333_s3 + $0x858] sm:$0xff]  ;;  %v16628_v6 = vld [vmem:[%s18333_s3 + $0x960] sm:$0xff] }
 0x490   : > { %v6241_v1 = vmax.f32 %v6239_v29, %v6240_v32  ;;  %10592 = vmatpush3.bf16.msra.mxu0 %v10591_v40  ;;  %v10593_v24 = vpack.c.bf16 %v16415_v3, %v16410_v58  ;;  %v16562_v29 = vld [vmem:[%s18333_s3 + $0x848] sm:$0xff]  ;;  %v16577_v40 = vld [vmem:[%s18333_s3 + $0x950] sm:$0xff]  ;;  %v7718_v44 = vsel %vm6655_vm8, %v6019_v9, %v7717_v47  ;;  %v10629_v22 = vpack.c.bf16 %v16438_v55, %v16433_v50  ;;  %v16614_v58 = vld [vmem:[%s18333_s3 + $0x9e0] sm:$0xff] }
 0x491   : > { %v6464_v12 = vrot.slane %v6463_v23, 2  ;;  %10628 = vmatpush3.bf16.msra.mxu1 %v10627_v63  ;;  %v10631_v60 = vpack.c.bf16 %v16448_v46, %v16443_v49  ;;  %v10597_v61 = vpack.c.bf16 %v16458_v10, %v16453_v43  ;;  %v16604_v27 = vld [vmem:[%s18333_s3 + $0x850] sm:$0xff]  ;;  %v16619_v3 = vld [vmem:[%s18333_s3 + $0x9e8] sm:$0xff]  ;;  %v10599_v2 = vpack.c.bf16 %v16469_v33, %v16464_v17  ;;  %v16638_v57 = vld [vmem:[%s18333_s3 + $0x8e0] sm:$0xff] }
 0x492   : > { %v6242_v7 = vrot.slane %v6241_v1, 1  ;;  %10594 = vmatprep.subr.bf16.mxu0 %v10593_v24  ;;  %v10633_v32 = vpack.c.bf16 %v16479_v18, %v16474_v36  ;;  %v16633_v26 = vld [vmem:[%s18333_s3 + $0x968] sm:$0xff]  ;;  %v16648_v50 = vld [vmem:[%s18333_s3 + $0x860] sm:$0xff]  ;;  %10630 = vmatprep.subr.bf16.mxu1 %v10629_v22  ;;  %v10635_v55 = vpack.c.bf16 %v16491_v48, %v16486_v28  ;;  %v10601_v49 = vpack.c.bf16 %v16501_v39, %v16496_v56  ;;  %v16666_v5 = vld [vmem:[%s18333_s3 + $0x9f0] sm:$0xff] }
 0x493   : > { %v6465_v42 = vmax.f32 %v6463_v23, %v6464_v12  ;;  %v16643_v45 = vld [vmem:[%s18333_s3 + $0x8e8] sm:$0xff]  ;;  %v10603_v46 = vpack.c.bf16 %v16511_v59, %v16506_v52  ;;  %v10637_v43 = vpack.c.bf16 %v16521_v51, %v16516_v31  ;;  %v16671_v62 = vld [vmem:[%s18333_s3 + $0x9f8] sm:$0xff]  ;;  %v10639_v17 = vpack.c.bf16 %v16534_v8, %v16529_v37  ;;  %v16681_v36 = vld [vmem:[%s18333_s3 + $0x970] sm:$0xff] }
 0x494   : > { %v6243_v15 = vmax.f32 %v6241_v1, %v6242_v7  ;;  %v16661_v10 = vld [vmem:[%s18333_s3 + $0x868] sm:$0xff]  ;;  %10596 = vmatpush3.bf16.msra.mxu0 %v10595_v34  ;;  %v10605_v33 = vpack.c.bf16 %v16544_v4, %v16539_v41  ;;  %v16686_v18 = vld [vmem:[%s18333_s3 + $0x978] sm:$0xff]  ;;  %v16691_v30 = vld [vmem:[%s18333_s3 + $0x8f0] sm:$0xff]  ;;  %v10607_v1 = vpack.c.bf16 %v16562_v29, %v16557_v16  ;;  %v10641_v23 = vpack.c.bf16 %v16572_v0, %v16567_v54 }
 0x495   : > { %v6466_v35 = vrot.slane %v6465_v42, 1  ;;  %10632 = vmatpush3.bf16.msra.mxu1 %v10631_v60  ;;  %10598 = vmatprep.subr.bf16.mxu0 %v10597_v61  ;;  %v10643_v14 = vpack.c.bf16 %v16582_v38, %v16577_v40  ;;  %v16702_v28 = vld [vmem:[%s18333_s3 + $0x8f8] sm:$0xff]  ;;  %v16707_v48 = vld [vmem:[%s18333_s3 + $0x870] sm:$0xff]  ;;  %v10609_v31 = vpack.c.bf16 %v16599_v21, %v16594_v11  ;;  %v10611_v51 = vpack.c.bf16 %v16609_v19, %v16604_v27  ;;  %v16732_v41 = vld [vmem:[%s18333_s3 + $0xb80] sm:$0xff] }
 0x496   : > { %v7719_v13 = vsel %vm6657_vm9, %v6243_v15, %v7718_v44  ;;  %v16712_v56 = vld [vmem:[%s18333_s3 + $0x878] sm:$0xff]  ;;  %10634 = vmatprep.subr.bf16.mxu1 %v10633_v32  ;;  %v10645_v9 = vpack.c.bf16 %v16619_v3, %v16614_v58  ;;  %v10647_v47 = vpack.c.bf16 %v16633_v26, %v16628_v6  ;;  %v10613_v63 = vpack.c.bf16 %v16643_v45, %v16638_v57  ;;  %v16737_v4 = vld [vmem:[%s18333_s3 + $0xb88] sm:$0xff]  ;;  %v16749_v16 = vld [vmem:[%s18333_s3 + $0xb00] sm:$0xff] }
 0x497   : > { %v19085_v39 = vld [vmem:[#allocation202_spill] sm:$0xff]  ;;  %v6467_v59 = vmax.f32 %v6465_v42, %v6466_v35  ;;  %v10615_v37 = vpack.c.bf16 %v16661_v10, %v16648_v50  ;;  %v10649_v8 = vpack.c.bf16 %v16671_v62, %v16666_v5  ;;  %v10651_v12 = vpack.c.bf16 %v16686_v18, %v16681_v36  ;;  %v16754_v29 = vld [vmem:[%s18333_s3 + $0xb08] sm:$0xff]  ;;  %v19086_v54 = vld [vmem:[#allocation131_spill] sm:$0xff] }
 0x498   : > { %v6247_v52 = vrot.slane %v19085_v39, 2  ;;  %10600 = vmatpush3.bf16.msra.mxu0 %v10599_v2  ;;  %v10617_v24 = vpack.c.bf16 %v16702_v28, %v16691_v30  ;;  %v10619_v34 = vpack.c.bf16 %v16712_v56, %v16707_v48  ;;  %v19087_v0 = vrot.slane %v19086_v54, 1  ;;  %v19088_v60 = vld [vmem:[#allocation129_spill] sm:$0xff]  ;;  %v19090_v15 = vld [vmem:[#allocation31_spill] sm:$0xff]  ;;  %v19091_v42 = vld [vmem:[#allocation68_spill] sm:$0xff] }
 0x499   : > { %v7720_v7 = vsel %vm6659_vm10, %v6467_v59, %v7719_v13  ;;  %10636 = vmatpush3.bf16.msra.mxu1 %v10635_v55  ;;  %v5802_v22 = vmax.f32 %v19084_v25, %v5801_v53  ;;  %v19089_v61 = vrot.slane %v19088_v60, 2  ;;  %v6468_v21 = vsel %vm4773_vm3, %v19059_v20, -inf  ;;  %10602 = vmatprep.subr.bf16.mxu0 %v10601_v49  ;;  %v19092_v53 = vld [vmem:[#allocation104_spill] sm:$0xff]  ;;  %v19093_v20 = vld [vmem:[#allocation30_spill] sm:$0xff]  ;;  %v19095_v59 = vld [vmem:[#allocation69_spill] sm:$0xff] }
 0x49a   : > { %7787 = vmatprep.mubr.f32.mxu0 %v7720_v7  ;;  %v5578_v44 = vmax.f32 %v19086_v54, %v19087_v0  ;;  %10638 = vmatprep.subr.bf16.mxu1 %v10637_v43  ;;  %v6248_v58 = vmax.f32 %v19085_v39, %v6247_v52  ;;  %v6469_v3 = vrot.slane %v6468_v21, 4  ;;  %v7843_v2 = vsel %vm6647_vm4, %v19091_v42, %v19090_v15  ;;  %v19098_v42 = vld [vmem:[#allocation73_spill] sm:$0xff]  ;;  %v19107_v40 = vld [vmem:[#allocation171_spill] sm:$0xff]  ;;  %v9449_v6 = vld [vmem:[%s18333_s3 + $0xa88] sm:$0xff] }
 0x49b   : > { %v6024_v11 = vmax.f32 %v19088_v60, %v19089_v61  ;;  %v10685_v32 = vpack.c.bf16 %v16737_v4, %v16732_v41  ;;  %v7844_v55 = vsel %vm6649_vm5, %v19092_v53, %v7843_v2  ;;  %v10687_v35 = vpack.c.bf16 %v16754_v29, %v16749_v16  ;;  %v19097_v61 = vld [vmem:[#allocation41_spill] sm:$0xff]  ;;  %v16848_v5 = vld [vmem:[%s18333_s3 + $0xa00] sm:$0xff]  ;;  %v16853_v62 = vld [vmem:[%s18333_s3 + $0xa08] sm:$0xff] }
 0x49c   : > { %v19094_v49 = vrot.slane %v19093_v20, 1  ;;  %10604 = vmatpush3.bf16.msra.mxu0 %v10603_v46  ;;  %v6249_v13 = vrot.slane %v6248_v58, 1  ;;  %v6470_v39 = vmax.f32 %v6468_v21, %v6469_v3  ;;  %v7845_v52 = vsel %vm6651_vm6, %v5578_v44, %v7844_v55  ;;  %v19100_v3 = vld [vmem:[#allocation178_spill] sm:$0xff]  ;;  %v19101_v55 = vld [vmem:[#allocation187_spill] sm:$0xff] }
 0x49d   : > { %v6025_v25 = vrot.slane %v6024_v11, 1  ;;  %v19096_v7 = vrot.slane %v19095_v59, 1  ;;  %10640 = vmatpush3.bf16.msra.mxu1 %v10639_v17  ;;  %10606 = vmatprep.subr.bf16.mxu0 %v10605_v33  ;;  %v7846_v60 = vsel %vm6653_vm7, %v5802_v22, %v7845_v52  ;;  %v5388_v15 = vrot.slane %v19097_v61, 1  ;;  %v19117_v50 = vld [vmem:[#allocation74_spill] sm:$0xff] }
 0x49e   : > { %v4941_v43 = vmax.f32 %v19093_v20, %v19094_v49  ;;  %v19099_v2 = vrot.slane %v19098_v42, 2  ;;  %10642 = vmatprep.subr.bf16.mxu1 %v10641_v23  ;;  %v6250_v46 = vmax.f32 %v6248_v58, %v6249_v13  ;;  %v6471_v21 = vrot.slane %v6470_v39, 2  ;;  %v19118_v18 = vld [vmem:[#allocation102_spill] sm:$0xff] }
 0x49f   : > { %v5165_v54 = vmax.f32 %v19095_v59, %v19096_v7  ;;  %v6026_v0 = vmax.f32 %v6024_v11, %v6025_v25  ;;  %v5834_v44 = vrot.slane %v19100_v3, 2  ;;  %v19102_v20 = vrot.slane %v19101_v55, 4  ;;  %v19103_v11 = vld [vmem:[#allocation145_spill] sm:$0xff]  ;;  %v16910_v16 = vld [vmem:[%s18333_s3 + $0xb18] sm:$0xff] }
 0x4a0   : > { %v5611_v53 = vmax.f32 %v19098_v42, %v19099_v2  ;;  %v5389_v33 = vmax.f32 %v19097_v61, %v5388_v15  ;;  %v19104_v25 = vcombine.high %v19103_v11, %v19103_v11  ;;  %10608 = vmatpush3.bf16.msra.mxu0 %v10607_v1  ;;  %v6472_v23 = vmax.f32 %v6470_v39, %v6471_v21 }
 0x4a1   : > { %v6057_v49 = vmax.f32 %v19101_v55, %v19102_v20  ;;  %v7847_v17 = vsel %vm6655_vm8, %v6026_v0, %v7846_v60  ;;  %v5835_v13 = vmax.f32 %v19100_v3, %v5834_v44  ;;  %10644 = vmatpush3.bf16.msra.mxu1 %v10643_v14  ;;  %10610 = vmatprep.subr.bf16.mxu0 %v10609_v31  ;;  %v19105_v60 = vld [vmem:[#allocation173_spill] sm:$0xff]  ;;  %v19108_v38 = vrot.slane %v19107_v40, 1  ;;  %v19109_v31 = vld [vmem:[#allocation192_spill] sm:$0xff] }
 0x4a2   : > { %v5612_v22 = vrot.slane %v5611_v53, 1  ;;  %v6279_v52 = vsel %vm4773_vm3, %v19104_v25, -inf  ;;  %v7848_v58 = vsel %vm6657_vm9, %v6250_v46, %v7847_v17  ;;  %v19106_v61 = vcombine.high %v19105_v60, %v19105_v60  ;;  %10646 = vmatprep.subr.bf16.mxu1 %v10645_v9  ;;  %v19110_v17 = vld [vmem:[#allocation201_spill] sm:$0xff] }
 0x4a3   : > { %v6058_v59 = vrot.slane %v6057_v49, 2  ;;  %v6280_v0 = vrot.slane %v6279_v52, 4  ;;  %v8122_v1 = vsel %vm6647_vm4, %v5165_v54, %v4941_v43  ;;  %v6473_v39 = vrot.slane %v6472_v23, 1 }
 0x4a4   : > { %v5613_v7 = vmax.f32 %v5611_v53, %v5612_v22  ;;  %v6503_v15 = vsel %vm4773_vm3, %v19106_v61, -inf  ;;  %v5836_v42 = vrot.slane %v5835_v13, 1  ;;  %v8123_v3 = vsel %vm6649_vm5, %v5389_v33, %v8122_v1  ;;  %10612 = vmatpush3.bf16.msra.mxu0 %v10611_v51  ;;  %v9448_v51 = vld [vmem:[%s18333_s3 + $0xa80] sm:$0xff]  ;;  %v19112_v22 = vld [vmem:[#allocation174_spill] sm:$0xff] }
 0x4a5   : > { %v6059_v2 = vmax.f32 %v6057_v49, %v6058_v59  ;;  %v6504_v46 = vrot.slane %v6503_v15, 4  ;;  %v6281_v21 = vmax.f32 %v6279_v52, %v6280_v0  ;;  %v5788_v14 = vmax.f32 %v19107_v40, %v19108_v38  ;;  %10648 = vmatpush3.bf16.msra.mxu1 %v10647_v47  ;;  %10614 = vmatprep.subr.bf16.mxu0 %v10613_v63  ;;  %v19114_v52 = vld [vmem:[#allocation28_spill] sm:$0xff]  ;;  %v19123_v40 = vld [vmem:[#allocation189_spill] sm:$0xff] }
 0x4a6   : > { %v6011_v53 = vrot.slane %v19109_v31, 1  ;;  %v6474_v44 = vmax.f32 %v6472_v23, %v6473_v39  ;;  %v5837_v43 = vmax.f32 %v5835_v13, %v5836_v42  ;;  %v8124_v20 = vsel %vm6651_vm6, %v5613_v7, %v8123_v3  ;;  %10650 = vmatprep.subr.bf16.mxu1 %v10649_v8  ;;  %v19115_v23 = vld [vmem:[#allocation62_spill] sm:$0xff]  ;;  %v19116_v59 = vld [vmem:[#allocation100_spill] sm:$0xff] }
 0x4a7   : > { %v6060_v9 = vrot.slane %v6059_v2, 1  ;;  %v6505_v54 = vmax.f32 %v6503_v15, %v6504_v46  ;;  %v6282_v55 = vrot.slane %v6281_v21, 2  ;;  %v19111_v27 = vrot.slane %v19110_v17, 2 }
 0x4a8   : > { %v6012_v49 = vmax.f32 %v19109_v31, %v6011_v53  ;;  %v7849_v26 = vsel %vm6659_vm10, %v6474_v44, %v7848_v58  ;;  %v8125_v47 = vsel %vm6653_vm7, %v5837_v43, %v8124_v20  ;;  %v19113_v11 = vrot.slane %v19112_v22, 4  ;;  %10616 = vmatpush3.bf16.msra.mxu0 %v10615_v37  ;;  %v19124_v31 = vld [vmem:[#allocation200_spill] sm:$0xff]  ;;  %v9483_v43 = vld [vmem:[%s18333_s3 + $0xb98] sm:$0xff] }
 0x4a9   : > { %v6234_v19 = vmax.f32 %v19110_v17, %v19111_v27  ;;  %v6061_v57 = vmax.f32 %v6059_v2, %v6060_v9  ;;  %v6506_v45 = vrot.slane %v6505_v54, 2  ;;  %v6283_v63 = vmax.f32 %v6281_v21, %v6282_v55  ;;  %10652 = vmatpush3.bf16.msra.mxu1 %v10651_v12  ;;  %10618 = vmatprep.subr.bf16.mxu0 %v10617_v24  ;;  %v19120_v2 = vld [vmem:[#allocation134_spill] sm:$0xff]  ;;  %v16905_v9 = vld [vmem:[%s18333_s3 + $0xb10] sm:$0xff]  ;;  %v19126_v55 = vld [vmem:[#allocation167_spill] sm:$0xff] }
 0x4aa   : > { %v6456_v25 = vmax.f32 %v19112_v22, %v19113_v11  ;;  %v7707_v13 = vsel %vm6647_vm4, %v19115_v23, %v19114_v52  ;;  %v10653_v0 = vpack.c.bf16 %v9449_v6, %v9448_v51  ;;  %10686 = vmatprep.subr.bf16.mxu1 %v10685_v32  ;;  %v10655_v36 = vpack.c.bf16 %v16853_v62, %v16848_v5  ;;  %v19121_v32 = vld [vmem:[#allocation170_spill] sm:$0xff]  ;;  %v16921_v17 = vld [vmem:[%s18333_s3 + $0xa90] sm:$0xff]  ;;  %v16949_v22 = vld [vmem:[%s18333_s3 + $0xba8] sm:$0xff] }
 0x4ab   : > { %v6235_v33 = vrot.slane %v6234_v19, 1  ;;  %v6507_v8 = vmax.f32 %v6505_v54, %v6506_v45  ;;  %v8126_v58 = vsel %vm6655_vm8, %v6061_v57, %v8125_v47  ;;  %v7708_v7 = vsel %vm6649_vm5, %v19116_v59, %v7707_v13  ;;  %v16926_v27 = vld [vmem:[%s18333_s3 + $0xa98] sm:$0xff]  ;;  %v19128_v45 = vld [vmem:[#allocation33_spill] sm:$0xff]  ;;  %v16954_v11 = vld [vmem:[%s18333_s3 + $0xb20] sm:$0xff] }
 0x4ac   : > { %v6284_v61 = vrot.slane %v6283_v63, 1  ;;  %v6457_v1 = vrot.slane %v6456_v25, 2  ;;  %v7709_v10 = vsel %vm6651_vm6, %v19117_v50, %v7708_v7  ;;  %v19119_v12 = vrot.slane %v19118_v18, 1  ;;  %10620 = vmatpush3.bf16.msra.mxu0 %v10619_v34  ;;  %7924 = vmatmul.mubr.f32.vlgmr.msra.gmra.mrb[72].mxu1 %v7849_v26  ;;  %v16936_v51 = vld [vmem:[%s18333_s3 + $0xa18] sm:$0xff]  ;;  %v16964_v52 = vld [vmem:[%s18333_s3 + $0xaa0] sm:$0xff]  ;;  %v16969_v23 = vld [vmem:[%s18333_s3 + $0xaa8] sm:$0xff] }
 0x4ad   : > { %v6236_v15 = vmax.f32 %v6234_v19, %v6235_v33  ;;  %v6508_v37 = vrot.slane %v6507_v8, 1  ;;  %v7710_v39 = vsel %vm6653_vm7, %v5788_v14, %v7709_v10  ;;  %v5598_v46 = vrot.slane %v19120_v2, 1  ;;  %v9482_v14 = vld [vmem:[%s18333_s3 + $0xb90] sm:$0xff]  ;;  %10688 = vmatpush3.bf16.msra.mxu1 %v10687_v35  ;;  %10654 = vmatprep.subr.bf16.mxu0 %v10653_v0  ;;  %v19129_v47 = vld [vmem:[#allocation70_spill] sm:$0xff]  ;;  %v16944_v33 = vld [vmem:[%s18333_s3 + $0xba0] sm:$0xff] }
 0x4ae   : > { %v5375_v30 = vmax.f32 %v19118_v18, %v19119_v12  ;;  %v6285_v28 = vmax.f32 %v6283_v63, %v6284_v61  ;;  %v6458_v24 = vmax.f32 %v6456_v25, %v6457_v1  ;;  %v7711_v42 = vsel %vm6655_vm8, %v6012_v49, %v7710_v39  ;;  %v16931_v19 = vld [vmem:[%s18333_s3 + $0xa10] sm:$0xff]  ;;  %v16959_v25 = vld [vmem:[%s18333_s3 + $0xb28] sm:$0xff]  ;;  %v16975_v7 = vld [vmem:[%s18333_s3 + $0xa20] sm:$0xff] }
 0x4af   : > { %v6509_v41 = vmax.f32 %v6507_v8, %v6508_v37  ;;  %v7712_v4 = vsel %vm6657_vm9, %v6236_v15, %v7711_v42  ;;  %v19122_v21 = vrot.slane %v19121_v32, 2  ;;  %v6044_v38 = vrot.slane %v19123_v40, 2  ;;  %v16980_v0 = vld [vmem:[%s18333_s3 + $0xa28] sm:$0xff]  ;;  %v16985_v61 = vld [vmem:[%s18333_s3 + $0xbb0] sm:$0xff]  ;;  %v16990_v15 = vld [vmem:[%s18333_s3 + $0xbb8] sm:$0xff] }
 0x4b0   : > { %v8127_v48 = vsel %vm6657_vm9, %v6285_v28, %v8126_v58  ;;  %v6459_v56 = vrot.slane %v6458_v24, 1  ;;  %v5599_v34 = vmax.f32 %v19120_v2, %v5598_v46  ;;  %v19125_v53 = vrot.slane %v19124_v31, 4  ;;  %v16997_v39 = vld [vmem:[%s18333_s3 + $0xb30] sm:$0xff]  ;;  %v17002_v18 = vld [vmem:[%s18333_s3 + $0xb38] sm:$0xff]  ;;  %v17027_v42 = vld [vmem:[%s18333_s3 + $0xbc0] sm:$0xff] }
 0x4b1   : > { %v5821_v3 = vmax.f32 %v19121_v32, %v19122_v21  ;;  %v8128_v29 = vsel %vm6659_vm10, %v6509_v41, %v8127_v48  ;;  %v6045_v54 = vmax.f32 %v19123_v40, %v6044_v38  ;;  %v19127_v20 = vcombine.high %v19126_v55, %v19126_v55  ;;  %v17007_v12 = vld [vmem:[%s18333_s3 + $0xab0] sm:$0xff]  ;;  %v17032_v2 = vld [vmem:[%s18333_s3 + $0xbc8] sm:$0xff]  ;;  %v17040_v32 = vld [vmem:[%s18333_s3 + $0xb40] sm:$0xff] }
 0x4b2   : > { %v6267_v44 = vmax.f32 %v19124_v31, %v19125_v53  ;;  %8195 = vmatprep.mubr.f32.mxu1 %v8128_v29  ;;  %v6460_v6 = vmax.f32 %v6458_v24, %v6459_v56  ;;  %v7986_v63 = vsel %vm6647_vm4, %v19129_v47, %v19128_v45  ;;  %v10689_v59 = vpack.c.bf16 %v9483_v43, %v9482_v14  ;;  %v17017_v28 = vld [vmem:[%s18333_s3 + $0xa30] sm:$0xff]  ;;  %v17022_v24 = vld [vmem:[%s18333_s3 + $0xa38] sm:$0xff]  ;;  %v17045_v21 = vld [vmem:[%s18333_s3 + $0xb48] sm:$0xff] }
 0x4b3   : > { %v5822_v35 = vrot.slane %v5821_v3, 1  ;;  %v6489_v49 = vsel %vm4773_vm3, %v19127_v20, -inf  ;;  %v6046_v8 = vrot.slane %v6045_v54, 1  ;;  %v7987_v58 = vsel %vm6649_vm5, %v5375_v30, %v7986_v63  ;;  %v17012_v30 = vld [vmem:[%s18333_s3 + $0xab8] sm:$0xff]  ;;  %v17055_v40 = vld [vmem:[%s18333_s3 + $0xac8] sm:$0xff]  ;;  %v19130_v38 = vld [vmem:[#allocation177_spill] sm:$0xff] }
 0x4b4   : > { %v6268_v26 = vrot.slane %v6267_v44, 2  ;;  %v6490_v57 = vrot.slane %v6489_v49, 4  ;;  %v7713_v1 = vsel %vm6659_vm10, %v6460_v6, %v7712_v4  ;;  %v7988_v37 = vsel %vm6651_vm6, %v5599_v34, %v7987_v58  ;;  %10690 = vmatprep.subr.bf16.mxu1 %v10689_v59  ;;  %v17068_v53 = vld [vmem:[%s18333_s3 + $0xa40] sm:$0xff]  ;;  %v17078_v5 = vld [vmem:[%s18333_s3 + $0xbd0] sm:$0xff]  ;;  %v17083_v62 = vld [vmem:[%s18333_s3 + $0xbd8] sm:$0xff] }
 0x4b5   : > { %v5823_v13 = vmax.f32 %v5821_v3, %v5822_v35  ;;  %7788 = vmatmul.mubr.f32.vlgmr.msra.gmra.mrb[72].mxu0 %v7713_v1  ;;  %v6047_v46 = vmax.f32 %v6045_v54, %v6046_v8  ;;  %v10691_v4 = vpack.c.bf16 %v16910_v16, %v16905_v9  ;;  %v17050_v3 = vld [vmem:[%s18333_s3 + $0xac0] sm:$0xff]  ;;  %v5829_v14 = vrot.slane %v19130_v38, 1  ;;  %v17093_v43 = vld [vmem:[%s18333_s3 + $0xb58] sm:$0xff]  ;;  %v17105_v54 = vld [vmem:[%s18333_s3 + $0xad0] sm:$0xff] }
 0x4b6   : > { %v6269_v50 = vmax.f32 %v6267_v44, %v6268_v26  ;;  %v6491_v10 = vmax.f32 %v6489_v49, %v6490_v57  ;;  %10656 = vmatpush3.bf16.msra.mxu0 %v10655_v36  ;;  %v10657_v34 = vpack.c.bf16 %v16926_v27, %v16921_v17  ;;  %v10659_v31 = vpack.c.bf16 %v16936_v51, %v16931_v19  ;;  %v17073_v44 = vld [vmem:[%s18333_s3 + $0xa48] sm:$0xff]  ;;  %v17088_v36 = vld [vmem:[%s18333_s3 + $0xb50] sm:$0xff]  ;;  %v17110_v55 = vld [vmem:[%s18333_s3 + $0xad8] sm:$0xff] }
 0x4b7   : > { %v7989_v41 = vsel %vm6653_vm7, %v5823_v13, %v7988_v37  ;;  %10692 = vmatpush3.bf16.msra.mxu1 %v10691_v4  ;;  %v10693_v16 = vpack.c.bf16 %v16949_v22, %v16944_v33  ;;  %v10695_v29 = vpack.c.bf16 %v16959_v25, %v16954_v11  ;;  %v10661_v35 = vpack.c.bf16 %v16969_v23, %v16964_v52  ;;  %v17115_v20 = vld [vmem:[%s18333_s3 + $0xa50] sm:$0xff]  ;;  %v17120_v49 = vld [vmem:[%s18333_s3 + $0xa58] sm:$0xff]  ;;  %v17125_v17 = vld [vmem:[%s18333_s3 + $0xbe0] sm:$0xff] }
 0x4b8   : > { %v6270_v48 = vrot.slane %v6269_v50, 1  ;;  %v6492_v56 = vrot.slane %v6491_v10, 2  ;;  %v7990_v9 = vsel %vm6655_vm8, %v6047_v46, %v7989_v41  ;;  %v17130_v27 = vld [vmem:[%s18333_s3 + $0xbe8] sm:$0xff]  ;;  %10658 = vmatprep.subr.bf16.mxu0 %v10657_v34  ;;  %v10663_v6 = vpack.c.bf16 %v16980_v0, %v16975_v7  ;;  %v17139_v57 = vld [vmem:[%s18333_s3 + $0xb60] sm:$0xff]  ;;  %v17177_v13 = vld [vmem:[%s18333_s3 + $0xbf0] sm:$0xff] }
 0x4b9   : > { %v10697_v26 = vpack.c.bf16 %v16990_v15, %v16985_v61  ;;  %v17144_v45 = vld [vmem:[%s18333_s3 + $0xb68] sm:$0xff]  ;;  %v17149_v47 = vld [vmem:[%s18333_s3 + $0xae0] sm:$0xff]  ;;  %10694 = vmatprep.subr.bf16.mxu1 %v10693_v16  ;;  %v10699_v22 = vpack.c.bf16 %v17002_v18, %v16997_v39  ;;  %v10665_v11 = vpack.c.bf16 %v17012_v30, %v17007_v12  ;;  %v10667_v25 = vpack.c.bf16 %v17022_v24, %v17017_v28  ;;  %v17182_v8 = vld [vmem:[%s18333_s3 + $0xbf8] sm:$0xff] }
 0x4ba   : > { %v6271_v19 = vmax.f32 %v6269_v50, %v6270_v48  ;;  %v6493_v51 = vmax.f32 %v6491_v10, %v6492_v56  ;;  %v17154_v63 = vld [vmem:[%s18333_s3 + $0xae8] sm:$0xff]  ;;  %v17159_v33 = vld [vmem:[%s18333_s3 + $0xa60] sm:$0xff]  ;;  %v10701_v52 = vpack.c.bf16 %v17032_v2, %v17027_v42  ;;  %10660 = vmatpush3.bf16.msra.mxu0 %v10659_v31  ;;  %v10703_v7 = vpack.c.bf16 %v17045_v21, %v17040_v32  ;;  %v17192_v61 = vld [vmem:[%s18333_s3 + $0xb70] sm:$0xff] }
 0x4bb   : > { %v17172_v23 = vld [vmem:[%s18333_s3 + $0xa68] sm:$0xff]  ;;  %v10669_v0 = vpack.c.bf16 %v17055_v40, %v17050_v3  ;;  %v17197_v15 = vld [vmem:[%s18333_s3 + $0xb78] sm:$0xff]  ;;  %v17202_v1 = vld [vmem:[%s18333_s3 + $0xaf0] sm:$0xff]  ;;  %10696 = vmatpush3.bf16.msra.mxu1 %v10695_v29  ;;  %10662 = vmatprep.subr.bf16.mxu0 %v10661_v35  ;;  %v10671_v50 = vpack.c.bf16 %v17073_v44, %v17068_v53  ;;  %v10705_v10 = vpack.c.bf16 %v17083_v62, %v17078_v5 }
 0x4bc   : > { %v6494_v58 = vrot.slane %v6493_v51, 1  ;;  %v7991_v59 = vsel %vm6657_vm9, %v6271_v19, %v7990_v9  ;;  %v10707_v37 = vpack.c.bf16 %v17093_v43, %v17088_v36  ;;  %v17213_v39 = vld [vmem:[%s18333_s3 + $0xaf8] sm:$0xff]  ;;  %v17218_v18 = vld [vmem:[%s18333_s3 + $0xa70] sm:$0xff]  ;;  %v19131_v30 = vld [vmem:[#allocation207_spill] sm:$0xff]  ;;  %10698 = vmatprep.subr.bf16.mxu1 %v10697_v26  ;;  %v10673_v42 = vpack.c.bf16 %v17110_v55, %v17105_v54 }
 0x4bd   : > { %v17223_v12 = vld [vmem:[%s18333_s3 + $0xa78] sm:$0xff]  ;;  %v6275_v28 = vrot.slane %v19131_v30, 2  ;;  %v10675_v2 = vpack.c.bf16 %v17120_v49, %v17115_v20  ;;  %v10709_v46 = vpack.c.bf16 %v17130_v27, %v17125_v17  ;;  %v10711_v41 = vpack.c.bf16 %v17144_v45, %v17139_v57  ;;  %v17243_v3 = vld [vmem:[%s18333_s3 + $0xd80] sm:$0xff]  ;;  %v17248_v40 = vld [vmem:[%s18333_s3 + $0xd88] sm:$0xff] }
 0x4be   : > { %v6495_v24 = vmax.f32 %v6493_v51, %v6494_v58  ;;  %v10677_v4 = vpack.c.bf16 %v17154_v63, %v17149_v47  ;;  %v10679_v32 = vpack.c.bf16 %v17172_v23, %v17159_v33  ;;  %v10713_v21 = vpack.c.bf16 %v17182_v8, %v17177_v13  ;;  %10664 = vmatpush3.bf16.msra.mxu0 %v10663_v6  ;;  %v17260_v53 = vld [vmem:[%s18333_s3 + $0xd00] sm:$0xff]  ;;  %v17265_v44 = vld [vmem:[%s18333_s3 + $0xd08] sm:$0xff]  ;;  %v19163_v33 = vld [vmem:[#allocation137_spill] sm:$0xff] }
 0x4bf   : > { %v10715_v56 = vpack.c.bf16 %v17197_v15, %v17192_v61  ;;  %v10681_v34 = vpack.c.bf16 %v17213_v39, %v17202_v1  ;;  %v10683_v31 = vpack.c.bf16 %v17223_v12, %v17218_v18  ;;  %10700 = vmatpush3.bf16.msra.mxu1 %v10699_v22  ;;  %v19132_v5 = vld [vmem:[#allocation135_spill] sm:$0xff]  ;;  %v5830_v16 = vmax.f32 %v19130_v38, %v5829_v14  ;;  %v19134_v29 = vld [vmem:[#allocation188_spill] sm:$0xff]  ;;  %v19138_v14 = vld [vmem:[#allocation106_spill] sm:$0xff] }
 0x4c0   : > { %v7992_v48 = vsel %vm6659_vm10, %v6495_v24, %v7991_v59  ;;  %v19133_v62 = vrot.slane %v19132_v5, 1  ;;  %v19135_v35 = vrot.slane %v19134_v29, 2  ;;  %v6496_v55 = vsel %vm4773_vm3, %v19105_v60, -inf  ;;  %10666 = vmatprep.subr.bf16.mxu0 %v10665_v11  ;;  %10702 = vmatprep.subr.bf16.mxu1 %v10701_v52  ;;  %v19136_v19 = vld [vmem:[#allocation35_spill] sm:$0xff]  ;;  %v19139_v60 = vld [vmem:[#allocation34_spill] sm:$0xff]  ;;  %v19153_v36 = vld [vmem:[#allocation172_spill] sm:$0xff] }
 0x4c1   : > { %8059 = vmatprep.mubr.f32.mxu0 %v7992_v48  ;;  %v6276_v17 = vmax.f32 %v19131_v30, %v6275_v28  ;;  %v6497_v27 = vrot.slane %v6496_v55, 4  ;;  %v19137_v51 = vld [vmem:[#allocation71_spill] sm:$0xff]  ;;  %v10749_v26 = vpack.c.bf16 %v17248_v40, %v17243_v3  ;;  %v10751_v58 = vpack.c.bf16 %v17265_v44, %v17260_v53  ;;  %v19141_v24 = vld [vmem:[#allocation10_spill] sm:$0xff]  ;;  %v9513_v57 = vld [vmem:[%s18333_s3 + $0xc88] sm:$0xff] }
 0x4c2   : > { %v5606_v9 = vmax.f32 %v19132_v5, %v19133_v62  ;;  %v6052_v54 = vmax.f32 %v19134_v29, %v19135_v35  ;;  %v8115_v6 = vsel %vm6647_vm4, %v19137_v51, %v19136_v19  ;;  %v19140_v11 = vrot.slane %v19139_v60, 1  ;;  %10668 = vmatpush3.bf16.msra.mxu0 %v10667_v25  ;;  %v19143_v35 = vld [vmem:[#allocation50_spill] sm:$0xff]  ;;  %v19144_v51 = vld [vmem:[#allocation136_spill] sm:$0xff]  ;;  %v17359_v13 = vld [vmem:[%s18333_s3 + $0xc00] sm:$0xff] }
 0x4c3   : > { %v8116_v22 = vsel %vm6649_vm5, %v19138_v14, %v8115_v6  ;;  %v6277_v59 = vrot.slane %v6276_v17, 1  ;;  %v6498_v30 = vmax.f32 %v6496_v55, %v6497_v27  ;;  %v19142_v48 = vrot.slane %v19141_v24, 1  ;;  %10704 = vmatpush3.bf16.msra.mxu1 %v10703_v7  ;;  %10670 = vmatprep.subr.bf16.mxu0 %v10669_v0  ;;  %v19146_v27 = vld [vmem:[#allocation180_spill] sm:$0xff]  ;;  %v19164_v15 = vld [vmem:[#allocation103_spill] sm:$0xff]  ;;  %v17421_v53 = vld [vmem:[%s18333_s3 + $0xd18] sm:$0xff] }
 0x4c4   : > { %v6053_v38 = vrot.slane %v6052_v54, 1  ;;  %v4969_v52 = vmax.f32 %v19139_v60, %v19140_v11  ;;  %v8117_v28 = vsel %vm6651_vm6, %v5606_v9, %v8116_v22  ;;  %v5416_v19 = vrot.slane %v19143_v35, 1  ;;  %10706 = vmatprep.subr.bf16.mxu1 %v10705_v10  ;;  %v19147_v22 = vld [vmem:[#allocation190_spill] sm:$0xff]  ;;  %v17364_v8 = vld [vmem:[%s18333_s3 + $0xc08] sm:$0xff] }
 0x4c5   : > { %v5193_v5 = vmax.f32 %v19141_v24, %v19142_v48  ;;  %v8118_v29 = vsel %vm6653_vm7, %v5830_v16, %v8117_v28  ;;  %v19145_v6 = vrot.slane %v19144_v51, 2  ;;  %v6278_v25 = vmax.f32 %v6276_v17, %v6277_v59 }
 0x4c6   : > { %v6054_v62 = vmax.f32 %v6052_v54, %v6053_v38  ;;  %v6499_v55 = vrot.slane %v6498_v30, 2  ;;  %v5862_v9 = vrot.slane %v19146_v27, 2  ;;  %v19148_v60 = vrot.slane %v19147_v22, 4  ;;  %v19149_v54 = vld [vmem:[#allocation204_spill] sm:$0xff]  ;;  %10672 = vmatpush3.bf16.msra.mxu0 %v10671_v50 }
 0x4c7   : > { %v5639_v14 = vmax.f32 %v19144_v51, %v19145_v6  ;;  %v5417_v0 = vmax.f32 %v19143_v35, %v5416_v19  ;;  %v19150_v38 = vcombine.high %v19149_v54, %v19149_v54  ;;  %10708 = vmatpush3.bf16.msra.mxu1 %v10707_v37  ;;  %10674 = vmatprep.subr.bf16.mxu0 %v10673_v42  ;;  %v19154_v43 = vrot.slane %v19153_v36, 1  ;;  %v19155_v42 = vld [vmem:[#allocation193_spill] sm:$0xff] }
 0x4c8   : > { %v6085_v11 = vmax.f32 %v19147_v22, %v19148_v60  ;;  %v8119_v7 = vsel %vm6655_vm8, %v6054_v62, %v8118_v29  ;;  %v6500_v10 = vmax.f32 %v6498_v30, %v6499_v55  ;;  %v5863_v59 = vmax.f32 %v19146_v27, %v5862_v9  ;;  %v19151_v29 = vld [vmem:[#allocation116_spill] sm:$0xff]  ;;  %10710 = vmatprep.subr.bf16.mxu1 %v10709_v46 }
 0x4c9   : > { %v5640_v16 = vrot.slane %v5639_v14, 1  ;;  %v6307_v28 = vsel %vm4773_vm3, %v19150_v38, -inf  ;;  %v8120_v17 = vsel %vm6657_vm9, %v6278_v25, %v8119_v7  ;;  %v19152_v35 = vcombine.high %v19151_v29, %v19151_v29  ;;  %v19156_v7 = vld [vmem:[#allocation203_spill] sm:$0xff] }
 0x4ca   : > { %v6086_v24 = vrot.slane %v6085_v11, 2  ;;  %v6308_v62 = vrot.slane %v6307_v28, 4  ;;  %v8394_v50 = vsel %vm6647_vm4, %v5193_v5, %v4969_v52  ;;  %v6501_v30 = vrot.slane %v6500_v10, 1  ;;  %10676 = vmatpush3.bf16.msra.mxu0 %v10675_v2  ;;  %v9512_v2 = vld [vmem:[%s18333_s3 + $0xc80] sm:$0xff] }
 0x4cb   : > { %v5641_v48 = vmax.f32 %v5639_v14, %v5640_v16  ;;  %v6531_v19 = vsel %vm4773_vm3, %v19152_v35, -inf  ;;  %v5864_v51 = vrot.slane %v5863_v59, 1  ;;  %v8395_v27 = vsel %vm6649_vm5, %v5417_v0, %v8394_v50  ;;  %10712 = vmatpush3.bf16.msra.mxu1 %v10711_v41  ;;  %10678 = vmatprep.subr.bf16.mxu0 %v10677_v4  ;;  %v19158_v16 = vld [vmem:[#allocation213_spill] sm:$0xff] }
 0x4cc   : > { %v6087_v6 = vmax.f32 %v6085_v11, %v6086_v24  ;;  %v6532_v25 = vrot.slane %v6531_v19, 4  ;;  %v6309_v55 = vmax.f32 %v6307_v28, %v6308_v62  ;;  %v5816_v37 = vmax.f32 %v19153_v36, %v19154_v43  ;;  %10714 = vmatprep.subr.bf16.mxu1 %v10713_v21  ;;  %v19160_v28 = vld [vmem:[#allocation32_spill] sm:$0xff]  ;;  %v19162_v24 = vld [vmem:[#allocation105_spill] sm:$0xff]  ;;  %v19169_v36 = vld [vmem:[#allocation195_spill] sm:$0xff] }
 0x4cd   : > { %v6039_v14 = vrot.slane %v19155_v42, 1  ;;  %v6502_v9 = vmax.f32 %v6500_v10, %v6501_v30  ;;  %v5865_v52 = vmax.f32 %v5863_v59, %v5864_v51  ;;  %v8396_v60 = vsel %vm6651_vm6, %v5641_v48, %v8395_v27  ;;  %v19161_v10 = vld [vmem:[#allocation64_spill] sm:$0xff] }
 0x4ce   : > { %v6088_v46 = vrot.slane %v6087_v6, 1  ;;  %v6533_v5 = vmax.f32 %v6531_v19, %v6532_v25  ;;  %v6310_v22 = vrot.slane %v6309_v55, 2  ;;  %v19157_v20 = vrot.slane %v19156_v7, 2  ;;  %10680 = vmatpush3.bf16.msra.mxu0 %v10679_v32 }
 0x4cf   : > { %v6040_v11 = vmax.f32 %v19155_v42, %v6039_v14  ;;  %v8121_v45 = vsel %vm6659_vm10, %v6502_v9, %v8120_v17  ;;  %v8397_v41 = vsel %vm6653_vm7, %v5865_v52, %v8396_v60  ;;  %v19159_v54 = vrot.slane %v19158_v16, 4  ;;  %10716 = vmatpush3.bf16.msra.mxu1 %v10715_v56  ;;  %10682 = vmatprep.subr.bf16.mxu0 %v10681_v34  ;;  %v19170_v42 = vld [vmem:[#allocation206_spill] sm:$0xff] }
 0x4d0   : > { %v6262_v49 = vmax.f32 %v19156_v7, %v19157_v20  ;;  %v6089_v47 = vmax.f32 %v6087_v6, %v6088_v46  ;;  %v6534_v63 = vrot.slane %v6533_v5, 2  ;;  %v6311_v4 = vmax.f32 %v6309_v55, %v6310_v22  ;;  %10750 = vmatprep.subr.bf16.mxu1 %v10749_v26  ;;  %v19166_v6 = vld [vmem:[#allocation140_spill] sm:$0xff]  ;;  %v19167_v26 = vld [vmem:[#allocation175_spill] sm:$0xff]  ;;  %v9547_v52 = vld [vmem:[%s18333_s3 + $0xd98] sm:$0xff] }
 0x4d1   : > { %v6484_v38 = vmax.f32 %v19158_v16, %v19159_v54  ;;  %v7979_v59 = vsel %vm6647_vm4, %v19161_v10, %v19160_v28  ;;  %v10717_v62 = vpack.c.bf16 %v9513_v57, %v9512_v2  ;;  %v10719_v61 = vpack.c.bf16 %v17364_v8, %v17359_v13  ;;  %v17416_v46 = vld [vmem:[%s18333_s3 + $0xd10] sm:$0xff]  ;;  %v17437_v20 = vld [vmem:[%s18333_s3 + $0xc98] sm:$0xff]  ;;  %v17460_v16 = vld [vmem:[%s18333_s3 + $0xda8] sm:$0xff] }
 0x4d2   : > { %v6263_v0 = vrot.slane %v6262_v49, 1  ;;  %v6535_v21 = vmax.f32 %v6533_v5, %v6534_v63  ;;  %v8398_v17 = vsel %vm6655_vm8, %v6089_v47, %v8397_v41  ;;  %v7980_v48 = vsel %vm6649_vm5, %v19162_v24, %v7979_v59  ;;  %10684 = vmatpush3.bf16.msra.mxu0 %v10683_v31  ;;  %8196 = vmatmul.mubr.f32.vlgmr.msra.gmra.mrb[74].mxu1 %v8121_v45  ;;  %v19172_v22 = vld [vmem:[#allocation77_spill] sm:$0xff]  ;;  %v17447_v2 = vld [vmem:[%s18333_s3 + $0xc18] sm:$0xff]  ;;  %v19175_v41 = vld [vmem:[#allocation75_spill] sm:$0xff] }
 0x4d3   : > { %v6312_v35 = vrot.slane %v6311_v4, 1  ;;  %v6485_v50 = vrot.slane %v6484_v38, 2  ;;  %v7981_v23 = vsel %vm6651_vm6, %v19163_v33, %v7980_v48  ;;  %v19165_v56 = vrot.slane %v19164_v15, 1  ;;  %10752 = vmatpush3.bf16.msra.mxu1 %v10751_v58  ;;  %10718 = vmatprep.subr.bf16.mxu0 %v10717_v62  ;;  %v17432_v7 = vld [vmem:[%s18333_s3 + $0xc90] sm:$0xff]  ;;  %v19174_v63 = vld [vmem:[#allocation38_spill] sm:$0xff]  ;;  %v17465_v54 = vld [vmem:[%s18333_s3 + $0xd20] sm:$0xff] }
 0x4d4   : > { %v6264_v19 = vmax.f32 %v6262_v49, %v6263_v0  ;;  %v6536_v32 = vrot.slane %v6535_v21, 1  ;;  %v7982_v30 = vsel %vm6653_vm7, %v5816_v37, %v7981_v23  ;;  %v5626_v25 = vrot.slane %v19166_v6, 1  ;;  %v9546_v37 = vld [vmem:[%s18333_s3 + $0xd90] sm:$0xff]  ;;  %v17455_v0 = vld [vmem:[%s18333_s3 + $0xda0] sm:$0xff]  ;;  %v17480_v10 = vld [vmem:[%s18333_s3 + $0xca8] sm:$0xff] }
 0x4d5   : > { %v5403_v1 = vmax.f32 %v19164_v15, %v19165_v56  ;;  %v6313_v39 = vmax.f32 %v6311_v4, %v6312_v35  ;;  %v6486_v34 = vmax.f32 %v6484_v38, %v6485_v50  ;;  %v7983_v51 = vsel %vm6655_vm8, %v6040_v11, %v7982_v30  ;;  %v17442_v49 = vld [vmem:[%s18333_s3 + $0xc10] sm:$0xff]  ;;  %v17470_v38 = vld [vmem:[%s18333_s3 + $0xd28] sm:$0xff]  ;;  %v17475_v28 = vld [vmem:[%s18333_s3 + $0xca0] sm:$0xff] }
 0x4d6   : > { %v6537_v3 = vmax.f32 %v6535_v21, %v6536_v32  ;;  %v7984_v40 = vsel %vm6657_vm9, %v6264_v19, %v7983_v51  ;;  %v19168_v55 = vrot.slane %v19167_v26, 2  ;;  %v6072_v43 = vrot.slane %v19169_v36, 2  ;;  %v17486_v48 = vld [vmem:[%s18333_s3 + $0xc20] sm:$0xff]  ;;  %v17491_v62 = vld [vmem:[%s18333_s3 + $0xc28] sm:$0xff]  ;;  %v17496_v35 = vld [vmem:[%s18333_s3 + $0xdb0] sm:$0xff] }
 0x4d7   : > { %v8399_v18 = vsel %vm6657_vm9, %v6313_v39, %v8398_v17  ;;  %v6487_v12 = vrot.slane %v6486_v34, 1  ;;  %v5627_v31 = vmax.f32 %v19166_v6, %v5626_v25  ;;  %v19171_v14 = vrot.slane %v19170_v42, 4  ;;  %v17501_v19 = vld [vmem:[%s18333_s3 + $0xdb8] sm:$0xff]  ;;  %v17508_v30 = vld [vmem:[%s18333_s3 + $0xd30] sm:$0xff]  ;;  %v17538_v51 = vld [vmem:[%s18333_s3 + $0xdc0] sm:$0xff] }
 0x4d8   : > { %v5849_v27 = vmax.f32 %v19167_v26, %v19168_v55  ;;  %v8400_v44 = vsel %vm6659_vm10, %v6537_v3, %v8399_v18  ;;  %v6073_v5 = vmax.f32 %v19169_v36, %v6072_v43  ;;  %v19173_v60 = vcombine.high %v19172_v22, %v19172_v22  ;;  %v17513_v15 = vld [vmem:[%s18333_s3 + $0xd38] sm:$0xff]  ;;  %v17518_v56 = vld [vmem:[%s18333_s3 + $0xcb0] sm:$0xff]  ;;  %v17543_v6 = vld [vmem:[%s18333_s3 + $0xdc8] sm:$0xff] }
 0x4d9   : > { %v6295_v9 = vmax.f32 %v19170_v42, %v19171_v14  ;;  %8467 = vmatprep.mubr.f32.mxu1 %v8400_v44  ;;  %v6488_v57 = vmax.f32 %v6486_v34, %v6487_v12  ;;  %v8258_v4 = vsel %vm6647_vm4, %v19175_v41, %v19174_v63  ;;  %v10753_v24 = vpack.c.bf16 %v9547_v52, %v9546_v37  ;;  %v17528_v39 = vld [vmem:[%s18333_s3 + $0xc30] sm:$0xff]  ;;  %v17533_v34 = vld [vmem:[%s18333_s3 + $0xc38] sm:$0xff]  ;;  %v17551_v26 = vld [vmem:[%s18333_s3 + $0xd40] sm:$0xff] }
 0x4da   : > { %v5850_v58 = vrot.slane %v5849_v27, 1  ;;  %v6517_v11 = vsel %vm4773_vm3, %v19173_v60, -inf  ;;  %v6074_v21 = vrot.slane %v6073_v5, 1  ;;  %v8259_v17 = vsel %vm6649_vm5, %v5403_v1, %v8258_v4  ;;  %v17523_v1 = vld [vmem:[%s18333_s3 + $0xcb8] sm:$0xff]  ;;  %v17556_v55 = vld [vmem:[%s18333_s3 + $0xd48] sm:$0xff]  ;;  %v19176_v43 = vld [vmem:[#allocation51_spill] sm:$0xff] }
 0x4db   : > { %v6296_v45 = vrot.slane %v6295_v9, 2  ;;  %v6518_v47 = vrot.slane %v6517_v11, 4  ;;  %v7985_v50 = vsel %vm6659_vm10, %v6488_v57, %v7984_v40  ;;  %v8260_v32 = vsel %vm6651_vm6, %v5627_v31, %v8259_v17  ;;  %10754 = vmatprep.subr.bf16.mxu1 %v10753_v24  ;;  %v17566_v36 = vld [vmem:[%s18333_s3 + $0xcc8] sm:$0xff]  ;;  %v17579_v14 = vld [vmem:[%s18333_s3 + $0xc40] sm:$0xff]  ;;  %v17589_v13 = vld [vmem:[%s18333_s3 + $0xdd0] sm:$0xff] }
 0x4dc   : > { %v5851_v59 = vmax.f32 %v5849_v27, %v5850_v58  ;;  %8060 = vmatmul.mubr.f32.vlgmr.msra.gmra.mrb[74].mxu0 %v7985_v50  ;;  %v6075_v25 = vmax.f32 %v6073_v5, %v6074_v21  ;;  %v10755_v40 = vpack.c.bf16 %v17421_v53, %v17416_v46  ;;  %v17561_v27 = vld [vmem:[%s18333_s3 + $0xcc0] sm:$0xff]  ;;  %v5857_v37 = vrot.slane %v19176_v43, 1  ;;  %v17594_v8 = vld [vmem:[%s18333_s3 + $0xdd8] sm:$0xff]  ;;  %v17616_v5 = vld [vmem:[%s18333_s3 + $0xcd0] sm:$0xff] }
 0x4dd   : > { %v6297_v33 = vmax.f32 %v6295_v9, %v6296_v45  ;;  %v6519_v23 = vmax.f32 %v6517_v11, %v6518_v47  ;;  %10720 = vmatpush3.bf16.msra.mxu0 %v10719_v61  ;;  %v10721_v31 = vpack.c.bf16 %v17437_v20, %v17432_v7  ;;  %v10723_v42 = vpack.c.bf16 %v17447_v2, %v17442_v49  ;;  %v17584_v9 = vld [vmem:[%s18333_s3 + $0xc48] sm:$0xff]  ;;  %v17599_v61 = vld [vmem:[%s18333_s3 + $0xd50] sm:$0xff]  ;;  %v17604_v52 = vld [vmem:[%s18333_s3 + $0xd58] sm:$0xff] }
 0x4de   : > { %v8261_v3 = vsel %vm6653_vm7, %v5851_v59, %v8260_v32  ;;  %10756 = vmatpush3.bf16.msra.mxu1 %v10755_v40  ;;  %v10757_v53 = vpack.c.bf16 %v17460_v16, %v17455_v0  ;;  %v10759_v44 = vpack.c.bf16 %v17470_v38, %v17465_v54  ;;  %v10725_v58 = vpack.c.bf16 %v17480_v10, %v17475_v28  ;;  %v17621_v22 = vld [vmem:[%s18333_s3 + $0xcd8] sm:$0xff]  ;;  %v17626_v60 = vld [vmem:[%s18333_s3 + $0xc50] sm:$0xff]  ;;  %v17636_v7 = vld [vmem:[%s18333_s3 + $0xde0] sm:$0xff] }
 0x4df   : > { %v6298_v18 = vrot.slane %v6297_v33, 1  ;;  %v6520_v12 = vrot.slane %v6519_v23, 2  ;;  %v8262_v46 = vsel %vm6655_vm8, %v6075_v25, %v8261_v3  ;;  %v17631_v11 = vld [vmem:[%s18333_s3 + $0xc58] sm:$0xff]  ;;  %v17641_v20 = vld [vmem:[%s18333_s3 + $0xde8] sm:$0xff]  ;;  %10722 = vmatprep.subr.bf16.mxu0 %v10721_v31  ;;  %v10727_v57 = vpack.c.bf16 %v17491_v62, %v17486_v48  ;;  %v17650_v47 = vld [vmem:[%s18333_s3 + $0xd60] sm:$0xff] }
 0x4e0   : > { %v10761_v45 = vpack.c.bf16 %v17501_v19, %v17496_v35  ;;  %v17655_v63 = vld [vmem:[%s18333_s3 + $0xd68] sm:$0xff]  ;;  %v17660_v41 = vld [vmem:[%s18333_s3 + $0xce0] sm:$0xff]  ;;  %10758 = vmatprep.subr.bf16.mxu1 %v10757_v53  ;;  %v10763_v16 = vpack.c.bf16 %v17513_v15, %v17508_v30  ;;  %v10729_v54 = vpack.c.bf16 %v17523_v1, %v17518_v56  ;;  %v10731_v38 = vpack.c.bf16 %v17533_v34, %v17528_v39  ;;  %v17688_v59 = vld [vmem:[%s18333_s3 + $0xdf0] sm:$0xff] }
 0x4e1   : > { %v6299_v49 = vmax.f32 %v6297_v33, %v6298_v18  ;;  %v6521_v2 = vmax.f32 %v6519_v23, %v6520_v12  ;;  %v17665_v4 = vld [vmem:[%s18333_s3 + $0xce8] sm:$0xff]  ;;  %v17670_v0 = vld [vmem:[%s18333_s3 + $0xc60] sm:$0xff]  ;;  %v10765_v28 = vpack.c.bf16 %v17543_v6, %v17538_v51  ;;  %v17693_v21 = vld [vmem:[%s18333_s3 + $0xdf8] sm:$0xff]  ;;  %10724 = vmatpush3.bf16.msra.mxu0 %v10723_v42  ;;  %v10767_v48 = vpack.c.bf16 %v17556_v55, %v17551_v26 }
 0x4e2   : > { %v17683_v10 = vld [vmem:[%s18333_s3 + $0xc68] sm:$0xff]  ;;  %v10733_v62 = vpack.c.bf16 %v17566_v36, %v17561_v27  ;;  %v17703_v35 = vld [vmem:[%s18333_s3 + $0xd70] sm:$0xff]  ;;  %v17708_v19 = vld [vmem:[%s18333_s3 + $0xd78] sm:$0xff]  ;;  %10760 = vmatpush3.bf16.msra.mxu1 %v10759_v44  ;;  %10726 = vmatprep.subr.bf16.mxu0 %v10725_v58  ;;  %v10735_v33 = vpack.c.bf16 %v17584_v9, %v17579_v14  ;;  %v10769_v23 = vpack.c.bf16 %v17594_v8, %v17589_v13 }
 0x4e3   : > { %v6522_v17 = vrot.slane %v6521_v2, 1  ;;  %v8263_v24 = vsel %vm6657_vm9, %v6299_v49, %v8262_v46  ;;  %v17713_v50 = vld [vmem:[%s18333_s3 + $0xcf0] sm:$0xff]  ;;  %v10771_v32 = vpack.c.bf16 %v17604_v52, %v17599_v61  ;;  %v17724_v30 = vld [vmem:[%s18333_s3 + $0xcf8] sm:$0xff]  ;;  %v19177_v1 = vld [vmem:[#allocation211_spill] sm:$0xff]  ;;  %10762 = vmatprep.subr.bf16.mxu1 %v10761_v45  ;;  %v10737_v51 = vpack.c.bf16 %v17621_v22, %v17616_v5 }
 0x4e4   : > { %v17729_v15 = vld [vmem:[%s18333_s3 + $0xc70] sm:$0xff]  ;;  %v17734_v56 = vld [vmem:[%s18333_s3 + $0xc78] sm:$0xff]  ;;  %v6303_v39 = vrot.slane %v19177_v1, 2  ;;  %v10739_v6 = vpack.c.bf16 %v17631_v11, %v17626_v60  ;;  %v10773_v25 = vpack.c.bf16 %v17641_v20, %v17636_v7  ;;  %v10775_v3 = vpack.c.bf16 %v17655_v63, %v17650_v47  ;;  %v17754_v27 = vld [vmem:[%s18333_s3 + $0xf80] sm:$0xff] }
 0x4e5   : > { %v6523_v34 = vmax.f32 %v6521_v2, %v6522_v17  ;;  %v10741_v40 = vpack.c.bf16 %v17665_v4, %v17660_v41  ;;  %v10743_v26 = vpack.c.bf16 %v17683_v10, %v17670_v0  ;;  %v10777_v55 = vpack.c.bf16 %v17693_v21, %v17688_v59  ;;  %v17759_v36 = vld [vmem:[%s18333_s3 + $0xf88] sm:$0xff]  ;;  %10728 = vmatpush3.bf16.msra.mxu0 %v10727_v57  ;;  %v17771_v13 = vld [vmem:[%s18333_s3 + $0xf00] sm:$0xff]  ;;  %v19178_v46 = vld [vmem:[#allocation141_spill] sm:$0xff]  ;;  %v17789_v57 = vpop.f32.mrb[64].mxu1 }
 0x4e6   : > { %v17776_v8 = vld [vmem:[%s18333_s3 + $0xf08] sm:$0xff]  ;;  %10764 = vmatpush3.bf16.msra.mxu1 %v10763_v16  ;;  %v19179_v53 = vrot.slane %v19178_v46, 1  ;;  %v5858_v58 = vmax.f32 %v19176_v43, %v5857_v37  ;;  %v19180_v5 = vld [vmem:[#allocation191_spill] sm:$0xff]  ;;  %v6524_v2 = vsel %vm4773_vm3, %v19151_v29, -inf  ;;  %10730 = vmatprep.subr.bf16.mxu0 %v10729_v54  ;;  %v6304_v45 = vmax.f32 %v19177_v1, %v6303_v39  ;;  %v17797_v37 = vpop.f32.mrb[65].mxu1  ;;  %v19190_v31 = vld [vmem:[#allocation142_spill] sm:$0xff] }
 0x4e7   : > { %v8264_v18 = vsel %vm6659_vm10, %v6523_v34, %v8263_v24  ;;  %v19181_v22 = vrot.slane %v19180_v5, 2  ;;  %10766 = vmatprep.subr.bf16.mxu1 %v10765_v28  ;;  %v6525_v16 = vrot.slane %v6524_v2, 4  ;;  %v19182_v17 = vld [vmem:[#allocation39_spill] sm:$0xff]  ;;  %v19183_v24 = vld [vmem:[#allocation78_spill] sm:$0xff]  ;;  %v19185_v28 = vld [vmem:[#allocation40_spill] sm:$0xff]  ;;  %v19191_v12 = vrot.slane %v19190_v31, 2 }
 0x4e8   : > { %8331 = vmatprep.mubr.f32.mxu0 %v8264_v18  ;;  %v5634_v44 = vmax.f32 %v19178_v46, %v19179_v53  ;;  %v8387_v34 = vsel %vm6647_vm4, %v19183_v24, %v19182_v17  ;;  %v19184_v46 = vld [vmem:[#allocation111_spill] sm:$0xff]  ;;  %v19186_v53 = vrot.slane %v19185_v28, 1  ;;  %v6305_v39 = vrot.slane %v6304_v45, 1  ;;  %v19187_v17 = vld [vmem:[#allocation76_spill] sm:$0xff]  ;;  %v19211_v0 = vld [vmem:[#allocation149_spill] sm:$0xff] }
 0x4e9   : > { %v6080_v49 = vmax.f32 %v19180_v5, %v19181_v22  ;;  %v8388_v29 = vsel %vm6649_vm5, %v19184_v46, %v8387_v34  ;;  %10732 = vmatpush3.bf16.msra.mxu0 %v10731_v38  ;;  %v6526_v5 = vmax.f32 %v6524_v2, %v6525_v16  ;;  %v19188_v24 = vrot.slane %v19187_v17, 1  ;;  %v19189_v46 = vld [vmem:[#allocation115_spill] sm:$0xff]  ;;  %v19192_v16 = vld [vmem:[#allocation109_spill] sm:$0xff]  ;;  %v9577_v47 = vld [vmem:[%s18333_s3 + $0xe88] sm:$0xff] }
 0x4ea   : > { %v4997_v1 = vmax.f32 %v19185_v28, %v19186_v53  ;;  %v8389_v22 = vsel %vm6651_vm6, %v5634_v44, %v8388_v29  ;;  %10768 = vmatpush3.bf16.msra.mxu1 %v10767_v48  ;;  %10734 = vmatprep.subr.bf16.mxu0 %v10733_v62  ;;  %v5444_v54 = vrot.slane %v19189_v46, 1  ;;  %v5667_v28 = vmax.f32 %v19190_v31, %v19191_v12  ;;  %v19193_v29 = vld [vmem:[#allocation194_spill] sm:$0xff]  ;;  %v17880_v59 = vld [vmem:[%s18333_s3 + $0xe00] sm:$0xff]  ;;  %v17885_v21 = vld [vmem:[%s18333_s3 + $0xe08] sm:$0xff] }
 0x4eb   : > { %v6081_v18 = vrot.slane %v6080_v49, 1  ;;  %v5221_v42 = vmax.f32 %v19187_v17, %v19188_v24  ;;  %v8390_v34 = vsel %vm6653_vm7, %v5858_v58, %v8389_v22  ;;  %10770 = vmatprep.subr.bf16.mxu1 %v10769_v23  ;;  %v6306_v38 = vmax.f32 %v6304_v45, %v6305_v39  ;;  %v19197_v39 = vld [vmem:[#allocation214_spill] sm:$0xff] }
 0x4ec   : > { %v6527_v2 = vrot.slane %v6526_v5, 2  ;;  %v5890_v44 = vrot.slane %v19192_v16, 2  ;;  %v19194_v53 = vrot.slane %v19193_v29, 4  ;;  %v5445_v62 = vmax.f32 %v19189_v46, %v5444_v54 }
 0x4ed   : > { %v6082_v43 = vmax.f32 %v6080_v49, %v6081_v18  ;;  %v5668_v58 = vrot.slane %v5667_v28, 1  ;;  %v19195_v49 = vld [vmem:[#allocation205_spill] sm:$0xff]  ;;  %10736 = vmatpush3.bf16.msra.mxu0 %v10735_v33  ;;  %v19198_v24 = vcombine.high %v19197_v39, %v19197_v39  ;;  %v8666_v14 = vsel %vm6647_vm4, %v5221_v42, %v4997_v1 }
 0x4ee   : > { %v6113_v17 = vmax.f32 %v19193_v29, %v19194_v53  ;;  %v19196_v18 = vcombine.high %v19195_v49, %v19195_v49  ;;  %v6528_v23 = vmax.f32 %v6526_v5, %v6527_v2  ;;  %v5891_v31 = vmax.f32 %v19192_v16, %v5890_v44  ;;  %10772 = vmatpush3.bf16.msra.mxu1 %v10771_v32  ;;  %v19199_v32 = vld [vmem:[#allocation179_spill] sm:$0xff]  ;;  %v19202_v29 = vld [vmem:[#allocation208_spill] sm:$0xff] }
 0x4ef   : > { %v8391_v48 = vsel %vm6655_vm8, %v6082_v43, %v8390_v34  ;;  %10738 = vmatprep.subr.bf16.mxu0 %v10737_v51  ;;  %v5669_v43 = vmax.f32 %v5667_v28, %v5668_v58  ;;  %v6559_v34 = vsel %vm4773_vm3, %v19198_v24, -inf  ;;  %10774 = vmatprep.subr.bf16.mxu1 %v10773_v25  ;;  %v8667_v52 = vsel %vm6649_vm5, %v5445_v62, %v8666_v14  ;;  %v19206_v58 = vld [vmem:[#allocation36_spill] sm:$0xff] }
 0x4f0   : > { %v6335_v22 = vsel %vm4773_vm3, %v19196_v18, -inf  ;;  %v8392_v12 = vsel %vm6657_vm9, %v6306_v38, %v8391_v48  ;;  %v6114_v45 = vrot.slane %v6113_v17, 2  ;;  %v6529_v9 = vrot.slane %v6528_v23, 1  ;;  %v19201_v38 = vld [vmem:[#allocation197_spill] sm:$0xff]  ;;  %v19207_v49 = vld [vmem:[#allocation72_spill] sm:$0xff] }
 0x4f1   : > { %v6336_v54 = vrot.slane %v6335_v22, 4  ;;  %v5892_v33 = vrot.slane %v5891_v31, 1  ;;  %v6560_v46 = vrot.slane %v6559_v34, 4  ;;  %v19200_v51 = vrot.slane %v19199_v32, 1  ;;  %10740 = vmatpush3.bf16.msra.mxu0 %v10739_v6  ;;  %v9576_v6 = vld [vmem:[%s18333_s3 + $0xe80] sm:$0xff] }
 0x4f2   : > { %v6115_v5 = vmax.f32 %v6113_v17, %v6114_v45  ;;  %v6067_v2 = vrot.slane %v19201_v38, 1  ;;  %v6530_v42 = vmax.f32 %v6528_v23, %v6529_v9  ;;  %10776 = vmatpush3.bf16.msra.mxu1 %v10775_v3  ;;  %10742 = vmatprep.subr.bf16.mxu0 %v10741_v40  ;;  %v8668_v16 = vsel %vm6651_vm6, %v5669_v43, %v8667_v52  ;;  %v19204_v17 = vld [vmem:[#allocation215_spill] sm:$0xff]  ;;  %v19208_v23 = vld [vmem:[#allocation108_spill] sm:$0xff] }
 0x4f3   : > { %v6337_v61 = vmax.f32 %v6335_v22, %v6336_v54  ;;  %v5844_v28 = vmax.f32 %v19199_v32, %v19200_v51  ;;  %v5893_v7 = vmax.f32 %v5891_v31, %v5892_v33  ;;  %v6561_v25 = vmax.f32 %v6559_v34, %v6560_v46  ;;  %10778 = vmatprep.subr.bf16.mxu1 %v10777_v55  ;;  %v19217_v51 = vld [vmem:[#allocation182_spill] sm:$0xff] }
 0x4f4   : > { %v6116_v20 = vrot.slane %v6115_v5, 1  ;;  %v6068_v44 = vmax.f32 %v19201_v38, %v6067_v2  ;;  %v19203_v60 = vrot.slane %v19202_v29, 2  ;;  %v8393_v63 = vsel %vm6659_vm10, %v6530_v42, %v8392_v12  ;;  %v19219_v2 = vld [vmem:[#allocation198_spill] sm:$0xff] }
 0x4f5   : > { %v6338_v1 = vrot.slane %v6337_v61, 2  ;;  %v6562_v4 = vrot.slane %v6561_v25, 2  ;;  %v8669_v3 = vsel %vm6653_vm7, %v5893_v7, %v8668_v16  ;;  %v19205_v48 = vrot.slane %v19204_v17, 4  ;;  %10744 = vmatpush3.bf16.msra.mxu0 %v10743_v26 }
 0x4f6   : > { %v6290_v11 = vmax.f32 %v19202_v29, %v19203_v60  ;;  %v6117_v41 = vmax.f32 %v6115_v5, %v6116_v20  ;;  %v8251_v18 = vsel %vm6647_vm4, %v19207_v49, %v19206_v58  ;;  %v10781_v31 = vpack.c.bf16 %v9577_v47, %v9576_v6  ;;  %v9611_v29 = vld [vmem:[%s18333_s3 + $0xf98] sm:$0xff]  ;;  %v19223_v6 = vld [vmem:[#allocation148_spill] sm:$0xff]  ;;  %v17958_v49 = vld [vmem:[%s18333_s3 + $0xe10] sm:$0xff] }
 0x4f7   : > { %v6339_v40 = vmax.f32 %v6337_v61, %v6338_v1  ;;  %v6512_v62 = vmax.f32 %v19204_v17, %v19205_v48  ;;  %v6563_v55 = vmax.f32 %v6561_v25, %v6562_v4  ;;  %v8252_v12 = vsel %vm6649_vm5, %v19208_v23, %v8251_v18  ;;  %v19215_v61 = vld [vmem:[#allocation150_spill] sm:$0xff]  ;;  %v9578_v4 = vld [vmem:[%s18333_s3 + $0xe90] sm:$0xff] }
 0x4f8   : > { %v6291_v53 = vrot.slane %v6290_v11, 1  ;;  %v8670_v22 = vsel %vm6655_vm8, %v6117_v41, %v8669_v3  ;;  %v19209_v45 = vpack.c.bf16 %v17708_v19, %v17703_v35  ;;  %v19210_v43 = vpack.c.bf16 %v17724_v30, %v17713_v50  ;;  %v19213_v19 = vld [vmem:[#allocation107_spill] sm:$0xff]  ;;  %v9595_v41 = vld [vmem:[%s18333_s3 + $0xf18] sm:$0xff] }
 0x4f9   : > { %v6340_v54 = vrot.slane %v6339_v40, 1  ;;  %v6513_v34 = vrot.slane %v6512_v62, 2  ;;  %v8253_v10 = vsel %vm6651_vm6, %v19211_v0, %v8252_v12  ;;  %v19212_v26 = vpack.c.bf16 %v17759_v36, %v17754_v27  ;;  %v9579_v3 = vld [vmem:[%s18333_s3 + $0xe98] sm:$0xff]  ;;  %v9613_v12 = vld [vmem:[%s18333_s3 + $0xfa8] sm:$0xff]  ;;  %v9580_v0 = vld [vmem:[%s18333_s3 + $0xea0] sm:$0xff] }
 0x4fa   : > { %10780 = vmatpush3.bf16.msra.mxu1 %v19209_v45  ;;  %10746 = vmatprep.subr.bf16.mxu0 %v19210_v43  ;;  %v6292_v24 = vmax.f32 %v6290_v11, %v6291_v53  ;;  %v6564_v14 = vrot.slane %v6563_v55, 1  ;;  %v8254_v9 = vsel %vm6653_vm7, %v5844_v28, %v8253_v10  ;;  %v10783_v35 = vpack.c.bf16 %v17885_v21, %v17880_v59  ;;  %v19225_v48 = vld [vmem:[#allocation42_spill] sm:$0xff]  ;;  %v9612_v59 = vld [vmem:[%s18333_s3 + $0xfa0] sm:$0xff]  ;;  %v17980_v45 = vld [vmem:[%s18333_s3 + $0xf28] sm:$0xff] }
 0x4fb   : > { %10814 = vmatprep.subr.bf16.mxu1 %v19212_v26  ;;  %v19214_v33 = vrot.slane %v19213_v19, 1  ;;  %v6341_v30 = vmax.f32 %v6339_v40, %v6340_v54  ;;  %v6514_v5 = vmax.f32 %v6512_v62, %v6513_v34  ;;  %v8255_v46 = vsel %vm6655_vm8, %v6068_v44, %v8254_v9  ;;  %v9610_v44 = vld [vmem:[%s18333_s3 + $0xf90] sm:$0xff]  ;;  %v19226_v62 = vld [vmem:[#allocation80_spill] sm:$0xff]  ;;  %v17963_v18 = vld [vmem:[%s18333_s3 + $0xe18] sm:$0xff] }
 0x4fc   : > { %v5654_v52 = vrot.slane %v19215_v61, 1  ;;  %v19216_v27 = vpack.c.bf16 %v17734_v56, %v17729_v15  ;;  %v6565_v36 = vmax.f32 %v6563_v55, %v6564_v14  ;;  %v8256_v32 = vsel %vm6657_vm9, %v6292_v24, %v8255_v46  ;;  %v19221_v56 = vld [vmem:[#allocation209_spill] sm:$0xff]  ;;  %v9581_v10 = vld [vmem:[%s18333_s3 + $0xea8] sm:$0xff]  ;;  %v17995_v14 = vpop.f32.mrb[64].mxu0  ;;  %v9615_v46 = vld [vmem:[%s18333_s3 + $0xfb8] sm:$0xff] }
 0x4fd   : > { %v5431_v50 = vmax.f32 %v19213_v19, %v19214_v33  ;;  %8468 = vmatmul.mubr.f32.vlgmr.msra.gmra.mrb[76].mxu1 %v8393_v63  ;;  %v19218_v28 = vrot.slane %v19217_v51, 2  ;;  %v6100_v42 = vrot.slane %v19219_v2, 2  ;;  %v19220_v7 = vpack.c.bf16 %v17776_v8, %v17771_v13  ;;  %v9594_v13 = vld [vmem:[%s18333_s3 + $0xf10] sm:$0xff] }
 0x4fe   : > { %10748 = vmatpush3.bf16.msra.mxu0 %v19216_v27  ;;  %v8671_v20 = vsel %vm6657_vm9, %v6341_v30, %v8670_v22  ;;  %v6515_v25 = vrot.slane %v6514_v5, 1  ;;  %v5655_v15 = vmax.f32 %v19215_v61, %v5654_v52  ;;  %v19222_v1 = vrot.slane %v19221_v56, 4  ;;  %v17993_v26 = vld [vmem:[%s18333_s3 + $0xfb0] sm:$0xff]  ;;  %v18005_v30 = vld [vmem:[%s18333_s3 + $0xe20] sm:$0xff]  ;;  %v18023_v52 = vld [vmem:[%s18333_s3 + $0xf38] sm:$0xff]  ;;  %v9662_v27 = vpop.f32.mrb[65].mxu0 }
 0x4ff   : > { %v5877_v38 = vmax.f32 %v19217_v51, %v19218_v28  ;;  %10816 = vmatpush3.bf16.msra.mxu1 %v19220_v7  ;;  %10782 = vmatprep.subr.bf16.mxu0 %v10781_v31  ;;  %v8672_v8 = vsel %vm6659_vm10, %v6565_v36, %v8671_v20  ;;  %v6101_v11 = vmax.f32 %v19219_v2, %v6100_v42  ;;  %v17975_v31 = vld [vmem:[%s18333_s3 + $0xf20] sm:$0xff]  ;;  %v17999_v9 = vsel %vm4773_vm3, %v19223_v6, -inf  ;;  %v18018_v61 = vld [vmem:[%s18333_s3 + $0xf30] sm:$0xff]  ;;  %v18035_v2 = vld [vmem:[%s18333_s3 + $0xeb8] sm:$0xff] }
 0x500   : > { %v6323_v16 = vmax.f32 %v19221_v56, %v19222_v1  ;;  %v19224_v47 = vcombine.high %v19223_v6, %v19223_v6  ;;  %8739 = vmatprep.mubr.f32.mxu1 %v8672_v8  ;;  %v6516_v40 = vmax.f32 %v6514_v5, %v6515_v25  ;;  %v8530_v58 = vsel %vm6647_vm4, %v19226_v62, %v19225_v48  ;;  %v18010_v5 = vld [vmem:[%s18333_s3 + $0xe28] sm:$0xff]  ;;  %v18045_v42 = vld [vmem:[%s18333_s3 + $0xe38] sm:$0xff]  ;;  %v18053_v56 = vld [vmem:[%s18333_s3 + $0xfc0] sm:$0xff] }
 0x501   : > { %v5878_v60 = vrot.slane %v5877_v38, 1  ;;  %v6102_v55 = vrot.slane %v6101_v11, 1  ;;  %v8531_v22 = vsel %vm6649_vm5, %v5431_v50, %v8530_v58  ;;  %v10817_v23 = vpack.c.bf16 %v9611_v29, %v9610_v44  ;;  %v18058_v1 = vld [vmem:[%s18333_s3 + $0xfc8] sm:$0xff]  ;;  %v19231_v48 = vld [vmem:[#allocation210_spill] sm:$0xff] }
 0x502   : > { %v6545_v63 = vsel %vm4773_vm3, %v19224_v47, -inf  ;;  %v6324_v53 = vrot.slane %v6323_v16, 2  ;;  %v8257_v43 = vsel %vm6659_vm10, %v6516_v40, %v8256_v32  ;;  %v8532_v34 = vsel %vm6651_vm6, %v5655_v15, %v8531_v22  ;;  %v18068_v44 = vld [vmem:[%s18333_s3 + $0xf48] sm:$0xff]  ;;  %v18079_v47 = vld [vmem:[%s18333_s3 + $0xec0] sm:$0xff] }
 0x503   : > { %v6546_v17 = vrot.slane %v6545_v63, 4  ;;  %v5879_v21 = vmax.f32 %v5877_v38, %v5878_v60  ;;  %8332 = vmatmul.mubr.f32.vlgmr.msra.gmra.mrb[76].mxu0 %v8257_v43  ;;  %v6103_v19 = vmax.f32 %v6101_v11, %v6102_v55  ;;  %10818 = vmatprep.subr.bf16.mxu1 %v10817_v23  ;;  %v10819_v50 = vpack.c.bf16 %v9595_v41, %v9594_v13  ;;  %v18030_v38 = vld [vmem:[%s18333_s3 + $0xeb0] sm:$0xff]  ;;  %v19227_v29 = vld [vmem:[#allocation196_spill] sm:$0xff]  ;;  %v18089_v41 = vld [vmem:[%s18333_s3 + $0xe40] sm:$0xff] }
 0x504   : > { %v6325_v54 = vmax.f32 %v6323_v16, %v6324_v53  ;;  %10784 = vmatpush3.bf16.msra.mxu0 %v10783_v35  ;;  %v10785_v51 = vpack.c.bf16 %v9579_v3, %v9578_v4  ;;  %v10787_v28 = vpack.c.bf16 %v17963_v18, %v17958_v49  ;;  %v18040_v35 = vld [vmem:[%s18333_s3 + $0xe30] sm:$0xff]  ;;  %v10821_v20 = vpack.c.bf16 %v9613_v12, %v9612_v59  ;;  %v18063_v16 = vld [vmem:[%s18333_s3 + $0xf40] sm:$0xff]  ;;  %v18094_v4 = vld [vmem:[%s18333_s3 + $0xe48] sm:$0xff] }
 0x505   : > { %v6547_v24 = vmax.f32 %v6545_v63, %v6546_v17  ;;  %v8533_v33 = vsel %vm6653_vm7, %v5879_v21, %v8532_v34  ;;  %10820 = vmatpush3.bf16.msra.mxu1 %v10819_v50  ;;  %v10823_v25 = vpack.c.bf16 %v17980_v45, %v17975_v31  ;;  %v10789_v15 = vpack.c.bf16 %v9581_v10, %v9580_v0  ;;  %v18084_v63 = vld [vmem:[%s18333_s3 + $0xec8] sm:$0xff]  ;;  %v19229_v3 = vld [vmem:[#allocation199_spill] sm:$0xff]  ;;  %v18105_v18 = vld [vmem:[%s18333_s3 + $0xfd0] sm:$0xff] }
 0x506   : > { %v6326_v36 = vrot.slane %v6325_v54, 1  ;;  %v8534_v7 = vsel %vm6655_vm8, %v6103_v19, %v8533_v33  ;;  %v19228_v13 = vrot.slane %v19227_v29, 2  ;;  %10786 = vmatprep.subr.bf16.mxu0 %v10785_v51  ;;  %v10825_v6 = vpack.c.bf16 %v9615_v46, %v17993_v26  ;;  %v19230_v53 = vld [vmem:[#allocation212_spill] sm:$0xff]  ;;  %10822 = vmatprep.subr.bf16.mxu1 %v10821_v20  ;;  %v18110_v59 = vld [vmem:[%s18333_s3 + $0xfd8] sm:$0xff]  ;;  %v18115_v21 = vld [vmem:[%s18333_s3 + $0xf50] sm:$0xff] }
 0x507   : > { %v6548_v32 = vrot.slane %v6547_v24, 2  ;;  %v6107_v40 = vrot.slane %v19229_v3, 2  ;;  %v6317_v17 = vrot.slane %v19230_v53, 2  ;;  %v19232_v62 = vrot.slane %v19231_v48, 4  ;;  %v18125_v31 = vld [vmem:[%s18333_s3 + $0xf58] sm:$0xff]  ;;  %v18130_v45 = vld [vmem:[%s18333_s3 + $0xed0] sm:$0xff] }
 0x508   : > { %v18073_v8 = vmax.f32 %v19227_v29, %v19228_v13  ;;  %v6327_v60 = vmax.f32 %v6325_v54, %v6326_v36  ;;  %v6539_v49 = vrot.slane %v17999_v9, 4  ;;  %10788 = vmatpush3.bf16.msra.mxu0 %v10787_v28  ;;  %v10791_v23 = vpack.c.bf16 %v18010_v5, %v18005_v30  ;;  %v18135_v43 = vld [vmem:[%s18333_s3 + $0xed8] sm:$0xff]  ;;  %v18146_v0 = vld [vmem:[%s18333_s3 + $0xe50] sm:$0xff]  ;;  %v18156_v26 = vld [vmem:[%s18333_s3 + $0xfe0] sm:$0xff] }
 0x509   : > { %v6549_v11 = vmax.f32 %v6547_v24, %v6548_v32  ;;  %v6330_v58 = vmax.f32 %v19231_v48, %v19232_v62  ;;  %v10827_v12 = vpack.c.bf16 %v18023_v52, %v18018_v61  ;;  %10824 = vmatpush3.bf16.msra.mxu1 %v10823_v25  ;;  %10790 = vmatprep.subr.bf16.mxu0 %v10789_v15  ;;  %v18151_v10 = vld [vmem:[%s18333_s3 + $0xe58] sm:$0xff]  ;;  %v19233_v19 = vld [vmem:[#allocation183_spill] sm:$0xff]  ;;  %v18167_v5 = vld [vmem:[%s18333_s3 + $0xfe8] sm:$0xff]  ;;  %v6552_v25 = vsel %vm4773_vm3, %v19197_v39, -inf }
 0x50a   : > { %v8535_v22 = vsel %vm6657_vm9, %v6327_v60, %v8534_v7  ;;  %v10793_v54 = vpack.c.bf16 %v18035_v2, %v18030_v38  ;;  %v10795_v24 = vpack.c.bf16 %v18045_v42, %v18040_v35  ;;  %v9698_v34 = vadd.f32 %v17797_v37, %v17789_v57  ;;  %10826 = vmatprep.subr.bf16.mxu1 %v10825_v6  ;;  %v18172_v46 = vld [vmem:[%s18333_s3 + $0xf60] sm:$0xff]  ;;  %v18177_v61 = vld [vmem:[%s18333_s3 + $0xf68] sm:$0xff]  ;;  %v19237_v6 = vld [vmem:[#allocation81_spill] sm:$0xff] }
 0x50b   : > { %v6550_v55 = vrot.slane %v6549_v11, 1  ;;  %v5885_v33 = vrot.slane %v19233_v19, 1  ;;  %v10829_v57 = vpack.c.bf16 %v18058_v1, %v18053_v56  ;;  %v10831_v37 = vpack.c.bf16 %v18068_v44, %v18063_v16  ;;  %v18195_v2 = vld [vmem:[%s18333_s3 + $0xee0] sm:$0xff]  ;;  %v18200_v35 = vld [vmem:[%s18333_s3 + $0xee8] sm:$0xff] }
 0x50c   : > { %v9663_v30 = vadd.f32 %v9662_v27, %v17995_v14  ;;  %v10797_v52 = vpack.c.bf16 %v18084_v63, %v18079_v47  ;;  %v10799_v14 = vpack.c.bf16 %v18094_v4, %v18089_v41  ;;  %v10833_v27 = vpack.c.bf16 %v18110_v59, %v18105_v18  ;;  %10792 = vmatpush3.bf16.msra.mxu0 %v10791_v23  ;;  %v19234_v15 = vld [vmem:[#allocation143_spill] sm:$0xff]  ;;  %v19238_v4 = vld [vmem:[#allocation114_spill] sm:$0xff] }
 0x50d   : > { %v6551_v50 = vmax.f32 %v6549_v11, %v6550_v55  ;;  %v6331_v36 = vrot.slane %v6330_v58, 2  ;;  %v10835_v51 = vpack.c.bf16 %v18125_v31, %v18115_v21  ;;  %v10801_v28 = vpack.c.bf16 %v18135_v43, %v18130_v45  ;;  %10828 = vmatpush3.bf16.msra.mxu1 %v10827_v12  ;;  %10794 = vmatprep.subr.bf16.mxu0 %v10793_v54  ;;  %v19236_v11 = vld [vmem:[#allocation43_spill] sm:$0xff]  ;;  %v19241_v54 = vld [vmem:[#allocation37_spill] sm:$0xff] }
 0x50e   : > { %v18190_v38 = vadd.f32 %v9698_v34, %v9663_v30  ;;  %v10803_v42 = vpack.c.bf16 %v18151_v10, %v18146_v0  ;;  %v10837_v7 = vpack.c.bf16 %v18167_v5, %v18156_v26  ;;  %v10839_v20 = vpack.c.bf16 %v18177_v61, %v18172_v46  ;;  %10830 = vmatprep.subr.bf16.mxu1 %v10829_v57  ;;  %v19243_v10 = vld [vmem:[#allocation112_spill] sm:$0xff]  ;;  %v9607_v46 = vld [vmem:[%s18333_s3 + $0xf78] sm:$0xff]  ;;  %v9590_v61 = vld [vmem:[%s18333_s3 + $0xef0] sm:$0xff] }
 0x50f   : > { %v8536_v32 = vsel %vm6659_vm10, %v6551_v50, %v8535_v22  ;;  %v19235_v56 = vrot.slane %v19234_v15, 1  ;;  %v5886_v16 = vmax.f32 %v19233_v19, %v5885_v33  ;;  %v6108_v44 = vmax.f32 %v19229_v3, %v6107_v40  ;;  %v9572_v19 = vld [vmem:[%s18333_s3 + $0xe60] sm:$0xff]  ;;  %v9606_v33 = vld [vmem:[%s18333_s3 + $0xf70] sm:$0xff] }
 0x510   : > { %8603 = vmatprep.mubr.f32.mxu0 %v8536_v32  ;;  %v6553_v29 = vrot.slane %v6552_v25, 4  ;;  %v10805_v13 = vpack.c.bf16 %v18200_v35, %v18195_v2  ;;  %v6332_v60 = vmax.f32 %v6330_v58, %v6331_v36  ;;  %v8659_v47 = vsel %vm6647_vm4, %v19237_v6, %v19236_v11  ;;  %10796 = vmatpush3.bf16.msra.mxu0 %v10795_v24  ;;  %v19239_v58 = vld [vmem:[#allocation181_spill] sm:$0xff] }
 0x511   : > { %v5662_v1 = vmax.f32 %v19234_v15, %v19235_v56  ;;  %v6095_v39 = vrot.slane %v18073_v8, 1  ;;  %v6109_v63 = vrot.slane %v6108_v44, 1  ;;  %v8660_v48 = vsel %vm6649_vm5, %v19238_v4, %v8659_v47  ;;  %10832 = vmatpush3.bf16.msra.mxu1 %v10831_v37  ;;  %10798 = vmatprep.subr.bf16.mxu0 %v10797_v52  ;;  %v19244_v37 = vld [vmem:[#allocation151_spill] sm:$0xff]  ;;  %v9591_v52 = vld [vmem:[%s18333_s3 + $0xef8] sm:$0xff] }
 0x512   : > { %v6554_v41 = vmax.f32 %v6552_v25, %v6553_v29  ;;  %v6318_v3 = vmax.f32 %v19230_v53, %v6317_v17  ;;  %v6333_v40 = vrot.slane %v6332_v60, 1  ;;  %v19240_v18 = vrot.slane %v19239_v58, 1  ;;  %10834 = vmatprep.subr.bf16.mxu1 %v10833_v27  ;;  %v9622_v53 = vld [vmem:[%s18333_s3 + $0xff0] sm:$0xff]  ;;  %v9623_v17 = vld [vmem:[%s18333_s3 + $0xff8] sm:$0xff] }
 0x513   : > { %v8661_v62 = vsel %vm6651_vm6, %v5662_v1, %v8660_v48  ;;  %v6540_v21 = vmax.f32 %v17999_v9, %v6539_v49  ;;  %v6110_v55 = vmax.f32 %v6108_v44, %v6109_v63  ;;  %v6096_v45 = vmax.f32 %v18073_v8, %v6095_v39  ;;  %v19242_v9 = vld [vmem:[#allocation79_spill] sm:$0xff]  ;;  %v9573_v8 = vld [vmem:[%s18333_s3 + $0xe68] sm:$0xff]  ;;  %v9574_v25 = vld [vmem:[%s18333_s3 + $0xe70] sm:$0xff] }
 0x514   : > { %v5872_v59 = vmax.f32 %v19239_v58, %v19240_v18  ;;  %v6555_v22 = vrot.slane %v6554_v41, 2  ;;  %v8662_v23 = vsel %vm6653_vm7, %v5886_v16, %v8661_v62  ;;  %v6319_v12 = vrot.slane %v6318_v3, 1  ;;  %10800 = vmatpush3.bf16.msra.mxu0 %v10799_v14  ;;  %v9575_v15 = vld [vmem:[%s18333_s3 + $0xe78] sm:$0xff] }
 0x515   : > { %v6334_v31 = vmax.f32 %v6332_v60, %v6333_v40  ;;  %v6541_v43 = vrot.slane %v6540_v21, 2  ;;  %v8523_v49 = vsel %vm6647_vm4, %v19242_v9, %v19241_v54  ;;  %v8663_v34 = vsel %vm6655_vm8, %v6110_v55, %v8662_v23  ;;  %10836 = vmatpush3.bf16.msra.mxu1 %v10835_v51  ;;  %10802 = vmatprep.subr.bf16.mxu0 %v10801_v28 }
 0x516   : > { %v6556_v24 = vmax.f32 %v6554_v41, %v6555_v22  ;;  %v6320_v0 = vmax.f32 %v6318_v3, %v6319_v12  ;;  %v8524_v26 = vsel %vm6649_vm5, %v19243_v10, %v8523_v49  ;;  %10838 = vmatprep.subr.bf16.mxu1 %v10837_v7  ;;  %v10841_v5 = vpack.c.bf16 %v9623_v17, %v9622_v53 }
 0x517   : > { %v8664_v50 = vsel %vm6657_vm9, %v6334_v31, %v8663_v34  ;;  %v6542_v57 = vmax.f32 %v6540_v21, %v6541_v43  ;;  %v8525_v30 = vsel %vm6651_vm6, %v19244_v37, %v8524_v26  ;;  %v10807_v51 = vpack.c.bf16 %v9573_v8, %v9572_v19 }
 0x518   : > { %v6557_v14 = vrot.slane %v6556_v24, 1  ;;  %v8526_v27 = vsel %vm6653_vm7, %v5872_v59, %v8525_v30  ;;  %10804 = vmatpush3.bf16.msra.mxu0 %v10803_v42  ;;  %v10843_v35 = vpack.c.bf16 %v9607_v46, %v9606_v33  ;;  %v10809_v7 = vpack.c.bf16 %v9591_v52, %v9590_v61 }
 0x519   : > { %v6543_v36 = vrot.slane %v6542_v57, 1  ;;  %v8527_v32 = vsel %vm6655_vm8, %v6096_v45, %v8526_v27  ;;  %10840 = vmatpush3.bf16.msra.mxu1 %v10839_v20  ;;  %10806 = vmatprep.subr.bf16.mxu0 %v10805_v13  ;;  %v10811_v16 = vpack.c.bf16 %v9575_v15, %v9574_v25  ;;  %v9766_v20 = vpop.f32.mrb[66].mxu1  ;;  %v9731_v13 = vpop.f32.mrb[66].mxu0 }
 0x51a   : > { %v6558_v28 = vmax.f32 %v6556_v24, %v6557_v14  ;;  %v8528_v2 = vsel %vm6657_vm9, %v6320_v0, %v8527_v32  ;;  %10842 = vmatprep.subr.bf16.mxu1 %v10841_v5  ;;  %v9767_v44 = vpop.f32.mrb[67].mxu1  ;;  %v9732_v60 = vpop.f32.mrb[67].mxu0 }
 0x51b   : > { %v6544_v56 = vmax.f32 %v6542_v57, %v6543_v36  ;;  %v9768_v29 = vadd.f32 %v9767_v44, %v9766_v20  ;;  %v9733_v11 = vadd.f32 %v9732_v60, %v9731_v13 }
 0x51c   : > { %v8665_v42 = vsel %vm6659_vm10, %v6558_v28, %v8664_v50  ;;  %10808 = vmatpush3.bf16.msra.mxu0 %v10807_v51 }
 0x51d   : > { %v8529_v1 = vsel %vm6659_vm10, %v6544_v56, %v8528_v2  ;;  %10844 = vmatpush3.bf16.msra.mxu1 %v10843_v35  ;;  %10810 = vmatprep.subr.bf16.mxu0 %v10809_v7  ;;  %v6977_v6 = vadd.f32 %v9733_v11, %v18190_v38  ;;  %v9624_v2 = vld [vmem:[%s18334_s4] ss:$0 sm:$0xff] }
 0x51f   : > { %v7113_v47 = vadd.f32 %v9768_v29, %v6977_v6 }
 0x520   : > { %10812 = vmatpush3.bf16.msra.mxu0 %v10811_v16  ;;  %8740 = vmatmul.mubr.f32.vlgmr.msra.gmra.mrb[78].mxu1 %v8665_v42 }
 0x523   : > { %8604 = vmatmul.mubr.f32.vlgmr.msra.gmra.mrb[78].mxu0 %v8529_v1 }
 0x52e   : > { %v9836_v39 = vpop.f32.mrb[68].mxu1 }
 0x52f   : > { %v9837_v63 = vpop.f32.mrb[69].mxu1 }
 0x530   : > { %v9838_v41 = vadd.f32 %v9837_v63, %v9836_v39 }
 0x53a   : > { %v9801_v4 = vpop.f32.mrb[68].mxu0 }
 0x53b   : > { %v9802_v48 = vpop.f32.mrb[69].mxu0 }
 0x53c   : > { %v9803_v3 = vadd.f32 %v9802_v48, %v9801_v4 }
 0x53e   : > { %v7249_v40 = vadd.f32 %v9803_v3, %v7113_v47 }
 0x540   : > { %v7385_v62 = vadd.f32 %v9838_v41, %v7249_v40 }
 0x557   : > { %v9906_v58 = vpop.f32.mrb[70].mxu1 }
 0x558   : > { %v9907_v18 = vpop.f32.mrb[71].mxu1 }
 0x559   : > { %v9908_v59 = vadd.f32 %v9907_v18, %v9906_v58 }
 0x562   : > { %v9871_v21 = vpop.f32.mrb[70].mxu0 }
 0x563   : > { %v9872_v55 = vpop.f32.mrb[71].mxu0 }
 0x564   : > { %v9873_v22 = vadd.f32 %v9872_v55, %v9871_v21 }
 0x566   : > { %v7521_v23 = vadd.f32 %v9873_v22, %v7385_v62 }
 0x568   : > { %v7657_v12 = vadd.f32 %v9908_v59, %v7521_v23 }
 0x57f   : > { %v9976_v53 = vpop.f32.mrb[72].mxu1 }
 0x580   : > { %v9977_v17 = vpop.f32.mrb[73].mxu1 }
 0x581   : > { %v9978_v38 = vadd.f32 %v9977_v17, %v9976_v53 }
 0x588   : > { %v9941_v31 = vpop.f32.mrb[72].mxu0 }
 0x589   : > { %v9942_v45 = vpop.f32.mrb[73].mxu0 }
 0x58a   : > { %v9943_v43 = vadd.f32 %v9942_v45, %v9941_v31 }
 0x58c   : > { %v7793_v54 = vadd.f32 %v9943_v43, %v7657_v12 }
 0x58e   : > { %v7929_v9 = vadd.f32 %v9978_v38, %v7793_v54 }
 0x5a5   : > { %v10046_v49 = vpop.f32.mrb[74].mxu1 }
 0x5a6   : > { %v10047_v24 = vpop.f32.mrb[75].mxu1 }
 0x5a7   : > { %v10048_v34 = vadd.f32 %v10047_v24, %v10046_v49 }
 0x5af   : > { %v10011_v0 = vpop.f32.mrb[74].mxu0 }
 0x5b0   : > { %v10012_v10 = vpop.f32.mrb[75].mxu0 }
 0x5b1   : > { %v10013_v26 = vadd.f32 %v10012_v10, %v10011_v0 }
 0x5b3   : > { %v8065_v19 = vadd.f32 %v10013_v26, %v7929_v9 }
 0x5b5   : > { %v8201_v8 = vadd.f32 %v10048_v34, %v8065_v19 }
 0x5d0   : > { %v10116_v33 = vpop.f32.mrb[76].mxu1 }
 0x5d1   : > { %v10117_v50 = vpop.f32.mrb[77].mxu1 }
 0x5d2   : > { %v10118_v57 = vadd.f32 %v10117_v50, %v10116_v33 }
 0x5d6   : > { %v10081_v37 = vpop.f32.mrb[76].mxu0 }
 0x5d7   : > { %v10082_v30 = vpop.f32.mrb[77].mxu0 }
 0x5d8   : > { %v10083_v5 = vadd.f32 %v10082_v30, %v10081_v37 }
 0x5da   : > { %v8337_v46 = vadd.f32 %v10083_v5, %v8201_v8 }
 0x5dc   : > { %v8473_v61 = vadd.f32 %v10118_v57, %v8337_v46 }
 0x5f3   : > { %v10186_v52 = vpop.f32.mrb[78].mxu1 }
 0x5f4   : > { %v10187_v14 = vpop.f32.mrb[79].mxu1 }
 0x5f5   : > { %v10188_v27 = vadd.f32 %v10187_v14, %v10186_v52 }
 0x5f6   : > { %v10151_v36 = vpop.f32.mrb[78].mxu0 }
 0x5f7   : > { %v10152_v32 = vpop.f32.mrb[79].mxu0 }
 0x5f8   : > { %v10153_v51 = vadd.f32 %v10152_v32, %v10151_v36 }
 0x5fa   : > { %v8609_v28 = vadd.f32 %v10153_v51, %v8473_v61 }
 0x5fc   : > { %v8745_v35 = vadd.f32 %v10188_v27, %v8609_v28 }
 0x5fe   : > { %v8753_v7 = vadd.f32 %v9624_v2, %v8745_v35 }
 0x600   : > { %8755 = vst.msk [vmem:[%s220_s13] sm:$0xff] %vm8754_vm11, %v8753_v7 }
 0x601   : > { %11164 = shalt.err (!%p11161_p3)
}
 0x602   : > { %s11165_s8 = scalar_lea.hbm %s18288_s16, 128  ;;  %s11169_s10 = scalar_lea.hbm %s18335_s5, 256 }
 0x603   : > { %p11166_p4 = scmp.ne.s32.totalorder %s18288_s16, %s11165_s8  ;;  %p11170_p9 = scmp.lt.u32.totalorder %s18288_s16, %s18335_s5 }
 0x604   : > { %p11171_p10 = scmp.lt.u32.totalorder %s11169_s10, %s11165_s8  ;;  %p11173_p12 = scmp.lt.u32.totalorder %s11165_s8, %s18288_s16 }
 0x605   : > { %p11167_p7 = pnand %p11166_p4, %p11286_p5 }
 0x606   : > { %p11172_p11 = por %p11171_p10, %p11170_p9 }
 0x607   : > { %p11168_p8 = pneg %p11167_p7 }
 0x608   : > { %p11174_p13 = por %p11173_p12, %p11172_p11 }
 0x60a   : > { %p11175_p0 = pnand %p11174_p13, %p11168_p8 }
 0x60c   : > { %11178 = shalt.err (!%p11175_p0)
}
 0x60d   : > { %11102 = dma.vmem_to_hbm [thread:$0]  (%p11286_p5), %s18290_s26, 128, %s18288_s16, %s8757_s23  }
 0x60e PF: > { %p11108_p1 = scmp.ge.s32.totalorder %s11213_s21, 2  ;;  %s8782_s12 = sand.u32 1, %s11201_s18  }
 0x60f   : > { %s8783_s13 = scalar_lea.sflag [#allocation3], %s8782_s12 }
 0x610   : > { %p11105_p2 = pnand %p11108_p1, %p11290_p6 }
 0x612   : > { %11196 = dma.done.wait (!%p11105_p2), %s8783_s13, 128  }
 0x613   : > { %11198 = vsyncadd (!%p11105_p2), %s8783_s13, 4294967168  ;;  %p15_p3 = scmp.ge.s32.totalorder %s11273_s24, 4   ;;  %s19245_s18 = smov %s11205_s19 }
 0x614   : > { %s19246_s19 = smov %s11209_s20  ;;  %s19247_s20 = smov %s11284_s27 }
 0x615   : > { %s19248_s21 = smov %s11273_s24  ;;  %17 = sbr.rel (!%p15_p3) target bundleno = 3 (0x3), region = 92 }
 0x61c   :  { %8788 = vsyncpa [#allocation3], 1 }
 0x61d   :  { %8790 = vsyncpa [#allocation3 + $0x1], 1 }

</bundles_post_ra>
